<compile_context>
chip_gen: v6e
topology: v6e:2x2x1
jax: 0.10.0
libtpu: 0.0.40
codegen_flags: <defaults>
</compile_context>

<pallas_src>
import math
from functools import partial

import jax
import jax.numpy as jnp
from jax.experimental import pallas as pl
from jax.experimental.pallas import tpu as pltpu


# ----------------------------- fused per-level kernel -----------------------------

def _fused_level_kernel(x_ref,
                        w1_ref, b1_ref,
                        w2b_ref, b2b_ref, w3b_ref, b3b_ref,
                        w2e_ref, b2e_ref, w3e_ref, b3e_ref,
                        t_ref, sb_ref, o_ref):
    # x_ref : (1, H, W, Cin) f32     un-padded NHWC tile (one batch element)
    # w1    : (9*Cin, c2+c3) bf16    fused im2col-packed first 3x3 of cv2[0] | cv3[0]
    # w2b/w2e: second 3x3 (9*c, c) bf16 ; w3b/w3e: final 1x1 (c, Cout) bf16 ; b*: (1, Cout) f32
    # t_ref : (1, K, E) bf16         L2-normalized text embeddings
    # sb_ref: (2,) f32 SMEM          [exp(logit_scale), bias]
    # o_ref : (1, H*W, 4*reg_max + K) f32   channels = [box logits | class logits]
    H = x_ref.shape[1]
    W = x_ref.shape[2]
    HW = H * W
    c_box = w2b_ref.shape[1]   # c2
    c_emb = w2e_ref.shape[1]   # c3

    def pad1(h):
        # zero-pad (H, W, C) -> (H+2, W+2, C) as a value (stays on-chip; no HBM traffic).
        c = h.shape[-1]
        zc = jnp.zeros((H, 1, c), h.dtype)
        h = jnp.concatenate([zc, h, zc], axis=1)
        zr = jnp.zeros((1, W + 2, c), h.dtype)
        return jnp.concatenate([zr, h, zr], axis=0)

    def im2col(xp):
        # (H+2, W+2, C) -> (H*W, 9*C); tap-major / channel-minor (matches weight packing).
        c = xp.shape[-1]
        taps = [xp[dy:dy + H, dx:dx + W, :].reshape(HW, c)
                for dy in range(3) for dx in range(3)]
        return jnp.concatenate(taps, axis=-1).astype(jnp.bfloat16)

    def mm_silu(slab_bf16, w_ref, b_ref):
        # single MXU matmul (bf16 in, f32 accumulate) + folded-BN bias + SiLU (f32)
        y = jnp.dot(slab_bf16, w_ref[...],
                    preferred_element_type=jnp.float32) + b_ref[...]
        return y * jax.nn.sigmoid(y)

    def conv1x1(h_f32, w_ref, b_ref):
        return jnp.dot(h_f32.astype(jnp.bfloat16), w_ref[...],
                       preferred_element_type=jnp.float32) + b_ref[...]

    # Stage 1: shared im2col slab, fused cv2[0]+cv3[0] matmul (one wide-N MXU call).
    p1 = im2col(pad1(x_ref[0]))                           # (HW, 9*Cin) bf16
    h_all = mm_silu(p1, w1_ref, b1_ref)                   # (HW, c2+c3) f32
    h_box = h_all[:, :c_box]
    h_emb = h_all[:, c_box:c_box + c_emb]

    # cv2: Conv3x3 -> Conv1x1  (distribution-focal box logits)
    hb = mm_silu(im2col(pad1(h_box.reshape(H, W, c_box))), w2b_ref, b2b_ref)
    box = conv1x1(hb, w3b_ref, b3b_ref)                   # (HW, 4*reg_max)

    # cv3: Conv3x3 -> Conv1x1  (pixel embeddings)
    he = mm_silu(im2col(pad1(h_emb.reshape(H, W, c_emb))), w2e_ref, b2e_ref)
    emb = conv1x1(he, w3e_ref, b3e_ref)                   # (HW, E)

    # cv4: ContrastiveHead(emb, text); text already L2-normalized in the wrapper.
    ss = jnp.sum(emb * emb, axis=-1, keepdims=True)
    en = emb * jax.lax.rsqrt(jnp.maximum(ss, 1e-24))      # == emb / max(||emb||, 1e-12)
    sim = jax.lax.dot_general(en.astype(jnp.bfloat16), t_ref[0],
                              (((1,), (1,)), ((), ())),
                              preferred_element_type=jnp.float32)   # (HW, K)
    cls = sim * sb_ref[0] + sb_ref[1]

    o_ref[0] = jnp.concatenate([box, cls], axis=-1).astype(o_ref.dtype)


def fused_level(x_nhwc, lvl, text_n, scale_bias):
    B, H, W, Cin = x_nhwc.shape
    HW = H * W
    K, E = text_n.shape[1], text_n.shape[2]
    no = lvl["w3_box"].shape[1] + K            # 4*reg_max + nc

    def const_spec(a):
        nd = a.ndim
        return pl.BlockSpec(a.shape, lambda b, _nd=nd: (0,) * _nd)

    w_args = [lvl["w1"], lvl["b1"],
              lvl["w2_box"], lvl["b2_box"], lvl["w3_box"], lvl["b3_box"],
              lvl["w2_emb"], lvl["b2_emb"], lvl["w3_emb"], lvl["b3_emb"]]
    in_specs = [pl.BlockSpec((1, H, W, Cin), lambda b: (b, 0, 0, 0))]
    in_specs += [const_spec(a) for a in w_args]
    in_specs += [pl.BlockSpec((1, K, E), lambda b: (b, 0, 0)),
                 pl.BlockSpec(memory_space=pltpu.MemorySpace.SMEM)]

    return pl.pallas_call(
        _fused_level_kernel,
        out_shape=jax.ShapeDtypeStruct((B, HW, no), jnp.float32),
        grid=(B,),
        in_specs=in_specs,
        out_specs=pl.BlockSpec((1, HW, no), lambda b: (b, 0, 0)),
        compiler_params=pltpu.CompilerParams(
            dimension_semantics=("parallel",)),            # v7x: shard batch over 2 TCs
    )(x_nhwc, *w_args, text_n, scale_bias)


# ----------------------------- decode (DFL + dist2bbox + sigmoid) -----------------------------

def _post_kernel(box_ref, cls_ref, anc_ref, str_ref, o_ref, *, reg_max):
    # box_ref: (1, 4*reg_max, A)  cls_ref: (1, nc, A)
    # anc_ref: (2, A)             str_ref: (1, A)     o_ref: (1, 4+nc, A)
    box = box_ref[0]
    cls = cls_ref[0]
    anc = anc_ref[...]
    strd = str_ref[...]
    proj = jax.lax.broadcasted_iota(jnp.float32, (reg_max, 1), 0)
    dists = []
    for j in range(4):                      # DFL: softmax over reg_max bins -> expectation
        chunk = box[j * reg_max:(j + 1) * reg_max, :]
        m = jnp.max(chunk, axis=0, keepdims=True)
        e = jnp.exp(chunk - m)
        p = e / jnp.sum(e, axis=0, keepdims=True)
        dists.append(jnp.sum(p * proj, axis=0, keepdims=True))
    dist = jnp.concatenate(dists, axis=0)   # (4, A)
    lt = dist[0:2, :]
    rb = dist[2:4, :]
    x1y1 = anc - lt
    x2y2 = anc + rb
    cxy = (x1y1 + x2y2) * 0.5
    wh = x2y2 - x1y1
    dbox = jnp.concatenate([cxy, wh], axis=0) * strd       # dist2bbox(xywh=True) * strides
    o_ref[0] = jnp.concatenate([dbox, jax.nn.sigmoid(cls)], axis=0).astype(o_ref.dtype)


def postprocess(box, cls, anchors, strides, *, nc, reg_max):
    B, _, A = box.shape
    return pl.pallas_call(
        partial(_post_kernel, reg_max=reg_max),
        out_shape=jax.ShapeDtypeStruct((B, 4 + nc, A), jnp.float32),
        grid=(B,),
        in_specs=[
            pl.BlockSpec((1, 4 * reg_max, A), lambda b: (b, 0, 0)),
            pl.BlockSpec((1, nc, A), lambda b: (b, 0, 0)),
            pl.BlockSpec((2, A), lambda b: (0, 0)),
            pl.BlockSpec((1, A), lambda b: (0, 0)),
        ],
        out_specs=pl.BlockSpec((1, 4 + nc, A), lambda b: (b, 0, 0)),
        compiler_params=pltpu.CompilerParams(dimension_semantics=("parallel",)),
    )(box, cls, anchors, strides)


def make_anchors(shapes_hw, strides, offset=0.5):
    aps, sts = [], []
    for (h, w), s in zip(shapes_hw, strides):
        sx = jnp.arange(w, dtype=jnp.float32) + offset
        sy = jnp.arange(h, dtype=jnp.float32) + offset
        syy, sxx = jnp.meshgrid(sy, sx, indexing="ij")
        aps.append(jnp.stack((sxx, syy), -1).reshape(-1, 2))
        sts.append(jnp.full((h * w, 1), float(s), jnp.float32))
    # transposed, like Detect.forward: anchors (2, A), strides (1, A)
    return jnp.concatenate(aps, 0).T, jnp.concatenate(sts, 0).T


# ----------------------------- parameter init -----------------------------

def init_params(key, nc, embed, ch, reg_max=16):
    c2 = max(16, ch[0] // 4, reg_max * 4)
    c3 = max(ch[0], min(nc, 100))
    bn_eps = 1e-3  # ultralytics Conv uses BatchNorm2d(eps=1e-3); folded into the conv

    def conv_bn_packed(k, cin, cout):
        # 3x3 conv + folded BN, im2col-packed to (9*cin, cout); bf16 for the MXU.
        w = jax.random.normal(k, (3, 3, cin, cout), jnp.float32) / math.sqrt(9 * cin)
        gamma = jnp.ones((cout,), jnp.float32)
        beta = jnp.zeros((cout,), jnp.float32)
        mean = jnp.zeros((cout,), jnp.float32)
        var = jnp.ones((cout,), jnp.float32)
        scale = gamma / jnp.sqrt(var + bn_eps)
        wp = (w * scale).reshape(9 * cin, cout).astype(jnp.bfloat16)
        b = (beta - mean * scale).reshape(1, cout)
        return wp, b

    def conv1x1_p(k, cin, cout):
        kw, kb = jax.random.split(k)
        w = (jax.random.normal(kw, (cin, cout), jnp.float32) / math.sqrt(cin)).astype(jnp.bfloat16)
        b = (jax.random.normal(kb, (cout,), jnp.float32) * 0.02).reshape(1, cout)
        return w, b

    levels = []
    for cin in ch:
        key, k1, k2, k3, k4, k5, k6 = jax.random.split(key, 7)
        # First 3x3 convs of cv2 and cv3 share the im2col slab -> fuse their weights
        # into one (9*cin, c2+c3) matrix so stage 1 is a single wide-N MXU matmul.
        w2a, b2a = conv_bn_packed(k1, cin, c2)
        w3a, b3a = conv_bn_packed(k4, cin, c3)
        w1 = jnp.concatenate([w2a, w3a], axis=1)             # (9*cin, c2+c3) bf16
        b1 = jnp.concatenate([b2a, b3a], axis=1)              # (1, c2+c3) f32
        w2_box, b2_box = conv_bn_packed(k2, c2, c2)
        w3_box, b3_box = conv1x1_p(k3, c2, 4 * reg_max)
        w2_emb, b2_emb = conv_bn_packed(k5, c3, c3)
        w3_emb, b3_emb = conv1x1_p(k6, c3, embed)
        # ContrastiveHead (with_bn=False): bias=-10.0, logit_scale=log(1/0.07)
        sb = jnp.array([math.exp(math.log(1.0 / 0.07)), -10.0], jnp.float32)
        levels.append(dict(w1=w1, b1=b1,
                           w2_box=w2_box, b2_box=b2_box, w3_box=w3_box, b3_box=b3_box,
                           w2_emb=w2_emb, b2_emb=b2_emb, w3_emb=w3_emb, b3_emb=b3_emb,
                           sb=sb))
    return levels


# ----------------------------- WorldDetect forward -----------------------------

def world_detect_forward(params, xs_nchw, text, strides_per_level, *, nc, reg_max=16):
    """Eval-mode (non-export) WorldDetect.forward: returns (y, x_list_nchw)."""
    B = xs_nchw[0].shape[0]
    no = nc + 4 * reg_max
    # Hoisted: text embeddings are shared by every pixel / level -> normalize once.
    tnorm = jnp.sqrt(jnp.sum(text * text, axis=-1, keepdims=True))
    text_n = (text / jnp.maximum(tnorm, 1e-12)).astype(jnp.bfloat16)

    x_out, feats, shapes_hw = [], [], []
    for i, x in enumerate(xs_nchw):
        xh = jnp.transpose(x, (0, 2, 3, 1))                    # NCHW -> NHWC (lane = channels)
        _, H, W, _ = xh.shape
        shapes_hw.append((H, W))
        feat = fused_level(xh, params[i], text_n, params[i]["sb"])   # (B, H*W, no)
        xi = jnp.transpose(feat.reshape(B, H, W, no), (0, 3, 1, 2))  # NCHW like torch x[i]
        x_out.append(xi)
        feats.append(xi.reshape(B, no, H * W))
    x_cat = jnp.concatenate(feats, axis=2)                     # (B, no, A)
    box_cat = x_cat[:, :reg_max * 4, :]
    cls_cat = x_cat[:, reg_max * 4:, :]
    anchors, stride_t = make_anchors(shapes_hw, strides_per_level)
    y = postprocess(box_cat, cls_cat, anchors, stride_t, nc=nc, reg_max=reg_max)
    return y, x_out


# ----------------------------- main -----------------------------

if __name__ == "__main__":
    B = 2
    nc = 8          # number of classes (kept small)
    embed = 32      # text embedding dim
    ch = (32, 64)   # channels of the two feature levels
    hw = [(16, 16), (8, 8)]
    reg_max = 16
    # TODO(synk): Detect.__init__ leaves self.stride = zeros (set by the model builder at
    # build time); synthetic non-zero strides are used so decoded boxes are non-trivial.
    strides_per_level = [8.0, 16.0]

    key = jax.random.PRNGKey(0)
    key, k_text, *k_feats = jax.random.split(key, 2 + len(ch))
    xs = [jax.random.normal(k_feats[i], (B, ch[i], hw[i][0], hw[i][1]), jnp.float32)
          for i in range(len(ch))]
    text = jax.random.normal(k_text, (B, nc, embed), jnp.float32)

    params = init_params(jax.random.PRNGKey(1), nc=nc, embed=embed, ch=ch, reg_max=reg_max)

    y, x_list = world_detect_forward(params, xs, text, strides_per_level,
                                     nc=nc, reg_max=reg_max)
    y = jax.block_until_ready(y)
    for xi in x_list:
        jax.block_until_ready(xi)

    A = sum(h * w for h, w in hw)
    assert y.shape == (B, 4 + nc, A), y.shape
    assert x_list[0].shape == (B, nc + 4 * reg_max, hw[0][0], hw[0][1])
    assert x_list[1].shape == (B, nc + 4 * reg_max, hw[1][0], hw[1][1])
    assert bool(jnp.all(jnp.isfinite(y)))
    print("KERNEL_OK")
</pallas_src>

<mosaic_0001>
module attributes {stable_mosaic.version = 11 : i64} {
  func.func @_fused_level_kernel(%arg0: i32, %arg1: memref<1x16x16x32xf32, #tpu.memory_space<vmem>>, %arg2: memref<288x96xbf16, #tpu.memory_space<vmem>>, %arg3: memref<1x96xf32, #tpu.memory_space<vmem>>, %arg4: memref<576x64xbf16, #tpu.memory_space<vmem>>, %arg5: memref<1x64xf32, #tpu.memory_space<vmem>>, %arg6: memref<64x64xbf16, #tpu.memory_space<vmem>>, %arg7: memref<1x64xf32, #tpu.memory_space<vmem>>, %arg8: memref<288x32xbf16, #tpu.memory_space<vmem>>, %arg9: memref<1x32xf32, #tpu.memory_space<vmem>>, %arg10: memref<32x32xbf16, #tpu.memory_space<vmem>>, %arg11: memref<1x32xf32, #tpu.memory_space<vmem>>, %arg12: memref<1x8x32xbf16, #tpu.memory_space<vmem>>, %arg13: memref<2xf32, #tpu.memory_space<smem>>, %arg14: memref<1x256x72xf32, #tpu.memory_space<vmem>>) attributes {dimension_semantics = [#tpu.dimension_semantics<parallel>], iteration_bounds = array<i64: 2>, scalar_prefetch = 0 : i64, scratch_operands = 0 : i64, tpu.core_type = #tpu.core_type<tc>, window_params = [{transform_indices = @transform_0, window_bounds = array<i64: 1, 16, 16, 32>}, {pipeline_mode = #tpu.pipeline_mode<synchronous>, transform_indices = @transform_1, window_bounds = array<i64: 288, 96>}, {pipeline_mode = #tpu.pipeline_mode<synchronous>, transform_indices = @transform_2, window_bounds = array<i64: 1, 96>}, {pipeline_mode = #tpu.pipeline_mode<synchronous>, transform_indices = @transform_3, window_bounds = array<i64: 576, 64>}, {pipeline_mode = #tpu.pipeline_mode<synchronous>, transform_indices = @transform_4, window_bounds = array<i64: 1, 64>}, {pipeline_mode = #tpu.pipeline_mode<synchronous>, transform_indices = @transform_5, window_bounds = array<i64: 64, 64>}, {pipeline_mode = #tpu.pipeline_mode<synchronous>, transform_indices = @transform_6, window_bounds = array<i64: 1, 64>}, {pipeline_mode = #tpu.pipeline_mode<synchronous>, transform_indices = @transform_7, window_bounds = array<i64: 288, 32>}, {pipeline_mode = #tpu.pipeline_mode<synchronous>, transform_indices = @transform_8, window_bounds = array<i64: 1, 32>}, {pipeline_mode = #tpu.pipeline_mode<synchronous>, transform_indices = @transform_9, window_bounds = array<i64: 32, 32>}, {pipeline_mode = #tpu.pipeline_mode<synchronous>, transform_indices = @transform_10, window_bounds = array<i64: 1, 32>}, {transform_indices = @transform_11, window_bounds = array<i64: 1, 8, 32>}, {transform_indices = @transform_12, window_bounds = array<i64: 2>}, {transform_indices = @transform_13, window_bounds = array<i64: 1, 256, 72>}]} {
    %c0 = arith.constant 0 : index
    %c0_0 = arith.constant 0 : index
    %c0_1 = arith.constant 0 : index
    %c0_2 = arith.constant 0 : index
    %0 = vector.load %arg1[%c0, %c0_0, %c0_1, %c0_2] : memref<1x16x16x32xf32, #tpu.memory_space<vmem>>, vector<1x16x16x32xf32>
    %1 = vector.shape_cast %0 : vector<1x16x16x32xf32> to vector<16x16x32xf32>
    %cst = arith.constant 0.000000e+00 : f32
    %2 = vector.broadcast %cst : f32 to vector<16x1x32xf32>
    %3 = tpu.concatenate %2, %1, %2 in 1 : vector<16x1x32xf32>, vector<16x16x32xf32>, vector<16x1x32xf32> -> vector<16x18x32xf32>
    %cst_3 = arith.constant 0.000000e+00 : f32
    %4 = vector.broadcast %cst_3 : f32 to vector<1x18x32xf32>
    %5 = tpu.concatenate %4, %3, %4 in 0 : vector<1x18x32xf32>, vector<16x18x32xf32>, vector<1x18x32xf32> -> vector<18x18x32xf32>
    %6 = vector.extract_strided_slice %5 {offsets = [0, 0, 0], sizes = [16, 16, 32], strides = [1, 1, 1]} : vector<18x18x32xf32> to vector<16x16x32xf32>
    %7 = vector.shape_cast %6 : vector<16x16x32xf32> to vector<256x32xf32>
    %8 = vector.extract_strided_slice %5 {offsets = [0, 1, 0], sizes = [16, 16, 32], strides = [1, 1, 1]} : vector<18x18x32xf32> to vector<16x16x32xf32>
    %9 = vector.shape_cast %8 : vector<16x16x32xf32> to vector<256x32xf32>
    %10 = vector.extract_strided_slice %5 {offsets = [0, 2, 0], sizes = [16, 16, 32], strides = [1, 1, 1]} : vector<18x18x32xf32> to vector<16x16x32xf32>
    %11 = vector.shape_cast %10 : vector<16x16x32xf32> to vector<256x32xf32>
    %12 = vector.extract_strided_slice %5 {offsets = [1, 0, 0], sizes = [16, 16, 32], strides = [1, 1, 1]} : vector<18x18x32xf32> to vector<16x16x32xf32>
    %13 = vector.shape_cast %12 : vector<16x16x32xf32> to vector<256x32xf32>
    %14 = vector.extract_strided_slice %5 {offsets = [1, 1, 0], sizes = [16, 16, 32], strides = [1, 1, 1]} : vector<18x18x32xf32> to vector<16x16x32xf32>
    %15 = vector.shape_cast %14 : vector<16x16x32xf32> to vector<256x32xf32>
    %16 = vector.extract_strided_slice %5 {offsets = [1, 2, 0], sizes = [16, 16, 32], strides = [1, 1, 1]} : vector<18x18x32xf32> to vector<16x16x32xf32>
    %17 = vector.shape_cast %16 : vector<16x16x32xf32> to vector<256x32xf32>
    %18 = vector.extract_strided_slice %5 {offsets = [2, 0, 0], sizes = [16, 16, 32], strides = [1, 1, 1]} : vector<18x18x32xf32> to vector<16x16x32xf32>
    %19 = vector.shape_cast %18 : vector<16x16x32xf32> to vector<256x32xf32>
    %20 = vector.extract_strided_slice %5 {offsets = [2, 1, 0], sizes = [16, 16, 32], strides = [1, 1, 1]} : vector<18x18x32xf32> to vector<16x16x32xf32>
    %21 = vector.shape_cast %20 : vector<16x16x32xf32> to vector<256x32xf32>
    %22 = vector.extract_strided_slice %5 {offsets = [2, 2, 0], sizes = [16, 16, 32], strides = [1, 1, 1]} : vector<18x18x32xf32> to vector<16x16x32xf32>
    %23 = vector.shape_cast %22 : vector<16x16x32xf32> to vector<256x32xf32>
    %24 = tpu.concatenate %7, %9, %11, %13, %15, %17, %19, %21, %23 in 1 : vector<256x32xf32>, vector<256x32xf32>, vector<256x32xf32>, vector<256x32xf32>, vector<256x32xf32>, vector<256x32xf32>, vector<256x32xf32>, vector<256x32xf32>, vector<256x32xf32> -> vector<256x288xf32>
    %25 = arith.truncf %24 : vector<256x288xf32> to vector<256x288xbf16>
    %c0_4 = arith.constant 0 : index
    %c0_5 = arith.constant 0 : index
    %26 = vector.load %arg2[%c0_4, %c0_5] : memref<288x96xbf16, #tpu.memory_space<vmem>>, vector<288x96xbf16>
    %cst_6 = arith.constant dense<0.000000e+00> : vector<256x96xf32>
    %27 = tpu.matmul %25, %26, %cst_6 {dimension_numbers = #tpu.dot_dimension_numbers<[1], [0], [0], [1], [0, 0, 1, 1], [], []>} : vector<256x288xbf16>, vector<288x96xbf16>, vector<256x96xf32> -> vector<256x96xf32>
    %c0_7 = arith.constant 0 : index
    %c0_8 = arith.constant 0 : index
    %28 = vector.load %arg3[%c0_7, %c0_8] : memref<1x96xf32, #tpu.memory_space<vmem>>, vector<1x96xf32>
    %29 = vector.broadcast %28 : vector<1x96xf32> to vector<256x96xf32>
    %30 = arith.addf %27, %29 : vector<256x96xf32>
    %31 = arith.negf %30 : vector<256x96xf32>
    %32 = math.exp %31 : vector<256x96xf32>
    %cst_9 = arith.constant 1.000000e+00 : f32
    %33 = vector.broadcast %cst_9 : f32 to vector<256x96xf32>
    %34 = arith.addf %33, %32 : vector<256x96xf32>
    %35 = arith.divf %33, %34 : vector<256x96xf32>
    %36 = arith.mulf %30, %35 : vector<256x96xf32>
    %37 = vector.extract_strided_slice %36 {offsets = [0, 0], sizes = [256, 64], strides = [1, 1]} : vector<256x96xf32> to vector<256x64xf32>
    %38 = vector.extract_strided_slice %36 {offsets = [0, 64], sizes = [256, 32], strides = [1, 1]} : vector<256x96xf32> to vector<256x32xf32>
    %39 = vector.shape_cast %37 : vector<256x64xf32> to vector<16x16x64xf32>
    %cst_10 = arith.constant 0.000000e+00 : f32
    %40 = vector.broadcast %cst_10 : f32 to vector<16x1x64xf32>
    %41 = tpu.concatenate %40, %39, %40 in 1 : vector<16x1x64xf32>, vector<16x16x64xf32>, vector<16x1x64xf32> -> vector<16x18x64xf32>
    %cst_11 = arith.constant 0.000000e+00 : f32
    %42 = vector.broadcast %cst_11 : f32 to vector<1x18x64xf32>
    %43 = tpu.concatenate %42, %41, %42 in 0 : vector<1x18x64xf32>, vector<16x18x64xf32>, vector<1x18x64xf32> -> vector<18x18x64xf32>
    %44 = vector.extract_strided_slice %43 {offsets = [0, 0, 0], sizes = [16, 16, 64], strides = [1, 1, 1]} : vector<18x18x64xf32> to vector<16x16x64xf32>
    %45 = vector.shape_cast %44 : vector<16x16x64xf32> to vector<256x64xf32>
    %46 = vector.extract_strided_slice %43 {offsets = [0, 1, 0], sizes = [16, 16, 64], strides = [1, 1, 1]} : vector<18x18x64xf32> to vector<16x16x64xf32>
    %47 = vector.shape_cast %46 : vector<16x16x64xf32> to vector<256x64xf32>
    %48 = vector.extract_strided_slice %43 {offsets = [0, 2, 0], sizes = [16, 16, 64], strides = [1, 1, 1]} : vector<18x18x64xf32> to vector<16x16x64xf32>
    %49 = vector.shape_cast %48 : vector<16x16x64xf32> to vector<256x64xf32>
    %50 = vector.extract_strided_slice %43 {offsets = [1, 0, 0], sizes = [16, 16, 64], strides = [1, 1, 1]} : vector<18x18x64xf32> to vector<16x16x64xf32>
    %51 = vector.shape_cast %50 : vector<16x16x64xf32> to vector<256x64xf32>
    %52 = vector.extract_strided_slice %43 {offsets = [1, 1, 0], sizes = [16, 16, 64], strides = [1, 1, 1]} : vector<18x18x64xf32> to vector<16x16x64xf32>
    %53 = vector.shape_cast %52 : vector<16x16x64xf32> to vector<256x64xf32>
    %54 = vector.extract_strided_slice %43 {offsets = [1, 2, 0], sizes = [16, 16, 64], strides = [1, 1, 1]} : vector<18x18x64xf32> to vector<16x16x64xf32>
    %55 = vector.shape_cast %54 : vector<16x16x64xf32> to vector<256x64xf32>
    %56 = vector.extract_strided_slice %43 {offsets = [2, 0, 0], sizes = [16, 16, 64], strides = [1, 1, 1]} : vector<18x18x64xf32> to vector<16x16x64xf32>
    %57 = vector.shape_cast %56 : vector<16x16x64xf32> to vector<256x64xf32>
    %58 = vector.extract_strided_slice %43 {offsets = [2, 1, 0], sizes = [16, 16, 64], strides = [1, 1, 1]} : vector<18x18x64xf32> to vector<16x16x64xf32>
    %59 = vector.shape_cast %58 : vector<16x16x64xf32> to vector<256x64xf32>
    %60 = vector.extract_strided_slice %43 {offsets = [2, 2, 0], sizes = [16, 16, 64], strides = [1, 1, 1]} : vector<18x18x64xf32> to vector<16x16x64xf32>
    %61 = vector.shape_cast %60 : vector<16x16x64xf32> to vector<256x64xf32>
    %62 = tpu.concatenate %45, %47, %49, %51, %53, %55, %57, %59, %61 in 1 : vector<256x64xf32>, vector<256x64xf32>, vector<256x64xf32>, vector<256x64xf32>, vector<256x64xf32>, vector<256x64xf32>, vector<256x64xf32>, vector<256x64xf32>, vector<256x64xf32> -> vector<256x576xf32>
    %63 = arith.truncf %62 : vector<256x576xf32> to vector<256x576xbf16>
    %c0_12 = arith.constant 0 : index
    %c0_13 = arith.constant 0 : index
    %64 = vector.load %arg4[%c0_12, %c0_13] : memref<576x64xbf16, #tpu.memory_space<vmem>>, vector<576x64xbf16>
    %cst_14 = arith.constant dense<0.000000e+00> : vector<256x64xf32>
    %65 = tpu.matmul %63, %64, %cst_14 {dimension_numbers = #tpu.dot_dimension_numbers<[1], [0], [0], [1], [0, 0, 1, 1], [], []>} : vector<256x576xbf16>, vector<576x64xbf16>, vector<256x64xf32> -> vector<256x64xf32>
    %c0_15 = arith.constant 0 : index
    %c0_16 = arith.constant 0 : index
    %66 = vector.load %arg5[%c0_15, %c0_16] : memref<1x64xf32, #tpu.memory_space<vmem>>, vector<1x64xf32>
    %67 = vector.broadcast %66 : vector<1x64xf32> to vector<256x64xf32>
    %68 = arith.addf %65, %67 : vector<256x64xf32>
    %69 = arith.negf %68 : vector<256x64xf32>
    %70 = math.exp %69 : vector<256x64xf32>
    %cst_17 = arith.constant 1.000000e+00 : f32
    %71 = vector.broadcast %cst_17 : f32 to vector<256x64xf32>
    %72 = arith.addf %71, %70 : vector<256x64xf32>
    %73 = arith.divf %71, %72 : vector<256x64xf32>
    %74 = arith.mulf %68, %73 : vector<256x64xf32>
    %75 = arith.truncf %74 : vector<256x64xf32> to vector<256x64xbf16>
    %c0_18 = arith.constant 0 : index
    %c0_19 = arith.constant 0 : index
    %76 = vector.load %arg6[%c0_18, %c0_19] : memref<64x64xbf16, #tpu.memory_space<vmem>>, vector<64x64xbf16>
    %cst_20 = arith.constant dense<0.000000e+00> : vector<256x64xf32>
    %77 = tpu.matmul %75, %76, %cst_20 {dimension_numbers = #tpu.dot_dimension_numbers<[1], [0], [0], [1], [0, 0, 1, 1], [], []>} : vector<256x64xbf16>, vector<64x64xbf16>, vector<256x64xf32> -> vector<256x64xf32>
    %c0_21 = arith.constant 0 : index
    %c0_22 = arith.constant 0 : index
    %78 = vector.load %arg7[%c0_21, %c0_22] : memref<1x64xf32, #tpu.memory_space<vmem>>, vector<1x64xf32>
    %79 = vector.broadcast %78 : vector<1x64xf32> to vector<256x64xf32>
    %80 = arith.addf %77, %79 : vector<256x64xf32>
    %81 = vector.shape_cast %38 : vector<256x32xf32> to vector<16x16x32xf32>
    %cst_23 = arith.constant 0.000000e+00 : f32
    %82 = vector.broadcast %cst_23 : f32 to vector<16x1x32xf32>
    %83 = tpu.concatenate %82, %81, %82 in 1 : vector<16x1x32xf32>, vector<16x16x32xf32>, vector<16x1x32xf32> -> vector<16x18x32xf32>
    %cst_24 = arith.constant 0.000000e+00 : f32
    %84 = vector.broadcast %cst_24 : f32 to vector<1x18x32xf32>
    %85 = tpu.concatenate %84, %83, %84 in 0 : vector<1x18x32xf32>, vector<16x18x32xf32>, vector<1x18x32xf32> -> vector<18x18x32xf32>
    %86 = vector.extract_strided_slice %85 {offsets = [0, 0, 0], sizes = [16, 16, 32], strides = [1, 1, 1]} : vector<18x18x32xf32> to vector<16x16x32xf32>
    %87 = vector.shape_cast %86 : vector<16x16x32xf32> to vector<256x32xf32>
    %88 = vector.extract_strided_slice %85 {offsets = [0, 1, 0], sizes = [16, 16, 32], strides = [1, 1, 1]} : vector<18x18x32xf32> to vector<16x16x32xf32>
    %89 = vector.shape_cast %88 : vector<16x16x32xf32> to vector<256x32xf32>
    %90 = vector.extract_strided_slice %85 {offsets = [0, 2, 0], sizes = [16, 16, 32], strides = [1, 1, 1]} : vector<18x18x32xf32> to vector<16x16x32xf32>
    %91 = vector.shape_cast %90 : vector<16x16x32xf32> to vector<256x32xf32>
    %92 = vector.extract_strided_slice %85 {offsets = [1, 0, 0], sizes = [16, 16, 32], strides = [1, 1, 1]} : vector<18x18x32xf32> to vector<16x16x32xf32>
    %93 = vector.shape_cast %92 : vector<16x16x32xf32> to vector<256x32xf32>
    %94 = vector.extract_strided_slice %85 {offsets = [1, 1, 0], sizes = [16, 16, 32], strides = [1, 1, 1]} : vector<18x18x32xf32> to vector<16x16x32xf32>
    %95 = vector.shape_cast %94 : vector<16x16x32xf32> to vector<256x32xf32>
    %96 = vector.extract_strided_slice %85 {offsets = [1, 2, 0], sizes = [16, 16, 32], strides = [1, 1, 1]} : vector<18x18x32xf32> to vector<16x16x32xf32>
    %97 = vector.shape_cast %96 : vector<16x16x32xf32> to vector<256x32xf32>
    %98 = vector.extract_strided_slice %85 {offsets = [2, 0, 0], sizes = [16, 16, 32], strides = [1, 1, 1]} : vector<18x18x32xf32> to vector<16x16x32xf32>
    %99 = vector.shape_cast %98 : vector<16x16x32xf32> to vector<256x32xf32>
    %100 = vector.extract_strided_slice %85 {offsets = [2, 1, 0], sizes = [16, 16, 32], strides = [1, 1, 1]} : vector<18x18x32xf32> to vector<16x16x32xf32>
    %101 = vector.shape_cast %100 : vector<16x16x32xf32> to vector<256x32xf32>
    %102 = vector.extract_strided_slice %85 {offsets = [2, 2, 0], sizes = [16, 16, 32], strides = [1, 1, 1]} : vector<18x18x32xf32> to vector<16x16x32xf32>
    %103 = vector.shape_cast %102 : vector<16x16x32xf32> to vector<256x32xf32>
    %104 = tpu.concatenate %87, %89, %91, %93, %95, %97, %99, %101, %103 in 1 : vector<256x32xf32>, vector<256x32xf32>, vector<256x32xf32>, vector<256x32xf32>, vector<256x32xf32>, vector<256x32xf32>, vector<256x32xf32>, vector<256x32xf32>, vector<256x32xf32> -> vector<256x288xf32>
    %105 = arith.truncf %104 : vector<256x288xf32> to vector<256x288xbf16>
    %c0_25 = arith.constant 0 : index
    %c0_26 = arith.constant 0 : index
    %106 = vector.load %arg8[%c0_25, %c0_26] : memref<288x32xbf16, #tpu.memory_space<vmem>>, vector<288x32xbf16>
    %cst_27 = arith.constant dense<0.000000e+00> : vector<256x32xf32>
    %107 = tpu.matmul %105, %106, %cst_27 {dimension_numbers = #tpu.dot_dimension_numbers<[1], [0], [0], [1], [0, 0, 1, 1], [], []>} : vector<256x288xbf16>, vector<288x32xbf16>, vector<256x32xf32> -> vector<256x32xf32>
    %c0_28 = arith.constant 0 : index
    %c0_29 = arith.constant 0 : index
    %108 = vector.load %arg9[%c0_28, %c0_29] : memref<1x32xf32, #tpu.memory_space<vmem>>, vector<1x32xf32>
    %109 = vector.broadcast %108 : vector<1x32xf32> to vector<256x32xf32>
    %110 = arith.addf %107, %109 : vector<256x32xf32>
    %111 = arith.negf %110 : vector<256x32xf32>
    %112 = math.exp %111 : vector<256x32xf32>
    %cst_30 = arith.constant 1.000000e+00 : f32
    %113 = vector.broadcast %cst_30 : f32 to vector<256x32xf32>
    %114 = arith.addf %113, %112 : vector<256x32xf32>
    %115 = arith.divf %113, %114 : vector<256x32xf32>
    %116 = arith.mulf %110, %115 : vector<256x32xf32>
    %117 = arith.truncf %116 : vector<256x32xf32> to vector<256x32xbf16>
    %c0_31 = arith.constant 0 : index
    %c0_32 = arith.constant 0 : index
    %118 = vector.load %arg10[%c0_31, %c0_32] : memref<32x32xbf16, #tpu.memory_space<vmem>>, vector<32x32xbf16>
    %cst_33 = arith.constant dense<0.000000e+00> : vector<256x32xf32>
    %119 = tpu.matmul %117, %118, %cst_33 {dimension_numbers = #tpu.dot_dimension_numbers<[1], [0], [0], [1], [0, 0, 1, 1], [], []>} : vector<256x32xbf16>, vector<32x32xbf16>, vector<256x32xf32> -> vector<256x32xf32>
    %c0_34 = arith.constant 0 : index
    %c0_35 = arith.constant 0 : index
    %120 = vector.load %arg11[%c0_34, %c0_35] : memref<1x32xf32, #tpu.memory_space<vmem>>, vector<1x32xf32>
    %121 = vector.broadcast %120 : vector<1x32xf32> to vector<256x32xf32>
    %122 = arith.addf %119, %121 : vector<256x32xf32>
    %123 = arith.mulf %122, %122 : vector<256x32xf32>
    %cst_36 = arith.constant dense<0.000000e+00> : vector<256xf32>
    %124 = vector.multi_reduction <add>, %123, %cst_36 [1] : vector<256x32xf32> to vector<256xf32>
    %125 = vector.shape_cast %124 : vector<256xf32> to vector<256x1xf32>
    %cst_37 = arith.constant 1.000000e-24 : f32
    %126 = vector.broadcast %cst_37 : f32 to vector<256x1xf32>
    %127 = arith.maximumf %125, %126 : vector<256x1xf32>
    %128 = math.rsqrt %127 : vector<256x1xf32>
    %129 = vector.broadcast %128 : vector<256x1xf32> to vector<256x32xf32>
    %130 = arith.mulf %122, %129 : vector<256x32xf32>
    %131 = arith.truncf %130 : vector<256x32xf32> to vector<256x32xbf16>
    %c0_38 = arith.constant 0 : index
    %c0_39 = arith.constant 0 : index
    %c0_40 = arith.constant 0 : index
    %132 = vector.load %arg12[%c0_38, %c0_39, %c0_40] : memref<1x8x32xbf16, #tpu.memory_space<vmem>>, vector<1x8x32xbf16>
    %133 = vector.shape_cast %132 : vector<1x8x32xbf16> to vector<8x32xbf16>
    %cst_41 = arith.constant dense<0.000000e+00> : vector<256x8xf32>
    %134 = tpu.matmul %131, %133, %cst_41 {dimension_numbers = #tpu.dot_dimension_numbers<[1], [1], [0], [0], [0, 0, 1, 0], [], []>} : vector<256x32xbf16>, vector<8x32xbf16>, vector<256x8xf32> -> vector<256x8xf32>
    %c0_42 = arith.constant 0 : index
    %135 = memref.load %arg13[%c0_42] : memref<2xf32, #tpu.memory_space<smem>>
    %136 = vector.broadcast %135 : f32 to vector<256x8xf32>
    %137 = arith.mulf %134, %136 : vector<256x8xf32>
    %c1 = arith.constant 1 : index
    %138 = memref.load %arg13[%c1] : memref<2xf32, #tpu.memory_space<smem>>
    %139 = vector.broadcast %138 : f32 to vector<256x8xf32>
    %140 = arith.addf %137, %139 : vector<256x8xf32>
    %141 = tpu.concatenate %80, %140 in 1 : vector<256x64xf32>, vector<256x8xf32> -> vector<256x72xf32>
    %c0_43 = arith.constant 0 : index
    %c0_44 = arith.constant 0 : index
    %c0_45 = arith.constant 0 : index
    %142 = vector.load %arg14[%c0_43, %c0_44, %c0_45] : memref<1x256x72xf32, #tpu.memory_space<vmem>>, vector<1x256x72xf32>
    %143 = vector.shape_cast %142 : vector<1x256x72xf32> to vector<256x72xf32>
    %144 = vector.shape_cast %141 : vector<256x72xf32> to vector<1x256x72xf32>
    tpu.vector_store %arg14[%c0_43, %c0_44, %c0_45], %144 {strides = array<i32>} : memref<1x256x72xf32, #tpu.memory_space<vmem>>, vector<1x256x72xf32>,
    return
  }
  func.func @transform_0(%arg0: i32) -> (i32, i32, i32, i32) {
    %c0_i32 = arith.constant 0 : i32
    %c0_i32_0 = arith.constant 0 : i32
    %c0_i32_1 = arith.constant 0 : i32
    %c0_i32_2 = arith.constant 0 : i32
    return %arg0, %c0_i32, %c0_i32_0, %c0_i32_1 : i32, i32, i32, i32
  }
  func.func @transform_1(%arg0: i32) -> (i32, i32) {
    %c0_i32 = arith.constant 0 : i32
    %c0_i32_0 = arith.constant 0 : i32
    %c0_i32_1 = arith.constant 0 : i32
    return %c0_i32, %c0_i32_0 : i32, i32
  }
  func.func @transform_2(%arg0: i32) -> (i32, i32) {
    %c0_i32 = arith.constant 0 : i32
    %c0_i32_0 = arith.constant 0 : i32
    %c0_i32_1 = arith.constant 0 : i32
    return %c0_i32, %c0_i32_0 : i32, i32
  }
  func.func @transform_3(%arg0: i32) -> (i32, i32) {
    %c0_i32 = arith.constant 0 : i32
    %c0_i32_0 = arith.constant 0 : i32
    %c0_i32_1 = arith.constant 0 : i32
    return %c0_i32, %c0_i32_0 : i32, i32
  }
  func.func @transform_4(%arg0: i32) -> (i32, i32) {
    %c0_i32 = arith.constant 0 : i32
    %c0_i32_0 = arith.constant 0 : i32
    %c0_i32_1 = arith.constant 0 : i32
    return %c0_i32, %c0_i32_0 : i32, i32
  }
  func.func @transform_5(%arg0: i32) -> (i32, i32) {
    %c0_i32 = arith.constant 0 : i32
    %c0_i32_0 = arith.constant 0 : i32
    %c0_i32_1 = arith.constant 0 : i32
    return %c0_i32, %c0_i32_0 : i32, i32
  }
  func.func @transform_6(%arg0: i32) -> (i32, i32) {
    %c0_i32 = arith.constant 0 : i32
    %c0_i32_0 = arith.constant 0 : i32
    %c0_i32_1 = arith.constant 0 : i32
    return %c0_i32, %c0_i32_0 : i32, i32
  }
  func.func @transform_7(%arg0: i32) -> (i32, i32) {
    %c0_i32 = arith.constant 0 : i32
    %c0_i32_0 = arith.constant 0 : i32
    %c0_i32_1 = arith.constant 0 : i32
    return %c0_i32, %c0_i32_0 : i32, i32
  }
  func.func @transform_8(%arg0: i32) -> (i32, i32) {
    %c0_i32 = arith.constant 0 : i32
    %c0_i32_0 = arith.constant 0 : i32
    %c0_i32_1 = arith.constant 0 : i32
    return %c0_i32, %c0_i32_0 : i32, i32
  }
  func.func @transform_9(%arg0: i32) -> (i32, i32) {
    %c0_i32 = arith.constant 0 : i32
    %c0_i32_0 = arith.constant 0 : i32
    %c0_i32_1 = arith.constant 0 : i32
    return %c0_i32, %c0_i32_0 : i32, i32
  }
  func.func @transform_10(%arg0: i32) -> (i32, i32) {
    %c0_i32 = arith.constant 0 : i32
    %c0_i32_0 = arith.constant 0 : i32
    %c0_i32_1 = arith.constant 0 : i32
    return %c0_i32, %c0_i32_0 : i32, i32
  }
  func.func @transform_11(%arg0: i32) -> (i32, i32, i32) {
    %c0_i32 = arith.constant 0 : i32
    %c0_i32_0 = arith.constant 0 : i32
    %c0_i32_1 = arith.constant 0 : i32
    return %arg0, %c0_i32, %c0_i32_0 : i32, i32, i32
  }
  func.func @transform_12(%arg0: i32) -> i32 {
    %c0_i32 = arith.constant 0 : i32
    %c0_i32_0 = arith.constant 0 : i32
    return %c0_i32 : i32
  }
  func.func @transform_13(%arg0: i32) -> (i32, i32, i32) {
    %c0_i32 = arith.constant 0 : i32
    %c0_i32_0 = arith.constant 0 : i32
    %c0_i32_1 = arith.constant 0 : i32
    return %arg0, %c0_i32, %c0_i32_0 : i32, i32, i32
  }
}

</mosaic_0001>

<bundles_post_ra>
// kernel: tpu_custom_call.1
= control target key start
LH: loop header
LB: loop body
LE: loop exit
PB: predicated region body
PF: predicated region fallthrough
CT: control target
= control target key end

     0   :  { %18 = vsyncpa [#allocation3], 0  ;;  %s16557_s0 = inlined_call_operand.vmem [shape: f32[2,16,16,32], index: 0, kind: input, shape index: {}]   ;;  %s16558_s1 = inlined_call_operand.hbm [shape: bf16[288,96], index: 1, kind: input, shape index: {}]   ;;  %s16559_s2 = inlined_call_operand.vmem [shape: f32[1,96], index: 2, kind: input, shape index: {}]   ;;  %s16560_s3 = inlined_call_operand.vmem [shape: bf16[576,64], index: 3, kind: input, shape index: {}]   ;;  %s16561_s4 = inlined_call_operand.vmem [shape: f32[1,64], index: 4, kind: input, shape index: {}]   ;;  %s16562_s5 = inlined_call_operand.vmem [shape: bf16[64,64], index: 5, kind: input, shape index: {}]   ;;  %s16563_s6 = inlined_call_operand.vmem [shape: f32[1,64], index: 6, kind: input, shape index: {}]   ;;  %s16564_s7 = inlined_call_operand.vmem [shape: bf16[288,32], index: 7, kind: input, shape index: {}]   ;;  %s16565_s8 = inlined_call_operand.vmem [shape: f32[1,32], index: 8, kind: input, shape index: {}]   ;;  %s16566_s9 = inlined_call_operand.vmem [shape: bf16[32,32], index: 9, kind: input, shape index: {}]   ;;  %s16567_s10 = inlined_call_operand.vmem [shape: f32[1,32], index: 10, kind: input, shape index: {}]   ;;  %s16568_s11 = inlined_call_operand.vmem [shape: bf16[2,8,32], index: 11, kind: input, shape index: {}]   ;;  %s16569_s12 = inlined_call_operand.vmem [shape: f32[2], index: 12, kind: input, shape index: {}]   ;;  %s16570_s13 = inlined_call_operand.vmem [shape: f32[2,256,72], index: 13, kind: output, shape index: {}]  }
   0x1   :  { %19 = vsyncpa [#allocation4], 0  ;;  %s10698_s25 = smov 0  }
   0x2 LB: > { %s10704_s26 = sadd.s32 4294967295, %s10618_s25   ;;  %p7639_p0 = scmp.ge.s32.totalorder %s10618_s25, 1  ;;  %s10618_s25 = sphi %s10698_s25, %s25_s25  }
   0x3   : > { %p339_p1 = scmp.lt.s32.totalorder %s10618_s25, 3  ;;  %s10620_s27 = smov [#allocation2]  }
   0x4   : > { %s351_s28 = sshll.u32 %s10620_s27, 4  ;;  %p8754_p3 = scmp.eq.s32.totalorder %s10704_s26, 0  ;;  %s352_s28 = int_to_ptr.vmem [resolvable:$true] %s351_s28 }
   0x5   : > { %p10708_p2 = pnand %p7639_p0, %p339_p1  ;;  %s392_s15 = sshll.u32 %s16569_s12, 4  ;;  %s393_s15 = int_to_ptr.vmem [resolvable:$true] %s392_s15 }
   0x6   : > { %s10574_s17 = scalar_lea.vmem %s352_s28, 2304  ;;  %p10582_p10 = scmp.lt.s32.totalorder %s352_s28, %s352_s28 }
   0x7   : > { %p8747_p4 = pneg %p10708_p2  ;;  %p10575_p7 = scmp.ne.s32.totalorder %s352_s28, %s10574_s17 }
   0x8   : > { %p10583_p11 = scmp.lt.s32.totalorder %s10574_s17, %s10574_s17 }
   0x9   : > { %p10720_p5 = pnand %p8754_p3, %p8747_p4 }
   0xa   : > { %p10584_p12 = por %p10583_p11, %p10582_p10 }
   0xb   : > { %p10565_p6 = pneg %p10720_p5 }
   0xd   : > { %p10577_p8 = pnand %p10575_p7, %p10565_p6 }
   0xf   : > { %p10578_p9 = pneg %p10577_p8 }
  0x11   : > { %p10585_p13 = pnand %p10584_p12, %p10578_p9 }
  0x13   : > { %10588 = shalt.err (!%p10585_p13)
}
  0x14   : > { %s10621_s18 = smov 64   ;;  %s10622_s19 = smov 4  }
  0x15   : > { %8750 = dma.hbm_to_vmem [thread:$0]  (!%p10720_p5), %s16558_s1, 2304, %s352_s28, [#allocation3], %s10621_s18, %s10621_s18, %s10622_s19  }
  0x16   : > { %s10589_s22 = scalar_lea.vmem %s393_s15, 16  ;;  %p10597_p7 = scmp.lt.s32.totalorder %s393_s15, %s393_s15 }
  0x17   : > { %p10590_p0 = scmp.ne.s32.totalorder %s393_s15, %s10589_s22  ;;  %p10598_p8 = scmp.lt.s32.totalorder %s10589_s22, %s10589_s22 }
  0x19   : > { %p10592_p1 = pnand %p10590_p0, %p10565_p6  ;;  %p10599_p10 = por %p10598_p8, %p10597_p7 }
  0x1b   : > { %p10593_p4 = pneg %p10592_p1 }
  0x1d   : > { %p10600_p9 = pnand %p10599_p10, %p10593_p4 }
  0x1f   : > { %10603 = shalt.err (!%p10600_p9)
}
  0x20   : > { %s10623_s23 = smov [#allocation5]   ;;  %420 = sbr.rel (%p10708_p2) target bundleno = 2057 (0x809), region = 72 }
  0x21   : > { %8753 = dma.vmem_to_smem (!%p10720_p5), %s393_s15, 16, %s10623_s23, [#allocation4]  }
  0x25   : > { %10609 = dma.done.wait (%p8754_p3), [#allocation3], 2304  }
  0x26   : > { %10611 = vsyncadd (%p8754_p3), [#allocation3], 4294964992 }
  0x27   : > { %10613 = dma.done.wait (%p8754_p3), [#allocation4], 16  }
  0x28   : > { %10615 = vsyncadd (%p8754_p3), [#allocation4], 4294967280 }
  0x29   : > { %430 = sfence }
  0x2a   : > { %p473_p6 = scmp.lt.s32.totalorder %s10704_s26, 1  ;;  %v10019_v0 = vld [vmem:[#allocation2 + $0x78] sm:$0xff]   ;;  %v10021_v2 = vld [vmem:[#allocation2 + $0x70] sm:$0xff]   ;;  %vm552_vm0 = vcmask 1040384   ;;  %vm789_vm1 = vcmask 1045504   ;;  %v16571_v20 = vmov 0.0  }
  0x2b   : > { %v10020_v1 = vld [vmem:[#allocation2 + $0x38] sm:$0xff]   ;;  %7941 = vmatprep.subr.bf16.mxu0 %v10019_v0  ;;  %v10022_v3 = vld [vmem:[#allocation2 + $0x30] sm:$0xff]   ;;  %v10783_v21 = vrot.slane %v16571_v20, 2  ;;  %vm711_vm2 = vcmask 1046528   ;;  %v10796_v25 = vrot.slane %v16571_v20, 1  ;;  %s10625_s30 = smov 64  }
  0x2c   : > { %s17468_s26 = smov (!%p473_p6, %s10704_s26), 1  ;;  %7942 = vmatpush3.bf16.msra.mxu0 %v10020_v1  ;;  %v10023_v42 = vld [vmem:[#allocation2 + $0x68] sm:$0xff]   ;;  %v10025_v50 = vld [vmem:[#allocation2 + $0x60] sm:$0xff]   ;;  %s10626_s14 = smov 32   ;;  %v10027_v61 = vld [vmem:[#allocation2 + $0x58] sm:$0xff]   ;;  %vm1506_vm3 = vcmask 261120  }
  0x2d   : > { %s7939_s24 = sshll.u32 %s17468_s26, 8  ;;  %7943 = vmatprep.subr.bf16.mxu0 %v10021_v2  ;;  %16826 = vst [vmem:[#allocation8_spill] sm:$0xff] %v10796_v25  ;;  %v10024_v43 = vld [vmem:[#allocation2 + $0x28] sm:$0xff]   ;;  %v10026_v59 = vld [vmem:[#allocation2 + $0x20] sm:$0xff]   ;;  %s10627_s15 = smov 96   ;;  %v10028_v1 = vld [vmem:[#allocation2 + $0x18] sm:$0xff]  }
  0x2e   : > { %s10759_s29 = scalar_lea.vmem %s16557_s0, %s7939_s24  ;;  %vm1538_vm4 = vcmask 523264   ;;  %vm1570_vm5 = vcmask 785408   ;;  %s7648_s19 = sshll.u32 %s17468_s26, 2  ;;  %vm7513_vm8 = vcmask 588800  }
  0x2f   : > { %v490_v4 = vld [vmem:[%s10759_s29 + $0x10] sm:$0xff]  ;;  %v491_v5 = vld [vmem:[%s10759_s29 + $0x18] sm:$0xff]  ;;  %v488_v6 = vld [vmem:[%s10759_s29] sm:$0xff]  ;;  %s481_s21 = scalar_lea.vmem %s16568_s11, %s7648_s19  ;;  %s7285_s27 = sld [smem:[#allocation5]] }
  0x30   : > { %v556_v7 = vrot.slane %v490_v4, 7  ;;  %v557_v8 = vrot.slane %v491_v5, 7  ;;  %v489_v9 = vld [vmem:[%s10759_s29 + $0x8] sm:$0xff]  ;;  %v492_v10 = vld [vmem:[%s10759_s29 + $0x20] sm:$0xff]  ;;  %v553_v12 = vrot.slane %v488_v6, 7  ;;  %v10770_v13 = vld [vmem:[%s10759_s29 + $0x30] sm:$0xff]  ;;  %7944 = vmatpush3.bf16.msra.mxu0 %v10022_v3  ;;  %s16394_s18 = scalar_lea.vmem %s16570_s13, %s7939_s24 }
  0x31   : > { %v10767_v11 = vld [vmem:[%s10759_s29 + $0x28] sm:$0xff]  ;;  %v10773_v14 = vld [vmem:[%s10759_s29 + $0x38] sm:$0xff]  ;;  %v554_v15 = vrot.slane %v489_v9, 7  ;;  %v559_v16 = vrot.slane %v492_v10, 7  ;;  %v562_v26 = vrot.slane %v10770_v13, 7  ;;  %7945 = vmatprep.subr.bf16.mxu0 %v10023_v42  ;;  %v10029_v6 = vld [vmem:[#allocation2 + $0x50] sm:$0xff]  }
  0x32   : > { %v560_v17 = vrot.slane %v10767_v11, 7  ;;  %v10777_v18 = vsel %vm552_vm0, %v556_v7, %v557_v8  ;;  %v10780_v19 = vsel %vm552_vm0, 0.0, %v556_v7  ;;  %v10793_v24 = vsel %vm552_vm0, 0.0, %v553_v12  ;;  %vm12625_vm6 = vmneg %vm1538_vm4 }
  0x33   : > { %v10787_v22 = vpack.i.bf16 %v10777_v18, %v10780_v19  ;;  %v10790_v23 = vsel %vm552_vm0, %v553_v12, %v554_v15  ;;  %v563_v27 = vrot.slane %v10773_v14, 7  ;;  %v664_v28 = vsel %vm552_vm0, %v554_v15, 0.0  ;;  %v496_v12 = vld [vmem:[%s10759_s29 + $0x40] sm:$0xff]  ;;  %vm7757_vm7 = vmpackc.low %vm12625_vm6, %vm12625_vm6 }
  0x34   : > { %v792_v29 = vrot.slane %v10793_v24, 2  ;;  %v10807_v30 = vsel %vm552_vm0, %v559_v16, %v560_v17  ;;  %v793_v31 = vrot.slane %v10790_v23, 2  ;;  %v795_v32 = vrot.slane %v664_v28, 2  ;;  %7946 = vmatpush3.bf16.msra.mxu0 %v10024_v43 }
  0x35   : > { %8775 = vrot.lane.b32.xlu1 %v10787_v22, %s10625_s30  ;;  %v10811_v33 = vsel %vm552_vm0, 0.0, %v559_v16  ;;  %v717_v34 = vrot.slane %v664_v28, 1  ;;  %v797_v36 = vrot.slane %v10780_v19, 2  ;;  %v798_v37 = vrot.slane %v10777_v18, 2  ;;  %7947 = vmatprep.subr.bf16.mxu0 %v10025_v50  ;;  %v10030_v16 = vld [vmem:[#allocation2 + $0x10] sm:$0xff]  }
  0x36   : > { %v8779_v35 = vpack.i.bf16 %v10811_v33, %v10783_v21  ;;  %v796_v38 = vsel %vm789_vm1, %v793_v31, %v795_v32  ;;  %v10819_v39 = vsel %vm789_vm1, %v792_v29, %v793_v31  ;;  %v665_v40 = vsel %vm552_vm0, %v557_v8, 0.0 }
  0x37   : > { %v719_v41 = vrot.slane %v10780_v19, 1  ;;  %v8789_v44 = vpack.i.bf16 %v796_v38, %v10819_v39  ;;  %v10825_v45 = vsel %vm789_vm1, %v797_v36, %v798_v37  ;;  %v8784_v46 = vpack.i.bf16 %v10790_v23, %v10793_v24 }
  0x38   : > { %v720_v47 = vrot.slane %v10777_v18, 1  ;;  %v722_v48 = vrot.slane %v665_v40, 1  ;;  %v715_v49 = vrot.slane %v10790_v23, 1  ;;  %v8794_v51 = vpack.i.bf16 %v10825_v45, %v10796_v25  ;;  %7948 = vmatpush3.bf16.msra.mxu0 %v10026_v59 }
  0x39   : > { %8780 = vrot.lane.b32.xlu1 %v8779_v35, %s10625_s30  ;;  %8790 = vrot.lane.b32.xlu0 %v8789_v44, %s10626_s14  ;;  %v802_v52 = vrot.slane %v10811_v33, 2  ;;  %v803_v53 = vrot.slane %v10807_v30, 2  ;;  %v714_v54 = vrot.slane %v10793_v24, 1  ;;  %v800_v58 = vrot.slane %v665_v40, 2  ;;  %v10033_v40 = vld [vmem:[#allocation2 + $0x40] sm:$0xff]  }
  0x3a   : > { %v10839_v55 = vsel %vm711_vm2, %v719_v41, %v720_v47  ;;  %v10842_v56 = vsel %vm711_vm2, %v720_v47, %v722_v48  ;;  %v10845_v57 = vsel %vm711_vm2, %v715_v49, %v717_v34  ;;  %v10854_v63 = vsel %vm552_vm0, 0.0, %v562_v26  ;;  %7949 = vmatprep.subr.bf16.mxu0 %v10027_v61  ;;  %v10034_v34 = vld [vmem:[#allocation2 + $0x88] sm:$0xff]   ;;  %v10035_v48 = vld [vmem:[#allocation2] sm:$0xff]  }
  0x3b   : > { %v10848_v60 = vsel %vm789_vm1, %v802_v52, %v803_v53  ;;  %v8799_v0 = vpack.i.bf16 %v10842_v56, %v10839_v55  ;;  %v10862_v2 = vsel %vm552_vm0, %v562_v26, %v563_v27  ;;  %v10865_v3 = vsel %vm711_vm2, %v714_v54, %v715_v49  ;;  %v10031_v26 = vld [vmem:[#allocation2 + $0x48] sm:$0xff]   ;;  %8500 = vmatprep.subr.bf16.mxu1 %v10034_v34 }
  0x3c   : > { %v8809_v62 = vpack.i.bf16 %v10848_v60, %v10845_v57  ;;  %v10868_v4 = vsel %vm789_vm1, %v798_v37, %v800_v58  ;;  %v666_v5 = vsel %vm552_vm0, %v560_v17, 0.0  ;;  %v8819_v7 = vpack.i.bf16 %v10854_v63, %v796_v38  ;;  %7950 = vmatpush3.bf16.msra.mxu0 %v10028_v1  ;;  %v497_v17 = vld [vmem:[%s10759_s29 + $0x48] sm:$0xff]  ;;  %8501 = vmatpush3.bf16.msra.mxu1 %v10034_v34  ;;  %v500_v34 = vld [vmem:[%s10759_s29 + $0x60] sm:$0xff] }
  0x3d   : > { %8785 = vrot.lane.b32.xlu1 %v8784_v46, %s10627_s15  ;;  %8795 = vrot.lane.b32.xlu0 %v8794_v51, %s10626_s14  ;;  %v8804_v8 = vpack.i.bf16 %v10865_v3, %v10868_v4  ;;  %v807_v9 = vrot.slane %v10854_v63, 2  ;;  %v808_v10 = vrot.slane %v10862_v2, 2  ;;  %v724_v11 = vrot.slane %v10811_v33, 1  ;;  %v10032_v38 = vld [vmem:[#allocation2 + $0x8] sm:$0xff]   ;;  %v498_v46 = vld [vmem:[%s10759_s29 + $0x50] sm:$0xff]  ;;  %v499_v51 = vld [vmem:[%s10759_s29 + $0x58] sm:$0xff] }
  0x3e   : > { %v725_v13 = vrot.slane %v10807_v30, 1  ;;  %v727_v15 = vrot.slane %v666_v5, 1  ;;  %7951 = vmatprep.subr.bf16.mxu0 %v10029_v6  ;;  %v805_v28 = vrot.slane %v666_v5, 2  ;;  %v8814_v29 = vpack.i.bf16 %v10819_v39, %v10807_v30  ;;  %v10036_v39 = vld [vmem:[#allocation2 + $0x80] sm:$0xff]  }
  0x3f   : > { %v10891_v31 = vsel %vm789_vm1, %v807_v9, %v808_v10  ;;  %v565_v32 = vrot.slane %v496_v12, 7  ;;  %v566_v37 = vrot.slane %v497_v17, 7  ;;  %8502 = vmatprep.subr.bf16.mxu1 %v10036_v39  ;;  %v667_v47 = vsel %vm552_vm0, %v563_v27, 0.0  ;;  %v501_v17 = vld [vmem:[%s10759_s29 + $0x68] sm:$0xff] }
  0x40   : > { %v10894_v35 = vsel %vm711_vm2, %v724_v11, %v725_v13  ;;  %v10897_v36 = vsel %vm711_vm2, %v725_v13, %v727_v15  ;;  %7952 = vmatpush3.bf16.msra.mxu0 %v10030_v16  ;;  %v8839_v41 = vpack.i.bf16 %v10891_v31, %v10842_v56  ;;  %v10907_v43 = vsel %vm789_vm1, %v803_v53, %v805_v28 }
  0x41   : > { %8810 = vrot.lane.b32.xlu1 %v8809_v62, %s10626_s14  ;;  %8800 = vrot.lane.b32.xlu0 %v8799_v0, %s10627_s15  ;;  %v8824_v42 = vpack.i.bf16 %v10897_v36, %v10894_v35  ;;  %v10910_v44 = vsel %vm552_vm0, 0.0, %v565_v32  ;;  %v8834_v49 = vpack.i.bf16 %v10839_v55, %v10907_v43  ;;  %v729_v52 = vrot.slane %v10854_v63, 1 }
  0x42   : > { %7953 = vmatprep.subr.bf16.mxu0 %v10031_v26  ;;  %16827 = vst [vmem:[#allocation9_spill] sm:$0xff] %v10910_v44  ;;  %v8849_v50 = vpack.i.bf16 %v10910_v44, %v10868_v4  ;;  %8503 = vmatpush3.bf16.msra.mxu1 %v10036_v39  ;;  %v730_v14 = vrot.slane %v10862_v2, 1  ;;  %v812_v27 = vrot.slane %v10910_v44, 2  ;;  %v732_v54 = vrot.slane %v667_v47, 1 }
  0x43   : > { %v568_v58 = vrot.slane %v498_v46, 7  ;;  %v8859_v59 = vpack.i.bf16 %v10807_v30, %v10811_v33  ;;  %v8844_v61 = vpack.i.bf16 %v10825_v45, %v10862_v2  ;;  %v569_v0 = vrot.slane %v499_v51, 7 }
  0x44   : > { %7954 = vmatpush3.bf16.msra.mxu0 %v10032_v38  ;;  %v10940_v1 = vsel %vm711_vm2, %v729_v52, %v730_v14  ;;  %v10943_v5 = vsel %vm711_vm2, %v730_v14, %v732_v54  ;;  %v810_v6 = vrot.slane %v667_v47, 2  ;;  %v668_v11 = vsel %vm552_vm0, %v566_v37, 0.0 }
  0x45   : > { %8820 = vrot.lane.b32.xlu1 %v8819_v7, %s10625_s30  ;;  %8805 = vrot.lane.b32.xlu0 %v8804_v8, %s10626_s14  ;;  %v10946_v7 = vsel %vm552_vm0, 0.0, %v568_v58  ;;  %v8854_v9 = vpack.i.bf16 %v10943_v5, %v10940_v1  ;;  %v10955_v12 = vsel %vm552_vm0, %v568_v58, %v569_v0  ;;  %v734_v16 = vrot.slane %v10910_v44, 1  ;;  %v502_v58 = vld [vmem:[%s10759_s29 + $0x70] sm:$0xff] }
  0x46   : > { %7955 = vmatprep.subr.bf16.mxu0 %v10033_v40  ;;  %16829 = vst [vmem:[#allocation11_spill] sm:$0xff] %v10946_v7  ;;  %16830 = vst [vmem:[#allocation12_spill] sm:$0xff] %v10955_v12  ;;  %v10961_v13 = vsel %vm789_vm1, %v808_v10, %v810_v6  ;;  %v8879_v15 = vpack.i.bf16 %v10946_v7, %v10907_v43  ;;  %v737_v28 = vrot.slane %v668_v11, 1  ;;  %v572_v38 = vrot.slane %v501_v17, 7 }
  0x47   : > { %v8864_v10 = vpack.i.bf16 %v10894_v35, %v10961_v13  ;;  %v815_v47 = vrot.slane %v668_v11, 2  ;;  %v669_v14 = vsel %vm552_vm0, %v569_v0, 0.0  ;;  %v739_v6 = vrot.slane %v10946_v7, 1 }
  0x48   : > { %7956 = vmatpush3.bf16.msra.mxu0 %v10035_v48  ;;  %v740_v0 = vrot.slane %v10955_v12, 1  ;;  %v820_v11 = vrot.slane %v669_v14, 2  ;;  %v8904_v17 = vpack.i.bf16 %v10891_v31, %v10955_v12 }
  0x49   : > { %8830 = vrot.lane.b32.xlu1 %v10787_v22, %s10627_s15  ;;  %8815 = vrot.lane.b32.xlu0 %v8814_v29, %s10625_s30  ;;  %v10914_v22 = vsel %vm552_vm0, %v565_v32, %v566_v37  ;;  %v817_v29 = vrot.slane %v10946_v7, 2  ;;  %v818_v32 = vrot.slane %v10955_v12, 2  ;;  %v8889_v37 = vpack.i.bf16 %v10862_v2, %v10854_v63 }
  0x4a   : > { %16828 = vst [vmem:[#allocation10_spill] sm:$0xff] %v10914_v22  ;;  %v813_v53 = vrot.slane %v10914_v22, 2  ;;  %v735_v26 = vrot.slane %v10914_v22, 1  ;;  %v8874_v39 = vpack.i.bf16 %v10848_v60, %v10914_v22 }
  0x4b   : > { %v10982_v40 = vsel %vm789_vm1, %v817_v29, %v818_v32 }
  0x4c   : > { %v10937_v62 = vsel %vm789_vm1, %v812_v27, %v813_v53  ;;  %v10988_v46 = vsel %vm711_vm2, %v735_v26, %v737_v28  ;;  %v8899_v48 = vpack.i.bf16 %v10982_v40, %v10943_v5  ;;  %v11003_v52 = vsel %vm789_vm1, %v813_v53, %v815_v47 }
  0x4d   : > { %8840 = vrot.lane.b32.xlu1 %v8839_v41, %s10626_s14  ;;  %8825 = vrot.lane.b32.xlu0 %v8824_v42, %s10627_s15  ;;  %v8869_v8 = vpack.i.bf16 %v10937_v62, %v10897_v36  ;;  %v571_v41 = vrot.slane %v500_v34, 7  ;;  %v10985_v42 = vsel %vm711_vm2, %v734_v16, %v735_v26  ;;  %v8894_v53 = vpack.i.bf16 %v10940_v1, %v11003_v52 }
  0x4e   : > { %v11031_v28 = vsel %vm711_vm2, %v739_v6, %v740_v0 }
  0x4f   : > { %v11000_v51 = vsel %vm552_vm0, 0.0, %v571_v41  ;;  %16833 = vst [vmem:[#allocation15_spill] sm:$0xff] %v11031_v28 }
  0x50   : > { %16832 = vst [vmem:[#allocation14_spill] sm:$0xff] %v11000_v51  ;;  %v822_v27 = vrot.slane %v11000_v51, 2 }
  0x51   : > { %8850 = vrot.lane.b32.xlu1 %v8849_v50, %s10625_s30  ;;  %8835 = vrot.lane.b32.xlu0 %v8834_v49, %s10626_s14  ;;  %v10994_v49 = vsel %vm552_vm0, %v571_v41, %v572_v38  ;;  %v8884_v50 = vpack.i.bf16 %v10988_v46, %v10985_v42  ;;  %v11048_v41 = vsel %vm789_vm1, %v818_v32, %v820_v11 }
  0x52   : > { %16831 = vst [vmem:[#allocation13_spill] sm:$0xff] %v10994_v49  ;;  %v823_v54 = vrot.slane %v10994_v49, 2  ;;  %v8924_v32 = vpack.i.bf16 %v10985_v42, %v11048_v41  ;;  %v8934_v6 = vpack.i.bf16 %v10937_v62, %v10994_v49 }
  0x54   : > { %v11028_v26 = vsel %vm789_vm1, %v822_v27, %v823_v54 }
  0x55   : > { %8860 = vrot.lane.b32.xlu1 %v8859_v59, %s10627_s15  ;;  %8845 = vrot.lane.b32.xlu0 %v8844_v61, %s10625_s30  ;;  %v11010_v59 = vld [vmem:[%s10759_s29 + $0x78] sm:$0xff]  ;;  %v8909_v61 = vpack.i.bf16 %v11000_v51, %v10961_v13  ;;  %v8929_v34 = vpack.i.bf16 %v11028_v26, %v10988_v46 }
  0x56   : > { %v575_v16 = vrot.slane %v11010_v59, 7  ;;  %v505_v59 = vld [vmem:[%s10759_s29 + $0x88] sm:$0xff] }
  0x57   : > { %v578_v11 = vrot.slane %v505_v59, 7 }
  0x59   : > { %8870 = vrot.lane.b32.xlu1 %v8869_v8, %s10626_s14  ;;  %8855 = vrot.lane.b32.xlu0 %v8854_v9, %s10627_s15  ;;  %v742_v8 = vrot.slane %v669_v14, 1  ;;  %v8919_v9 = vpack.i.bf16 %v10914_v22, %v10910_v44 }
  0x5b   : > { %v11034_v29 = vsel %vm711_vm2, %v740_v0, %v742_v8 }
  0x5c   : > { %16834 = vst [vmem:[#allocation16_spill] sm:$0xff] %v11034_v29 }
  0x5d   : > { %8880 = vrot.lane.b32.xlu1 %v8879_v15, %s10625_s30  ;;  %8865 = vrot.lane.b32.xlu0 %v8864_v10, %s10626_s14  ;;  %v574_v15 = vrot.slane %v502_v58, 7  ;;  %v8914_v10 = vpack.i.bf16 %v11034_v29, %v11031_v28 }
  0x5f   : > { %v11051_v47 = vsel %vm552_vm0, %v574_v15, %v575_v16 }
  0x60   : > { %16836 = vst [vmem:[#allocation18_spill] sm:$0xff] %v11051_v47 }
  0x61   : > { %8890 = vrot.lane.b32.xlu1 %v8889_v37, %s10627_s15  ;;  %8875 = vrot.lane.b32.xlu0 %v8874_v39, %s10625_s30  ;;  %v11043_v37 = vsel %vm552_vm0, 0.0, %v574_v15  ;;  %v1701_v39 = vpack.c.bf16 %v10868_v4, %v10825_v45  ;;  %v504_v4 = vld [vmem:[%s10759_s29 + $0x80] sm:$0xff] }
  0x62   : > { %16835 = vst [vmem:[#allocation17_spill] sm:$0xff] %v11043_v37  ;;  %v8939_v45 = vpack.i.bf16 %v11043_v37, %v11003_v52  ;;  %v827_v14 = vrot.slane %v11043_v37, 2 }
  0x63   : > { %8504 = vmatprep.mubr.msk.bf16.mxu1 %vm1506_vm3, %v1701_v39 }
  0x65   : > { %8900 = vrot.lane.b32.xlu1 %v8899_v48, %s10626_s14  ;;  %8885 = vrot.lane.b32.xlu0 %v8884_v50, %s10627_s15  ;;  %v1704_v48 = vpack.c.bf16 %v10907_v43, %v10848_v60  ;;  %v670_v50 = vsel %vm552_vm0, %v572_v38, 0.0  ;;  %v828_v60 = vrot.slane %v11051_v47, 2  ;;  %v744_v43 = vrot.slane %v11000_v51, 1 }
  0x66   : > { %v745_v38 = vrot.slane %v10994_v49, 1  ;;  %v747_v27 = vrot.slane %v670_v50, 1  ;;  %v825_v58 = vrot.slane %v670_v50, 2  ;;  %v1710_v50 = vpack.c.bf16 %v11003_v52, %v10937_v62 }
  0x67   : > { %8505 = vmatmul.mubr.msk.bf16.vlgmr.msra.gmra.mxu1 %vm1506_vm3, %v1704_v48  ;;  %v11077_v0 = vsel %vm789_vm1, %v827_v14, %v828_v60  ;;  %v506_v48 = vld [vmem:[%s10759_s29 + $0x90] sm:$0xff]  ;;  %v749_v62 = vrot.slane %v11043_v37, 1 }
  0x68   : > { %v11080_v8 = vsel %vm711_vm2, %v744_v43, %v745_v38  ;;  %v8959_v15 = vpack.i.bf16 %v11077_v0, %v11034_v29  ;;  %v580_v14 = vrot.slane %v506_v48, 7 }
  0x69   : > { %8910 = vrot.lane.b32.xlu1 %v8909_v61, %s10625_s30  ;;  %8895 = vrot.lane.b32.xlu0 %v8894_v53, %s10626_s14  ;;  %v577_v61 = vrot.slane %v504_v4, 7  ;;  %v8949_v53 = vpack.i.bf16 %v10955_v12, %v10946_v7  ;;  %16837 = vst [vmem:[#allocation19_spill] sm:$0xff] %v11080_v8  ;;  %v507_v4 = vld [vmem:[%s10759_s29 + $0x98] sm:$0xff]  ;;  %v11349_v7 = vld [vmem:[%s10759_s29 + $0xe8] sm:$0xff] }
  0x6a   : > { %v581_v59 = vrot.slane %v507_v4, 7 }
  0x6b   : > { %v11095_v39 = vsel %vm552_vm0, 0.0, %v577_v61 }
  0x6c   : > { %16839 = vst [vmem:[#allocation21_spill] sm:$0xff] %v11095_v39  ;;  %v832_v52 = vrot.slane %v11095_v39, 2 }
  0x6d   : > { %8920 = vrot.lane.b32.xlu1 %v8919_v9, %s10627_s15  ;;  %8905 = vrot.lane.b32.xlu0 %v8904_v17, %s10625_s30  ;;  %v11083_v9 = vsel %vm711_vm2, %v745_v38, %v747_v27  ;;  %v1707_v17 = vpack.c.bf16 %v10961_v13, %v10891_v31  ;;  %v671_v31 = vsel %vm552_vm0, %v575_v16, 0.0  ;;  %v750_v16 = vrot.slane %v11051_v47, 1 }
  0x6e   : > { %16838 = vst [vmem:[#allocation20_spill] sm:$0xff] %v11083_v9  ;;  %v752_v43 = vrot.slane %v671_v31, 1  ;;  %v830_v38 = vrot.slane %v671_v31, 2  ;;  %v8964_v27 = vpack.i.bf16 %v10982_v40, %v11051_v47 }
  0x6f   : > { %8508 = vmatprep.mubr.msk.bf16.mxu1 %vm1506_vm3, %v1707_v17  ;;  %v1713_v17 = vpack.c.bf16 %v11048_v41, %v10982_v40 }
  0x70   : > { %8509 = vmatmul.mubr.msk.bf16.gmra.mxu1 %vm1506_vm3, %v1710_v50  ;;  %v11135_v48 = vsel %vm711_vm2, %v750_v16, %v752_v43  ;;  %v831_v31 = vsel %vm789_vm1, %v828_v60, %v830_v38  ;;  %v508_v38 = vld [vmem:[%s10759_s29 + $0xa0] sm:$0xff] }
  0x71   : > { %8930 = vrot.lane.b32.xlu1 %v8929_v34, %s10626_s14  ;;  %8915 = vrot.lane.b32.xlu0 %v8914_v10, %s10627_s15  ;;  %v8944_v34 = vpack.i.bf16 %v11083_v9, %v11080_v8  ;;  %v826_v10 = vsel %vm789_vm1, %v823_v54, %v825_v58  ;;  %v8969_v54 = vpack.i.bf16 %v11095_v39, %v11048_v41 }
  0x72   : > { %v8954_v13 = vpack.i.bf16 %v11031_v28, %v826_v10  ;;  %v8979_v58 = vpack.i.bf16 %v10994_v49, %v11000_v51  ;;  %16843 = vst [vmem:[#allocation25_spill] sm:$0xff] %v11135_v48  ;;  %8512 = vmatprep.mubr.msk.bf16.mxu1 %vm1506_vm3, %v1713_v17  ;;  %v1719_v41 = vpack.c.bf16 %v831_v31, %v11077_v0  ;;  %v583_v17 = vrot.slane %v508_v38, 7 }
  0x75   : > { %8940 = vrot.lane.b32.xlu1 %v8939_v45, %s10625_s30  ;;  %8925 = vrot.lane.b32.xlu0 %v8924_v32, %s10626_s14  ;;  %v11101_v45 = vsel %vm552_vm0, %v577_v61, %v578_v11  ;;  %v672_v61 = vsel %vm552_vm0, %v578_v11, 0.0  ;;  %v1716_v11 = vpack.c.bf16 %v826_v10, %v11028_v26 }
  0x76   : > { %16840 = vst [vmem:[#allocation22_spill] sm:$0xff] %v11101_v45  ;;  %v833_v32 = vrot.slane %v11101_v45, 2  ;;  %v757_v43 = vrot.slane %v672_v61, 1 }
  0x78   : > { %8513 = vmatmul.mubr.msk.bf16.gmra.mxu1 %vm1506_vm3, %v1716_v11 }
  0x79   : > { %8950 = vrot.lane.b32.xlu1 %v8949_v53, %s10627_s15  ;;  %8935 = vrot.lane.b32.xlu0 %v8934_v6, %s10625_s30  ;;  %v11124_v53 = vsel %vm789_vm1, %v832_v52, %v833_v32  ;;  %v11127_v6 = vsel %vm552_vm0, 0.0, %v580_v14 }
  0x7a   : > { %16841 = vst [vmem:[#allocation23_spill] sm:$0xff] %v11127_v6  ;;  %v8989_v50 = vpack.i.bf16 %v11124_v53, %v11083_v9  ;;  %8516 = vmatprep.mubr.msk.bf16.mxu1 %vm1506_vm3, %v1719_v41  ;;  %v8999_v60 = vpack.i.bf16 %v11127_v6, %v826_v10  ;;  %v837_v52 = vrot.slane %v11127_v6, 2  ;;  %v9009_v10 = vpack.i.bf16 %v11051_v47, %v11043_v37 }
  0x7b   : > { %v11190_v41 = vsel %vm552_vm0, 0.0, %v583_v17 }
  0x7c   : > { %16847 = vst [vmem:[#allocation29_spill] sm:$0xff] %v11190_v41 }
  0x7d   : > { %8960 = vrot.lane.b32.xlu1 %v8959_v15, %s10626_s14  ;;  %8945 = vrot.lane.b32.xlu0 %v8944_v34, %s10627_s15  ;;  %v835_v15 = vrot.slane %v672_v61, 2  ;;  %v11132_v34 = vsel %vm711_vm2, %v749_v62, %v750_v16  ;;  %v8984_v62 = vpack.i.bf16 %v11080_v8, %v831_v31  ;;  %v755_v16 = vrot.slane %v11101_v45, 1  ;;  %v516_v8 = vld [vmem:[%s10759_s29 + $0xe0] sm:$0xff] }
  0x7e   : > { %16842 = vst [vmem:[#allocation24_spill] sm:$0xff] %v11132_v34  ;;  %v8974_v40 = vpack.i.bf16 %v11135_v48, %v11132_v34  ;;  %v595_v25 = vrot.slane %v516_v8, 7 }
  0x7f   : > { %v11181_v11 = vsel %vm711_vm2, %v755_v16, %v757_v43 }
  0x80   : > { %16846 = vst [vmem:[#allocation28_spill] sm:$0xff] %v11181_v11 }
  0x81   : > { %8970 = vrot.lane.b32.xlu1 %v8969_v54, %s10625_s30  ;;  %8955 = vrot.lane.b32.xlu0 %v8954_v13, %s10626_s14  ;;  %v11149_v13 = vsel %vm552_vm0, %v580_v14, %v581_v59  ;;  %v11152_v54 = vsel %vm789_vm1, %v833_v32, %v835_v15  ;;  %v754_v32 = vrot.slane %v11095_v39, 1 }
  0x82   : > { %16844 = vst [vmem:[#allocation26_spill] sm:$0xff] %v11149_v13  ;;  %v1722_v4 = vpack.c.bf16 %v11152_v54, %v11124_v53  ;;  %v838_v14 = vrot.slane %v11149_v13, 2  ;;  %v760_v38 = vrot.slane %v11149_v13, 1 }
  0x83   : > { %v11178_v61 = vsel %vm711_vm2, %v754_v32, %v755_v16  ;;  %v759_v32 = vrot.slane %v11127_v6, 1  ;;  %v842_v16 = vrot.slane %v11190_v41, 2 }
  0x84   : > { %8517 = vmatmul.mubr.msk.bf16.gmra.mxu1 %vm1506_vm3, %v1722_v4  ;;  %v11175_v15 = vsel %vm789_vm1, %v837_v52, %v838_v14  ;;  %16845 = vst [vmem:[#allocation27_spill] sm:$0xff] %v11178_v61  ;;  %v673_v4 = vsel %vm552_vm0, %v581_v59, 0.0  ;;  %v9014_v52 = vpack.i.bf16 %v11132_v34, %v11152_v54  ;;  %v510_v59 = vld [vmem:[%s10759_s29 + $0xb0] sm:$0xff] }
  0x85   : > { %8980 = vrot.lane.b32.xlu1 %v8979_v58, %s10627_s15  ;;  %8965 = vrot.lane.b32.xlu0 %v8964_v27, %s10625_s30  ;;  %v509_v27 = vld [vmem:[%s10759_s29 + $0xa8] sm:$0xff]  ;;  %v8994_v58 = vpack.i.bf16 %v11028_v26, %v11101_v45  ;;  %v9004_v26 = vpack.i.bf16 %v11181_v11, %v11178_v61  ;;  %v11218_v37 = vsel %vm711_vm2, %v759_v32, %v760_v38 }
  0x86   : > { %16849 = vst [vmem:[#allocation31_spill] sm:$0xff] %v11218_v37 }
  0x89   : > { %8990 = vrot.lane.b32.xlu1 %v8989_v50, %s10626_s14  ;;  %8975 = vrot.lane.b32.xlu0 %v8974_v40, %s10627_s15  ;;  %v584_v50 = vrot.slane %v509_v27, 7  ;;  %v9019_v40 = vpack.i.bf16 %v11175_v15, %v11135_v48  ;;  %v762_v27 = vrot.slane %v673_v4, 1 }
  0x8d   : > { %9000 = vrot.lane.b32.xlu1 %v8999_v60, %s10625_s30  ;;  %8985 = vrot.lane.b32.xlu0 %v8984_v62, %s10626_s14  ;;  %v11193_v60 = vsel %vm552_vm0, %v583_v17, %v584_v50  ;;  %v9029_v62 = vpack.i.bf16 %v11190_v41, %v831_v31  ;;  %v511_v17 = vld [vmem:[%s10759_s29 + $0xb8] sm:$0xff] }
  0x8e   : > { %16848 = vst [vmem:[#allocation30_spill] sm:$0xff] %v11193_v60  ;;  %v843_v43 = vrot.slane %v11193_v60, 2 }
  0x90   : > { %v11215_v20 = vsel %vm789_vm1, %v842_v16, %v843_v43 }
  0x91   : > { %9010 = vrot.lane.b32.xlu1 %v9009_v10, %s10627_s15  ;;  %8995 = vrot.lane.b32.xlu0 %v8994_v58, %s10625_s30  ;;  %v840_v10 = vrot.slane %v673_v4, 2  ;;  %v674_v58 = vsel %vm552_vm0, %v584_v50, 0.0  ;;  %v586_v4 = vrot.slane %v510_v59, 7  ;;  %v11221_v50 = vsel %vm711_vm2, %v760_v38, %v762_v27 }
  0x92   : > { %v845_v31 = vrot.slane %v674_v58, 2  ;;  %16850 = vst [vmem:[#allocation32_spill] sm:$0xff] %v11221_v50  ;;  %v9049_v32 = vpack.i.bf16 %v11215_v20, %v11181_v11 }
  0x93   : > { %v11240_v38 = vsel %vm552_vm0, 0.0, %v586_v4 }
  0x94   : > { %16851 = vst [vmem:[#allocation33_spill] sm:$0xff] %v11240_v38 }
  0x95   : > { %9020 = vrot.lane.b32.xlu1 %v9019_v40, %s10626_s14  ;;  %9005 = vrot.lane.b32.xlu0 %v9004_v26, %s10627_s15  ;;  %v9039_v40 = vpack.i.bf16 %v11101_v45, %v11095_v39  ;;  %v9024_v26 = vpack.i.bf16 %v11077_v0, %v11149_v13  ;;  %v587_v39 = vrot.slane %v511_v17, 7  ;;  %v9059_v17 = vpack.i.bf16 %v11240_v38, %v11152_v54 }
  0x96   : > { %v9069_v54 = vpack.i.bf16 %v11149_v13, %v11127_v6 }
  0x97   : > { %v11245_v27 = vsel %vm552_vm0, %v586_v4, %v587_v39  ;;  %v767_v4 = vrot.slane %v674_v58, 1  ;;  %v9054_v58 = vpack.i.bf16 %v11124_v53, %v11193_v60 }
  0x98   : > { %16852 = vst [vmem:[#allocation34_spill] sm:$0xff] %v11245_v27  ;;  %v770_v13 = vrot.slane %v11245_v27, 1 }
  0x99   : > { %9030 = vrot.lane.b32.xlu1 %v9029_v62, %s10625_s30  ;;  %9015 = vrot.lane.b32.xlu0 %v9014_v52, %s10626_s14  ;;  %v11224_v62 = vsel %vm789_vm1, %v838_v14, %v840_v10  ;;  %v11227_v52 = vsel %vm789_vm1, %v843_v43, %v845_v31  ;;  %v9034_v14 = vpack.i.bf16 %v11221_v50, %v11218_v37  ;;  %v513_v43 = vld [vmem:[%s10759_s29 + $0xc8] sm:$0xff]  ;;  %v512_v10 = vld [vmem:[%s10759_s29 + $0xc0] sm:$0xff]  ;;  %v764_v31 = vrot.slane %v11190_v41, 1 }
  0x9a   : > { %v1725_v0 = vpack.c.bf16 %v11224_v62, %v11175_v15  ;;  %v1728_v16 = vpack.c.bf16 %v11227_v52, %v11215_v20  ;;  %v9044_v59 = vpack.i.bf16 %v11178_v61, %v11224_v62  ;;  %v589_v45 = vrot.slane %v512_v10, 7 }
  0x9c   : > { %8520 = vmatprep.mubr.msk.bf16.mxu1 %vm1506_vm3, %v1725_v0  ;;  %v847_v0 = vrot.slane %v11240_v38, 2  ;;  %v11281_v6 = vsel %vm552_vm0, 0.0, %v589_v45 }
  0x9d   : > { %9040 = vrot.lane.b32.xlu1 %v9039_v40, %s10627_s15  ;;  %9025 = vrot.lane.b32.xlu0 %v9024_v26, %s10625_s30  ;;  %v590_v40 = vrot.slane %v513_v43, 7  ;;  %v765_v26 = vrot.slane %v11193_v60, 1  ;;  %v852_v53 = vrot.slane %v11281_v6, 2 }
  0x9e   : > { %8521 = vmatmul.mubr.msk.bf16.gmra.mxu1 %vm1506_vm3, %v1728_v16  ;;  %v848_v16 = vrot.slane %v11245_v27, 2 }
  0x9f   : > { %v11264_v43 = vsel %vm552_vm0, %v589_v45, %v590_v40 }
  0xa0   : > { %v11276_v10 = vsel %vm789_vm1, %v847_v0, %v848_v16  ;;  %v11292_v0 = vld [vmem:[%s10759_s29 + $0xd8] sm:$0xff] }
  0xa1   : > { %9050 = vrot.lane.b32.xlu1 %v9049_v32, %s10626_s14  ;;  %9035 = vrot.lane.b32.xlu0 %v9034_v14, %s10627_s15  ;;  %v675_v32 = vsel %vm552_vm0, %v587_v39, 0.0  ;;  %v11270_v14 = vsel %vm711_vm2, %v764_v31, %v765_v26  ;;  %v11273_v39 = vsel %vm711_vm2, %v765_v26, %v767_v4  ;;  %v514_v26 = vld [vmem:[%s10759_s29 + $0xd0] sm:$0xff]  ;;  %v9079_v4 = vpack.i.bf16 %v11276_v10, %v11221_v50 }
  0xa2   : > { %16853 = vst [vmem:[#allocation35_spill] sm:$0xff] %v11273_v39  ;;  %v772_v11 = vrot.slane %v675_v32, 1  ;;  %v850_v61 = vrot.slane %v675_v32, 2  ;;  %v9064_v45 = vpack.i.bf16 %v11273_v39, %v11270_v14  ;;  %v592_v31 = vrot.slane %v514_v26, 7 }
  0xa3   : > { %v16855_v50 = vrot.slane %v11264_v43, 2 }
  0xa4   : > { %v11303_v32 = vsel %vm711_vm2, %v770_v13, %v772_v11  ;;  %v9084_v11 = vpack.i.bf16 %v11175_v15, %v11245_v27  ;;  %v11332_v51 = vsel %vm552_vm0, 0.0, %v592_v31 }
  0xa5   : > { %9060 = vrot.lane.b32.xlu1 %v9059_v17, %s10625_s30  ;;  %9045 = vrot.lane.b32.xlu0 %v9044_v59, %s10626_s14  ;;  %v769_v59 = vrot.slane %v11240_v38, 1  ;;  %16854 = vst [vmem:[#allocation36_spill] sm:$0xff] %v11303_v32  ;;  %v11308_v34 = vsel %vm789_vm1, %v852_v53, %v16855_v50  ;;  %v9099_v50 = vpack.i.bf16 %v11193_v60, %v11190_v41  ;;  %v16856_v60 = vrot.slane %v11292_v0, 7 }
  0xa7   : > { %v11278_v17 = vpop.permute.xlu1 %8775  ;;  %v11300_v48 = vsel %vm711_vm2, %v769_v59, %v770_v13  ;;  %v9074_v59 = vpack.i.bf16 %v11218_v37, %v11227_v52  ;;  %v9089_v13 = vpack.i.bf16 %v11281_v6, %v11224_v62  ;;  %v9109_v62 = vpack.i.bf16 %v11308_v34, %v11273_v39 }
  0xa8   : > { %v775_v37 = vrot.slane %v11264_v43, 1  ;;  %v8777_v39 = vunpack.i.l.bf16 %v11278_v17  ;;  %v8778_v12 = vunpack.i.h.bf16 %v11278_v17 }
  0xa9   : > { %9070 = vrot.lane.b32.xlu1 %v9069_v54, %s10627_s15  ;;  %9055 = vrot.lane.b32.xlu0 %v9054_v58, %s10625_s30  ;;  %v11311_v58 = vsel %vm789_vm1, %v848_v16, %v850_v61  ;;  %v9094_v61 = vpack.i.bf16 %v11303_v32, %v11300_v48  ;;  %v676_v16 = vsel %vm552_vm0, %v590_v40, 0.0  ;;  %v11340_v40 = vsel %vm552_vm0, %v592_v31, %v16856_v60 }
  0xaa   : > { %v777_v49 = vrot.slane %v676_v16, 1  ;;  %v855_v9 = vrot.slane %v676_v16, 2  ;;  %v857_v16 = vrot.slane %v11332_v51, 2 }
  0xab   : > { %v11297_v47 = vpop.permute.xlu1 %8780  ;;  %v8791_v54 = vpop.permute.xlu0 %8790 }
  0xac   : > { %v8792_v53 = vunpack.i.l.bf16 %v8791_v54  ;;  %v8793_v26 = vunpack.i.h.bf16 %v8791_v54  ;;  %v774_v54 = vrot.slane %v11281_v6, 1 }
  0xad   : > { %9080 = vrot.lane.b32.xlu1 %v9079_v4, %s10626_s14  ;;  %9065 = vrot.lane.b32.xlu0 %v9064_v45, %s10627_s15  ;;  %v8782_v45 = vunpack.i.l.bf16 %v11297_v47 }
  0xae   : > { %v1603_v31 = vsel %vm1506_vm3, %v10865_v3, %v8792_v53  ;;  %v16599_v3 = vrot.slane %v11349_v7, 7 }
  0xaf   : > { %v8786_v4 = vpop.permute.xlu1 %8785  ;;  %v11335_v41 = vpop.permute.xlu0 %8795 }
  0xb0   : > { %v8797_v15 = vunpack.i.l.bf16 %v11335_v41  ;;  %v8788_v29 = vunpack.i.h.bf16 %v8786_v4  ;;  %v8787_v60 = vunpack.i.l.bf16 %v8786_v4 }
  0xb1   : > { %9090 = vrot.lane.b32.xlu1 %v9089_v13, %s10625_s30  ;;  %9075 = vrot.lane.b32.xlu0 %v9074_v59, %s10626_s14  ;;  %v1604_v13 = vsel %vm1506_vm3, %v10845_v57, %v8793_v26  ;;  %v11366_v59 = vsel %vm711_vm2, %v774_v54, %v775_v37  ;;  %v1635_v57 = vsel %vm1538_vm4, %v1603_v31, %v8777_v39  ;;  %v16858_v26 = vrot.slane %v11264_v43, 2 }
  0xb2   : > { %v1507_v28 = vsel %vm1506_vm3, 0.0, %v8797_v15  ;;  %v11389_v31 = vsel %vm711_vm2, %v775_v37, %v777_v49 }
  0xb3   : > { %v11356_v44 = vpop.permute.xlu1 %8810  ;;  %v11363_v17 = vsel %vm1538_vm4, %v1507_v28, %v8782_v45  ;;  %v8801_v4 = vpop.permute.xlu0 %8800  ;;  %v11374_v22 = vsel %vm789_vm1, %v16858_v26, %v855_v9  ;;  %v1636_v28 = vsel %vm1538_vm4, %v1604_v13, %v8778_v12  ;;  %v9114_v13 = vpack.i.bf16 %v11215_v20, %v11264_v43 }
  0xb4   : > { %16857 = vst [vmem:[#allocation37_spill] sm:$0xff] %v11363_v17  ;;  %v8803_v53 = vunpack.i.h.bf16 %v8801_v4  ;;  %v8802_v15 = vunpack.i.l.bf16 %v8801_v4  ;;  %v1571_v8 = vsel %vm1570_vm5, %v11363_v17, %v8787_v60  ;;  %v1572_v45 = vsel %vm1570_vm5, %v11363_v17, %v8788_v29 }
  0xb5   : > { %9100 = vrot.lane.b32.xlu1 %v9099_v50, %s10627_s15  ;;  %9085 = vrot.lane.b32.xlu0 %v9084_v11, %s10625_s30  ;;  %v1731_v50 = vpack.c.bf16 %v11311_v58, %v11276_v10  ;;  %v1734_v12 = vpack.c.bf16 %v11374_v22, %v11308_v34  ;;  %v9119_v29 = vpack.i.bf16 %v11332_v51, %v11227_v52  ;;  %v16859_v4 = vrot.slane %v11340_v40, 2 }
  0xb6   : > { %v1667_v39 = vsel %vm1570_vm5, %v1635_v57, %v8802_v15  ;;  %v1668_v9 = vsel %vm1570_vm5, %v1636_v28, %v8803_v53  ;;  %v8812_v49 = vunpack.i.l.bf16 %v11356_v44  ;;  %v1699_v37 = vpack.c.bf16 %v1572_v45, %v1571_v8 }
  0xb7   : > { %v11384_v54 = vpop.permute.xlu1 %8820  ;;  %v8806_v11 = vpop.permute.xlu0 %8805  ;;  %v1700_v60 = vpack.c.bf16 %v1668_v9, %v1667_v39  ;;  %v11400_v15 = vsel %vm789_vm1, %v857_v16, %v16859_v4  ;;  %8524 = vmatprep.mubr.msk.bf16.mxu1 %vm1506_vm3, %v1731_v50  ;;  %v9129_v53 = vpack.i.bf16 %v11245_v27, %v11240_v38  ;;  %v16860_v52 = vrot.slane %v11292_v0, 7 }
  0xb8   : > { %8525 = vmatmul.mubr.msk.bf16.gmra.mxu1 %vm1506_vm3, %v1734_v12  ;;  %v8808_v20 = vunpack.i.h.bf16 %v8806_v11  ;;  %v9124_v16 = vpack.i.bf16 %v11389_v31, %v11366_v59  ;;  %v8798_v0 = vunpack.i.h.bf16 %v11335_v41  ;;  %v9139_v8 = vpack.i.bf16 %v11400_v15, %v11303_v32 }
  0xb9   : > { %9110 = vrot.lane.b32.xlu1 %v9109_v62, %s10626_s14  ;;  %v11410_v57 = vsel %vm552_vm0, %v16860_v52, 0.0  ;;  %9095 = vrot.lane.b32.xlu0 %v9094_v61, %s10627_s15  ;;  %v11426_v61 = vsel %vm552_vm0, %v595_v25, %v16599_v3  ;;  %v11429_v45 = vsel %vm552_vm0, 0.0, %v595_v25  ;;  %v8783_v50 = vunpack.i.h.bf16 %v11297_v47  ;;  %v518_v25 = vld [vmem:[%s10759_s29 + $0xf0] sm:$0xff]  ;;  %v519_v62 = vld [vmem:[%s10759_s29 + $0xf8] sm:$0xff] }
  0xba   : > { %1978 = vmatprep.mubr.bf16.mxu0 %v1700_v60  ;;  %v779_v41 = vrot.slane %v11332_v51, 1  ;;  %v780_v9 = vrot.slane %v11340_v40, 1  ;;  %v782_v12 = vrot.slane %v11410_v57, 1  ;;  %v1509_v60 = vsel %vm1506_vm3, %v10790_v23, %v8812_v49 }
  0xbb   : > { %1979 = vmatmul.mubr.bf16.vlgmr.msra.gmra.mxu0 %v1699_v37  ;;  %v8831_v28 = vpop.permute.xlu1 %8830  ;;  %v8816_v39 = vpop.permute.xlu0 %8815  ;;  %v8807_v4 = vunpack.i.l.bf16 %v8806_v11  ;;  %v8822_v37 = vunpack.i.l.bf16 %v11384_v54  ;;  %v1508_v47 = vsel %vm1506_vm3, %v10793_v24, %v8808_v20  ;;  %v16861_v38 = vpack.i.bf16 %v11270_v14, %v11311_v58 }
  0xbc   : > { %v8818_v52 = vunpack.i.h.bf16 %v8816_v39  ;;  %v8817_v26 = vunpack.i.l.bf16 %v8816_v39  ;;  %v8833_v3 = vunpack.i.h.bf16 %v8831_v28  ;;  %v8832_v17 = vunpack.i.l.bf16 %v8831_v28 }
  0xbd   : > { %9120 = vrot.lane.b32.xlu1 %v9119_v29, %s10625_s30  ;;  %9105 = vrot.lane.b32.xlu0 %v16861_v38, %s10626_s14  ;;  %v1605_v23 = vsel %vm1506_vm3, %v10839_v55, %v8798_v0  ;;  %v862_v49 = vrot.slane %v11429_v45, 2  ;;  %v863_v27 = vrot.slane %v11426_v61, 2  ;;  %v11455_v20 = vsel %vm711_vm2, %v779_v41, %v780_v9 }
  0xbe   : > { %v1540_v29 = vsel %vm1538_vm4, %v1508_v47, %v8818_v52  ;;  %v11458_v28 = vsel %vm711_vm2, %v780_v9, %v782_v12  ;;  %v598_v39 = vrot.slane %v518_v25, 7  ;;  %v599_v38 = vrot.slane %v519_v62, 7 }
  0xbf   : > { %v11449_v11 = vpop.permute.xlu1 %8840  ;;  %v8826_v24 = vpop.permute.xlu0 %8825  ;;  %v1606_v55 = vsel %vm1506_vm3, %v10842_v56, %v8807_v4  ;;  %v1541_v52 = vsel %vm1538_vm4, %v1509_v60, %v8822_v37  ;;  %v1637_v47 = vsel %vm1538_vm4, %v1605_v23, %v8783_v50  ;;  %v1573_v9 = vsel %vm1570_vm5, %v1540_v29, %v8832_v17 }
  0xc0   : > { %v8828_v0 = vunpack.i.h.bf16 %v8826_v24  ;;  %v8827_v32 = vunpack.i.l.bf16 %v8826_v24  ;;  %v1638_v41 = vsel %vm1538_vm4, %v1606_v55, %v8817_v26  ;;  %v1574_v12 = vsel %vm1570_vm5, %v1541_v52, %v8833_v3 }
  0xc1   : > { %9130 = vrot.lane.b32.xlu1 %v9129_v53, %s10627_s15  ;;  %9115 = vrot.lane.b32.xlu0 %v9114_v13, %s10625_s30  ;;  %v9134_v53 = vpack.i.bf16 %v11300_v48, %v11374_v22  ;;  %v9149_v13 = vpack.i.bf16 %v11429_v45, %v11311_v58  ;;  %v9154_v26 = vpack.i.bf16 %v11458_v28, %v11455_v20  ;;  %v860_v17 = vrot.slane %v11410_v57, 2 }
  0xc2   : > { %v1669_v56 = vsel %vm1570_vm5, %v1637_v47, %v8827_v32  ;;  %v1670_v4 = vsel %vm1570_vm5, %v1638_v41, %v8828_v0  ;;  %v11481_v3 = vsel %vm552_vm0, %v598_v39, %v599_v38  ;;  %v8813_v32 = vunpack.i.h.bf16 %v11356_v44 }
  0xc3   : > { %v11469_v62 = vpop.permute.xlu1 %8850  ;;  %v8836_v60 = vpop.permute.xlu0 %8835  ;;  %v1703_v50 = vpack.c.bf16 %v1670_v4, %v1669_v56  ;;  %v8842_v37 = vunpack.i.l.bf16 %v11449_v11  ;;  %v1702_v25 = vpack.c.bf16 %v1574_v12, %v1573_v9  ;;  %v11487_v23 = vsel %vm789_vm1, %v862_v49, %v863_v27 }
  0xc4   : > { %v8838_v58 = vunpack.i.h.bf16 %v8836_v60  ;;  %v11491_v29 = vsel %vm552_vm0, 0.0, %v598_v39  ;;  %v16862_v57 = vrot.slane %v11349_v7, 7  ;;  %v11499_v44 = vsel %vm552_vm0, %v599_v38, 0.0 }
  0xc5   : > { %9140 = vrot.lane.b32.xlu1 %v9139_v8, %s10626_s14  ;;  %9125 = vrot.lane.b32.xlu0 %v9124_v16, %s10627_s15  ;;  %v906_v49 = vrot.slane %v11491_v29, 2  ;;  %v907_v55 = vrot.slane %v11481_v3, 2  ;;  %v909_v0 = vrot.slane %v11499_v44, 2  ;;  %v8823_v39 = vunpack.i.h.bf16 %v11384_v54 }
  0xc6   : > { %1986 = vmatprep.mubr.bf16.mxu0 %v1703_v50  ;;  %v11496_v24 = vsel %vm552_vm0, %v16862_v57, 0.0  ;;  %v8852_v7 = vunpack.i.l.bf16 %v11469_v62  ;;  %v9169_v47 = vpack.i.bf16 %v11487_v23, %v11389_v31  ;;  %v16863_v38 = vrot.slane %v11340_v40, 2 }
  0xc7   : > { %1987 = vmatmul.mubr.bf16.gmra.mxu0 %v1702_v25  ;;  %v8861_v8 = vpop.permute.xlu1 %8860  ;;  %v865_v16 = vrot.slane %v11496_v24, 2  ;;  %v8846_v52 = vpop.permute.xlu0 %8845  ;;  %v1607_v9 = vsel %vm1506_vm3, %v10894_v35, %v8813_v32  ;;  %v1511_v12 = vsel %vm1506_vm3, %v10777_v18, %v8842_v37  ;;  %v8837_v56 = vunpack.i.l.bf16 %v8836_v60 }
  0xc8   : > { %v11512_v41 = vsel %vm789_vm1, %v16863_v38, %v860_v17  ;;  %v8848_v4 = vunpack.i.h.bf16 %v8846_v52  ;;  %v1510_v54 = vsel %vm1506_vm3, %v10780_v19, %v8838_v58  ;;  %v8847_v50 = vunpack.i.l.bf16 %v8846_v52 }
  0xc9   : > { %9150 = vrot.lane.b32.xlu1 %v9149_v13, %s10625_s30  ;;  %v8863_v25 = vunpack.i.h.bf16 %v8861_v8  ;;  %v8862_v57 = vunpack.i.l.bf16 %v8861_v8  ;;  %9135 = vrot.lane.b32.xlu0 %v9134_v53, %s10626_s14  ;;  %v11526_v35 = vsel %vm789_vm1, %v906_v49, %v907_v55  ;;  %v11529_v18 = vsel %vm789_vm1, %v863_v27, %v865_v16 }
  0xca   : > { %v1542_v38 = vsel %vm1538_vm4, %v1510_v54, %v8848_v4  ;;  %v11532_v13 = vsel %vm789_vm1, %v907_v55, %v909_v0  ;;  %v1639_v19 = vsel %vm1538_vm4, %v1607_v9, %v8823_v39  ;;  %v1543_v32 = vsel %vm1538_vm4, %v1511_v12, %v8852_v7 }
  0xcb   : > { %v11522_v17 = vpop.permute.xlu1 %8870  ;;  %v8856_v60 = vpop.permute.xlu0 %8855  ;;  %v1743_v53 = vpack.c.bf16 %v11532_v13, %v11526_v35  ;;  %v1737_v37 = vpack.c.bf16 %v11512_v41, %v11400_v15  ;;  %v1608_v58 = vsel %vm1506_vm3, %v10897_v36, %v8837_v56  ;;  %v16864_v49 = vpack.i.bf16 %v11264_v43, %v11281_v6 }
  0xcc   : > { %v8858_v8 = vunpack.i.h.bf16 %v8856_v60  ;;  %v8857_v27 = vunpack.i.l.bf16 %v8856_v60  ;;  %v1740_v55 = vpack.c.bf16 %v11529_v18, %v11487_v23  ;;  %v16865_v16 = vpack.i.bf16 %v11276_v10, %v11340_v40 }
  0xcd   : > { %9160 = vrot.lane.b32.xlu1 %v16864_v49, %s10627_s15  ;;  %v1640_v0 = vsel %vm1538_vm4, %v1608_v58, %v8847_v50  ;;  %v1575_v39 = vsel %vm1570_vm5, %v1542_v38, %v8862_v57  ;;  %v1576_v36 = vsel %vm1570_vm5, %v1543_v32, %v8863_v25  ;;  %8528 = vmatprep.mubr.msk.bf16.mxu1 %vm1506_vm3, %v1737_v37  ;;  %v784_v10 = vrot.slane %v11429_v45, 1 }
  0xce   : > { %9145 = vrot.lane.b32.xlu0 %v16865_v16, %s10625_s30  ;;  %v1671_v52 = vsel %vm1570_vm5, %v1639_v19, %v8857_v27  ;;  %v1672_v9 = vsel %vm1570_vm5, %v1640_v0, %v8858_v8  ;;  %8529 = vmatmul.mubr.msk.bf16.gmra.mxu1 %vm1506_vm3, %v1740_v55  ;;  %v785_v4 = vrot.slane %v11426_v61, 1  ;;  %v787_v54 = vrot.slane %v11496_v24, 1 }
  0xcf   : > { %v11556_v7 = vpop.permute.xlu1 %8880  ;;  %v8866_v12 = vpop.permute.xlu0 %8865  ;;  %v1706_v56 = vpack.c.bf16 %v1672_v9, %v1671_v52  ;;  %8532 = vmatprep.mubr.msk.bf16.mxu1 %vm1506_vm3, %v1743_v53  ;;  %v8872_v50 = vunpack.i.l.bf16 %v11522_v17  ;;  %v1705_v25 = vpack.c.bf16 %v1576_v36, %v1575_v39  ;;  %v9179_v57 = vpack.i.bf16 %v11491_v29, %v11374_v22 }
  0xd0   : > { %v8868_v38 = vunpack.i.h.bf16 %v8866_v12  ;;  %v9164_v24 = vpack.i.bf16 %v11366_v59, %v11512_v41  ;;  %v8843_v60 = vunpack.i.h.bf16 %v11449_v11  ;;  %v8853_v32 = vunpack.i.h.bf16 %v11469_v62 }
  0xd1   : > { %9170 = vrot.lane.b32.xlu1 %v9169_v47, %s10626_s14  ;;  %1994 = vmatprep.mubr.bf16.mxu0 %v1706_v56  ;;  %v9174_v47 = vpack.i.bf16 %v11308_v34, %v11426_v61  ;;  %v9189_v53 = vpack.i.bf16 %v11340_v40, %v11332_v51  ;;  %v11582_v37 = vsel %vm711_vm2, %v784_v10, %v785_v4  ;;  %v8867_v58 = vunpack.i.l.bf16 %v8866_v12 }
  0xd2   : > { %9155 = vrot.lane.b32.xlu0 %v9154_v26, %s10627_s15  ;;  %1995 = vmatmul.mubr.bf16.gmra.mxu0 %v1705_v25  ;;  %v11585_v26 = vsel %vm711_vm2, %v785_v4, %v787_v54  ;;  %v1513_v11 = vsel %vm1506_vm3, %v10807_v30, %v8872_v50  ;;  %v8882_v8 = vunpack.i.l.bf16 %v11556_v7  ;;  %v1512_v34 = vsel %vm1506_vm3, %v10811_v33, %v8868_v38 }
  0xd3   : > { %v8891_v19 = vpop.permute.xlu1 %8890  ;;  %v8876_v22 = vpop.permute.xlu0 %8875  ;;  %v1609_v16 = vsel %vm1506_vm3, %v10940_v1, %v8843_v60  ;;  %v9184_v36 = vpack.i.bf16 %v11585_v26, %v11582_v37  ;;  %v9199_v52 = vpack.i.bf16 %v11526_v35, %v11458_v28  ;;  %v1610_v33 = vsel %vm1506_vm3, %v10943_v5, %v8867_v58 }
  0xd4   : > { %v8878_v27 = vunpack.i.h.bf16 %v8876_v22  ;;  %v8877_v62 = vunpack.i.l.bf16 %v8876_v22  ;;  %v8893_v49 = vunpack.i.h.bf16 %v8891_v19  ;;  %v8892_v55 = vunpack.i.l.bf16 %v8891_v19 }
  0xd5   : > { %9180 = vrot.lane.b32.xlu1 %v9179_v57, %s10625_s30  ;;  %v1545_v1 = vsel %vm1538_vm4, %v1513_v11, %v8882_v8  ;;  %v1641_v56 = vsel %vm1538_vm4, %v1609_v16, %v8853_v32  ;;  %v869_v38 = vrot.slane %v11491_v29, 1  ;;  %v872_v60 = vrot.slane %v11499_v44, 1 }
  0xd6   : > { %9165 = vrot.lane.b32.xlu0 %v9164_v24, %s10626_s14  ;;  %v1544_v30 = vsel %vm1538_vm4, %v1512_v34, %v8878_v27  ;;  %v1642_v10 = vsel %vm1538_vm4, %v1610_v33, %v8877_v62  ;;  %v1578_v54 = vsel %vm1570_vm5, %v1545_v1, %v8893_v49  ;;  %v870_v24 = vrot.slane %v11481_v3, 1 }
  0xd7   : > { %v11596_v0 = vpop.permute.xlu1 %8900  ;;  %v8886_v39 = vpop.permute.xlu0 %8885  ;;  %v1577_v4 = vsel %vm1570_vm5, %v1544_v30, %v8892_v55  ;;  %v16866_v32 = vmov 0.0   ;;  %v9194_v11 = vpack.i.bf16 %v11455_v20, %v11529_v18  ;;  %v8873_v58 = vunpack.i.h.bf16 %v11522_v17 }
  0xd8   : > { %v8888_v9 = vunpack.i.h.bf16 %v8886_v39  ;;  %v8887_v12 = vunpack.i.l.bf16 %v8886_v39  ;;  %v8902_v19 = vunpack.i.l.bf16 %v11596_v0  ;;  %v9209_v22 = vpack.i.bf16 %v16866_v32, %v11512_v41 }
  0xd9   : > { %9190 = vrot.lane.b32.xlu1 %v9189_v53, %s10627_s15  ;;  %v9204_v44 = vpack.i.bf16 %v11400_v15, %v11481_v3  ;;  %v9219_v27 = vpack.i.bf16 %v11426_v61, %v11429_v45  ;;  %v8883_v34 = vunpack.i.h.bf16 %v11556_v7  ;;  %v11633_v62 = vsel %vm711_vm2, %v869_v38, %v870_v24 }
  0xda   : > { %9175 = vrot.lane.b32.xlu0 %v9174_v47, %s10625_s30  ;;  %v1673_v5 = vsel %vm1570_vm5, %v1641_v56, %v8887_v12  ;;  %v1674_v50 = vsel %vm1570_vm5, %v1642_v10, %v8888_v9  ;;  %v1708_v47 = vpack.c.bf16 %v1578_v54, %v1577_v4  ;;  %v11636_v49 = vsel %vm711_vm2, %v870_v24, %v872_v60 }
  0xdb   : > { %v11612_v35 = vpop.permute.xlu1 %8910  ;;  %v8896_v25 = vpop.permute.xlu0 %8895  ;;  %v1709_v57 = vpack.c.bf16 %v1674_v50, %v1673_v5  ;;  %v11640_v17 = vpack.c.bf16 %v10783_v21, %v10783_v21  ;;  %v1515_v55 = vsel %vm1506_vm3, %v10862_v2, %v8902_v19  ;;  %v1611_v2 = vsel %vm1506_vm3, %v10985_v42, %v8873_v58 }
  0xdc   : > { %v8898_v53 = vunpack.i.h.bf16 %v8896_v25  ;;  %v8897_v15 = vunpack.i.l.bf16 %v8896_v25  ;;  %v8912_v16 = vunpack.i.l.bf16 %v11612_v35  ;;  %v9214_v1 = vpack.i.bf16 %v11636_v49, %v11633_v62 }
  0xdd   : > { %9200 = vrot.lane.b32.xlu1 %v9199_v52, %s10626_s14  ;;  %2002 = vmatprep.mubr.bf16.mxu0 %v1709_v57  ;;  %16867 = vst [vmem:[#allocation38_spill] sm:$0xff] %v11640_v17  ;;  %v1643_v42 = vsel %vm1538_vm4, %v1611_v2, %v8883_v34  ;;  %v16869_v34 = vld [vmem:[#allocation10_spill] sm:$0xff] }
  0xde   : > { %9185 = vrot.lane.b32.xlu0 %v9184_v36, %s10627_s15  ;;  %2003 = vmatmul.mubr.bf16.gmra.mxu0 %v1708_v47  ;;  %v1514_v7 = vsel %vm1506_vm3, %v10854_v63, %v8898_v53  ;;  %v1612_v63 = vsel %vm1506_vm3, %v10988_v46, %v8897_v15  ;;  %v1547_v4 = vsel %vm1538_vm4, %v1515_v55, %v8912_v16  ;;  %v16868_v47 = vld [vmem:[#allocation8_spill] sm:$0xff] }
  0xdf   : > { %v8921_v8 = vpop.permute.xlu1 %8920  ;;  %v8906_v41 = vpop.permute.xlu0 %8905  ;;  %8533 = vmatmul.mubr.msk.bf16.gmra.mxu1 %vm1506_vm3, %v11640_v17  ;;  %v9234_v32 = vpack.i.bf16 %v11491_v29, %v16868_v47  ;;  %v9224_v53 = vpack.i.bf16 %v11582_v37, %v11532_v13  ;;  %v16870_v13 = vld [vmem:[#allocation9_spill] sm:$0xff] }
  0xe0   : > { %v8908_v30 = vunpack.i.h.bf16 %v8906_v41  ;;  %v8907_v39 = vunpack.i.l.bf16 %v8906_v41  ;;  %v8923_v36 = vunpack.i.h.bf16 %v8921_v8  ;;  %v8922_v52 = vunpack.i.l.bf16 %v8921_v8 }
  0xe1   : > { %9210 = vrot.lane.b32.xlu1 %v9209_v22, %s10625_s30  ;;  %v8913_v8 = vunpack.i.h.bf16 %v11612_v35  ;;  %v16871_v35 = vld [vmem:[#allocation15_spill] sm:$0xff] }
  0xe2   : > { %9195 = vrot.lane.b32.xlu0 %v9194_v11, %s10626_s14  ;;  %v1546_v9 = vsel %vm1538_vm4, %v1514_v7, %v8908_v30  ;;  %v1644_v54 = vsel %vm1538_vm4, %v1612_v63, %v8907_v39  ;;  %v1580_v50 = vsel %vm1570_vm5, %v1547_v4, %v8923_v36  ;;  %v8903_v11 = vunpack.i.h.bf16 %v11596_v0 }
  0xe3   : > { %v11653_v33 = vpop.permute.xlu1 %8930  ;;  %v8916_v12 = vpop.permute.xlu0 %8915  ;;  %v1579_v5 = vsel %vm1570_vm5, %v1546_v9, %v8922_v52  ;;  %v16872_v52 = vld [vmem:[#allocation16_spill] sm:$0xff] }
  0xe4   : > { %v8918_v56 = vunpack.i.h.bf16 %v8916_v12  ;;  %v8917_v10 = vunpack.i.l.bf16 %v8916_v12  ;;  %v8932_v60 = vunpack.i.l.bf16 %v11653_v33  ;;  %v1711_v19 = vpack.c.bf16 %v1580_v50, %v1579_v5 }
  0xe5   : > { %9220 = vrot.lane.b32.xlu1 %v9219_v27, %s10627_s15  ;;  %v9229_v27 = vpack.i.bf16 %v11529_v18, %v11487_v23  ;;  %v1613_v23 = vsel %vm1506_vm3, %v16871_v35, %v8903_v11 }
  0xe6   : > { %9205 = vrot.lane.b32.xlu0 %v9204_v44, %s10625_s30  ;;  %v1675_v46 = vsel %vm1570_vm5, %v1643_v42, %v8917_v10  ;;  %v1676_v57 = vsel %vm1570_vm5, %v1644_v54, %v8918_v56  ;;  %v1517_v29 = vsel %vm1506_vm3, %v16869_v34, %v8932_v60  ;;  %v1645_v63 = vsel %vm1538_vm4, %v1613_v23, %v8913_v8 }
  0xe7   : > { %v11667_v25 = vpop.permute.xlu1 %8940  ;;  %v8926_v38 = vpop.permute.xlu0 %8925  ;;  %v1712_v24 = vpack.c.bf16 %v1676_v57, %v1675_v46  ;;  %v8933_v60 = vunpack.i.h.bf16 %v11653_v33 }
  0xe8   : > { %v8928_v22 = vunpack.i.h.bf16 %v8926_v38  ;;  %v8927_v41 = vunpack.i.l.bf16 %v8926_v38  ;;  %v8942_v55 = vunpack.i.l.bf16 %v11667_v25 }
  0xe9   : > { %1002 = vrot.lane.b32.xlu1 %v11585_v26, %s10626_s14  ;;  %2010 = vmatprep.mubr.bf16.mxu0 %v1712_v24 }
  0xea   : > { %9215 = vrot.lane.b32.xlu0 %v9214_v1, %s10627_s15  ;;  %2011 = vmatmul.mubr.bf16.gmra.mxu0 %v1711_v19  ;;  %v1516_v0 = vsel %vm1506_vm3, %v16870_v13, %v8928_v22  ;;  %v1614_v2 = vsel %vm1506_vm3, %v16872_v52, %v8927_v41  ;;  %v1549_v1 = vsel %vm1538_vm4, %v1517_v29, %v8942_v55  ;;  %v16875_v55 = vld [vmem:[#allocation19_spill] sm:$0xff] }
  0xeb   : > { %v8951_v58 = vpop.permute.xlu1 %8950  ;;  %v8936_v44 = vpop.permute.xlu0 %8935  ;;  %v1615_v33 = vsel %vm1506_vm3, %v16875_v55, %v8933_v60 }
  0xec   : > { %v8938_v15 = vunpack.i.h.bf16 %v8936_v44  ;;  %v8937_v16 = vunpack.i.l.bf16 %v8936_v44  ;;  %v8953_v30 = vunpack.i.h.bf16 %v8951_v58  ;;  %v8952_v7 = vunpack.i.l.bf16 %v8951_v58 }
  0xed   : > { %9235 = vrot.lane.b32.xlu1 %v9234_v32, %s10627_s15  ;;  %v8943_v32 = vunpack.i.h.bf16 %v11667_v25 }
  0xee   : > { %9225 = vrot.lane.b32.xlu0 %v9224_v53, %s10626_s14  ;;  %v1548_v39 = vsel %vm1538_vm4, %v1516_v0, %v8938_v15  ;;  %v1646_v56 = vsel %vm1538_vm4, %v1614_v2, %v8937_v16  ;;  %v1582_v4 = vsel %vm1570_vm5, %v1549_v1, %v8953_v30  ;;  %v16873_v53 = vld [vmem:[#allocation12_spill] sm:$0xff] }
  0xef   : > { %v11692_v18 = vpop.permute.xlu1 %8960  ;;  %v8946_v36 = vpop.permute.xlu0 %8945  ;;  %v1581_v10 = vsel %vm1570_vm5, %v1548_v39, %v8952_v7  ;;  %v16876_v0 = vld [vmem:[#allocation20_spill] sm:$0xff]  ;;  %v1647_v23 = vsel %vm1538_vm4, %v1615_v33, %v8943_v32  ;;  %v16878_v32 = vld [vmem:[#allocation14_spill] sm:$0xff] }
  0xf0   : > { %v8948_v9 = vunpack.i.h.bf16 %v8946_v36  ;;  %v8947_v12 = vunpack.i.l.bf16 %v8946_v36  ;;  %v8962_v57 = vunpack.i.l.bf16 %v11692_v18  ;;  %v1714_v38 = vpack.c.bf16 %v1582_v4, %v1581_v10 }
  0xf2   : > { %9230 = vrot.lane.b32.xlu0 %v9229_v27, %s10625_s30  ;;  %v1677_v54 = vsel %vm1570_vm5, %v1645_v63, %v8947_v12  ;;  %v1678_v5 = vsel %vm1570_vm5, %v1646_v56, %v8948_v9  ;;  %v1519_v11 = vsel %vm1506_vm3, %v16873_v53, %v8962_v57  ;;  %v16874_v27 = vld [vmem:[#allocation11_spill] sm:$0xff]  ;;  %v16877_v57 = vld [vmem:[#allocation13_spill] sm:$0xff] }
  0xf3   : > { %v11703_v42 = vpop.permute.xlu1 %8970  ;;  %v8956_v50 = vpop.permute.xlu0 %8955  ;;  %v1715_v46 = vpack.c.bf16 %v1678_v5, %v1677_v54  ;;  %v8963_v54 = vunpack.i.h.bf16 %v11692_v18 }
  0xf4   : > { %v8958_v24 = vunpack.i.h.bf16 %v8956_v50  ;;  %v8957_v58 = vunpack.i.l.bf16 %v8956_v50  ;;  %v8972_v8 = vunpack.i.l.bf16 %v11703_v42  ;;  %v8973_v50 = vunpack.i.h.bf16 %v11703_v42 }
  0xf5   : > { %2018 = vmatprep.mubr.bf16.mxu0 %v1715_v46 }
  0xf6   : > { %1190 = vrot.lane.b32.xlu0 %v11481_v3, %s10627_s15  ;;  %2019 = vmatmul.mubr.bf16.gmra.mxu0 %v1714_v38  ;;  %v1518_v34 = vsel %vm1506_vm3, %v16874_v27, %v8958_v24  ;;  %v1616_v16 = vsel %vm1506_vm3, %v16876_v0, %v8957_v58  ;;  %v1551_v35 = vsel %vm1538_vm4, %v1519_v11, %v8972_v8  ;;  %v16879_v8 = vld [vmem:[#allocation24_spill] sm:$0xff] }
  0xf7   : > { %v8981_v19 = vpop.permute.xlu1 %8980  ;;  %v8966_v22 = vpop.permute.xlu0 %8965  ;;  %v1617_v18 = vsel %vm1506_vm3, %v16879_v8, %v8963_v54 }
  0xf8   : > { %v8968_v44 = vunpack.i.h.bf16 %v8966_v22  ;;  %v8967_v29 = vunpack.i.l.bf16 %v8966_v22  ;;  %v8983_v3 = vunpack.i.h.bf16 %v8981_v19  ;;  %v8982_v41 = vunpack.i.l.bf16 %v8981_v19 }
  0xf9   : > { %v1649_v33 = vsel %vm1538_vm4, %v1617_v18, %v8973_v50  ;;  %v16882_v50 = vld [vmem:[#allocation17_spill] sm:$0xff] }
  0xfa   : > { %v1550_v25 = vsel %vm1538_vm4, %v1518_v34, %v8968_v44  ;;  %v1648_v39 = vsel %vm1538_vm4, %v1616_v16, %v8967_v29  ;;  %v1584_v52 = vsel %vm1570_vm5, %v1551_v35, %v8983_v3  ;;  %v16880_v34 = vld [vmem:[#allocation25_spill] sm:$0xff] }
  0xfb   : > { %v11719_v15 = vpop.permute.xlu1 %8990  ;;  %v8976_v13 = vpop.permute.xlu0 %8975  ;;  %v1583_v36 = vsel %vm1570_vm5, %v1550_v25, %v8982_v41 }
  0xfc   : > { %v8978_v30 = vunpack.i.h.bf16 %v8976_v13  ;;  %v8977_v7 = vunpack.i.l.bf16 %v8976_v13  ;;  %v8992_v56 = vunpack.i.l.bf16 %v11719_v15  ;;  %v1717_v10 = vpack.c.bf16 %v1584_v52, %v1583_v36 }
  0xfe   : > { %v1679_v9 = vsel %vm1570_vm5, %v1647_v23, %v8977_v7  ;;  %v1680_v12 = vsel %vm1570_vm5, %v1648_v39, %v8978_v30  ;;  %v1521_v38 = vsel %vm1506_vm3, %v16877_v57, %v8992_v56  ;;  %v16881_v56 = vld [vmem:[#allocation18_spill] sm:$0xff] }
  0xff   : > { %v11729_v2 = vpop.permute.xlu1 %9000  ;;  %v8986_v1 = vpop.permute.xlu0 %8985  ;;  %v1718_v63 = vpack.c.bf16 %v1680_v12, %v1679_v9  ;;  %v8993_v9 = vunpack.i.h.bf16 %v11719_v15 }
 0x100   : > { %v8988_v4 = vunpack.i.h.bf16 %v8986_v1  ;;  %v8987_v24 = vunpack.i.l.bf16 %v8986_v1  ;;  %v9002_v60 = vunpack.i.l.bf16 %v11729_v2  ;;  %v9003_v1 = vunpack.i.h.bf16 %v11729_v2 }
 0x101   : > { %2026 = vmatprep.mubr.bf16.mxu0 %v1718_v63 }
 0x102   : > { %2027 = vmatmul.mubr.bf16.gmra.mxu0 %v1717_v10  ;;  %v1520_v22 = vsel %vm1506_vm3, %v16878_v32, %v8988_v4  ;;  %v1618_v29 = vsel %vm1506_vm3, %v16880_v34, %v8987_v24  ;;  %v1553_v55 = vsel %vm1538_vm4, %v1521_v38, %v9002_v60  ;;  %v16883_v60 = vld [vmem:[#allocation27_spill] sm:$0xff] }
 0x103   : > { %v9011_v5 = vpop.permute.xlu1 %9010  ;;  %v8996_v46 = vpop.permute.xlu0 %8995  ;;  %v1619_v15 = vsel %vm1506_vm3, %v16883_v60, %v8993_v9 }
 0x104   : > { %v8998_v19 = vunpack.i.h.bf16 %v8996_v46  ;;  %v8997_v53 = vunpack.i.l.bf16 %v8996_v46  ;;  %v9013_v11 = vunpack.i.h.bf16 %v9011_v5  ;;  %v9012_v58 = vunpack.i.l.bf16 %v9011_v5 }
 0x105   : > { %v1651_v18 = vsel %vm1538_vm4, %v1619_v15, %v9003_v1  ;;  %v16886_v1 = vld [vmem:[#allocation21_spill] sm:$0xff] }
 0x106   : > { %v1552_v42 = vsel %vm1538_vm4, %v1520_v22, %v8998_v19  ;;  %v1650_v25 = vsel %vm1538_vm4, %v1618_v29, %v8997_v53  ;;  %v1586_v0 = vsel %vm1570_vm5, %v1553_v55, %v9013_v11  ;;  %v16884_v22 = vld [vmem:[#allocation28_spill] sm:$0xff] }
 0x107   : > { %v11743_v44 = vpop.permute.xlu1 %9020  ;;  %v9006_v27 = vpop.permute.xlu0 %9005  ;;  %v1585_v13 = vsel %vm1570_vm5, %v1552_v42, %v9012_v58 }
 0x108   : > { %v9008_v3 = vunpack.i.h.bf16 %v9006_v27  ;;  %v9007_v41 = vunpack.i.l.bf16 %v9006_v27  ;;  %v9022_v39 = vunpack.i.l.bf16 %v11743_v44  ;;  %v1720_v36 = vpack.c.bf16 %v1586_v0, %v1585_v13 }
 0x10a   : > { %v1681_v30 = vsel %vm1570_vm5, %v1649_v33, %v9007_v41  ;;  %v1682_v7 = vsel %vm1570_vm5, %v1650_v25, %v9008_v3  ;;  %v1523_v10 = vsel %vm1506_vm3, %v16881_v56, %v9022_v39  ;;  %v16885_v39 = vld [vmem:[#allocation22_spill] sm:$0xff] }
 0x10b   : > { %v11753_v16 = vpop.permute.xlu1 %9030  ;;  %v9016_v35 = vpop.permute.xlu0 %9015  ;;  %v1721_v23 = vpack.c.bf16 %v1682_v7, %v1681_v30  ;;  %v9023_v30 = vunpack.i.h.bf16 %v11743_v44 }
 0x10c   : > { %v9018_v52 = vunpack.i.h.bf16 %v9016_v35  ;;  %v9017_v4 = vunpack.i.l.bf16 %v9016_v35  ;;  %v9032_v54 = vunpack.i.l.bf16 %v11753_v16  ;;  %v9033_v35 = vunpack.i.h.bf16 %v11753_v16 }
 0x10d   : > { %2034 = vmatprep.mubr.bf16.mxu0 %v1721_v23 }
 0x10e   : > { %2035 = vmatmul.mubr.bf16.gmra.mxu0 %v1720_v36  ;;  %v1522_v46 = vsel %vm1506_vm3, %v16882_v50, %v9018_v52  ;;  %v1620_v53 = vsel %vm1506_vm3, %v16884_v22, %v9017_v4  ;;  %v1555_v8 = vsel %vm1538_vm4, %v1523_v10, %v9032_v54  ;;  %v16887_v54 = vld [vmem:[#allocation31_spill] sm:$0xff] }
 0x10f   : > { %v9041_v12 = vpop.permute.xlu1 %9040  ;;  %v9026_v63 = vpop.permute.xlu0 %9025  ;;  %v1621_v44 = vsel %vm1506_vm3, %v16887_v54, %v9023_v30 }
 0x110   : > { %v9028_v5 = vunpack.i.h.bf16 %v9026_v63  ;;  %v9027_v57 = vunpack.i.l.bf16 %v9026_v63  ;;  %v9043_v38 = vunpack.i.h.bf16 %v9041_v12  ;;  %v9042_v24 = vunpack.i.l.bf16 %v9041_v12 }
 0x111   : > { %v1653_v15 = vsel %vm1538_vm4, %v1621_v44, %v9033_v35  ;;  %v16890_v35 = vld [vmem:[#allocation23_spill] sm:$0xff] }
 0x112   : > { %v1554_v2 = vsel %vm1538_vm4, %v1522_v46, %v9028_v5  ;;  %v1652_v42 = vsel %vm1538_vm4, %v1620_v53, %v9027_v57  ;;  %v1588_v34 = vsel %vm1570_vm5, %v1555_v8, %v9043_v38  ;;  %v16888_v46 = vld [vmem:[#allocation32_spill] sm:$0xff] }
 0x113   : > { %v11767_v19 = vpop.permute.xlu1 %9050  ;;  %v9036_v32 = vpop.permute.xlu0 %9035  ;;  %v1587_v27 = vsel %vm1570_vm5, %v1554_v2, %v9042_v24 }
 0x114   : > { %v9038_v11 = vunpack.i.h.bf16 %v9036_v32  ;;  %v9037_v58 = vunpack.i.l.bf16 %v9036_v32  ;;  %v9052_v25 = vunpack.i.l.bf16 %v11767_v19  ;;  %v1723_v13 = vpack.c.bf16 %v1588_v34, %v1587_v27 }
 0x116   : > { %v1683_v3 = vsel %vm1570_vm5, %v1651_v18, %v9037_v58  ;;  %v1684_v41 = vsel %vm1570_vm5, %v1652_v42, %v9038_v11  ;;  %v1525_v36 = vsel %vm1506_vm3, %v16885_v39, %v9052_v25  ;;  %v16889_v25 = vld [vmem:[#allocation26_spill] sm:$0xff] }
 0x117   : > { %v11777_v29 = vpop.permute.xlu1 %9060  ;;  %v9046_v55 = vpop.permute.xlu0 %9045  ;;  %v1724_v33 = vpack.c.bf16 %v1684_v41, %v1683_v3  ;;  %v9053_v3 = vunpack.i.h.bf16 %v11767_v19 }
 0x118   : > { %v9048_v0 = vunpack.i.h.bf16 %v9046_v55  ;;  %v9047_v52 = vunpack.i.l.bf16 %v9046_v55  ;;  %v9062_v9 = vunpack.i.l.bf16 %v11777_v29  ;;  %v9063_v55 = vunpack.i.h.bf16 %v11777_v29 }
 0x119   : > { %2042 = vmatprep.mubr.bf16.mxu0 %v1724_v33  ;;  %v1623_v19 = vsel %vm1506_vm3, %v11270_v14, %v9053_v3  ;;  %v16893_v3 = vld [vmem:[#allocation29_spill] sm:$0xff] }
 0x11a   : > { %2043 = vmatmul.mubr.bf16.gmra.mxu0 %v1723_v13  ;;  %v1524_v63 = vsel %vm1506_vm3, %v16886_v1, %v9048_v0  ;;  %v1622_v57 = vsel %vm1506_vm3, %v16888_v46, %v9047_v52  ;;  %v1557_v60 = vsel %vm1538_vm4, %v1525_v36, %v9062_v9  ;;  %v16891_v1 = vld [vmem:[#allocation35_spill] sm:$0xff]  ;;  %v1655_v54 = vsel %vm1538_vm4, %v1623_v19, %v9063_v55 }
 0x11b   : > { %v9071_v7 = vpop.permute.xlu1 %9070  ;;  %v9056_v23 = vpop.permute.xlu0 %9055 }
 0x11c   : > { %v9058_v12 = vunpack.i.h.bf16 %v9056_v23  ;;  %v9057_v56 = vunpack.i.l.bf16 %v9056_v23  ;;  %v9073_v10 = vunpack.i.h.bf16 %v9071_v7  ;;  %v9072_v4 = vunpack.i.l.bf16 %v9071_v7 }
 0x11e   : > { %v1556_v16 = vsel %vm1538_vm4, %v1524_v63, %v9058_v12  ;;  %v1654_v2 = vsel %vm1538_vm4, %v1622_v57, %v9057_v56  ;;  %v1590_v22 = vsel %vm1570_vm5, %v1557_v60, %v9073_v10 }
 0x11f   : > { %v11791_v5 = vpop.permute.xlu1 %9080  ;;  %v9066_v50 = vpop.permute.xlu0 %9065  ;;  %v1589_v32 = vsel %vm1570_vm5, %v1556_v16, %v9072_v4 }
 0x120   : > { %v9068_v38 = vunpack.i.h.bf16 %v9066_v50  ;;  %v9067_v24 = vunpack.i.l.bf16 %v9066_v50  ;;  %v9082_v42 = vunpack.i.l.bf16 %v11791_v5  ;;  %v1726_v27 = vpack.c.bf16 %v1590_v22, %v1589_v32 }
 0x121   : > { %v9083_v32 = vunpack.i.h.bf16 %v11791_v5 }
 0x122   : > { %v1685_v11 = vsel %vm1570_vm5, %v1653_v15, %v9067_v24  ;;  %v1686_v58 = vsel %vm1570_vm5, %v1654_v2, %v9068_v38  ;;  %v1527_v13 = vsel %vm1506_vm3, %v16889_v25, %v9082_v42 }
 0x123   : > { %v11801_v53 = vpop.permute.xlu1 %9090  ;;  %v9076_v8 = vpop.permute.xlu0 %9075  ;;  %v1727_v18 = vpack.c.bf16 %v1686_v58, %v1685_v11  ;;  %v1625_v5 = vsel %vm1506_vm3, %v11300_v48, %v9083_v32 }
 0x124   : > { %v9078_v34 = vunpack.i.h.bf16 %v9076_v8  ;;  %v9077_v0 = vunpack.i.l.bf16 %v9076_v8  ;;  %v9092_v30 = vunpack.i.l.bf16 %v11801_v53  ;;  %v9093_v11 = vunpack.i.h.bf16 %v11801_v53  ;;  %v16892_v8 = vld [vmem:[#allocation30_spill] sm:$0xff] }
 0x125   : > { %2050 = vmatprep.mubr.bf16.mxu0 %v1727_v18 }
 0x126   : > { %2051 = vmatmul.mubr.bf16.gmra.mxu0 %v1726_v27  ;;  %v1526_v23 = vsel %vm1506_vm3, %v16890_v35, %v9078_v34  ;;  %v1624_v63 = vsel %vm1506_vm3, %v16891_v1, %v9077_v0  ;;  %v1559_v4 = vsel %vm1538_vm4, %v1527_v13, %v9092_v30  ;;  %v16894_v30 = vld [vmem:[#allocation36_spill] sm:$0xff] }
 0x127   : > { %v9101_v41 = vpop.permute.xlu1 %9100  ;;  %v9086_v33 = vpop.permute.xlu0 %9085 }
 0x128   : > { %v9088_v7 = vunpack.i.h.bf16 %v9086_v33  ;;  %v9087_v39 = vunpack.i.l.bf16 %v9086_v33  ;;  %v9103_v36 = vunpack.i.h.bf16 %v9101_v41  ;;  %v9102_v52 = vunpack.i.l.bf16 %v9101_v41 }
 0x12a   : > { %v1558_v29 = vsel %vm1538_vm4, %v1526_v23, %v9088_v7  ;;  %v1656_v44 = vsel %vm1538_vm4, %v1624_v63, %v9087_v39  ;;  %v1592_v14 = vsel %vm1570_vm5, %v1559_v4, %v9103_v36  ;;  %v1657_v36 = vsel %vm1538_vm4, %v1625_v5, %v9093_v11 }
 0x12b   : > { %v11815_v9 = vpop.permute.xlu1 %9110  ;;  %v9096_v12 = vpop.permute.xlu0 %9095  ;;  %v1591_v16 = vsel %vm1570_vm5, %v1558_v29, %v9102_v52 }
 0x12c   : > { %v9098_v56 = vunpack.i.h.bf16 %v9096_v12  ;;  %v9097_v10 = vunpack.i.l.bf16 %v9096_v12  ;;  %v9112_v60 = vunpack.i.l.bf16 %v11815_v9  ;;  %v1729_v15 = vpack.c.bf16 %v1592_v14, %v1591_v16 }
 0x12e   : > { %v1687_v46 = vsel %vm1570_vm5, %v1655_v54, %v9097_v10  ;;  %v1688_v57 = vsel %vm1570_vm5, %v1656_v44, %v9098_v56  ;;  %v1529_v18 = vsel %vm1506_vm3, %v16892_v8, %v9112_v60  ;;  %v9113_v44 = vunpack.i.h.bf16 %v11815_v9 }
 0x12f   : > { %v11825_v50 = vpop.permute.xlu1 %9120  ;;  %v9106_v38 = vpop.permute.xlu0 %9105  ;;  %v1730_v24 = vpack.c.bf16 %v1688_v57, %v1687_v46  ;;  %v16895_v57 = vld [vmem:[#allocation34_spill] sm:$0xff] }
 0x130   : > { %v9108_v2 = vunpack.i.h.bf16 %v9106_v38  ;;  %v9107_v42 = vunpack.i.l.bf16 %v9106_v38  ;;  %v9122_v27 = vunpack.i.l.bf16 %v11825_v50  ;;  %v9123_v14 = vunpack.i.h.bf16 %v11825_v50 }
 0x131   : > { %2058 = vmatprep.mubr.bf16.mxu0 %v1730_v24  ;;  %v1627_v9 = vsel %vm1506_vm3, %v11366_v59, %v9113_v44 }
 0x132   : > { %2059 = vmatmul.mubr.bf16.gmra.mxu0 %v1729_v15  ;;  %v1528_v41 = vsel %vm1506_vm3, %v16893_v3, %v9108_v2  ;;  %v1626_v7 = vsel %vm1506_vm3, %v16894_v30, %v9107_v42  ;;  %v1561_v39 = vsel %vm1538_vm4, %v1529_v18, %v9122_v27  ;;  %v16896_v2 = vld [vmem:[#allocation33_spill] sm:$0xff] }
 0x133   : > { %v9131_v22 = vpop.permute.xlu1 %9130  ;;  %v9116_v58 = vpop.permute.xlu0 %9115 }
 0x134   : > { %v9118_v34 = vunpack.i.h.bf16 %v9116_v58  ;;  %v9117_v55 = vunpack.i.l.bf16 %v9116_v58  ;;  %v9133_v33 = vunpack.i.h.bf16 %v9131_v22  ;;  %v9132_v25 = vunpack.i.l.bf16 %v9131_v22 }
 0x136   : > { %v1560_v53 = vsel %vm1538_vm4, %v1528_v41, %v9118_v34  ;;  %v1658_v52 = vsel %vm1538_vm4, %v1626_v7, %v9117_v55  ;;  %v1594_v48 = vsel %vm1570_vm5, %v1561_v39, %v9133_v33  ;;  %v1659_v41 = vsel %vm1538_vm4, %v1627_v9, %v9123_v14 }
 0x137   : > { %v11839_v13 = vpop.permute.xlu1 %9140  ;;  %v9126_v0 = vpop.permute.xlu0 %9125  ;;  %v1593_v19 = vsel %vm1570_vm5, %v1560_v53, %v9132_v25 }
 0x138   : > { %v9128_v35 = vunpack.i.h.bf16 %v9126_v0  ;;  %v9127_v23 = vunpack.i.l.bf16 %v9126_v0  ;;  %v9142_v10 = vunpack.i.l.bf16 %v11839_v13  ;;  %v1732_v4 = vpack.c.bf16 %v1594_v48, %v1593_v19 }
 0x13a   : > { %v1689_v12 = vsel %vm1570_vm5, %v1657_v36, %v9127_v23  ;;  %v1690_v1 = vsel %vm1570_vm5, %v1658_v52, %v9128_v35  ;;  %v1531_v38 = vsel %vm1506_vm3, %v16895_v57, %v9142_v10  ;;  %v9143_v23 = vunpack.i.h.bf16 %v11839_v13 }
 0x13b   : > { %v11849_v29 = vpop.permute.xlu1 %9150  ;;  %v9136_v63 = vpop.permute.xlu0 %9135  ;;  %v1733_v56 = vpack.c.bf16 %v1690_v1, %v1689_v12 }
 0x13c   : > { %v9138_v54 = vunpack.i.h.bf16 %v9136_v63  ;;  %v9137_v24 = vunpack.i.l.bf16 %v9136_v63  ;;  %v9152_v60 = vunpack.i.l.bf16 %v11849_v29  ;;  %v9153_v36 = vunpack.i.h.bf16 %v11849_v29 }
 0x13d   : > { %2066 = vmatprep.mubr.bf16.mxu0 %v1733_v56  ;;  %v1629_v13 = vsel %vm1506_vm3, %v11455_v20, %v9143_v23 }
 0x13e   : > { %2067 = vmatmul.mubr.bf16.gmra.mxu0 %v1732_v4  ;;  %v1530_v32 = vsel %vm1506_vm3, %v16896_v2, %v9138_v54  ;;  %v1628_v42 = vsel %vm1506_vm3, %v11389_v31, %v9137_v24  ;;  %v1563_v3 = vsel %vm1538_vm4, %v1531_v38, %v9152_v60  ;;  %v1661_v57 = vsel %vm1538_vm4, %v1629_v13, %v9153_v36 }
 0x13f   : > { %v9161_v16 = vpop.permute.xlu1 %9160 }
 0x140   : > { %v9146_v46 = vpop.permute.xlu0 %9145  ;;  %v9163_v11 = vunpack.i.h.bf16 %v9161_v16  ;;  %v9162_v58 = vunpack.i.l.bf16 %v9161_v16 }
 0x141   : > { %v9148_v15 = vunpack.i.h.bf16 %v9146_v46  ;;  %v9147_v22 = vunpack.i.l.bf16 %v9146_v46 }
 0x142   : > { %v1596_v25 = vsel %vm1570_vm5, %v1563_v3, %v9163_v11 }
 0x143   : > { %v9171_v8 = vpop.permute.xlu1 %9170  ;;  %v1562_v50 = vsel %vm1538_vm4, %v1530_v32, %v9148_v15  ;;  %v1660_v55 = vsel %vm1538_vm4, %v1628_v42, %v9147_v22 }
 0x144   : > { %v9156_v18 = vpop.permute.xlu0 %9155  ;;  %v1595_v33 = vsel %vm1570_vm5, %v1562_v50, %v9162_v58  ;;  %v9172_v30 = vunpack.i.l.bf16 %v9171_v8  ;;  %v9173_v2 = vunpack.i.h.bf16 %v9171_v8 }
 0x145   : > { %v9158_v27 = vunpack.i.h.bf16 %v9156_v18  ;;  %v9157_v34 = vunpack.i.l.bf16 %v9156_v18  ;;  %v1735_v7 = vpack.c.bf16 %v1596_v25, %v1595_v33 }
 0x146   : > { %v1533_v19 = vsel %vm1506_vm3, %v11264_v43, %v9172_v30  ;;  %v1631_v50 = vsel %vm1506_vm3, %v11582_v37, %v9173_v2  ;;  %v8506_v2 = vpop.f32.mrf.mxu1 }
 0x147   : > { %v11871_v59 = vpop.permute.xlu1 %9180  ;;  %v1691_v5 = vsel %vm1570_vm5, %v1659_v41, %v9157_v34  ;;  %v1692_v53 = vsel %vm1570_vm5, %v1660_v55, %v9158_v27 }
 0x148   : > { %v9166_v0 = vpop.permute.xlu0 %9165  ;;  %v1736_v31 = vpack.c.bf16 %v1692_v53, %v1691_v5  ;;  %v9182_v12 = vunpack.i.l.bf16 %v11871_v59  ;;  %v9183_v18 = vunpack.i.h.bf16 %v11871_v59 }
 0x149   : > { %v9168_v35 = vunpack.i.h.bf16 %v9166_v0  ;;  %v9167_v48 = vunpack.i.l.bf16 %v9166_v0 }
 0x14a   : > { %2074 = vmatprep.mubr.bf16.mxu0 %v1736_v31  ;;  %v1565_v46 = vsel %vm1538_vm4, %v1533_v19, %v9182_v12  ;;  %v1663_v59 = vsel %vm1538_vm4, %v1631_v50, %v9183_v18 }
 0x14b   : > { %2075 = vmatmul.mubr.bf16.gmra.mxu0 %v1735_v7  ;;  %v9191_v39 = vpop.permute.xlu1 %9190  ;;  %v1532_v63 = vsel %vm1506_vm3, %v11281_v6, %v9168_v35  ;;  %v1630_v43 = vsel %vm1506_vm3, %v11458_v28, %v9167_v48 }
 0x14c   : > { %v9176_v52 = vpop.permute.xlu0 %9175  ;;  %v9193_v10 = vunpack.i.h.bf16 %v9191_v39  ;;  %v9192_v4 = vunpack.i.l.bf16 %v9191_v39 }
 0x14d   : > { %v9178_v1 = vunpack.i.h.bf16 %v9176_v52  ;;  %v9177_v56 = vunpack.i.l.bf16 %v9176_v52 }
 0x14e   : > { %v1598_v24 = vsel %vm1570_vm5, %v1565_v46, %v9193_v10 }
 0x14f   : > { %v9201_v54 = vpop.permute.xlu1 %9200  ;;  %v1564_v29 = vsel %vm1538_vm4, %v1532_v63, %v9178_v1  ;;  %v1662_v6 = vsel %vm1538_vm4, %v1630_v43, %v9177_v56 }
 0x150   : > { %v9186_v44 = vpop.permute.xlu0 %9185  ;;  %v1597_v38 = vsel %vm1570_vm5, %v1564_v29, %v9192_v4  ;;  %v9202_v22 = vunpack.i.l.bf16 %v9201_v54  ;;  %v9203_v5 = vunpack.i.h.bf16 %v9201_v54 }
 0x151   : > { %v9188_v16 = vunpack.i.h.bf16 %v9186_v44  ;;  %v9187_v14 = vunpack.i.l.bf16 %v9186_v44  ;;  %v1738_v11 = vpack.c.bf16 %v1598_v24, %v1597_v38 }
 0x152   : > { %v1535_v27 = vsel %vm1506_vm3, %v11340_v40, %v9202_v22  ;;  %v1633_v36 = vsel %vm1506_vm3, %v11633_v62, %v9203_v5 }
 0x153   : > { %v9211_v20 = vpop.permute.xlu1 %9210  ;;  %v1693_v60 = vsel %vm1570_vm5, %v1661_v57, %v9187_v14  ;;  %v1694_v15 = vsel %vm1570_vm5, %v1662_v6, %v9188_v16 }
 0x154   : > { %v9196_v32 = vpop.permute.xlu0 %9195  ;;  %v1739_v28 = vpack.c.bf16 %v1694_v15, %v1693_v60  ;;  %v9212_v3 = vunpack.i.l.bf16 %v9211_v20  ;;  %v11906_v35 = vunpack.i.h.bf16 %v9211_v20 }
 0x155   : > { %v9198_v58 = vunpack.i.h.bf16 %v9196_v32  ;;  %v9197_v34 = vunpack.i.l.bf16 %v9196_v32 }
 0x156   : > { %2082 = vmatprep.mubr.bf16.mxu0 %v1739_v28  ;;  %v1567_v7 = vsel %vm1538_vm4, %v1535_v27, %v9212_v3  ;;  %16897 = vst [vmem:[#allocation8_spill] sm:$0xff] %v11906_v35  ;;  %v1665_v4 = vsel %vm1538_vm4, %v1633_v36, %v11906_v35  ;;  %v2141_v28 = vpop.f32.mrf.mxu1 }
 0x157   : > { %2083 = vmatmul.mubr.bf16.gmra.mxu0 %v1738_v11  ;;  %v9221_v9 = vpop.permute.xlu1 %9220  ;;  %v1534_v41 = vsel %vm1506_vm3, %v11332_v51, %v9198_v58  ;;  %v1632_v31 = vsel %vm1506_vm3, %v11585_v26, %v9197_v34 }
 0x158   : > { %v9206_v42 = vpop.permute.xlu0 %9205  ;;  %v9223_v33 = vunpack.i.h.bf16 %v9221_v9  ;;  %v9222_v25 = vunpack.i.l.bf16 %v9221_v9  ;;  %v8507_v58 = vpop.f32.mrf.mxu1 }
 0x159   : > { %v9208_v8 = vunpack.i.h.bf16 %v9206_v42  ;;  %v9207_v55 = vunpack.i.l.bf16 %v9206_v42 }
 0x15a   : > { %v1600_v39 = vsel %vm1570_vm5, %v1567_v7, %v9223_v33  ;;  %v2144_v27 = vpop.f32.mrf.mxu1 }
 0x15b   : > { %v1003_v53 = vpop.permute.xlu1 %1002  ;;  %v1566_v0 = vsel %vm1538_vm4, %v1534_v41, %v9208_v8  ;;  %v1664_v51 = vsel %vm1538_vm4, %v1632_v31, %v9207_v55 }
 0x15c   : > { %v9216_v37 = vpop.permute.xlu0 %9215  ;;  %v1599_v23 = vsel %vm1570_vm5, %v1566_v0, %v9222_v25  ;;  %v1537_v46 = vsel %vm1506_vm3, %v11426_v61, %v1003_v53  ;;  %v11951_v31 = vpop.f32.mrf.mxu1 }
 0x15d   : > { %v9218_v40 = vunpack.i.h.bf16 %v9216_v37  ;;  %v9217_v30 = vunpack.i.l.bf16 %v9216_v37  ;;  %v1741_v56 = vpack.c.bf16 %v1600_v39, %v1599_v23 }
 0x15f   : > { %v9236_v52 = vpop.permute.xlu1 %9235  ;;  %v1695_v19 = vsel %vm1570_vm5, %v1663_v59, %v9217_v30  ;;  %v1696_v26 = vsel %vm1570_vm5, %v1664_v51, %v9218_v40  ;;  %v10037_v40 = vld [vmem:[%s16560_s3 + $0x78] sm:$0xff]  }
 0x160   : > { %v9226_v48 = vpop.permute.xlu0 %9225  ;;  %v11915_v12 = vunpack.i.l.bf16 %v9236_v52  ;;  %v1742_v1 = vpack.c.bf16 %v1696_v26, %v1695_v19  ;;  %v9238_v54 = vunpack.i.h.bf16 %v9236_v52  ;;  %v10038_v51 = vld [vmem:[%s16560_s3 + $0x38] sm:$0xff]   ;;  %8071 = vmatprep.subr.bf16.mxu1 %v10037_v40  ;;  %v2157_v52 = vpop.f32.mrf.mxu1  ;;  %v10039_v19 = vld [vmem:[%s16560_s3 + $0x70] sm:$0xff]  }
 0x161   : > { %v9227_v63 = vunpack.i.l.bf16 %v9226_v48  ;;  %v9228_v10 = vunpack.i.h.bf16 %v9226_v48  ;;  %8072 = vmatpush3.bf16.msra.mxu1 %v10038_v51 }
 0x162   : > { %16898 = vst [vmem:[#allocation10_spill] sm:$0xff] %v11915_v12  ;;  %2090 = vmatprep.mubr.bf16.mxu0 %v1742_v1  ;;  %v1697_v62 = vsel %vm1570_vm5, %v1665_v4, %v11915_v12  ;;  %v10040_v1 = vld [vmem:[%s16560_s3 + $0x30] sm:$0xff]   ;;  %8073 = vmatprep.subr.bf16.mxu1 %v10039_v19 }
 0x163   : > { %v1634_v13 = vsel %vm1506_vm3, %v11636_v49, %v9227_v63  ;;  %2091 = vmatmul.mubr.bf16.gmra.mxu0 %v1741_v56  ;;  %v1536_v49 = vsel %vm1506_vm3, %v11429_v45, %v9228_v10  ;;  %v11938_v45 = vld [vmem:[%s16559_s2] ss:$0 sm:$0xff] }
 0x164   : > { %v9231_v29 = vpop.permute.xlu0 %9230  ;;  %v1666_v44 = vsel %vm1538_vm4, %v1634_v13, %v11906_v35  ;;  %v8511_v13 = vpop.f32.mrf.mxu1 }
 0x165   : > { %v9233_v43 = vunpack.i.h.bf16 %v9231_v29  ;;  %v9232_v16 = vunpack.i.l.bf16 %v9231_v29  ;;  %v1698_v14 = vsel %vm1570_vm5, %v1666_v44, %v11915_v12  ;;  %8074 = vmatpush3.bf16.msra.mxu1 %v10040_v1  ;;  %v10042_v44 = vld [vmem:[%s16560_s3 + $0x28] sm:$0xff]   ;;  %v10054_v1 = vld [vmem:[%s16560_s3] sm:$0xff]  }
 0x166   : > { %v1745_v57 = vpack.c.bf16 %v1698_v14, %v1697_v62  ;;  %v10041_v62 = vld [vmem:[%s16560_s3 + $0x68] sm:$0xff]  }
 0x167   : > { %v1568_v6 = vsel %vm1538_vm4, %v1536_v49, %v9232_v16  ;;  %v1569_v38 = vsel %vm1538_vm4, %v1537_v46, %v9233_v43  ;;  %8075 = vmatprep.subr.bf16.mxu1 %v10041_v62  ;;  %v2160_v46 = vpop.f32.mrf.mxu1  ;;  %v10043_v49 = vld [vmem:[%s16560_s3 + $0x60] sm:$0xff]  }
 0x168   : > { %v1191_v24 = vpop.permute.xlu0 %1190  ;;  %v1601_v20 = vsel %vm1570_vm5, %v1568_v6, %v9238_v54  ;;  %2098 = vmatprep.mubr.bf16.mxu0 %v1745_v57 }
 0x169   : > { %v1602_v60 = vsel %vm1570_vm5, %v1569_v38, %v1191_v24  ;;  %8076 = vmatpush3.bf16.msra.mxu1 %v10042_v44  ;;  %v10044_v38 = vld [vmem:[%s16560_s3 + $0x20] sm:$0xff]  }
 0x16a   : > { %v1744_v15 = vpack.c.bf16 %v1602_v60, %v1601_v20  ;;  %8077 = vmatprep.subr.bf16.mxu1 %v10043_v49 }
 0x16c   : > { %2099 = vmatmul.mubr.bf16.gmra.mxu0 %v1744_v15  ;;  %v10046_v15 = vld [vmem:[%s16560_s3 + $0x58] sm:$0xff]  }
 0x16d   : > { %8078 = vmatpush3.bf16.msra.mxu1 %v10044_v38 }
 0x16e   : > { %8079 = vmatprep.subr.bf16.mxu1 %v10046_v15 }
 0x17b   : > { %v7957_v32 = vpop.f32.mrf.mxu0 }
 0x17d   : > { %v7958_v61 = vpop.f32.mrf.mxu0 }
 0x17e   : > { %v7959_v22 = vadd.f32 %v7958_v61, %v7957_v32 }
 0x17f   : > { %v7960_v11 = vpop.f32.mrf.mxu0 }
 0x180   : > { %v1981_v9 = vadd.f32 %v7959_v22, %v11938_v45 }
 0x181   : > { %v7961_v50 = vpop.f32.mrf.mxu0 }
 0x182   : > { %v7962_v18 = vadd.f32 %v7961_v50, %v7960_v11  ;;  %v11941_v42 = vadd.f32 %v2141_v28, %v1981_v9  ;;  %v10048_v28 = vld [vmem:[%s16560_s3 + $0x18] sm:$0xff]   ;;  %v10049_v9 = vld [vmem:[%s16560_s3 + $0x50] sm:$0xff]  }
 0x183   : > { %8080 = vmatpush3.bf16.msra.mxu1 %v10048_v28 }
 0x184   : > { %v7686_v34 = vmul.f32 -1.442695, %v11941_v42  ;;  %v1984_v3 = vadd.f32 %v7962_v18, %v11938_v45  ;;  %8081 = vmatprep.subr.bf16.mxu1 %v10049_v9 }
 0x186   : > { %10097 = vpow2.f32 %v7686_v34  ;;  %v11945_v8 = vadd.f32 %v2144_v27, %v1984_v3  ;;  %v10050_v34 = vld [vmem:[%s16560_s3 + $0x10] sm:$0xff]  }
 0x187   : > { %v7963_v41 = vpop.f32.mrf.mxu0  ;;  %8082 = vmatpush3.bf16.msra.mxu1 %v10050_v34 }
 0x188   : > { %v7687_v55 = vmul.f32 -1.442695, %v11945_v8 }
 0x189   : > { %v7964_v33 = vpop.f32.mrf.mxu0 }
 0x18a   : > { %10099 = vpow2.f32 %v7687_v55  ;;  %v7965_v25 = vadd.f32 %v7964_v33, %v7963_v41 }
 0x18b   : > { %v7966_v5 = vpop.f32.mrf.mxu0 }
 0x18c   : > { %v1989_v53 = vadd.f32 %v7965_v25, %v11938_v45 }
 0x18d   : > { %v7967_v0 = vpop.f32.mrf.mxu0 }
 0x18e   : > { %v11949_v37 = vadd.f32 %v8506_v2, %v1989_v53  ;;  %v7968_v59 = vadd.f32 %v7967_v0, %v7966_v5  ;;  %v12007_v5 = vpop.f32.mrf.mxu1 }
 0x190   : > { %v7688_v30 = vmul.f32 -1.442695, %v11949_v37  ;;  %v1992_v7 = vadd.f32 %v7968_v59, %v11938_v45 }
 0x192   : > { %10101 = vpow2.f32 %v7688_v30  ;;  %v11961_v23 = vadd.f32 %v8507_v58, %v1992_v7  ;;  %v7969_v36 = vpop.f32.mrf.mxu0 }
 0x193   : > { %v10098_v39 = vpop.eup %10097 }
 0x194   : > { %v2364_v26 = vadd.f32 1.0, %v10098_v39  ;;  %v7689_v48 = vmul.f32 -1.442695, %v11961_v23  ;;  %v7970_v63 = vpop.f32.mrf.mxu0 }
 0x195   : > { %v7971_v56 = vadd.f32 %v7970_v63, %v7969_v36  ;;  %v2173_v36 = vpop.f32.mrf.mxu1 }
 0x196   : > { %10103 = vrcp.f32 %v2364_v26  ;;  %v7972_v4 = vpop.f32.mrf.mxu0 }
 0x197   : > { %v10100_v10 = vpop.eup %10099  ;;  %10105 = vpow2.f32 %v7689_v48  ;;  %v1997_v29 = vadd.f32 %v7971_v56, %v11938_v45  ;;  %v8515_v62 = vpop.f32.mrf.mxu1 }
 0x198   : > { %v2365_v54 = vadd.f32 1.0, %v10100_v10  ;;  %v7973_v43 = vpop.f32.mrf.mxu0 }
 0x199   : > { %v7974_v16 = vadd.f32 %v7973_v43, %v7972_v4  ;;  %v11977_v14 = vadd.f32 %v2157_v52, %v1997_v29 }
 0x19a   : > { %10107 = vrcp.f32 %v2365_v54 }
 0x19b   : > { %v7690_v57 = vmul.f32 -1.442695, %v11977_v14  ;;  %v2000_v6 = vadd.f32 %v7974_v16, %v11938_v45 }
 0x19d   : > { %10109 = vpow2.f32 %v7690_v57  ;;  %v11987_v24 = vadd.f32 %v2160_v46, %v2000_v6  ;;  %v2176_v6 = vpop.f32.mrf.mxu1 }
 0x19e   : > { %v7975_v60 = vpop.f32.mrf.mxu0 }
 0x19f   : > { %v10102_v20 = vpop.eup %10101  ;;  %v7691_v32 = vmul.f32 -1.442695, %v11987_v24 }
 0x1a0   : > { %v2366_v2 = vadd.f32 1.0, %v10102_v20  ;;  %v7976_v61 = vpop.f32.mrf.mxu0 }
 0x1a1   : > { %v7977_v22 = vadd.f32 %v7976_v61, %v7975_v60 }
 0x1a2   : > { %10111 = vrcp.f32 %v2366_v2  ;;  %v7978_v58 = vpop.f32.mrf.mxu0 }
 0x1a3   : > { %v10104_v11 = vpop.eup %10103  ;;  %10113 = vpow2.f32 %v7691_v32  ;;  %v2005_v27 = vadd.f32 %v7977_v22, %v11938_v45 }
 0x1a4   : > { %v10106_v50 = vpop.eup %10105  ;;  %v2460_v18 = vmul.f32 %v10104_v11, %v11941_v42  ;;  %v7979_v41 = vpop.f32.mrf.mxu0  ;;  %v10051_v42 = vld [vmem:[%s16560_s3 + $0x48] sm:$0xff]  }
 0x1a5   : > { %v2367_v3 = vadd.f32 1.0, %v10106_v50  ;;  %v12005_v55 = vadd.f32 %v11951_v31, %v2005_v27  ;;  %v7980_v33 = vadd.f32 %v7979_v41, %v7978_v58  ;;  %v10052_v31 = vld [vmem:[%s16560_s3 + $0x8] sm:$0xff]   ;;  %8083 = vmatprep.subr.bf16.mxu1 %v10051_v42 }
 0x1a6   : > { %v12012_v53 = vrot.slane %v2460_v18, 7  ;;  %8084 = vmatpush3.bf16.msra.mxu1 %v10052_v31 }
 0x1a7   : > { %v10108_v25 = vpop.eup %10107  ;;  %10115 = vrcp.f32 %v2367_v3  ;;  %v7692_v59 = vmul.f32 -1.442695, %v12005_v55  ;;  %v2008_v40 = vadd.f32 %v7980_v33, %v11938_v45 }
 0x1a8   : > { %16899 = vst [vmem:[#allocation9_spill] sm:$0xff] %v12012_v53  ;;  %v2461_v0 = vmul.f32 %v10108_v25, %v11945_v8  ;;  %v10053_v8 = vld [vmem:[%s16560_s3 + $0x40] sm:$0xff]   ;;  %v12029_v52 = vsel %vm552_vm0, 0.0, %v12012_v53 }
 0x1a9   : > { %10117 = vpow2.f32 %v7692_v59  ;;  %v12022_v7 = vadd.f32 %v8511_v13, %v2008_v40  ;;  %8085 = vmatprep.subr.bf16.mxu1 %v10053_v8 }
 0x1aa   : > { %v12020_v30 = vrot.slane %v2461_v0, 7  ;;  %v10110_v51 = vpop.eup %10109  ;;  %v7981_v39 = vpop.f32.mrf.mxu0  ;;  %8086 = vmatpush3.bf16.msra.mxu1 %v10054_v1 }
 0x1ab   : > { %v2368_v19 = vadd.f32 1.0, %v10110_v51  ;;  %v7693_v26 = vmul.f32 -1.442695, %v12022_v7 }
 0x1ac   : > { %16900 = vst [vmem:[#allocation15_spill] sm:$0xff] %v12020_v30  ;;  %v12035_v48 = vsel %vm552_vm0, %v12012_v53, %v12020_v30  ;;  %v7982_v63 = vpop.f32.mrf.mxu0  ;;  %v12068_v9 = vsel %vm552_vm0, %v12020_v30, 0.0 }
 0x1ad   : > { %v9239_v56 = vpack.i.bf16 %v12035_v48, %v12029_v52  ;;  %10119 = vrcp.f32 %v2368_v19  ;;  %v7983_v10 = vadd.f32 %v7982_v63, %v7981_v39  ;;  %v2683_v61 = vrot.slane %v12035_v48, 1 }
 0x1ae   : > { %10121 = vpow2.f32 %v7693_v26  ;;  %v7984_v13 = vpop.f32.mrf.mxu0  ;;  %v2685_v33 = vrot.slane %v12068_v9, 1  ;;  %v12094_v26 = vpop.f32.mrf.mxu1 }
 0x1af   : > { %v10112_v4 = vpop.eup %10111  ;;  %9240 = vrot.lane.b32.xlu1 %v9239_v56, %s10625_s30  ;;  %v2013_v44 = vadd.f32 %v7983_v10, %v11938_v45 }
 0x1b0   : > { %v10114_v54 = vpop.eup %10113  ;;  %v2462_v29 = vmul.f32 %v10112_v4, %v11949_v37  ;;  %v7985_v16 = vpop.f32.mrf.mxu0  ;;  %v12092_v19 = vsel %vm711_vm2, %v2683_v61, %v2685_v33 }
 0x1b1   : > { %v2369_v43 = vadd.f32 1.0, %v10114_v54  ;;  %v7986_v49 = vadd.f32 %v7985_v16, %v7984_v13  ;;  %v12047_v57 = vadd.f32 %v2173_v36, %v2013_v44  ;;  %16905 = vst [vmem:[#allocation20_spill] sm:$0xff] %v12092_v19  ;;  %v2189_v16 = vpop.f32.mrf.mxu1 }
 0x1b2   : > { %v12045_v46 = vrot.slane %v2462_v29, 7 }
 0x1b3   : > { %10123 = vrcp.f32 %v2369_v43  ;;  %v7694_v20 = vmul.f32 -1.442695, %v12047_v57  ;;  %v2016_v60 = vadd.f32 %v7986_v49, %v11938_v45 }
 0x1b4   : > { %16901 = vst [vmem:[#allocation16_spill] sm:$0xff] %v12045_v46  ;;  %v10116_v38 = vpop.eup %10115  ;;  %v12053_v15 = vsel %vm552_vm0, 0.0, %v12045_v46 }
 0x1b5   : > { %v2463_v2 = vmul.f32 %v10116_v38, %v11961_v23  ;;  %v9244_v32 = vpack.i.bf16 %v12053_v15, %v16868_v47  ;;  %10125 = vpow2.f32 %v7694_v20  ;;  %v12060_v28 = vadd.f32 %v2176_v6, %v2016_v60 }
 0x1b6   : > { %v10118_v22 = vpop.eup %10117  ;;  %v7987_v58 = vpop.f32.mrf.mxu0  ;;  %v2682_v47 = vrot.slane %v12029_v52, 1  ;;  %v2687_v6 = vrot.slane %v12053_v15, 1 }
 0x1b7   : > { %v12063_v11 = vrot.slane %v2463_v2, 7  ;;  %9245 = vrot.lane.b32.xlu0 %v9244_v32, %s10625_s30  ;;  %v2370_v50 = vadd.f32 1.0, %v10118_v22  ;;  %v7695_v23 = vmul.f32 -1.442695, %v12060_v28 }
 0x1b8   : > { %v7988_v18 = vpop.f32.mrf.mxu0  ;;  %v12078_v3 = vsel %vm711_vm2, %v2682_v47, %v2683_v61 }
 0x1b9   : > { %16902 = vst [vmem:[#allocation12_spill] sm:$0xff] %v12063_v11  ;;  %v12075_v27 = vsel %vm552_vm0, %v12045_v46, %v12063_v11  ;;  %10127 = vrcp.f32 %v2370_v50  ;;  %v7989_v34 = vadd.f32 %v7988_v18, %v7987_v58  ;;  %16903 = vst [vmem:[#allocation11_spill] sm:$0xff] %v12078_v3  ;;  %v12117_v38 = vsel %vm552_vm0, %v12063_v11, 0.0  ;;  %v12129_v58 = vpop.f32.mrf.mxu1 }
 0x1ba   : > { %v10120_v41 = vpop.eup %10119  ;;  %10129 = vpow2.f32 %v7695_v23  ;;  %v7990_v25 = vpop.f32.mrf.mxu0  ;;  %v9249_v42 = vpack.i.bf16 %v12078_v3, %v12075_v27  ;;  %v2688_v13 = vrot.slane %v12075_v27, 1  ;;  %v2690_v47 = vrot.slane %v12117_v38, 1 }
 0x1bb   : > { %v10122_v0 = vpop.eup %10121  ;;  %v2464_v59 = vmul.f32 %v10120_v41, %v11977_v14  ;;  %v2021_v40 = vadd.f32 %v7989_v34, %v11938_v45 }
 0x1bc   : > { %v2371_v31 = vadd.f32 1.0, %v10122_v0  ;;  %9250 = vrot.lane.b32.xlu1 %v9249_v42, %s10625_s30  ;;  %v7991_v51 = vpop.f32.mrf.mxu0  ;;  %v12125_v60 = vsel %vm711_vm2, %v2687_v6, %v2688_v13  ;;  %v2192_v0 = vpop.f32.mrf.mxu1 }
 0x1bd   : > { %v12086_v39 = vrot.slane %v2464_v59, 7  ;;  %v12089_v36 = vadd.f32 %v12007_v5, %v2021_v40  ;;  %v7992_v8 = vadd.f32 %v7991_v51, %v7990_v25  ;;  %16907 = vst [vmem:[#allocation14_spill] sm:$0xff] %v12125_v60  ;;  %v10047_v59 = vld [vmem:[%s16560_s3 + $0xb8] sm:$0xff]  }
 0x1be   : > { %10131 = vrcp.f32 %v2371_v31 }
 0x1bf   : > { %16904 = vst [vmem:[#allocation19_spill] sm:$0xff] %v12086_v39  ;;  %v12098_v14 = vsel %vm552_vm0, 0.0, %v12086_v39  ;;  %v7696_v63 = vmul.f32 -1.442695, %v12089_v36  ;;  %v2024_v56 = vadd.f32 %v7992_v8, %v11938_v45  ;;  %v12151_v8 = vsel %vm711_vm2, %v2688_v13, %v2690_v47 }
 0x1c0   : > { %v10124_v1 = vpop.eup %10123  ;;  %v9254_v4 = vpack.i.bf16 %v12098_v14, %v12092_v19  ;;  %16910 = vst [vmem:[#allocation18_spill] sm:$0xff] %v12151_v8  ;;  %v2692_v13 = vrot.slane %v12098_v14, 1 }
 0x1c1   : > { %v2465_v10 = vmul.f32 %v10124_v1, %v11987_v24  ;;  %10133 = vpow2.f32 %v7696_v63  ;;  %v12108_v54 = vadd.f32 %v8515_v62, %v2024_v56 }
 0x1c2   : > { %v10126_v29 = vpop.eup %10125  ;;  %v7993_v43 = vpop.f32.mrf.mxu0  ;;  %9255 = vrot.lane.b32.xlu0 %v9254_v4, %s10625_s30 }
 0x1c3   : > { %v12110_v44 = vrot.slane %v2465_v10, 7  ;;  %v2372_v49 = vadd.f32 1.0, %v10126_v29  ;;  %v7697_v24 = vmul.f32 -1.442695, %v12108_v54 }
 0x1c4   : > { %v7994_v20 = vpop.f32.mrf.mxu0 }
 0x1c5   : > { %16906 = vst [vmem:[#allocation13_spill] sm:$0xff] %v12110_v44  ;;  %v12122_v62 = vsel %vm552_vm0, %v12086_v39, %v12110_v44  ;;  %10135 = vrcp.f32 %v2372_v49  ;;  %v7995_v32 = vadd.f32 %v7994_v20, %v7993_v43 }
 0x1c6   : > { %v10128_v2 = vpop.eup %10127  ;;  %v7996_v61 = vpop.f32.mrf.mxu0  ;;  %v9259_v22 = vpack.i.bf16 %v12125_v60, %v12122_v62  ;;  %10137 = vpow2.f32 %v7697_v24  ;;  %v2693_v63 = vrot.slane %v12122_v62, 1 }
 0x1c7   : > { %v10130_v50 = vpop.eup %10129  ;;  %v2466_v23 = vmul.f32 %v10128_v2, %v12005_v55  ;;  %v2029_v41 = vadd.f32 %v7995_v32, %v11938_v45  ;;  %v10045_v55 = vld [vmem:[%s16560_s3 + $0xf8] sm:$0xff]  }
 0x1c8   : > { %v2373_v18 = vadd.f32 1.0, %v10130_v50  ;;  %9260 = vrot.lane.b32.xlu1 %v9259_v22, %s10625_s30  ;;  %v7997_v34 = vpop.f32.mrf.mxu0  ;;  %8183 = vmatprep.subr.bf16.mxu0 %v10045_v55  ;;  %v12173_v2 = vsel %vm711_vm2, %v2692_v13, %v2693_v63  ;;  %v12179_v22 = vsel %vm552_vm0, %v12110_v44, 0.0 }
 0x1c9   : > { %v12135_v33 = vrot.slane %v2466_v23, 7  ;;  %v7998_v25 = vadd.f32 %v7997_v34, %v7996_v61  ;;  %v12137_v42 = vadd.f32 %v2189_v16, %v2029_v41  ;;  %8184 = vmatpush3.bf16.msra.mxu0 %v10047_v59  ;;  %16913 = vst [vmem:[#allocation28_spill] sm:$0xff] %v12173_v2 }
 0x1ca   : > { %10139 = vrcp.f32 %v2373_v18 }
 0x1cb   : > { %16908 = vst [vmem:[#allocation24_spill] sm:$0xff] %v12135_v33  ;;  %v10132_v40 = vpop.eup %10131  ;;  %v2032_v31 = vadd.f32 %v7998_v25, %v11938_v45  ;;  %v12148_v51 = vsel %vm552_vm0, 0.0, %v12135_v33  ;;  %v7698_v10 = vmul.f32 -1.442695, %v12137_v42  ;;  %v2695_v25 = vrot.slane %v12179_v22, 1 }
 0x1cc   : > { %16909 = vst [vmem:[#allocation25_spill] sm:$0xff] %v12148_v51  ;;  %v2467_v56 = vmul.f32 %v10132_v40, %v12022_v7  ;;  %v9264_v4 = vpack.i.bf16 %v12148_v51, %v12151_v8  ;;  %v10055_v40 = vld [vmem:[%s16560_s3 + $0xf0] sm:$0xff]  }
 0x1cd   : > { %v12160_v29 = vadd.f32 %v2192_v0, %v2032_v31  ;;  %10141 = vpow2.f32 %v7698_v10  ;;  %8185 = vmatprep.subr.bf16.mxu0 %v10055_v40 }
 0x1ce   : > { %v10134_v43 = vpop.eup %10133  ;;  %v12163_v16 = vrot.slane %v2467_v56, 7  ;;  %v7999_v49 = vpop.f32.mrf.mxu0  ;;  %9265 = vrot.lane.b32.xlu0 %v9264_v4, %s10625_s30 }
 0x1cf   : > { %v2374_v6 = vadd.f32 1.0, %v10134_v43  ;;  %v7699_v7 = vmul.f32 -1.442695, %v12160_v29  ;;  %v12193_v56 = vpop.f32.mrf.mxu1 }
 0x1d0   : > { %16911 = vst [vmem:[#allocation17_spill] sm:$0xff] %v12163_v16  ;;  %v8000_v24 = vpop.f32.mrf.mxu0  ;;  %v12170_v20 = vsel %vm552_vm0, %v12135_v33, %v12163_v16 }
 0x1d1   : > { %16912 = vst [vmem:[#allocation27_spill] sm:$0xff] %v12170_v20  ;;  %10143 = vrcp.f32 %v2374_v6  ;;  %v8001_v32 = vadd.f32 %v8000_v24, %v7999_v49  ;;  %v9269_v61 = vpack.i.bf16 %v12173_v2, %v12170_v20  ;;  %v2698_v24 = vrot.slane %v12170_v20, 1 }
 0x1d2   : > { %10145 = vpow2.f32 %v7699_v7  ;;  %v8002_v50 = vpop.f32.mrf.mxu0  ;;  %v10136_v23 = vpop.eup %10135  ;;  %v12211_v7 = vsel %vm711_vm2, %v2693_v63, %v2695_v25  ;;  %v10057_v25 = vld [vmem:[%s16560_s3 + $0xe8] sm:$0xff]  }
 0x1d3   : > { %v2037_v47 = vadd.f32 %v8001_v32, %v11938_v45  ;;  %9270 = vrot.lane.b32.xlu1 %v9269_v61, %s10625_s30  ;;  %v10138_v18 = vpop.eup %10137  ;;  %v2468_v34 = vmul.f32 %v10136_v23, %v12047_v57  ;;  %v10056_v57 = vld [vmem:[%s16560_s3 + $0xb0] sm:$0xff]   ;;  %16916 = vst [vmem:[#allocation31_spill] sm:$0xff] %v12211_v7 }
 0x1d4   : > { %v8003_v41 = vpop.f32.mrf.mxu0  ;;  %v2375_v0 = vadd.f32 1.0, %v10138_v18  ;;  %8186 = vmatpush3.bf16.msra.mxu0 %v10056_v57  ;;  %v2697_v18 = vrot.slane %v12148_v51, 1 }
 0x1d5   : > { %v12186_v55 = vadd.f32 %v12094_v26, %v2037_v47  ;;  %v8004_v59 = vadd.f32 %v8003_v41, %v8002_v50  ;;  %v12191_v31 = vrot.slane %v2468_v34, 7  ;;  %8187 = vmatprep.subr.bf16.mxu0 %v10057_v25 }
 0x1d6   : > { %10147 = vrcp.f32 %v2375_v0  ;;  %v10058_v0 = vld [vmem:[%s16560_s3 + $0xa8] sm:$0xff]   ;;  %v12240_v40 = vsel %vm711_vm2, %v2697_v18, %v2698_v24  ;;  %v10060_v18 = vld [vmem:[%s16560_s3 + $0xa0] sm:$0xff]  }
 0x1d7   : > { %16914 = vst [vmem:[#allocation22_spill] sm:$0xff] %v12191_v31  ;;  %v10140_v10 = vpop.eup %10139  ;;  %v7700_v4 = vmul.f32 -1.442695, %v12186_v55  ;;  %v2040_v26 = vadd.f32 %v8004_v59, %v11938_v45  ;;  %v12202_v43 = vsel %vm552_vm0, 0.0, %v12191_v31  ;;  %v10059_v59 = vld [vmem:[%s16560_s3 + $0xe0] sm:$0xff]   ;;  %16918 = vst [vmem:[#allocation26_spill] sm:$0xff] %v12240_v40 }
 0x1d8   : > { %16915 = vst [vmem:[#allocation21_spill] sm:$0xff] %v12202_v43  ;;  %v2469_v13 = vmul.f32 %v10140_v10, %v12060_v28  ;;  %v9274_v50 = vpack.i.bf16 %v12202_v43, %v12211_v7  ;;  %v2205_v28 = vpop.f32.mrf.mxu1  ;;  %8188 = vmatpush3.bf16.msra.mxu0 %v10058_v0 }
 0x1d9   : > { %10149 = vpow2.f32 %v7700_v4  ;;  %v12208_v6 = vadd.f32 %v12129_v58, %v2040_v26  ;;  %v12222_v58 = vsel %vm552_vm0, %v12163_v16, 0.0  ;;  %8189 = vmatprep.subr.bf16.mxu0 %v10059_v59 }
 0x1da   : > { %v12214_v32 = vrot.slane %v2469_v13, 7  ;;  %v8005_v61 = vpop.f32.mrf.mxu0  ;;  %v10142_v23 = vpop.eup %10141  ;;  %9275 = vrot.lane.b32.xlu0 %v9274_v50, %s10625_s30  ;;  %v2700_v49 = vrot.slane %v12222_v58, 1 }
 0x1db   : > { %v7701_v47 = vmul.f32 -1.442695, %v12208_v6  ;;  %v2376_v34 = vadd.f32 1.0, %v10142_v23  ;;  %v12244_v13 = vpop.f32.mrf.mxu1 }
 0x1dc   : > { %16917 = vst [vmem:[#allocation32_spill] sm:$0xff] %v12214_v32  ;;  %v12227_v63 = vsel %vm552_vm0, %v12191_v31, %v12214_v32  ;;  %v8006_v41 = vpop.f32.mrf.mxu0  ;;  %v12272_v59 = vsel %vm711_vm2, %v2698_v24, %v2700_v49  ;;  %8190 = vmatpush3.bf16.msra.mxu0 %v10060_v18 }
 0x1dd   : > { %10151 = vrcp.f32 %v2376_v34  ;;  %v8007_v10 = vadd.f32 %v8006_v41, %v8005_v61  ;;  %v9279_v26 = vpack.i.bf16 %v12240_v40, %v12227_v63  ;;  %v12254_v61 = vld [vmem:[%s16560_s3 + $0x118] sm:$0xff]   ;;  %v2208_v5 = vpop.f32.mrf.mxu1  ;;  %16920 = vst [vmem:[#allocation35_spill] sm:$0xff] %v12272_v59 }
 0x1de   : > { %v10144_v57 = vpop.eup %10143  ;;  %v8008_v4 = vpop.f32.mrf.mxu0  ;;  %10153 = vpow2.f32 %v7701_v47  ;;  %8536 = vmatprep.subr.bf16.mxu1 %v12254_v61 }
 0x1df   : > { %v10146_v50 = vpop.eup %10145  ;;  %v2470_v23 = vmul.f32 %v10144_v57, %v12089_v36  ;;  %9280 = vrot.lane.b32.xlu1 %v9279_v26, %s10625_s30  ;;  %v2045_v25 = vadd.f32 %v8007_v10, %v11938_v45  ;;  %v10061_v36 = vld [vmem:[%s16560_s3 + $0xd8] sm:$0xff]  }
 0x1e0   : > { %v2377_v34 = vadd.f32 1.0, %v10146_v50  ;;  %v8009_v41 = vpop.f32.mrf.mxu0  ;;  %v10062_v10 = vld [vmem:[%s16560_s3 + $0x98] sm:$0xff]   ;;  %8191 = vmatprep.subr.bf16.mxu0 %v10061_v36 }
 0x1e1   : > { %v12261_v47 = vrot.slane %v2470_v23, 7  ;;  %v8010_v0 = vadd.f32 %v8009_v41, %v8008_v4  ;;  %v12264_v57 = vadd.f32 %v2205_v28, %v2045_v25  ;;  %v2703_v41 = vrot.slane %v12227_v63, 1  ;;  %8192 = vmatpush3.bf16.msra.mxu0 %v10062_v10 }
 0x1e2   : > { %10155 = vrcp.f32 %v2377_v34 }
 0x1e3   : > { %16919 = vst [vmem:[#allocation23_spill] sm:$0xff] %v12261_v47  ;;  %v2048_v50 = vadd.f32 %v8010_v0, %v11938_v45  ;;  %v12269_v26 = vsel %vm552_vm0, 0.0, %v12261_v47  ;;  %v10148_v28 = vpop.eup %10147  ;;  %v7702_v23 = vmul.f32 -1.442695, %v12264_v57  ;;  %v2702_v0 = vrot.slane %v12202_v43, 1 }
 0x1e4   : > { %v9284_v34 = vpack.i.bf16 %v12269_v26, %v12272_v59  ;;  %v2471_v49 = vmul.f32 %v10148_v28, %v12108_v54 }
 0x1e5   : > { %v12284_v24 = vadd.f32 %v2208_v5, %v2048_v50  ;;  %10157 = vpow2.f32 %v7702_v23  ;;  %v12297_v54 = vsel %vm711_vm2, %v2702_v0, %v2703_v41  ;;  %v12301_v50 = vsel %vm552_vm0, %v12214_v32, 0.0 }
 0x1e6   : > { %v10150_v18 = vpop.eup %10149  ;;  %v8011_v25 = vpop.f32.mrf.mxu0  ;;  %9285 = vrot.lane.b32.xlu0 %v9284_v34, %s10625_s30  ;;  %v12288_v4 = vrot.slane %v2471_v49, 7  ;;  %16922 = vst [vmem:[#allocation29_spill] sm:$0xff] %v12297_v54  ;;  %v2705_v0 = vrot.slane %v12301_v50, 1 }
 0x1e7   : > { %v2378_v1 = vadd.f32 1.0, %v10150_v18  ;;  %v7703_v37 = vmul.f32 -1.442695, %v12284_v24 }
 0x1e8   : > { %16921 = vst [vmem:[#allocation30_spill] sm:$0xff] %v12288_v4  ;;  %v8012_v36 = vpop.f32.mrf.mxu0  ;;  %v12294_v5 = vsel %vm552_vm0, %v12261_v47, %v12288_v4 }
 0x1e9   : > { %10159 = vrcp.f32 %v2378_v1  ;;  %v8013_v12 = vadd.f32 %v8012_v36, %v8011_v25  ;;  %v9289_v10 = vpack.i.bf16 %v12297_v54, %v12294_v5  ;;  %v10064_v25 = vld [vmem:[%s16560_s3 + $0xd0] sm:$0xff]  }
 0x1ea   : > { %10161 = vpow2.f32 %v7703_v37  ;;  %v8014_v28 = vpop.f32.mrf.mxu0  ;;  %v10152_v23 = vpop.eup %10151  ;;  %v10065_v37 = vld [vmem:[%s16560_s3 + $0x90] sm:$0xff]   ;;  %8193 = vmatprep.subr.bf16.mxu0 %v10064_v25 }
 0x1eb   : > { %v2053_v1 = vadd.f32 %v8013_v12, %v11938_v45  ;;  %v10154_v34 = vpop.eup %10153  ;;  %v2472_v49 = vmul.f32 %v10152_v23, %v12137_v42  ;;  %9290 = vrot.lane.b32.xlu1 %v9289_v10, %s10625_s30  ;;  %v12320_v42 = vpop.f32.mrf.mxu1  ;;  %8194 = vmatpush3.bf16.msra.mxu0 %v10065_v37 }
 0x1ec   : > { %v8015_v18 = vpop.f32.mrf.mxu0  ;;  %v2379_v36 = vadd.f32 1.0, %v10154_v34  ;;  %v12335_v34 = vsel %vm711_vm2, %v2703_v41, %v2705_v0 }
 0x1ed   : > { %v12316_v35 = vadd.f32 %v12193_v56, %v2053_v1  ;;  %v8016_v12 = vadd.f32 %v8015_v18, %v8014_v28  ;;  %v12318_v17 = vrot.slane %v2472_v49, 7  ;;  %16924 = vst [vmem:[#allocation34_spill] sm:$0xff] %v12335_v34  ;;  %v2708_v49 = vrot.slane %v12294_v5, 1 }
 0x1ee   : > { %10163 = vrcp.f32 %v2379_v36  ;;  %v2221_v36 = vpop.f32.mrf.mxu1 }
 0x1ef   : > { %16923 = vst [vmem:[#allocation36_spill] sm:$0xff] %v12318_v17  ;;  %v10156_v10 = vpop.eup %10155  ;;  %v7704_v23 = vmul.f32 -1.442695, %v12316_v35  ;;  %v2056_v54 = vadd.f32 %v8016_v12, %v11938_v45  ;;  %v12326_v59 = vsel %vm552_vm0, 0.0, %v12318_v17 }
 0x1f0   : > { %v2473_v56 = vmul.f32 %v10156_v10, %v12160_v29  ;;  %v9294_v37 = vpack.i.bf16 %v12326_v59, %v12335_v34  ;;  %v2707_v10 = vrot.slane %v12269_v26, 1  ;;  %v12363_v2 = vpop.f32.mrf.mxu1 }
 0x1f1   : > { %10165 = vpow2.f32 %v7704_v23  ;;  %v12332_v1 = vadd.f32 %v12244_v13, %v2056_v54  ;;  %v12346_v13 = vsel %vm552_vm0, %v12288_v4, 0.0 }
 0x1f2   : > { %v12338_v18 = vrot.slane %v2473_v56, 7  ;;  %v8017_v25 = vpop.f32.mrf.mxu0  ;;  %v10158_v29 = vpop.eup %10157  ;;  %9295 = vrot.lane.b32.xlu0 %v9294_v37, %s10625_s30  ;;  %v12355_v23 = vsel %vm711_vm2, %v2707_v10, %v2708_v49  ;;  %v2710_v10 = vrot.slane %v12346_v13, 1 }
 0x1f3   : > { %v7705_v12 = vmul.f32 -1.442695, %v12332_v1  ;;  %v2380_v54 = vadd.f32 1.0, %v10158_v29  ;;  %16926 = vst [vmem:[#allocation39_spill] sm:$0xff] %v12355_v23 }
 0x1f4   : > { %16925 = vst [vmem:[#allocation33_spill] sm:$0xff] %v12338_v18  ;;  %v12351_v41 = vsel %vm552_vm0, %v12318_v17, %v12338_v18  ;;  %v8018_v0 = vpop.f32.mrf.mxu0  ;;  %v12359_v28 = vsel %vm552_vm0, %v12338_v18, 0.0  ;;  %v2712_v17 = vrot.slane %v12326_v59, 1 }
 0x1f5   : > { %10167 = vrcp.f32 %v2380_v54  ;;  %v8019_v34 = vadd.f32 %v8018_v0, %v8017_v25  ;;  %v9299_v7 = vpack.i.bf16 %v12355_v23, %v12351_v41  ;;  %v2713_v25 = vrot.slane %v12351_v41, 1 }
 0x1f6   : > { %v10160_v56 = vpop.eup %10159  ;;  %v8020_v40 = vpop.f32.mrf.mxu0  ;;  %10169 = vpow2.f32 %v7705_v12  ;;  %v2715_v54 = vrot.slane %v12359_v28, 1 }
 0x1f7   : > { %v10162_v29 = vpop.eup %10161  ;;  %v2474_v37 = vmul.f32 %v10160_v56, %v12186_v55  ;;  %9300 = vrot.lane.b32.xlu1 %v9299_v7, %s10625_s30  ;;  %v2061_v19 = vadd.f32 %v8019_v34, %v11938_v45  ;;  %v2224_v12 = vpop.f32.mrf.mxu1  ;;  %v12382_v34 = vsel %vm711_vm2, %v2708_v49, %v2710_v10  ;;  %v10067_v49 = vld [vmem:[%s16560_s3 + $0x88] sm:$0xff]  }
 0x1f8   : > { %v2381_v8 = vadd.f32 1.0, %v10162_v29  ;;  %v8021_v60 = vpop.f32.mrf.mxu0  ;;  %16928 = vst [vmem:[#allocation41_spill] sm:$0xff] %v12382_v34  ;;  %v12400_v10 = vsel %vm711_vm2, %v2713_v25, %v2715_v54 }
 0x1f9   : > { %v12371_v0 = vrot.slane %v2474_v37, 7  ;;  %v8022_v23 = vadd.f32 %v8021_v60, %v8020_v40  ;;  %v12374_v55 = vadd.f32 %v2221_v36, %v2061_v19  ;;  %v2757_v60 = vrot.slane %v12029_v52, 2  ;;  %v10066_v40 = vld [vmem:[%s16560_s3 + $0xc8] sm:$0xff]   ;;  %16929 = vst [vmem:[#allocation42_spill] sm:$0xff] %v12400_v10 }
 0x1fa   : > { %10171 = vrcp.f32 %v2381_v8  ;;  %8195 = vmatprep.subr.bf16.mxu0 %v10066_v40 }
 0x1fb   : > { %16927 = vst [vmem:[#allocation40_spill] sm:$0xff] %v12371_v0  ;;  %v2064_v56 = vadd.f32 %v8022_v23, %v11938_v45  ;;  %v12379_v7 = vsel %vm552_vm0, 0.0, %v12371_v0  ;;  %v10164_v37 = vpop.eup %10163  ;;  %v7706_v8 = vmul.f32 -1.442695, %v12374_v55  ;;  %8196 = vmatpush3.bf16.msra.mxu0 %v10067_v49 }
 0x1fc   : > { %v9304_v19 = vpack.i.bf16 %v12379_v7, %v12382_v34  ;;  %v2475_v36 = vmul.f32 %v10164_v37, %v12208_v6  ;;  %v16930_v34 = vrot.slane %v12035_v48, 2 }
 0x1fd   : > { %v12397_v23 = vadd.f32 %v2224_v12, %v2064_v56  ;;  %10173 = vpow2.f32 %v7706_v8 }
 0x1fe   : > { %v10166_v29 = vpop.eup %10165  ;;  %v8023_v3 = vpop.f32.mrf.mxu0  ;;  %9305 = vrot.lane.b32.xlu0 %v9304_v19, %s10625_s30  ;;  %v12406_v4 = vsel %vm789_vm1, %v2757_v60, %v16930_v34  ;;  %v12409_v18 = vrot.slane %v2475_v36, 7  ;;  %v12420_v60 = vsel %vm711_vm2, %v2712_v17, %v2713_v25  ;;  %v10068_v19 = vld [vmem:[%s16560_s3 + $0xc0] sm:$0xff]  }
 0x1ff   : > { %v2382_v6 = vadd.f32 1.0, %v10166_v29  ;;  %v7707_v12 = vmul.f32 -1.442695, %v12397_v23  ;;  %v9314_v56 = vpack.i.bf16 %v12406_v4, %v12400_v10  ;;  %16932 = vst [vmem:[#allocation44_spill] sm:$0xff] %v12420_v60  ;;  %8197 = vmatprep.subr.bf16.mxu0 %v10068_v19  ;;  %v2763_v19 = vrot.slane %v12075_v27, 2 }
 0x200   : > { %16931 = vst [vmem:[#allocation43_spill] sm:$0xff] %v12409_v18  ;;  %v8024_v54 = vpop.f32.mrf.mxu0  ;;  %v12417_v34 = vsel %vm552_vm0, %v12371_v0, %v12409_v18  ;;  %v12433_v17 = vsel %vm552_vm0, %v12409_v18, 0.0  ;;  %v12444_v18 = vpop.f32.mrf.mxu1 }
 0x201   : > { %10175 = vrcp.f32 %v2382_v6  ;;  %v8025_v37 = vadd.f32 %v8024_v54, %v8023_v3  ;;  %v9309_v29 = vpack.i.bf16 %v12420_v60, %v12417_v34  ;;  %v10069_v3 = vld [vmem:[%s16560_s3 + $0x80] sm:$0xff]  }
 0x202   : > { %10177 = vpow2.f32 %v7707_v12  ;;  %v8026_v8 = vpop.f32.mrf.mxu0  ;;  %9315 = vrot.lane.b32.xlu0 %v9314_v56, %s10625_s30  ;;  %v10168_v40 = vpop.eup %10167  ;;  %v2760_v12 = vrot.slane %v12068_v9, 2  ;;  %8198 = vmatpush3.bf16.msra.mxu0 %v10069_v3 }
 0x203   : > { %v2069_v25 = vadd.f32 %v8025_v37, %v11938_v45  ;;  %v10170_v49 = vpop.eup %10169  ;;  %v2476_v36 = vmul.f32 %v10168_v40, %v12264_v57  ;;  %9310 = vrot.lane.b32.xlu1 %v9309_v29, %s10625_s30  ;;  %v2718_v37 = vrot.slane %v12417_v34, 1  ;;  %v2720_v57 = vrot.slane %v12433_v17, 1 }
 0x204   : > { %v8027_v6 = vpop.f32.mrf.mxu0  ;;  %v2383_v54 = vadd.f32 1.0, %v10170_v49 }
 0x205   : > { %v12440_v56 = vadd.f32 %v12320_v42, %v2069_v25  ;;  %v8028_v10 = vadd.f32 %v8027_v6, %v8026_v8  ;;  %v12442_v60 = vrot.slane %v2476_v36, 7  ;;  %v16934_v25 = vrot.slane %v12035_v48, 2 }
 0x206   : > { %10179 = vrcp.f32 %v2383_v54  ;;  %v2762_v36 = vrot.slane %v12053_v15, 2  ;;  %v12470_v0 = vsel %vm711_vm2, %v2718_v37, %v2720_v57 }
 0x207   : > { %16933 = vst [vmem:[#allocation45_spill] sm:$0xff] %v12442_v60  ;;  %v10172_v40 = vpop.eup %10171  ;;  %v7708_v29 = vmul.f32 -1.442695, %v12440_v56  ;;  %v2072_v9 = vadd.f32 %v8028_v10, %v11938_v45  ;;  %v12453_v42 = vsel %vm552_vm0, 0.0, %v12442_v60  ;;  %v12462_v49 = vsel %vm789_vm1, %v16934_v25, %v2760_v12  ;;  %16936 = vst [vmem:[#allocation47_spill] sm:$0xff] %v12470_v0 }
 0x208   : > { %v2477_v8 = vmul.f32 %v10172_v40, %v12284_v24  ;;  %v9319_v54 = vpack.i.bf16 %v12453_v42, %v12462_v49  ;;  %v2237_v24 = vpop.f32.mrf.mxu1  ;;  %v12481_v25 = vsel %vm789_vm1, %v2762_v36, %v2763_v19 }
 0x209   : > { %10181 = vpow2.f32 %v7708_v29  ;;  %v12457_v3 = vadd.f32 %v12363_v2, %v2072_v9  ;;  %v2717_v29 = vrot.slane %v12379_v7, 1  ;;  %16937 = vst [vmem:[#allocation48_spill] sm:$0xff] %v12481_v25  ;;  %v9329_v16 = vpack.i.bf16 %v12481_v25, %v12470_v0 }
 0x20a   : > { %v12465_v10 = vrot.slane %v2477_v8, 7  ;;  %v10174_v40 = vpop.eup %10173  ;;  %9320 = vrot.lane.b32.xlu1 %v9319_v54, %s10625_s30  ;;  %v12494_v47 = vpop.f32.mrf.mxu1 }
 0x20b   : > { %v8029_v6 = vpop.f32.mrf.mxu0  ;;  %v7709_v2 = vmul.f32 -1.442695, %v12457_v3  ;;  %v2384_v9 = vadd.f32 1.0, %v10174_v40  ;;  %v12484_v57 = vsel %vm711_vm2, %v2717_v29, %v2718_v37  ;;  %v2765_v37 = vrot.slane %v12117_v38, 2 }
 0x20c   : > { %16935 = vst [vmem:[#allocation46_spill] sm:$0xff] %v12465_v10  ;;  %v12477_v12 = vsel %vm552_vm0, %v12442_v60, %v12465_v10  ;;  %16938 = vst [vmem:[#allocation49_spill] sm:$0xff] %v12484_v57  ;;  %v12490_v32 = vsel %vm552_vm0, %v12465_v10, 0.0  ;;  %v2768_v38 = vrot.slane %v12122_v62, 2 }
 0x20d   : > { %v8030_v8 = vpop.f32.mrf.mxu0  ;;  %10183 = vrcp.f32 %v2384_v9  ;;  %v9324_v54 = vpack.i.bf16 %v12484_v57, %v12477_v12  ;;  %v2723_v9 = vrot.slane %v12477_v12, 1 }
 0x20e   : > { %v10176_v31 = vpop.eup %10175  ;;  %v8031_v60 = vadd.f32 %v8030_v8, %v8029_v6  ;;  %10185 = vpow2.f32 %v7709_v2  ;;  %9330 = vrot.lane.b32.xlu1 %v9329_v16, %s10625_s30  ;;  %v2725_v8 = vrot.slane %v12490_v32, 1  ;;  %v12511_v16 = vld [vmem:[%s16559_s2] ss:$0 sm:$0xff]  ;;  %v12519_v2 = vsel %vm789_vm1, %v2763_v19, %v2765_v37 }
 0x20f   : > { %v8032_v40 = vpop.f32.mrf.mxu0  ;;  %v10178_v36 = vpop.eup %10177  ;;  %v2478_v29 = vmul.f32 %v10176_v31, %v12316_v35  ;;  %9325 = vrot.lane.b32.xlu0 %v9324_v54, %s10625_s30  ;;  %16941 = vst [vmem:[#allocation52_spill] sm:$0xff] %v12519_v2  ;;  %v2722_v37 = vrot.slane %v12453_v42, 1 }
 0x210   : > { %v2385_v0 = vadd.f32 1.0, %v10178_v36  ;;  %v2077_v6 = vadd.f32 %v8031_v60, %v11938_v45  ;;  %v2240_v31 = vpop.f32.mrf.mxu1 }
 0x211   : > { %v8033_v10 = vpop.f32.mrf.mxu0  ;;  %v12503_v57 = vrot.slane %v2478_v29, 7 }
 0x212   : > { %v8034_v11 = vadd.f32 %v8033_v10, %v8032_v40  ;;  %10187 = vrcp.f32 %v2385_v0  ;;  %v12506_v35 = vadd.f32 %v2237_v24, %v2077_v6  ;;  %v2767_v0 = vrot.slane %v12098_v14, 2 }
 0x213   : > { %16939 = vst [vmem:[#allocation50_spill] sm:$0xff] %v12503_v57  ;;  %v12516_v60 = vsel %vm552_vm0, 0.0, %v12503_v57  ;;  %v10180_v10 = vpop.eup %10179 }
 0x214   : > { %v2080_v45 = vadd.f32 %v12511_v16, %v8034_v11  ;;  %16940 = vst [vmem:[#allocation51_spill] sm:$0xff] %v12516_v60  ;;  %v7710_v24 = vmul.f32 -1.442695, %v12506_v35  ;;  %v9334_v40 = vpack.i.bf16 %v12516_v60, %v12519_v2  ;;  %v2479_v54 = vmul.f32 %v10180_v10, %v12332_v1 }
 0x215   : > { %v12529_v11 = vsel %vm711_vm2, %v2723_v9, %v2725_v8  ;;  %v12533_v19 = vsel %vm789_vm1, %v2767_v0, %v2768_v38  ;;  %v12547_v0 = vsel %vm711_vm2, %v2722_v37, %v2723_v9 }
 0x216   : > { %v12526_v36 = vadd.f32 %v2240_v31, %v2080_v45  ;;  %16942 = vst [vmem:[#allocation53_spill] sm:$0xff] %v12529_v11  ;;  %v10182_v29 = vpop.eup %10181  ;;  %10189 = vpow2.f32 %v7710_v24  ;;  %9335 = vrot.lane.b32.xlu0 %v9334_v40, %s10625_s30  ;;  %16943 = vst [vmem:[#allocation54_spill] sm:$0xff] %v12533_v19  ;;  %v12536_v39 = vrot.slane %v2479_v54, 7  ;;  %v9344_v8 = vpack.i.bf16 %v12533_v19, %v12529_v11 }
 0x217   : > { %v8035_v6 = vpop.f32.mrf.mxu0  ;;  %v2386_v44 = vadd.f32 1.0, %v10182_v29  ;;  %16945 = vst [vmem:[#allocation56_spill] sm:$0xff] %v12547_v0 }
 0x218   : > { %16944 = vst [vmem:[#allocation55_spill] sm:$0xff] %v12536_v39  ;;  %v7711_v1 = vmul.f32 -1.442695, %v12526_v36  ;;  %v12544_v10 = vsel %vm552_vm0, %v12503_v57, %v12536_v39  ;;  %v12551_v24 = vsel %vm552_vm0, %v12536_v39, 0.0 }
 0x219   : > { %v8036_v31 = vpop.f32.mrf.mxu0  ;;  %10191 = vrcp.f32 %v2386_v44  ;;  %16946 = vst [vmem:[#allocation57_spill] sm:$0xff] %v12551_v24  ;;  %v9339_v44 = vpack.i.bf16 %v12547_v0, %v12544_v10  ;;  %v2728_v39 = vrot.slane %v12544_v10, 1  ;;  %v2730_v11 = vrot.slane %v12551_v24, 1 }
 0x21a   : > { %v8037_v45 = vadd.f32 %v8036_v31, %v8035_v6  ;;  %10193 = vpow2.f32 %v7711_v1  ;;  %9345 = vrot.lane.b32.xlu0 %v9344_v8, %s10625_s30  ;;  %v10184_v54 = vpop.eup %10183  ;;  %v2770_v31 = vrot.slane %v12179_v22, 2 }
 0x21b   : > { %v8038_v40 = vpop.f32.mrf.mxu0  ;;  %v10186_v6 = vpop.eup %10185  ;;  %v2480_v9 = vmul.f32 %v10184_v54, %v12374_v55  ;;  %9340 = vrot.lane.b32.xlu1 %v9339_v44, %s10625_s30 }
 0x21c   : > { %v2085_v29 = vadd.f32 %v12511_v16, %v8037_v45  ;;  %v2387_v1 = vadd.f32 1.0, %v10186_v6  ;;  %v12569_v54 = vpop.f32.mrf.mxu1  ;;  %v2773_v6 = vrot.slane %v12170_v20, 2 }
 0x21d   : > { %v8039_v37 = vpop.f32.mrf.mxu0  ;;  %v12565_v0 = vrot.slane %v2480_v9, 7 }
 0x21e   : > { %v12562_v57 = vadd.f32 %v12444_v18, %v2085_v29  ;;  %v8040_v8 = vadd.f32 %v8039_v37, %v8038_v40  ;;  %10195 = vrcp.f32 %v2387_v1  ;;  %v12577_v40 = vsel %vm789_vm1, %v2768_v38, %v2770_v31  ;;  %v2253_v30 = vpop.f32.mrf.mxu1 }
 0x21f   : > { %16947 = vst [vmem:[#allocation58_spill] sm:$0xff] %v12565_v0  ;;  %v10188_v45 = vpop.eup %10187  ;;  %v12573_v44 = vsel %vm552_vm0, 0.0, %v12565_v0  ;;  %16948 = vst [vmem:[#allocation59_spill] sm:$0xff] %v12577_v40  ;;  %v12584_v37 = vsel %vm711_vm2, %v2728_v39, %v2730_v11  ;;  %v2772_v1 = vrot.slane %v12148_v51, 2 }
 0x220   : > { %v7712_v22 = vmul.f32 -1.442695, %v12562_v57  ;;  %v2088_v55 = vadd.f32 %v12511_v16, %v8040_v8  ;;  %v2481_v18 = vmul.f32 %v10188_v45, %v12397_v23  ;;  %16949 = vst [vmem:[#allocation60_spill] sm:$0xff] %v12584_v37  ;;  %v9349_v38 = vpack.i.bf16 %v12573_v44, %v12577_v40 }
 0x221   : > { %v9241_v29 = vpop.permute.xlu1 %9240  ;;  %v12604_v46 = vsel %vm789_vm1, %v2772_v1, %v2773_v6 }
 0x222   : > { %10197 = vpow2.f32 %v7712_v22  ;;  %v12581_v9 = vadd.f32 %v12494_v47, %v2088_v55  ;;  %v12587_v8 = vrot.slane %v2481_v18, 7  ;;  %v12589_v33 = vunpack.i.h.bf16 %v9241_v29  ;;  %9350 = vrot.lane.b32.xlu1 %v9349_v38, %s10625_s30  ;;  %16952 = vst [vmem:[#allocation63_spill] sm:$0xff] %v12604_v46 }
 0x223   : > { %v9242_v23 = vunpack.i.l.bf16 %v9241_v29  ;;  %v8041_v45 = vpop.f32.mrf.mxu0  ;;  %v10190_v31 = vpop.eup %10189  ;;  %v2727_v47 = vrot.slane %v12516_v60, 1 }
 0x224   : > { %16950 = vst [vmem:[#allocation61_spill] sm:$0xff] %v12587_v8  ;;  %16951 = vst [vmem:[#allocation62_spill] sm:$0xff] %v12589_v33  ;;  %v7713_v22 = vmul.f32 -1.442695, %v12581_v9  ;;  %v12598_v11 = vsel %vm552_vm0, %v12565_v0, %v12587_v8  ;;  %v2388_v55 = vadd.f32 1.0, %v10190_v31  ;;  %v12608_v53 = vsel %vm552_vm0, %v12587_v8, 0.0 }
 0x225   : > { %v8042_v18 = vpop.f32.mrf.mxu0  ;;  %v3230_v29 = vsel %vm1538_vm4, %v10783_v21, %v9242_v23  ;;  %16953 = vst [vmem:[#allocation64_spill] sm:$0xff] %v12608_v53  ;;  %v12611_v20 = vsel %vm711_vm2, %v2727_v47, %v2728_v39  ;;  %v9359_v0 = vpack.i.bf16 %v12604_v46, %v12584_v37  ;;  %v3231_v23 = vsel %vm1538_vm4, %v10783_v21, %v12589_v33  ;;  %v12622_v47 = vpop.f32.mrf.mxu1 }
 0x226   : > { %16954 = vst [vmem:[#allocation65_spill] sm:$0xff] %v12611_v20  ;;  %v10192_v31 = vpop.eup %10191  ;;  %10199 = vrcp.f32 %v2388_v55  ;;  %v8043_v38 = vadd.f32 %v8042_v18, %v8041_v45  ;;  %v9354_v1 = vpack.i.bf16 %v12611_v20, %v12598_v11  ;;  %v2775_v8 = vrot.slane %v12222_v58, 2 }
 0x227   : > { %v8044_v51 = vpop.f32.mrf.mxu0  ;;  %v10194_v24 = vpop.eup %10193  ;;  %v2482_v39 = vmul.f32 %v10192_v31, %v12440_v56  ;;  %10201 = vpow2.f32 %v7713_v22  ;;  %v3297_v37 = vpack.c.bf16 %v3231_v23, %v3230_v29  ;;  %v16955_v45 = vmov 0  ;;  %9360 = vrot.lane.b32.xlu1 %v9359_v0, %s10625_s30 }
 0x228   : > { %v16956_v45 = vsel %vm12625_vm6, 4294967295, %v16955_v45  ;;  %v2733_v55 = vrot.slane %v12598_v11, 1  ;;  %v2389_v21 = vadd.f32 1.0, %v10194_v24  ;;  %v2093_v18 = vadd.f32 %v12511_v16, %v8043_v38  ;;  %9355 = vrot.lane.b32.xlu0 %v9354_v1, %s10625_s30 }
 0x229   : > { %16957 = vst [vmem:[#allocation66_spill] sm:$0xff] %v16956_v45  ;;  %v8045_v58 = vpop.f32.mrf.mxu0  ;;  %v9246_v56 = vpop.permute.xlu0 %9245  ;;  %v2735_v22 = vrot.slane %v12608_v53, 1  ;;  %v12634_v31 = vrot.slane %v2482_v39, 7  ;;  %3734 = vmatprep.mubr.bf16.mxu1 %v3297_v37  ;;  %v2777_v39 = vrot.slane %v12202_v43, 2 }
 0x22a   : > { %v8046_v29 = vadd.f32 %v8045_v58, %v8044_v51  ;;  %v9247_v23 = vunpack.i.l.bf16 %v9246_v56  ;;  %10203 = vrcp.f32 %v2389_v21  ;;  %v12637_v20 = vadd.f32 %v2253_v30, %v2093_v18  ;;  %v10070_v30 = vld [vmem:[%s16560_s3 + $0x110] sm:$0xff]   ;;  %v2256_v18 = vpop.f32.mrf.mxu1 }
 0x22b   : > { %16958 = vst [vmem:[#allocation67_spill] sm:$0xff] %v12634_v31  ;;  %v12647_v1 = vsel %vm552_vm0, 0.0, %v12634_v31  ;;  %v12650_v51 = vsel %vm789_vm1, %v2773_v6, %v2775_v8  ;;  %v10196_v37 = vpop.eup %10195  ;;  %v12669_v6 = vsel %vm711_vm2, %v2733_v55, %v2735_v22  ;;  %v9248_v43 = vunpack.i.h.bf16 %v9246_v56 }
 0x22c   : > { %v2096_v0 = vadd.f32 %v12511_v16, %v8046_v29  ;;  %v12643_v24 = vpack.c.bf16 %v9247_v23, %v9247_v23  ;;  %v8047_v38 = vpop.f32.mrf.mxu0  ;;  %16960 = vst [vmem:[#allocation69_spill] sm:$0xff] %v12647_v1  ;;  %16961 = vst [vmem:[#allocation70_spill] sm:$0xff] %v12650_v51  ;;  %v7714_v21 = vmul.f32 -1.442695, %v12637_v20  ;;  %v9364_v58 = vpack.i.bf16 %v12647_v1, %v12650_v51 }
 0x22d   : > { %v2483_v29 = vmul.f32 %v10196_v37, %v12457_v3  ;;  %16962 = vst [vmem:[#allocation71_spill] sm:$0xff] %v12669_v6  ;;  %v16963_v3 = vrot.slane %v12227_v63, 2  ;;  %v2732_v37 = vrot.slane %v12573_v44, 1 }
 0x22e   : > { %16959 = vst [vmem:[#allocation68_spill] sm:$0xff] %v12643_v24  ;;  %v12660_v23 = vadd.f32 %v2256_v18, %v2096_v0  ;;  %v8048_v33 = vpop.f32.mrf.mxu0  ;;  %7759 = vmatmul.mubr.msk.bf16.vlgmr.msra.gmra.mxu1 %vm7757_vm7, %v12643_v24  ;;  %10205 = vpow2.f32 %v7714_v21  ;;  %v9251_v53 = vpop.permute.xlu1 %9250  ;;  %9365 = vrot.lane.b32.xlu0 %v9364_v58, %s10625_s30 }
 0x22f   : > { %v10198_v8 = vpop.eup %10197  ;;  %v8049_v60 = vadd.f32 %v8048_v33, %v8047_v38  ;;  %v12675_v0 = vsel %vm789_vm1, %v2777_v39, %v16963_v3  ;;  %8537 = vmatpush3.bf16.msra.mxu1 %v12254_v61  ;;  %v12679_v18 = vrot.slane %v2483_v29, 7  ;;  %v10071_v33 = vld [vmem:[%s16560_s3 + $0x108] sm:$0xff]   ;;  %v12685_v56 = vunpack.i.l.bf16 %v9251_v53 }
 0x230   : > { %v2390_v22 = vadd.f32 1.0, %v10198_v8  ;;  %v7715_v45 = vmul.f32 -1.442695, %v12660_v23  ;;  %v8050_v21 = vpop.f32.mrf.mxu0  ;;  %8538 = vmatprep.subr.bf16.mxu1 %v10070_v30  ;;  %v9374_v61 = vpack.i.bf16 %v12675_v0, %v12669_v6  ;;  %v2780_v39 = vrot.slane %v12301_v50, 2 }
 0x231   : > { %16964 = vst [vmem:[#allocation72_spill] sm:$0xff] %v12679_v18  ;;  %16965 = vst [vmem:[#allocation73_spill] sm:$0xff] %v12685_v56  ;;  %v2101_v38 = vadd.f32 %v12511_v16, %v8049_v60  ;;  %v12694_v29 = vsel %vm552_vm0, %v12634_v31, %v12679_v18  ;;  %v12697_v8 = vsel %vm711_vm2, %v2732_v37, %v2733_v55  ;;  %v12707_v24 = vsel %vm552_vm0, %v12679_v18, 0.0 }
 0x232   : > { %10207 = vrcp.f32 %v2390_v22  ;;  %v8051_v58 = vpop.f32.mrf.mxu0  ;;  %16966 = vst [vmem:[#allocation74_spill] sm:$0xff] %v12694_v29  ;;  %16967 = vst [vmem:[#allocation75_spill] sm:$0xff] %v12697_v8  ;;  %9375 = vrot.lane.b32.xlu0 %v9374_v61, %s10625_s30  ;;  %v3232_v50 = vsel %vm1538_vm4, %v12406_v4, %v9248_v43  ;;  %v9253_v31 = vunpack.i.h.bf16 %v9251_v53  ;;  %v9369_v55 = vpack.i.bf16 %v12697_v8, %v12694_v29 }
 0x233   : > { %10209 = vpow2.f32 %v7715_v45  ;;  %v12700_v3 = vadd.f32 %v12569_v54, %v2101_v38  ;;  %v8052_v60 = vadd.f32 %v8051_v58, %v8050_v21  ;;  %8539 = vmatpush3.bf16.msra.mxu1 %v10070_v30  ;;  %v10200_v22 = vpop.eup %10199  ;;  %v3233_v54 = vsel %vm1538_vm4, %v12462_v49, %v12685_v56 }
 0x234   : > { %8540 = vmatprep.subr.bf16.mxu1 %v10071_v33  ;;  %v10202_v45 = vpop.eup %10201  ;;  %v2484_v37 = vmul.f32 %v10200_v22, %v12506_v35  ;;  %v3302_v30 = vpack.c.bf16 %v3233_v54, %v3232_v50  ;;  %v9256_v21 = vpop.permute.xlu0 %9255  ;;  %9370 = vrot.lane.b32.xlu1 %v9369_v55, %s10625_s30  ;;  %v16968_v61 = vrot.slane %v12227_v63, 2  ;;  %v2738_v49 = vrot.slane %v12694_v29, 1 }
 0x235   : > { %v7716_v43 = vmul.f32 -1.442695, %v12700_v3  ;;  %v2104_v4 = vadd.f32 %v12511_v16, %v8052_v60  ;;  %v2391_v38 = vadd.f32 1.0, %v10202_v45  ;;  %v9257_v53 = vunpack.i.l.bf16 %v9256_v21 }
 0x236   : > { %v12721_v58 = vsel %vm789_vm1, %v16968_v61, %v2780_v39  ;;  %v12724_v18 = vrot.slane %v2484_v37, 7  ;;  %3742 = vmatprep.mubr.bf16.mxu1 %v3302_v30  ;;  %v2740_v16 = vrot.slane %v12707_v24, 1  ;;  %v3200_v50 = vsel %vm1538_vm4, %v12029_v52, %v9253_v31 }
 0x237   : > { %10211 = vpow2.f32 %v7716_v43  ;;  %v12727_v35 = vadd.f32 %v12622_v47, %v2104_v4  ;;  %8541 = vmatpush3.bf16.msra.mxu1 %v10071_v33  ;;  %v10204_v60 = vpop.eup %10203  ;;  %v3201_v39 = vsel %vm1538_vm4, %v12035_v48, %v9257_v53  ;;  %v2783_v22 = vrot.slane %v12294_v5, 2 }
 0x238   : > { %16969 = vst [vmem:[#allocation76_spill] sm:$0xff] %v12724_v18  ;;  %10213 = vrcp.f32 %v2391_v38  ;;  %v12737_v55 = vsel %vm552_vm0, 0.0, %v12724_v18  ;;  %v2485_v47 = vmul.f32 %v10204_v60, %v12526_v36  ;;  %v3301_v45 = vpack.c.bf16 %v3201_v39, %v3200_v50 }
 0x239   : > { %16970 = vst [vmem:[#allocation77_spill] sm:$0xff] %v12737_v55  ;;  %v7717_v54 = vmul.f32 -1.442695, %v12727_v35  ;;  %v9258_v33 = vunpack.i.h.bf16 %v9256_v21  ;;  %v9379_v37 = vpack.i.bf16 %v12737_v55, %v12721_v58  ;;  %v12746_v48 = vsel %vm711_vm2, %v2738_v49, %v2740_v16 }
 0x23a   : > { %v12743_v43 = vrot.slane %v2485_v47, 7  ;;  %v9261_v52 = vpop.permute.xlu1 %9260  ;;  %3743 = vmatmul.mubr.bf16.gmra.mxu1 %v3301_v45  ;;  %16972 = vst [vmem:[#allocation79_spill] sm:$0xff] %v12746_v48  ;;  %v2782_v31 = vrot.slane %v12269_v26, 2  ;;  %v2737_v36 = vrot.slane %v12647_v1, 1  ;;  %v2785_v61 = vrot.slane %v12346_v13, 2 }
 0x23b   : > { %10215 = vpow2.f32 %v7717_v54  ;;  %v10206_v4 = vpop.eup %10205  ;;  %v12749_v30 = vunpack.i.l.bf16 %v9261_v52  ;;  %9380 = vrot.lane.b32.xlu1 %v9379_v37, %s10625_s30  ;;  %v3234_v50 = vsel %vm1538_vm4, %v12481_v25, %v9258_v33  ;;  %v9263_v37 = vunpack.i.h.bf16 %v9261_v52 }
 0x23c   : > { %16971 = vst [vmem:[#allocation78_spill] sm:$0xff] %v12743_v43  ;;  %v12756_v21 = vsel %vm552_vm0, %v12724_v18, %v12743_v43  ;;  %v2392_v38 = vadd.f32 1.0, %v10206_v4  ;;  %v12759_v53 = vsel %vm789_vm1, %v2782_v31, %v2783_v22  ;;  %v12763_v16 = vsel %vm711_vm2, %v2737_v36, %v2738_v49  ;;  %v10072_v31 = vld [vmem:[%s16560_s3 + $0x100] sm:$0xff]  }
 0x23d   : > { %16973 = vst [vmem:[#allocation80_spill] sm:$0xff] %v12749_v30  ;;  %16974 = vst [vmem:[#allocation81_spill] sm:$0xff] %v12756_v21  ;;  %v9389_v60 = vpack.i.bf16 %v12759_v53, %v12746_v48  ;;  %v12771_v47 = vsel %vm552_vm0, %v12743_v43, 0.0  ;;  %v9384_v54 = vpack.i.bf16 %v12763_v16, %v12756_v21  ;;  %v3235_v13 = vsel %vm1538_vm4, %v12519_v2, %v12749_v30 }
 0x23e   : > { %16975 = vst [vmem:[#allocation82_spill] sm:$0xff] %v12763_v16  ;;  %10217 = vrcp.f32 %v2392_v38  ;;  %v3306_v33 = vpack.c.bf16 %v3235_v13, %v3234_v50  ;;  %v2743_v38 = vrot.slane %v12756_v21, 1  ;;  %v2745_v43 = vrot.slane %v12771_v47, 1  ;;  %8542 = vmatprep.subr.bf16.mxu1 %v10072_v31 }
 0x23f   : > { %v10208_v39 = vpop.eup %10207  ;;  %9390 = vrot.lane.b32.xlu1 %v9389_v60, %s10625_s30  ;;  %9385 = vrot.lane.b32.xlu0 %v9384_v54, %s10625_s30  ;;  %v12789_v52 = vsel %vm789_vm1, %v2783_v22, %v2785_v61  ;;  %v2788_v50 = vrot.slane %v12351_v41, 2  ;;  %v3202_v54 = vsel %vm1538_vm4, %v12053_v15, %v9263_v37  ;;  %v2742_v37 = vrot.slane %v12737_v55, 1 }
 0x240   : > { %v10210_v49 = vpop.eup %10209  ;;  %v2486_v45 = vmul.f32 %v10208_v39, %v12562_v57  ;;  %v9266_v36 = vpop.permute.xlu0 %9265  ;;  %3750 = vmatprep.mubr.bf16.mxu1 %v3306_v33  ;;  %8543 = vmatpush3.bf16.msra.mxu1 %v10072_v31  ;;  %v2787_v31 = vrot.slane %v12326_v59, 2  ;;  %v12805_v56 = vsel %vm711_vm2, %v2743_v38, %v2745_v43  ;;  %v2800_v48 = vrot.slane %v12490_v32, 2 }
 0x241   : > { %v2393_v4 = vadd.f32 1.0, %v10210_v49  ;;  %v9267_v57 = vunpack.i.l.bf16 %v9266_v36  ;;  %v9268_v33 = vunpack.i.h.bf16 %v9266_v36  ;;  %16977 = vst [vmem:[#allocation84_spill] sm:$0xff] %v12805_v56  ;;  %v2812_v2 = vrot.slane %v12647_v1, 2 }
 0x242   : > { %v12786_v18 = vrot.slane %v2486_v45, 7 }
 0x243   : > { %10219 = vrcp.f32 %v2393_v4  ;;  %v3203_v13 = vsel %vm1538_vm4, %v12075_v27, %v9267_v57  ;;  %v12814_v57 = vsel %vm789_vm1, %v2787_v31, %v2788_v50 }
 0x244   : > { %16976 = vst [vmem:[#allocation83_spill] sm:$0xff] %v12786_v18  ;;  %v10212_v60 = vpop.eup %10211  ;;  %v12794_v39 = vsel %vm552_vm0, 0.0, %v12786_v18  ;;  %v3299_v61 = vpack.c.bf16 %v3203_v13, %v3202_v54  ;;  %v9404_v43 = vpack.i.bf16 %v12814_v57, %v12805_v56 }
 0x245   : > { %v10214_v49 = vpop.eup %10213  ;;  %v2394_v45 = vadd.f32 1.0, %v10212_v60  ;;  %v9394_v22 = vpack.i.bf16 %v12794_v39, %v12789_v52  ;;  %v9271_v30 = vpop.permute.xlu1 %9270  ;;  %v3236_v60 = vsel %vm1538_vm4, %v12533_v19, %v9268_v33 }
 0x246   : > { %v2487_v4 = vmul.f32 %v10214_v49, %v12581_v9  ;;  %v12807_v15 = vunpack.i.l.bf16 %v9271_v30  ;;  %3751 = vmatmul.mubr.bf16.gmra.mxu1 %v3299_v61  ;;  %3895 = vmatprep.mubr.bf16.mxu0 %v3299_v61  ;;  %v12829_v49 = vsel %vm711_vm2, %v2742_v37, %v2743_v38  ;;  %v2790_v61 = vrot.slane %v12359_v28, 2 }
 0x247   : > { %10221 = vrcp.f32 %v2394_v45  ;;  %9395 = vrot.lane.b32.xlu0 %v9394_v22, %s10625_s30  ;;  %16980 = vst [vmem:[#allocation87_spill] sm:$0xff] %v12829_v49  ;;  %v2792_v37 = vrot.slane %v12379_v7, 2 }
 0x248   : > { %16978 = vst [vmem:[#allocation85_spill] sm:$0xff] %v12807_v15  ;;  %v10216_v27 = vpop.eup %10215  ;;  %v12811_v36 = vrot.slane %v2487_v4, 7  ;;  %v3237_v54 = vsel %vm1538_vm4, %v12577_v40, %v12807_v15  ;;  %v2793_v4 = vrot.slane %v12417_v34, 2 }
 0x249   : > { %v2395_v9 = vadd.f32 1.0, %v10216_v27  ;;  %v3310_v45 = vpack.c.bf16 %v3237_v54, %v3236_v60  ;;  %v9273_v27 = vunpack.i.h.bf16 %v9271_v30  ;;  %v2797_v30 = vrot.slane %v12453_v42, 2 }
 0x24a   : > { %16979 = vst [vmem:[#allocation86_spill] sm:$0xff] %v12811_v36  ;;  %v12826_v13 = vsel %vm552_vm0, %v12786_v18, %v12811_v36  ;;  %v12837_v31 = vsel %vm552_vm0, %v12811_v36, 0.0  ;;  %v2795_v36 = vrot.slane %v12433_v17, 2  ;;  %v12849_v18 = vsel %vm789_vm1, %v2788_v50, %v2790_v61 }
 0x24b   : > { %10223 = vrcp.f32 %v2395_v9  ;;  %9405 = vrot.lane.b32.xlu0 %v9404_v43, %s10625_s30  ;;  %v9399_v22 = vpack.i.bf16 %v12829_v49, %v12826_v13  ;;  %v10218_v33 = vpop.eup %10217  ;;  %3758 = vmatprep.mubr.bf16.mxu1 %v3310_v45  ;;  %v2748_v60 = vrot.slane %v12826_v13, 1  ;;  %v2750_v28 = vrot.slane %v12837_v31, 1 }
 0x24c   : > { %v2488_v38 = vmul.f32 %v10218_v33, %v12637_v20  ;;  %v9276_v43 = vpop.permute.xlu0 %9275  ;;  %v12852_v20 = vsel %vm789_vm1, %v2792_v37, %v2793_v4  ;;  %v3204_v50 = vsel %vm1538_vm4, %v12098_v14, %v9273_v27  ;;  %v2803_v14 = vrot.slane %v12544_v10, 2 }
 0x24d   : > { %9400 = vrot.lane.b32.xlu1 %v9399_v22, %s10625_s30  ;;  %v9277_v45 = vunpack.i.l.bf16 %v9276_v43  ;;  %v2798_v22 = vrot.slane %v12477_v12, 2  ;;  %v9278_v15 = vunpack.i.h.bf16 %v9276_v43 }
 0x24e   : > { %v12843_v9 = vrot.slane %v2488_v38, 7 }
 0x24f   : > { %v3205_v61 = vsel %vm1538_vm4, %v12122_v62, %v9277_v45 }
 0x250   : > { %v10220_v54 = vpop.eup %10219  ;;  %v12859_v38 = vsel %vm552_vm0, 0.0, %v12843_v9  ;;  %v12869_v56 = vpack.c.bf16 %v3205_v61, %v3204_v50 }
 0x251   : > { %v2489_v33 = vmul.f32 %v10220_v54, %v12660_v23  ;;  %v9409_v17 = vpack.i.bf16 %v12859_v38, %v12849_v18  ;;  %v9281_v49 = vpop.permute.xlu1 %9280  ;;  %v2747_v23 = vrot.slane %v12794_v39, 1  ;;  %v12873_v54 = vsel %vm711_vm2, %v2748_v60, %v2750_v28 }
 0x252   : > { %16981 = vst [vmem:[#allocation88_spill] sm:$0xff] %v12873_v54  ;;  %v12877_v8 = vunpack.i.l.bf16 %v9281_v49  ;;  %3759 = vmatmul.mubr.bf16.gmra.mxu1 %v12869_v56  ;;  %v9283_v16 = vunpack.i.h.bf16 %v9281_v49 }
 0x253   : > { %v12867_v37 = vrot.slane %v2489_v33, 7  ;;  %9410 = vrot.lane.b32.xlu1 %v9409_v17, %s10625_s30  ;;  %v12893_v28 = vsel %vm711_vm2, %v2747_v23, %v2748_v60  ;;  %v9419_v33 = vpack.i.bf16 %v12852_v20, %v12873_v54  ;;  %v3238_v17 = vsel %vm1538_vm4, %v12604_v46, %v9278_v15  ;;  %v16990_v46 = vld [vmem:[#allocation27_spill] sm:$0xff] }
 0x254   : > { %v10222_v43 = vpop.eup %10221  ;;  %16982 = vst [vmem:[#allocation89_spill] sm:$0xff] %v12877_v8  ;;  %16983 = vst [vmem:[#allocation90_spill] sm:$0xff] %v12893_v28  ;;  %v12914_v15 = vsel %vm789_vm1, %v2797_v30, %v2798_v22 }
 0x255   : > { %v12883_v62 = vsel %vm552_vm0, %v12867_v37, 0.0  ;;  %v2490_v27 = vmul.f32 %v10222_v43, %v12700_v3  ;;  %v12890_v32 = vsel %vm552_vm0, %v12843_v9, %v12867_v37  ;;  %v3239_v3 = vsel %vm1538_vm4, %v12650_v51, %v12877_v8 }
 0x256   : > { %v9414_v45 = vpack.i.bf16 %v12893_v28, %v12890_v32  ;;  %v3314_v61 = vpack.c.bf16 %v3239_v3, %v3238_v17  ;;  %v2753_v43 = vrot.slane %v12890_v32, 1  ;;  %v2755_v60 = vrot.slane %v12883_v62, 1 }
 0x257   : > { %v12904_v50 = vrot.slane %v2490_v27, 7  ;;  %9420 = vrot.lane.b32.xlu1 %v9419_v33, %s10625_s30  ;;  %v12911_v28 = vsel %vm789_vm1, %v2793_v4, %v2795_v36  ;;  %v12917_v27 = vsel %vm789_vm1, %v2798_v22, %v2800_v48  ;;  %v2807_v17 = vrot.slane %v12573_v44, 2  ;;  %v16986_v36 = vld [vmem:[#allocation57_spill] sm:$0xff] }
 0x258   : > { %v10224_v23 = vpop.eup %10223  ;;  %9415 = vrot.lane.b32.xlu0 %v9414_v45, %s10625_s30  ;;  %3766 = vmatprep.mubr.bf16.mxu1 %v3314_v61  ;;  %v9286_v8 = vpop.permute.xlu0 %9285  ;;  %v16985_v45 = vld [vmem:[#allocation51_spill] sm:$0xff]  ;;  %v2805_v4 = vrot.slane %v16986_v36, 2  ;;  %v2752_v48 = vrot.slane %v12859_v38, 1  ;;  %v16988_v61 = vrot.slane %v12598_v11, 2  ;;  %v16989_v36 = vld [vmem:[#allocation25_spill] sm:$0xff] }
 0x259   : > { %v2491_v3 = vmul.f32 %v10224_v23, %v12727_v35  ;;  %v12923_v49 = vsel %vm552_vm0, 0.0, %v12904_v50  ;;  %v2802_v33 = vrot.slane %v16985_v45, 2  ;;  %v9287_v54 = vunpack.i.l.bf16 %v9286_v8 }
 0x25a   : > { %16984 = vst [vmem:[#allocation91_spill] sm:$0xff] %v12923_v49  ;;  %v9424_v30 = vpack.i.bf16 %v12923_v49, %v12911_v28  ;;  %v12933_v35 = vsel %vm711_vm2, %v2753_v43, %v2755_v60  ;;  %v12938_v23 = vsel %vm789_vm1, %v2807_v17, %v16988_v61  ;;  %v3206_v51 = vsel %vm1538_vm4, %v16989_v36, %v9283_v16 }
 0x25b   : > { %v12930_v22 = vrot.slane %v2491_v3, 7  ;;  %16987 = vst [vmem:[#allocation51_spill] sm:$0xff] %v12933_v35  ;;  %v12941_v6 = vsel %vm789_vm1, %v2802_v33, %v2803_v14  ;;  %v3207_v3 = vsel %vm1538_vm4, %v16990_v46, %v9287_v54  ;;  %v12949_v40 = vsel %vm711_vm2, %v2752_v48, %v2753_v43 }
 0x25c   : > { %9425 = vrot.lane.b32.xlu0 %v9424_v30, %s10625_s30  ;;  %16991 = vst [vmem:[#allocation57_spill] sm:$0xff] %v12949_v40  ;;  %v2813_v60 = vrot.slane %v12694_v29, 2  ;;  %v9288_v61 = vunpack.i.h.bf16 %v9286_v8  ;;  %v12956_v33 = vpack.c.bf16 %v3207_v3, %v3206_v51  ;;  %v9434_v46 = vpack.i.bf16 %v12914_v15, %v12933_v35  ;;  %v16993_v35 = vld [vmem:[#allocation64_spill] sm:$0xff] }
 0x25d   : > { %v12954_v17 = vsel %vm552_vm0, %v12930_v22, 0.0  ;;  %v12961_v30 = vsel %vm552_vm0, %v12904_v50, %v12930_v22  ;;  %v2901_v54 = vrot.slane %v12923_v49, 2  ;;  %v2818_v48 = vrot.slane %v12756_v21, 2  ;;  %v9291_v8 = vpop.permute.xlu1 %9290 }
 0x25e   : > { %16992 = vst [vmem:[#allocation25_spill] sm:$0xff] %v12961_v30  ;;  %v9429_v16 = vpack.i.bf16 %v12949_v40, %v12961_v30  ;;  %v2902_v43 = vrot.slane %v12961_v30, 2  ;;  %3767 = vmatmul.mubr.bf16.gmra.mxu1 %v12956_v33  ;;  %v12972_v51 = vsel %vm789_vm1, %v2803_v14, %v2805_v4  ;;  %v9439_v36 = vpack.i.bf16 %v12941_v6, %v12917_v27 }
 0x25f   : > { %v2904_v3 = vrot.slane %v12954_v17, 2  ;;  %v2810_v19 = vrot.slane %v16993_v35, 2  ;;  %v12978_v40 = vunpack.i.l.bf16 %v9291_v8  ;;  %v2815_v14 = vrot.slane %v12707_v24, 2 }
 0x260   : > { %9435 = vrot.lane.b32.xlu0 %v9434_v46, %s10625_s30  ;;  %9430 = vrot.lane.b32.xlu1 %v9429_v16, %s10625_s30  ;;  %v12984_v25 = vsel %vm789_vm1, %v2901_v54, %v2902_v43  ;;  %v2817_v4 = vrot.slane %v12737_v55, 2  ;;  %v9444_v21 = vpack.i.bf16 %v12938_v23, %v12972_v51  ;;  %v3240_v46 = vsel %vm1538_vm4, %v12675_v0, %v9288_v61 }
 0x261   : > { %16994 = vst [vmem:[#allocation27_spill] sm:$0xff] %v12978_v40  ;;  %16995 = vst [vmem:[#allocation64_spill] sm:$0xff] %v12984_v25  ;;  %v12991_v35 = vsel %vm789_vm1, %v2902_v43, %v2904_v3  ;;  %v3241_v16 = vsel %vm1538_vm4, %v12721_v58, %v12978_v40  ;;  %v12999_v54 = vsel %vm789_vm1, %v2812_v2, %v2813_v60  ;;  %v2823_v24 = vrot.slane %v12826_v13, 2 }
 0x262   : > { %16996 = vst [vmem:[#allocation92_spill] sm:$0xff] %v12991_v35  ;;  %v3318_v1 = vpack.c.bf16 %v3241_v16, %v3240_v46  ;;  %v13003_v55 = vsel %vm789_vm1, %v2817_v4, %v2818_v48  ;;  %v2865_v29 = vrot.slane %v12961_v30, 1  ;;  %v2820_v61 = vrot.slane %v12771_v47, 2 }
 0x263   : > { %v2822_v2 = vrot.slane %v12794_v39, 2  ;;  %v2825_v3 = vrot.slane %v12837_v31, 2  ;;  %v13014_v46 = vsel %vm789_vm1, %v2813_v60, %v2815_v14  ;;  %v16997_v4 = vrot.slane %v12598_v11, 2 }
 0x264   : > { %9445 = vrot.lane.b32.xlu0 %v9444_v21, %s10625_s30  ;;  %9440 = vrot.lane.b32.xlu1 %v9439_v36, %s10625_s30  ;;  %v2864_v43 = vrot.slane %v12923_v49, 1  ;;  %v9293_v47 = vunpack.i.h.bf16 %v9291_v8  ;;  %v9454_v21 = vpack.i.bf16 %v13003_v55, %v13014_v46  ;;  %v2867_v14 = vrot.slane %v12954_v17, 1  ;;  %v16998_v17 = vld [vmem:[#allocation21_spill] sm:$0xff] }
 0x265   : > { %3774 = vmatprep.mubr.bf16.mxu1 %v3318_v1  ;;  %v13019_v16 = vsel %vm789_vm1, %v16997_v4, %v2810_v19  ;;  %v13027_v31 = vsel %vm789_vm1, %v2822_v2, %v2823_v24  ;;  %v9296_v1 = vpop.permute.xlu0 %9295  ;;  %v13036_v8 = vsel %vm789_vm1, %v2818_v48, %v2820_v61  ;;  %v2830_v4 = vrot.slane %v12883_v62, 2 }
 0x266   : > { %v9449_v36 = vpack.i.bf16 %v12999_v54, %v13019_v16  ;;  %v13030_v60 = vsel %vm711_vm2, %v2864_v43, %v2865_v29  ;;  %v9297_v19 = vunpack.i.l.bf16 %v9296_v1  ;;  %v13040_v40 = vsel %vm789_vm1, %v2823_v24, %v2825_v3 }
 0x267   : > { %v9459_v2 = vpack.i.bf16 %v13027_v31, %v13036_v8  ;;  %v2828_v43 = vrot.slane %v12890_v32, 2  ;;  %v9298_v49 = vunpack.i.h.bf16 %v9296_v1  ;;  %v3208_v30 = vsel %vm1538_vm4, %v16998_v17, %v9293_v47 }
 0x268   : > { %9455 = vrot.lane.b32.xlu0 %v9454_v21, %s10625_s30  ;;  %9450 = vrot.lane.b32.xlu1 %v9449_v36, %s10625_s30  ;;  %v3209_v21 = vsel %vm1538_vm4, %v12227_v63, %v9297_v19  ;;  %v9464_v48 = vpack.i.bf16 %v13030_v60, %v13040_v40  ;;  %v2827_v24 = vrot.slane %v12859_v38, 2  ;;  %v13055_v3 = vsel %vm711_vm2, %v2865_v29, %v2867_v14 }
 0x269   : > { %v9301_v61 = vpop.permute.xlu1 %9300  ;;  %v13051_v62 = vpack.c.bf16 %v3209_v21, %v3208_v30  ;;  %v13063_v63 = vsel %vm789_vm1, %v2828_v43, %v2830_v4  ;;  %v3242_v30 = vsel %vm1538_vm4, %v12759_v53, %v9298_v49  ;;  %v17000_v49 = vld [vmem:[#allocation9_spill] sm:$0xff]  ;;  %v17001_v21 = vld [vmem:[#allocation16_spill] sm:$0xff] }
 0x26a   : > { %v13057_v36 = vunpack.i.l.bf16 %v9301_v61  ;;  %v13066_v47 = vsel %vm789_vm1, %v2827_v24, %v2828_v43  ;;  %v9474_v1 = vpack.i.bf16 %v12984_v25, %v13063_v63  ;;  %v9479_v17 = vpack.i.bf16 %v17000_v49, %v12991_v35 }
 0x26b   : > { %3775 = vmatmul.mubr.bf16.gmra.mxu1 %v13051_v62  ;;  %v9469_v14 = vpack.i.bf16 %v13066_v47, %v13055_v3 }
 0x26c   : > { %16999 = vst [vmem:[#allocation21_spill] sm:$0xff] %v13057_v36  ;;  %9465 = vrot.lane.b32.xlu0 %v9464_v48, %s10625_s30  ;;  %9460 = vrot.lane.b32.xlu1 %v9459_v2, %s10625_s30  ;;  %v3243_v29 = vsel %vm1538_vm4, %v12789_v52, %v13057_v36  ;;  %v9303_v2 = vunpack.i.h.bf16 %v9301_v61  ;;  %v17002_v48 = vld [vmem:[#allocation15_spill] sm:$0xff] }
 0x26d   : > { %v3322_v19 = vpack.c.bf16 %v3243_v29, %v3242_v30  ;;  %v17003_v24 = vpack.i.bf16 %v17001_v21, %v17002_v48  ;;  %v17005_v21 = vld [vmem:[#allocation24_spill] sm:$0xff] }
 0x26e   : > { %v3210_v61 = vsel %vm1538_vm4, %v12269_v26, %v9303_v2  ;;  %v17008_v26 = vld [vmem:[#allocation19_spill] sm:$0xff]  ;;  %v17009_v2 = vld [vmem:[#allocation12_spill] sm:$0xff] }
 0x26f   : > { %3782 = vmatprep.mubr.bf16.mxu1 %v3322_v19 }
 0x270   : > { %9475 = vrot.lane.b32.xlu0 %v9474_v1, %s10625_s30  ;;  %9470 = vrot.lane.b32.xlu1 %v9469_v14, %s10625_s30  ;;  %v9306_v4 = vpop.permute.xlu0 %9305 }
 0x271   : > { %v9307_v43 = vunpack.i.l.bf16 %v9306_v4  ;;  %v9308_v14 = vunpack.i.h.bf16 %v9306_v4 }
 0x273   : > { %v3211_v30 = vsel %vm1538_vm4, %v12294_v5, %v9307_v43  ;;  %v17010_v5 = vpack.i.bf16 %v17008_v26, %v17009_v2  ;;  %v3244_v4 = vsel %vm1538_vm4, %v12814_v57, %v9308_v14  ;;  %v17015_v26 = vld [vmem:[#allocation17_spill] sm:$0xff] }
 0x274   : > { %9485 = vrot.lane.b32.xlu0 %v17003_v24, %s10625_s30  ;;  %9480 = vrot.lane.b32.xlu1 %v9479_v17, %s10625_s30  ;;  %v9316_v29 = vpop.permute.xlu0 %9315  ;;  %v13090_v1 = vpack.c.bf16 %v3211_v30, %v3210_v61  ;;  %v17006_v17 = vld [vmem:[#allocation13_spill] sm:$0xff]  ;;  %v17011_v30 = vld [vmem:[#allocation23_spill] sm:$0xff] }
 0x275   : > { %v9317_v19 = vunpack.i.l.bf16 %v9316_v29  ;;  %v9311_v36 = vpop.permute.xlu1 %9310  ;;  %v17007_v48 = vpack.i.bf16 %v17005_v21, %v17006_v17  ;;  %v17012_v21 = vld [vmem:[#allocation32_spill] sm:$0xff] }
 0x276   : > { %3783 = vmatmul.mubr.bf16.gmra.mxu1 %v13090_v1  ;;  %v9313_v49 = vunpack.i.h.bf16 %v9311_v36  ;;  %v13093_v25 = vunpack.i.l.bf16 %v9311_v36  ;;  %v17013_v17 = vpack.i.bf16 %v17011_v30, %v17012_v21  ;;  %v17023_v21 = vld [vmem:[#allocation43_spill] sm:$0xff] }
 0x277   : > { %v3213_v24 = vsel %vm1538_vm4, %v12351_v41, %v9317_v19  ;;  %v17017_v41 = vld [vmem:[#allocation40_spill] sm:$0xff]  ;;  %v17018_v19 = vld [vmem:[#allocation33_spill] sm:$0xff] }
 0x278   : > { %17004 = vst [vmem:[#allocation9_spill] sm:$0xff] %v13093_v25  ;;  %9495 = vrot.lane.b32.xlu0 %v17007_v48, %s10625_s30  ;;  %9490 = vrot.lane.b32.xlu1 %v17010_v5, %s10625_s30  ;;  %v3245_v43 = vsel %vm1538_vm4, %v12849_v18, %v13093_v25  ;;  %v3212_v36 = vsel %vm1538_vm4, %v12326_v59, %v9313_v49  ;;  %v17014_v48 = vld [vmem:[#allocation22_spill] sm:$0xff]  ;;  %v9318_v5 = vunpack.i.h.bf16 %v9316_v29 }
 0x279   : > { %v3326_v61 = vpack.c.bf16 %v3245_v43, %v3244_v4  ;;  %v17016_v14 = vpack.i.bf16 %v17014_v48, %v17015_v26  ;;  %v13120_v2 = vpack.c.bf16 %v3213_v24, %v3212_v36  ;;  %v17019_v49 = vpack.i.bf16 %v17017_v41, %v17018_v19  ;;  %v17020_v4 = vld [vmem:[#allocation36_spill] sm:$0xff]  ;;  %v17021_v43 = vld [vmem:[#allocation30_spill] sm:$0xff]  ;;  %v17024_v36 = vld [vmem:[#allocation11_spill] sm:$0xff] }
 0x27a   : > { %v17022_v30 = vpack.i.bf16 %v17020_v4, %v17021_v43  ;;  %v3262_v29 = vsel %vm1538_vm4, %v17024_v36, %v9318_v5  ;;  %v9524_v26 = vpack.i.bf16 %v12843_v9, %v12930_v22 }
 0x27b   : > { %3790 = vmatprep.mubr.bf16.mxu1 %v3326_v61  ;;  %v9519_v61 = vpack.i.bf16 %v12904_v50, %v17023_v21 }
 0x27c   : > { %9505 = vrot.lane.b32.xlu0 %v17013_v17, %s10625_s30  ;;  %9500 = vrot.lane.b32.xlu1 %v17016_v14, %s10625_s30  ;;  %v9321_v25 = vpop.permute.xlu1 %9320  ;;  %v17025_v17 = vld [vmem:[#allocation20_spill] sm:$0xff] }
 0x27d   : > { %v9322_v59 = vunpack.i.l.bf16 %v9321_v25  ;;  %v9323_v24 = vunpack.i.h.bf16 %v9321_v25  ;;  %v17027_v25 = vld [vmem:[#allocation45_spill] sm:$0xff] }
 0x27e   : > { %3791 = vmatmul.mubr.bf16.gmra.mxu1 %v13120_v2  ;;  %v9529_v50 = vpack.i.bf16 %v17027_v25, %v12867_v37 }
 0x27f   : > { %v3263_v48 = vsel %vm1538_vm4, %v17025_v17, %v9322_v59  ;;  %v3246_v9 = vsel %vm1538_vm4, %v12852_v20, %v9323_v24 }
 0x280   : > { %9515 = vrot.lane.b32.xlu0 %v17019_v49, %s10625_s30  ;;  %9510 = vrot.lane.b32.xlu1 %v17022_v30, %s10625_s30  ;;  %v3298_v14 = vpack.c.bf16 %v3263_v48, %v3262_v29  ;;  %v9331_v19 = vpop.permute.xlu1 %9330  ;;  %v17029_v29 = vld [vmem:[#allocation18_spill] sm:$0xff] }
 0x281   : > { %v9326_v41 = vpop.permute.xlu0 %9325  ;;  %v9332_v4 = vunpack.i.l.bf16 %v9331_v19  ;;  %v9333_v21 = vunpack.i.h.bf16 %v9331_v19 }
 0x282   : > { %v9328_v49 = vunpack.i.h.bf16 %v9326_v41  ;;  %v13139_v35 = vunpack.i.l.bf16 %v9326_v41  ;;  %3896 = vmatmul.mubr.bf16.vlgmr.msra.gmra.mxu0 %v3298_v14 }
 0x283   : > { %3903 = vmatprep.mubr.bf16.mxu0 %v12869_v56  ;;  %v3215_v59 = vsel %vm1538_vm4, %v12417_v34, %v9332_v4 }
 0x284   : > { %17026 = vst [vmem:[#allocation16_spill] sm:$0xff] %v13139_v35  ;;  %9525 = vrot.lane.b32.xlu0 %v9524_v26, %s10625_s30  ;;  %9520 = vrot.lane.b32.xlu1 %v9519_v61, %s10625_s30  ;;  %v3247_v22 = vsel %vm1538_vm4, %v12911_v28, %v13139_v35  ;;  %v3214_v5 = vsel %vm1538_vm4, %v12379_v7, %v9328_v49  ;;  %v17028_v61 = vld [vmem:[#allocation14_spill] sm:$0xff] }
 0x285   : > { %v3330_v43 = vpack.c.bf16 %v3247_v22, %v3246_v9  ;;  %v13155_v30 = vpack.c.bf16 %v3215_v59, %v3214_v5  ;;  %v3264_v36 = vsel %vm1538_vm4, %v17028_v61, %v9333_v21  ;;  %v17031_v59 = vld [vmem:[#allocation28_spill] sm:$0xff]  ;;  %v17032_v21 = vld [vmem:[#allocation31_spill] sm:$0xff] }
 0x287   : > { %3798 = vmatprep.mubr.bf16.mxu1 %v3330_v43 }
 0x288   : > { %9530 = vrot.lane.b32.xlu1 %v9529_v50, %s10625_s30  ;;  %v9336_v56 = vpop.permute.xlu0 %9335  ;;  %3799 = vmatmul.mubr.bf16.gmra.mxu1 %v13155_v30 }
 0x289   : > { %v9337_v37 = vunpack.i.l.bf16 %v9336_v56  ;;  %v9338_v34 = vunpack.i.h.bf16 %v9336_v56 }
 0x28b   : > { %v3265_v7 = vsel %vm1538_vm4, %v17029_v29, %v9337_v37  ;;  %v3248_v49 = vsel %vm1538_vm4, %v12914_v15, %v9338_v34 }
 0x28c   : > { %v9346_v24 = vpop.permute.xlu0 %9345  ;;  %v3303_v17 = vpack.c.bf16 %v3265_v7, %v3264_v36 }
 0x28d   : > { %v9347_v48 = vunpack.i.l.bf16 %v9346_v24  ;;  %v9341_v26 = vpop.permute.xlu1 %9340  ;;  %v9348_v22 = vunpack.i.h.bf16 %v9346_v24 }
 0x28e   : > { %3904 = vmatmul.mubr.bf16.gmra.mxu0 %v3303_v17  ;;  %v9343_v14 = vunpack.i.h.bf16 %v9341_v26  ;;  %v13163_v41 = vunpack.i.l.bf16 %v9341_v26 }
 0x28f   : > { %3911 = vmatprep.mubr.bf16.mxu0 %v12956_v33  ;;  %v3217_v19 = vsel %vm1538_vm4, %v12477_v12, %v9347_v48  ;;  %v3266_v43 = vsel %vm1538_vm4, %v17031_v59, %v9348_v22 }
 0x290   : > { %17030 = vst [vmem:[#allocation15_spill] sm:$0xff] %v13163_v41  ;;  %v3249_v4 = vsel %vm1538_vm4, %v12917_v27, %v13163_v41  ;;  %v3216_v25 = vsel %vm1538_vm4, %v12453_v42, %v9343_v14 }
 0x291   : > { %v3334_v50 = vpack.c.bf16 %v3249_v4, %v3248_v49  ;;  %v13175_v9 = vpack.c.bf16 %v3217_v19, %v3216_v25  ;;  %v17034_v4 = vld [vmem:[#allocation26_spill] sm:$0xff] }
 0x293   : > { %3806 = vmatprep.mubr.bf16.mxu1 %v3334_v50  ;;  %v17035_v50 = vld [vmem:[#allocation35_spill] sm:$0xff] }
 0x294   : > { %3807 = vmatmul.mubr.bf16.gmra.mxu1 %v13175_v9  ;;  %v9351_v33 = vpop.permute.xlu1 %9350 }
 0x295   : > { %v9352_v5 = vunpack.i.l.bf16 %v9351_v33  ;;  %v9353_v12 = vunpack.i.h.bf16 %v9351_v33 }
 0x297   : > { %v3267_v56 = vsel %vm1538_vm4, %v17032_v21, %v9352_v5  ;;  %v3250_v24 = vsel %vm1538_vm4, %v12941_v6, %v9353_v12 }
 0x298   : > { %v3307_v36 = vpack.c.bf16 %v3267_v56, %v3266_v43 }
 0x299   : > { %v9361_v61 = vpop.permute.xlu1 %9360 }
 0x29a   : > { %v9356_v37 = vpop.permute.xlu0 %9355  ;;  %v9362_v7 = vunpack.i.l.bf16 %v9361_v61  ;;  %3912 = vmatmul.mubr.bf16.gmra.mxu0 %v3307_v36  ;;  %v9363_v19 = vunpack.i.h.bf16 %v9361_v61 }
 0x29b   : > { %v9358_v42 = vunpack.i.h.bf16 %v9356_v37  ;;  %v13182_v29 = vunpack.i.l.bf16 %v9356_v37  ;;  %3919 = vmatprep.mubr.bf16.mxu0 %v13051_v62 }
 0x29c   : > { %v3219_v48 = vsel %vm1538_vm4, %v12544_v10, %v9362_v7  ;;  %v3268_v25 = vsel %vm1538_vm4, %v17034_v4, %v9363_v19 }
 0x29d   : > { %17033 = vst [vmem:[#allocation24_spill] sm:$0xff] %v13182_v29  ;;  %v3251_v17 = vsel %vm1538_vm4, %v12972_v51, %v13182_v29  ;;  %v3218_v34 = vsel %vm1538_vm4, %v16985_v45, %v9358_v42 }
 0x29e   : > { %v3338_v26 = vpack.c.bf16 %v3251_v17, %v3250_v24  ;;  %v13194_v14 = vpack.c.bf16 %v3219_v48, %v3218_v34  ;;  %v17038_v34 = vld [vmem:[#allocation34_spill] sm:$0xff] }
 0x2a0   : > { %3814 = vmatprep.mubr.bf16.mxu1 %v3338_v26  ;;  %v9366_v49 = vpop.permute.xlu0 %9365 }
 0x2a1   : > { %3815 = vmatmul.mubr.bf16.gmra.mxu1 %v13194_v14  ;;  %v9367_v62 = vunpack.i.l.bf16 %v9366_v49  ;;  %v9368_v12 = vunpack.i.h.bf16 %v9366_v49 }
 0x2a3   : > { %v3269_v22 = vsel %vm1538_vm4, %v17035_v50, %v9367_v62  ;;  %v3252_v56 = vsel %vm1538_vm4, %v12938_v23, %v9368_v12  ;;  %v17040_v50 = vld [vmem:[#allocation74_spill] sm:$0xff] }
 0x2a4   : > { %v9376_v33 = vpop.permute.xlu0 %9375  ;;  %v3311_v45 = vpack.c.bf16 %v3269_v22, %v3268_v25 }
 0x2a5   : > { %v9377_v5 = vunpack.i.l.bf16 %v9376_v33 }
 0x2a6   : > { %3920 = vmatmul.mubr.bf16.gmra.mxu0 %v3311_v45  ;;  %v9371_v10 = vpop.permute.xlu1 %9370 }
 0x2a7   : > { %3927 = vmatprep.mubr.bf16.mxu0 %v13090_v1  ;;  %v9373_v59 = vunpack.i.h.bf16 %v9371_v10  ;;  %v13202_v43 = vunpack.i.l.bf16 %v9371_v10  ;;  %v3221_v21 = vsel %vm1538_vm4, %v12598_v11, %v9377_v5  ;;  %v9378_v1 = vunpack.i.h.bf16 %v9376_v33  ;;  %v17037_v11 = vld [vmem:[#allocation29_spill] sm:$0xff] }
 0x2a8   : > { %v17041_v5 = vld [vmem:[#allocation69_spill] sm:$0xff] }
 0x2a9   : > { %17036 = vst [vmem:[#allocation13_spill] sm:$0xff] %v13202_v43  ;;  %v3253_v37 = vsel %vm1538_vm4, %v13019_v16, %v13202_v43  ;;  %v3220_v61 = vsel %vm1538_vm4, %v12573_v44, %v9373_v59  ;;  %v3270_v17 = vsel %vm1538_vm4, %v17037_v11, %v9378_v1 }
 0x2aa   : > { %v3342_v36 = vpack.c.bf16 %v3253_v37, %v3252_v56  ;;  %v13213_v42 = vpack.c.bf16 %v3221_v21, %v3220_v61  ;;  %v17042_v37 = vld [vmem:[#allocation39_spill] sm:$0xff] }
 0x2ac   : > { %3822 = vmatprep.mubr.bf16.mxu1 %v3342_v36  ;;  %v17043_v36 = vld [vmem:[#allocation41_spill] sm:$0xff] }
 0x2ad   : > { %v9381_v7 = vpop.permute.xlu1 %9380  ;;  %3823 = vmatmul.mubr.bf16.gmra.mxu1 %v13213_v42 }
 0x2ae   : > { %v9382_v24 = vunpack.i.l.bf16 %v9381_v7  ;;  %v9383_v26 = vunpack.i.h.bf16 %v9381_v7 }
 0x2b0   : > { %v3271_v48 = vsel %vm1538_vm4, %v17038_v34, %v9382_v24  ;;  %v3254_v33 = vsel %vm1538_vm4, %v12999_v54, %v9383_v26 }
 0x2b1   : > { %v9391_v19 = vpop.permute.xlu1 %9390  ;;  %v3315_v49 = vpack.c.bf16 %v3271_v48, %v3270_v17  ;;  %v9386_v62 = vpop.permute.xlu0 %9385 }
 0x2b2   : > { %v9392_v44 = vunpack.i.l.bf16 %v9391_v19  ;;  %v9388_v4 = vunpack.i.h.bf16 %v9386_v62  ;;  %v13220_v25 = vunpack.i.l.bf16 %v9386_v62  ;;  %v9393_v21 = vunpack.i.h.bf16 %v9391_v19  ;;  %v17045_v19 = vld [vmem:[#allocation81_spill] sm:$0xff] }
 0x2b3   : > { %3928 = vmatmul.mubr.bf16.gmra.mxu0 %v3315_v49 }
 0x2b4   : > { %17039 = vst [vmem:[#allocation19_spill] sm:$0xff] %v13220_v25  ;;  %3935 = vmatprep.mubr.bf16.mxu0 %v13120_v2  ;;  %v3223_v22 = vsel %vm1538_vm4, %v17040_v50, %v9392_v44  ;;  %v3255_v45 = vsel %vm1538_vm4, %v13014_v46, %v13220_v25  ;;  %v3222_v12 = vsel %vm1538_vm4, %v17041_v5, %v9388_v4  ;;  %v17046_v4 = vld [vmem:[#allocation77_spill] sm:$0xff] }
 0x2b5   : > { %v3346_v10 = vpack.c.bf16 %v3255_v45, %v3254_v33  ;;  %v13232_v59 = vpack.c.bf16 %v3223_v22, %v3222_v12  ;;  %v3272_v61 = vsel %vm1538_vm4, %v17042_v37, %v9393_v21 }
 0x2b7   : > { %3830 = vmatprep.mubr.bf16.mxu1 %v3346_v10  ;;  %v17047_v10 = vld [vmem:[#allocation44_spill] sm:$0xff] }
 0x2b8   : > { %3831 = vmatmul.mubr.bf16.gmra.mxu1 %v13232_v59 }
 0x2b9   : > { %v9396_v56 = vpop.permute.xlu0 %9395 }
 0x2ba   : > { %v9397_v2 = vunpack.i.l.bf16 %v9396_v56  ;;  %v9398_v11 = vunpack.i.h.bf16 %v9396_v56  ;;  %v17048_v56 = vld [vmem:[#allocation42_spill] sm:$0xff] }
 0x2bc   : > { %v3273_v1 = vsel %vm1538_vm4, %v17043_v36, %v9397_v2  ;;  %v3256_v62 = vsel %vm1538_vm4, %v13003_v55, %v9398_v11 }
 0x2bd   : > { %v9406_v7 = vpop.permute.xlu0 %9405  ;;  %v3319_v24 = vpack.c.bf16 %v3273_v1, %v3272_v61 }
 0x2be   : > { %v9407_v17 = vunpack.i.l.bf16 %v9406_v7  ;;  %v9408_v45 = vunpack.i.h.bf16 %v9406_v7 }
 0x2bf   : > { %v9401_v34 = vpop.permute.xlu1 %9400  ;;  %3936 = vmatmul.mubr.bf16.gmra.mxu0 %v3319_v24 }
 0x2c0   : > { %v9403_v48 = vunpack.i.h.bf16 %v9401_v34  ;;  %v13239_v26 = vunpack.i.l.bf16 %v9401_v34  ;;  %3943 = vmatprep.mubr.bf16.mxu0 %v13155_v30  ;;  %v3225_v49 = vsel %vm1538_vm4, %v17045_v19, %v9407_v17  ;;  %v3274_v21 = vsel %vm1538_vm4, %v17047_v10, %v9408_v45  ;;  %v17051_v45 = vld [vmem:[#allocation47_spill] sm:$0xff] }
 0x2c2   : > { %17044 = vst [vmem:[#allocation12_spill] sm:$0xff] %v13239_v26  ;;  %v3257_v44 = vsel %vm1538_vm4, %v13036_v8, %v13239_v26  ;;  %v3224_v50 = vsel %vm1538_vm4, %v17046_v4, %v9403_v48 }
 0x2c3   : > { %v3350_v22 = vpack.c.bf16 %v3257_v44, %v3256_v62  ;;  %v13251_v33 = vpack.c.bf16 %v3225_v49, %v3224_v50 }
 0x2c5   : > { %3838 = vmatprep.mubr.bf16.mxu1 %v3350_v22  ;;  %v9411_v30 = vpop.permute.xlu1 %9410 }
 0x2c6   : > { %3839 = vmatmul.mubr.bf16.gmra.mxu1 %v13251_v33  ;;  %v9412_v5 = vunpack.i.l.bf16 %v9411_v30  ;;  %v9413_v12 = vunpack.i.h.bf16 %v9411_v30 }
 0x2c8   : > { %v3275_v2 = vsel %vm1538_vm4, %v17048_v56, %v9412_v5  ;;  %v3258_v7 = vsel %vm1538_vm4, %v13027_v31, %v9413_v12 }
 0x2c9   : > { %v9421_v61 = vpop.permute.xlu1 %9420  ;;  %v3323_v36 = vpack.c.bf16 %v3275_v2, %v3274_v21 }
 0x2ca   : > { %v9416_v37 = vpop.permute.xlu0 %9415  ;;  %v9422_v11 = vunpack.i.l.bf16 %v9421_v61  ;;  %v9423_v17 = vunpack.i.h.bf16 %v9421_v61 }
 0x2cb   : > { %v9418_v1 = vunpack.i.h.bf16 %v9416_v37  ;;  %v13258_v24 = vunpack.i.l.bf16 %v9416_v37  ;;  %3944 = vmatmul.mubr.bf16.gmra.mxu0 %v3323_v36 }
 0x2cc   : > { %3951 = vmatprep.mubr.bf16.mxu0 %v13175_v9  ;;  %v3227_v19 = vsel %vm1538_vm4, %v12826_v13, %v9422_v11  ;;  %v17050_v9 = vld [vmem:[#allocation49_spill] sm:$0xff] }
 0x2cd   : > { %17049 = vst [vmem:[#allocation23_spill] sm:$0xff] %v13258_v24  ;;  %v3259_v34 = vsel %vm1538_vm4, %v13040_v40, %v13258_v24  ;;  %v3226_v48 = vsel %vm1538_vm4, %v12794_v39, %v9418_v1  ;;  %v3276_v22 = vsel %vm1538_vm4, %v17050_v9, %v9423_v17 }
 0x2ce   : > { %v9426_v49 = vpop.permute.xlu0 %9425  ;;  %v3354_v62 = vpack.c.bf16 %v3259_v34, %v3258_v7  ;;  %v13270_v44 = vpack.c.bf16 %v3227_v19, %v3226_v48  ;;  %v17053_v48 = vld [vmem:[#allocation48_spill] sm:$0xff] }
 0x2cf   : > { %v9427_v4 = vunpack.i.l.bf16 %v9426_v49  ;;  %v9428_v50 = vunpack.i.h.bf16 %v9426_v49  ;;  %v17054_v19 = vld [vmem:[#allocation52_spill] sm:$0xff] }
 0x2d0   : > { %3846 = vmatprep.mubr.bf16.mxu1 %v3354_v62  ;;  %v17055_v49 = vld [vmem:[#allocation56_spill] sm:$0xff] }
 0x2d1   : > { %3847 = vmatmul.mubr.bf16.gmra.mxu1 %v13270_v44  ;;  %v3277_v30 = vsel %vm1538_vm4, %v17051_v45, %v9427_v4  ;;  %v3260_v56 = vsel %vm1538_vm4, %v13066_v47, %v9428_v50  ;;  %v17056_v4 = vld [vmem:[#allocation53_spill] sm:$0xff] }
 0x2d2   : > { %v9436_v5 = vpop.permute.xlu0 %9435  ;;  %v9431_v39 = vpop.permute.xlu1 %9430  ;;  %v3327_v12 = vpack.c.bf16 %v3277_v30, %v3276_v22  ;;  %v10073_v30 = vld [vmem:[%s16564_s7 + $0x78] sm:$0xff]  }
 0x2d3   : > { %v9437_v10 = vunpack.i.l.bf16 %v9436_v5  ;;  %v9433_v13 = vunpack.i.h.bf16 %v9431_v39  ;;  %v13277_v21 = vunpack.i.l.bf16 %v9431_v39  ;;  %v9438_v2 = vunpack.i.h.bf16 %v9436_v5  ;;  %v10074_v5 = vld [vmem:[%s16564_s7 + $0x38] sm:$0xff]   ;;  %8335 = vmatprep.subr.bf16.mxu0 %v10073_v30 }
 0x2d4   : > { %3952 = vmatmul.mubr.bf16.gmra.mxu0 %v3327_v12 }
 0x2d5   : > { %17052 = vst [vmem:[#allocation32_spill] sm:$0xff] %v13277_v21  ;;  %3959 = vmatprep.mubr.bf16.mxu0 %v13194_v14  ;;  %v3261_v37 = vsel %vm1538_vm4, %v13063_v63, %v13277_v21  ;;  %v3228_v61 = vsel %vm1538_vm4, %v12859_v38, %v9433_v13  ;;  %v3229_v36 = vsel %vm1538_vm4, %v12890_v32, %v9437_v10  ;;  %v17057_v10 = vld [vmem:[#allocation54_spill] sm:$0xff]  ;;  %v17058_v13 = vld [vmem:[#allocation59_spill] sm:$0xff] }
 0x2d6   : > { %v9446_v1 = vpop.permute.xlu0 %9445  ;;  %v9441_v11 = vpop.permute.xlu1 %9440  ;;  %v3358_v7 = vpack.c.bf16 %v3261_v37, %v3260_v56  ;;  %v13289_v17 = vpack.c.bf16 %v3229_v36, %v3228_v61  ;;  %v3300_v14 = vpack.c.bf16 %v17054_v19, %v17053_v48  ;;  %v3278_v62 = vsel %vm1538_vm4, %v17055_v49, %v9438_v2  ;;  %v17059_v2 = vld [vmem:[#allocation65_spill] sm:$0xff]  ;;  %v17060_v61 = vld [vmem:[#allocation60_spill] sm:$0xff]  ;;  %8336 = vmatpush3.bf16.msra.mxu0 %v10074_v5 }
 0x2d7   : > { %v9442_v34 = vunpack.i.l.bf16 %v9441_v11  ;;  %v9447_v22 = vunpack.i.l.bf16 %v9446_v1  ;;  %v9443_v45 = vunpack.i.h.bf16 %v9441_v11  ;;  %v3305_v56 = vpack.c.bf16 %v17058_v13, %v17057_v10  ;;  %v10075_v11 = vld [vmem:[%s16564_s7 + $0x70] sm:$0xff]   ;;  %v17063_v13 = vld [vmem:[#allocation71_spill] sm:$0xff] }
 0x2d8   : > { %3854 = vmatprep.mubr.bf16.mxu1 %v3358_v7  ;;  %v17062_v7 = vld [vmem:[#allocation70_spill] sm:$0xff]  ;;  %v10076_v48 = vld [vmem:[%s16564_s7 + $0x30] sm:$0xff]   ;;  %8337 = vmatprep.subr.bf16.mxu0 %v10075_v11 }
 0x2d9   : > { %3855 = vmatmul.mubr.bf16.gmra.mxu1 %v13289_v17  ;;  %v3279_v38 = vsel %vm1538_vm4, %v17056_v4, %v9442_v34  ;;  %v3280_v37 = vsel %vm1538_vm4, %v17059_v2, %v9443_v45  ;;  %v3281_v36 = vsel %vm1538_vm4, %v17060_v61, %v9447_v22  ;;  %v10077_v4 = vld [vmem:[%s16564_s7 + $0x68] sm:$0xff]   ;;  %v3313_v45 = vpack.c.bf16 %v12721_v58, %v12675_v0 }
 0x2da   : > { %v13298_v50 = vpop.permute.xlu0 %9455  ;;  %v13300_v32 = vpop.permute.xlu1 %9450  ;;  %8544 = vmatprep.mubr.msk.bf16.mxu1 %vm1538_vm4, %v3300_v14  ;;  %v3331_v9 = vpack.c.bf16 %v3279_v38, %v3278_v62  ;;  %v3335_v49 = vpack.c.bf16 %v3281_v36, %v3280_v37  ;;  %8338 = vmatpush3.bf16.msra.mxu0 %v10076_v48  ;;  %v9448_v38 = vunpack.i.h.bf16 %v9446_v1  ;;  %v3317_v2 = vpack.c.bf16 %v12789_v52, %v12759_v53  ;;  %v17066_v0 = vld [vmem:[#allocation75_spill] sm:$0xff]  ;;  %v10079_v52 = vld [vmem:[%s16564_s7 + $0x60] sm:$0xff]  }
 0x2db   : > { %v9452_v62 = vunpack.i.l.bf16 %v13300_v32  ;;  %8339 = vmatprep.subr.bf16.mxu0 %v10077_v4  ;;  %v10078_v53 = vld [vmem:[%s16564_s7 + $0x28] sm:$0xff]   ;;  %v9457_v36 = vunpack.i.l.bf16 %v13298_v50  ;;  %v9453_v11 = vunpack.i.h.bf16 %v13300_v32  ;;  %v17068_v4 = vld [vmem:[#allocation62_spill] sm:$0xff] }
 0x2dc   : > { %3960 = vmatmul.mubr.bf16.gmra.mxu0 %v3331_v9  ;;  %v3282_v58 = vsel %vm1538_vm4, %v17066_v0, %v9448_v38  ;;  %v4907_v38 = vrot.slane %v17068_v4, 2  ;;  %v10080_v32 = vld [vmem:[%s16564_s7 + $0x20] sm:$0xff]  }
 0x2dd   : > { %3967 = vmatprep.mubr.bf16.mxu0 %v13213_v42  ;;  %v17061_v42 = vld [vmem:[#allocation63_spill] sm:$0xff] }
 0x2de   : > { %v13310_v39 = vpop.permute.xlu0 %9465  ;;  %v13312_v12 = vpop.permute.xlu1 %9460  ;;  %v3309_v34 = vpack.c.bf16 %v17062_v7, %v17061_v42  ;;  %8340 = vmatpush3.bf16.msra.mxu0 %v10078_v53 }
 0x2df   : > { %8341 = vmatprep.subr.bf16.mxu0 %v10079_v52  ;;  %v9462_v52 = vunpack.i.l.bf16 %v13312_v12 }
 0x2e1   : > { %8545 = vmatmul.mubr.msk.bf16.vlgmr.msra.gmra.mxu1 %vm1538_vm4, %v3305_v56  ;;  %v3283_v56 = vsel %vm1538_vm4, %v17063_v13, %v9452_v62 }
 0x2e2   : > { %v13329_v19 = vpop.permute.xlu0 %9475  ;;  %v13331_v14 = vpop.permute.xlu1 %9470  ;;  %8548 = vmatprep.mubr.msk.bf16.mxu1 %vm1538_vm4, %v3309_v34  ;;  %v3339_v61 = vpack.c.bf16 %v3283_v56, %v3282_v58  ;;  %v17067_v34 = vld [vmem:[#allocation46_spill] sm:$0xff]  ;;  %8342 = vmatpush3.bf16.msra.mxu0 %v10080_v32 }
 0x2e4   : > { %3968 = vmatmul.mubr.bf16.gmra.mxu0 %v3335_v49 }
 0x2e5   : > { %3975 = vmatprep.mubr.bf16.mxu0 %v13232_v59 }
 0x2e6   : > { %v9486_v9 = vpop.permute.xlu0 %9485  ;;  %v13339_v22 = vpop.permute.xlu1 %9480 }
 0x2e7   : > { %v9488_v30 = vunpack.i.h.bf16 %v9486_v9  ;;  %v9487_v5 = vunpack.i.l.bf16 %v9486_v9  ;;  %v9483_v10 = vunpack.i.h.bf16 %v13339_v22  ;;  %v3321_v9 = vpack.c.bf16 %v12849_v18, %v12814_v57 }
 0x2e8   : > { %v3325_v57 = vpack.c.bf16 %v12911_v28, %v12852_v20  ;;  %v10082_v20 = vld [vmem:[%s16564_s7 + $0x18] sm:$0xff]   ;;  %v4832_v28 = vrot.slane %v17068_v4, 1 }
 0x2e9   : > { %v13349_v1 = vsel %vm552_vm0, 0.0, %v9488_v30  ;;  %v4785_v59 = vsel %vm552_vm0, %v9487_v5, 0.0  ;;  %v13353_v37 = vsel %vm552_vm0, 0.0, %v9483_v10  ;;  %8549 = vmatmul.mubr.msk.bf16.gmra.mxu1 %vm1538_vm4, %v3313_v45  ;;  %v17069_v45 = vld [vmem:[#allocation82_spill] sm:$0xff]  ;;  %v10081_v10 = vld [vmem:[%s16564_s7 + $0x58] sm:$0xff]  }
 0x2ea   : > { %17064 = vst [vmem:[#allocation22_spill] sm:$0xff] %v13349_v1  ;;  %17065 = vst [vmem:[#allocation17_spill] sm:$0xff] %v13353_v37  ;;  %8552 = vmatprep.mubr.msk.bf16.mxu1 %vm1538_vm4, %v3317_v2  ;;  %v4909_v42 = vrot.slane %v4785_v59, 2  ;;  %v4906_v7 = vrot.slane %v13353_v37, 2  ;;  %v9534_v48 = vpack.i.bf16 %v13349_v1, %v17067_v34  ;;  %v13371_v49 = vpop.permute.xlu1 %9490  ;;  %v3284_v30 = vsel %vm1538_vm4, %v17069_v45, %v9453_v11 }
 0x2eb   : > { %v9544_v18 = vpack.i.bf16 %v17068_v4, %v13353_v37  ;;  %v9492_v0 = vunpack.i.l.bf16 %v13371_v49  ;;  %v4834_v58 = vrot.slane %v4785_v59, 1  ;;  %8343 = vmatprep.subr.bf16.mxu0 %v10081_v10  ;;  %v17071_v59 = vld [vmem:[#allocation73_spill] sm:$0xff]  ;;  %v9458_v34 = vunpack.i.h.bf16 %v13298_v50  ;;  %v17075_v50 = vld [vmem:[#allocation84_spill] sm:$0xff]  ;;  %v17113_v4 = vld [vmem:[#allocation38_spill] sm:$0xff] }
 0x2ec   : > { %3976 = vmatmul.mubr.bf16.gmra.mxu0 %v3339_v61  ;;  %9535 = vrot.lane.b32.xlu0 %v9534_v48, %s10625_s30  ;;  %v13388_v13 = vsel %vm789_vm1, %v4906_v7, %v4907_v38  ;;  %v13391_v56 = vsel %vm789_vm1, %v4907_v38, %v4909_v42  ;;  %v4831_v61 = vrot.slane %v13353_v37, 1  ;;  %v17072_v42 = vld [vmem:[#allocation50_spill] sm:$0xff]  ;;  %v10083_v38 = vld [vmem:[%s16564_s7 + $0x50] sm:$0xff]   ;;  %v3287_v45 = vsel %vm1538_vm4, %v17075_v50, %v9462_v52 }
 0x2ed   : > { %3983 = vmatprep.mubr.bf16.mxu0 %v13251_v33  ;;  %v17070_v33 = vld [vmem:[#allocation79_spill] sm:$0xff]  ;;  %v9559_v7 = vpack.i.bf16 %v17072_v42, %v17071_v59  ;;  %v13415_v48 = vsel %vm552_vm0, %v9492_v0, 0.0  ;;  %8344 = vmatpush3.bf16.msra.mxu0 %v10082_v20  ;;  %v4911_v0 = vrot.slane %v13349_v1, 2  ;;  %v9467_v52 = vunpack.i.l.bf16 %v13310_v39  ;;  %v17077_v20 = vld [vmem:[#allocation58_spill] sm:$0xff] }
 0x2ee   : > { %v8087_v62 = vpop.f32.mrf.mxu1  ;;  %v3285_v5 = vsel %vm1538_vm4, %v17070_v33, %v9457_v36  ;;  %v9539_v36 = vpack.i.bf16 %v13391_v56, %v13388_v13  ;;  %v13425_v32 = vsel %vm711_vm2, %v4831_v61, %v4832_v28  ;;  %v3329_v33 = vpack.c.bf16 %v12917_v27, %v12914_v15  ;;  %8345 = vmatprep.subr.bf16.mxu0 %v10083_v38  ;;  %v13449_v61 = vpop.permute.xlu1 %9500  ;;  %v10085_v27 = vld [vmem:[%s16564_s7 + $0x48] sm:$0xff]  }
 0x2ef   : > { %v3343_v53 = vpack.c.bf16 %v3285_v5, %v3284_v30  ;;  %17073 = vst [vmem:[#allocation40_spill] sm:$0xff] %v13425_v32  ;;  %v13433_v30 = vpop.permute.xlu0 %9495  ;;  %v10084_v5 = vld [vmem:[%s16564_s7 + $0x10] sm:$0xff]   ;;  %v4914_v10 = vrot.slane %v13415_v48, 2  ;;  %v4836_v38 = vrot.slane %v13349_v1, 1 }
 0x2f0   : > { %v8088_v2 = vpop.f32.mrf.mxu1  ;;  %9545 = vrot.lane.b32.xlu0 %v9544_v18, %s10627_s15  ;;  %9540 = vrot.lane.b32.xlu1 %v9539_v36, %s10626_s14  ;;  %v17076_v18 = vld [vmem:[#allocation87_spill] sm:$0xff]  ;;  %v9463_v36 = vunpack.i.h.bf16 %v13312_v12 }
 0x2f1   : > { %8553 = vmatmul.mubr.msk.bf16.gmra.mxu1 %vm1538_vm4, %v3321_v9  ;;  %v13405_v11 = vadd.f32 %v8088_v2, %v8087_v62  ;;  %v13428_v9 = vsel %vm711_vm2, %v4832_v28, %v4834_v58  ;;  %v3333_v2 = vpack.c.bf16 %v12972_v51, %v12941_v6  ;;  %v9493_v58 = vunpack.i.h.bf16 %v13371_v49  ;;  %8346 = vmatpush3.bf16.msra.mxu0 %v10084_v5  ;;  %v10086_v49 = vld [vmem:[%s16564_s7 + $0x8] sm:$0xff]  }
 0x2f2   : > { %8556 = vmatprep.mubr.msk.bf16.mxu1 %vm1538_vm4, %v3325_v57  ;;  %v13418_v62 = vpop.f32.mrf.mxu1  ;;  %17074 = vst [vmem:[#allocation33_spill] sm:$0xff] %v13428_v9  ;;  %v3286_v57 = vsel %vm1538_vm4, %v17076_v18, %v9458_v34  ;;  %v9497_v6 = vunpack.i.l.bf16 %v13433_v30  ;;  %v4912_v51 = vrot.slane %v17071_v59, 2  ;;  %v9554_v28 = vpack.i.bf16 %v17077_v20, %v13391_v56  ;;  %8347 = vmatprep.subr.bf16.mxu0 %v10085_v27  ;;  %v17082_v18 = vld [vmem:[#allocation90_spill] sm:$0xff] }
 0x2f3   : > { %v13474_v50 = vsel %vm552_vm0, 0.0, %v9493_v58  ;;  %v13501_v27 = vpop.permute.xlu0 %9505 }
 0x2f4   : > { %3984 = vmatmul.mubr.bf16.gmra.mxu0 %v3343_v53  ;;  %9560 = vrot.lane.b32.xlu0 %v9559_v7, %s10625_s30  ;;  %v13452_v15 = vpop.f32.mrf.mxu1  ;;  %v3347_v53 = vpack.c.bf16 %v3287_v45, %v3286_v57  ;;  %v9472_v7 = vunpack.i.l.bf16 %v13331_v14  ;;  %v13470_v34 = vsel %vm789_vm1, %v4912_v51, %v4914_v10  ;;  %17079 = vst [vmem:[#allocation30_spill] sm:$0xff] %v13474_v50  ;;  %v4839_v45 = vrot.slane %v13415_v48, 1  ;;  %v10087_v48 = vld [vmem:[%s16564_s7 + $0x40] sm:$0xff]   ;;  %v17081_v10 = vld [vmem:[#allocation88_spill] sm:$0xff] }
 0x2f5   : > { %3991 = vmatprep.mubr.bf16.mxu0 %v13270_v44  ;;  %v9549_v44 = vpack.i.bf16 %v13428_v9, %v13425_v32  ;;  %17078 = vst [vmem:[#allocation36_spill] sm:$0xff] %v13470_v34  ;;  %v13479_v12 = vsel %vm789_vm1, %v4911_v0, %v4912_v51  ;;  %8348 = vmatpush3.bf16.msra.mxu0 %v10086_v49  ;;  %v4916_v58 = vrot.slane %v13474_v50, 2 }
 0x2f6   : > { %17080 = vst [vmem:[#allocation43_spill] sm:$0xff] %v13479_v12  ;;  %v9574_v5 = vpack.i.bf16 %v13470_v34, %v13479_v12  ;;  %v3288_v57 = vsel %vm1538_vm4, %v17082_v18, %v9463_v36  ;;  %v3337_v0 = vpack.c.bf16 %v13019_v16, %v12938_v23  ;;  %v3341_v51 = vpack.c.bf16 %v13014_v46, %v12999_v54  ;;  %v10088_v23 = vld [vmem:[%s16564_s7] sm:$0xff]  }
 0x2f7   : > { %9550 = vrot.lane.b32.xlu1 %v9549_v44, %s10626_s14  ;;  %v9468_v44 = vunpack.i.h.bf16 %v13310_v39  ;;  %v4837_v39 = vrot.slane %v17071_v59, 1  ;;  %8349 = vmatprep.subr.bf16.mxu0 %v10087_v48 }
 0x2f8   : > { %9575 = vrot.lane.b32.xlu0 %v9574_v5, %s10626_s14  ;;  %v17087_v5 = vld [vmem:[#allocation80_spill] sm:$0xff] }
 0x2f9   : > { %8557 = vmatmul.mubr.msk.bf16.gmra.mxu1 %vm1538_vm4, %v3329_v33  ;;  %v13484_v33 = vsel %vm552_vm0, %v9497_v6, 0.0  ;;  %v9564_v6 = vpack.i.bf16 %v17071_v59, %v13349_v1  ;;  %v13518_v36 = vsel %vm711_vm2, %v4837_v39, %v4839_v45  ;;  %v4917_v45 = vrot.slane %v17087_v5, 2  ;;  %8350 = vmatpush3.bf16.msra.mxu0 %v10088_v23 }
 0x2fa   : > { %8560 = vmatprep.mubr.msk.bf16.mxu1 %vm1538_vm4, %v3333_v2  ;;  %v8093_v42 = vpop.f32.mrf.mxu1  ;;  %v3289_v2 = vsel %vm1538_vm4, %v17081_v10, %v9467_v52  ;;  %v4919_v16 = vrot.slane %v13484_v33, 2  ;;  %v13515_v52 = vsel %vm711_vm2, %v4836_v38, %v4837_v39  ;;  %17085 = vst [vmem:[#allocation20_spill] sm:$0xff] %v13518_v36  ;;  %v3345_v23 = vpack.c.bf16 %v13036_v8, %v13003_v55 }
 0x2fb   : > { %9555 = vrot.lane.b32.xlu1 %v9554_v28, %s10625_s30  ;;  %17084 = vst [vmem:[#allocation11_spill] sm:$0xff] %v13515_v52  ;;  %v9579_v54 = vpack.i.bf16 %v13518_v36, %v13515_v52  ;;  %v3351_v46 = vpack.c.bf16 %v3289_v2, %v3288_v57  ;;  %v13536_v10 = vsel %vm789_vm1, %v4916_v58, %v4917_v45  ;;  %v13545_v57 = vpop.permute.xlu0 %9515  ;;  %v17091_v58 = vld [vmem:[#allocation51_spill] sm:$0xff]  ;;  %v4977_v59 = vrot.slane %v13258_v24, 2 }
 0x2fc   : > { %3992 = vmatmul.mubr.bf16.gmra.mxu0 %v3347_v53  ;;  %v8094_v56 = vpop.f32.mrf.mxu1  ;;  %v17083_v53 = vld [vmem:[#allocation25_spill] sm:$0xff]  ;;  %17088 = vst [vmem:[#allocation45_spill] sm:$0xff] %v13536_v10  ;;  %v9594_v55 = vpack.i.bf16 %v13388_v13, %v17087_v5 }
 0x2fd   : > { %3999 = vmatprep.mubr.bf16.mxu0 %v13289_v17  ;;  %v13495_v17 = vpop.permute.xlu1 %9510  ;;  %v3295_v49 = vsel %vm1538_vm4, %v17083_v53, %v9472_v7  ;;  %v13520_v20 = vadd.f32 %v8094_v56, %v8093_v42  ;;  %v17086_v7 = vld [vmem:[#allocation91_spill] sm:$0xff]  ;;  %v9477_v42 = vunpack.i.l.bf16 %v13329_v19  ;;  %v9473_v56 = vunpack.i.h.bf16 %v13331_v14  ;;  %9580 = vrot.lane.b32.xlu0 %v9579_v54, %s10626_s14 }
 0x2fe   : > { %v13522_v28 = vpop.f32.mrf.mxu1  ;;  %v3294_v38 = vsel %vm1538_vm4, %v17086_v7, %v9468_v44  ;;  %v13543_v44 = vsel %vm789_vm1, %v4917_v45, %v4919_v16  ;;  %v17090_v14 = vld [vmem:[#allocation67_spill] sm:$0xff]  ;;  %v4844_v7 = vrot.slane %v13484_v33, 1  ;;  %v4842_v33 = vrot.slane %v17087_v5, 1 }
 0x2ff   : > { %9565 = vrot.lane.b32.xlu1 %v9564_v6, %s10627_s15  ;;  %v3356_v48 = vpack.c.bf16 %v3295_v49, %v3294_v38  ;;  %17089 = vst [vmem:[#allocation14_spill] sm:$0xff] %v13543_v44  ;;  %v9584_v39 = vpack.i.bf16 %v17090_v14, %v13470_v34  ;;  %v3291_v6 = vsel %vm1538_vm4, %v17091_v58, %v9477_v42  ;;  %v17093_v16 = vld [vmem:[#allocation55_spill] sm:$0xff]  ;;  %v4841_v38 = vrot.slane %v13474_v50, 1  ;;  %v17094_v58 = vld [vmem:[#allocation85_spill] sm:$0xff] }
 0x300   : > { %v13540_v2 = vpop.f32.mrf.mxu1  ;;  %v9498_v14 = vunpack.i.h.bf16 %v13433_v30  ;;  %v9609_v13 = vpack.i.bf16 %v13543_v44, %v13536_v10  ;;  %v17097_v30 = vld [vmem:[#allocation68_spill] sm:$0xff] }
 0x301   : > { %8561 = vmatmul.mubr.msk.bf16.gmra.mxu1 %vm1538_vm4, %v3337_v0  ;;  %v13538_v18 = vpop.permute.xlu1 %9520  ;;  %9585 = vrot.lane.b32.xlu0 %v9584_v39, %s10625_s30  ;;  %v9526_v39 = vpop.permute.xlu0 %9525 }
 0x302   : > { %8564 = vmatprep.mubr.msk.bf16.mxu1 %vm1538_vm4, %v3341_v51  ;;  %v17092_v51 = vld [vmem:[#allocation57_spill] sm:$0xff] }
 0x303   : > { %9570 = vrot.lane.b32.xlu1 %v9579_v54, %s10627_s15  ;;  %v3290_v53 = vsel %vm1538_vm4, %v17092_v51, %v9473_v56  ;;  %v9589_v54 = vpack.i.bf16 %v13474_v50, %v17093_v16  ;;  %v9482_v56 = vunpack.i.l.bf16 %v13339_v22  ;;  %v9507_v22 = vunpack.i.l.bf16 %v13501_v27 }
 0x304   : > { %4000 = vmatmul.mubr.bf16.gmra.mxu0 %v3351_v46  ;;  %v3349_v46 = vpack.c.bf16 %v13040_v40, %v13027_v31  ;;  %v3355_v42 = vpack.c.bf16 %v3291_v6, %v3290_v53  ;;  %v9502_v40 = vunpack.i.l.bf16 %v13449_v61  ;;  %v9503_v51 = vunpack.i.h.bf16 %v13449_v61 }
 0x305   : > { %4007 = vmatprep.mubr.bf16.mxu0 %v3356_v48  ;;  %v13574_v31 = vpop.permute.xlu1 %9530  ;;  %v9478_v48 = vunpack.i.h.bf16 %v13329_v19  ;;  %9595 = vrot.lane.b32.xlu0 %v9594_v55, %s10625_s30  ;;  %v13586_v53 = vsel %vm711_vm2, %v4841_v38, %v4842_v33  ;;  %v13589_v19 = vsel %vm711_vm2, %v4842_v33, %v4844_v7  ;;  %v9599_v61 = vpack.i.bf16 %v17087_v5, %v13474_v50 }
 0x306   : > { %v8099_v49 = vpop.f32.mrf.mxu1  ;;  %17095 = vst [vmem:[#allocation18_spill] sm:$0xff] %v13586_v53  ;;  %17096 = vst [vmem:[#allocation28_spill] sm:$0xff] %v13589_v19  ;;  %v3353_v16 = vpack.c.bf16 %v13063_v63, %v13066_v47  ;;  %v13607_v7 = vsel %vm552_vm0, %v9502_v40, 0.0  ;;  %v9512_v38 = vunpack.i.l.bf16 %v13495_v17  ;;  %v9508_v33 = vunpack.i.h.bf16 %v13501_v27 }
 0x307   : > { %9590 = vrot.lane.b32.xlu1 %v9589_v54, %s10625_s30  ;;  %v9614_v63 = vpack.i.bf16 %v13589_v19, %v13586_v53  ;;  %v13622_v47 = vsel %vm552_vm0, %v9507_v22, 0.0  ;;  %v9523_v40 = vunpack.i.h.bf16 %v13538_v18  ;;  %v4849_v53 = vrot.slane %v13607_v7, 1 }
 0x308   : > { %v8100_v45 = vpop.f32.mrf.mxu1  ;;  %v13650_v6 = vsel %vm552_vm0, 0.0, %v9508_v33 }
 0x309   : > { %8565 = vmatmul.mubr.msk.bf16.gmra.mxu1 %vm1538_vm4, %v3345_v23  ;;  %v13569_v8 = vadd.f32 %v8100_v45, %v8099_v49  ;;  %v9532_v23 = vunpack.i.l.bf16 %v13574_v31  ;;  %v9528_v45 = vunpack.i.h.bf16 %v9526_v39  ;;  %9600 = vrot.lane.b32.xlu0 %v9599_v61, %s10627_s15  ;;  %v17105_v61 = vld [vmem:[#allocation89_spill] sm:$0xff]  ;;  %17107 = vst [vmem:[#allocation29_spill] sm:$0xff] %v13650_v6  ;;  %v4931_v5 = vrot.slane %v13650_v6, 2 }
 0x30a   : > { %8568 = vmatprep.mubr.msk.bf16.mxu1 %vm1538_vm4, %v3349_v46  ;;  %v3293_v46 = vsel %vm1538_vm4, %v13055_v3, %v9482_v56  ;;  %v13610_v55 = vpop.f32.mrf.mxu1  ;;  %v13619_v3 = vsel %vm552_vm0, 0.0, %v9498_v14  ;;  %v13625_v56 = vsel %vm552_vm0, 0.0, %v9503_v51  ;;  %v17102_v14 = vld [vmem:[#allocation64_spill] sm:$0xff]  ;;  %v13639_v51 = vsel %vm552_vm0, %v9512_v38, 0.0 }
 0x30b   : > { %9610 = vrot.lane.b32.xlu1 %v9609_v13, %s10626_s14  ;;  %v9527_v13 = vunpack.i.l.bf16 %v9526_v39  ;;  %17099 = vst [vmem:[#allocation31_spill] sm:$0xff] %v13619_v3  ;;  %17100 = vst [vmem:[#allocation26_spill] sm:$0xff] %v13625_v56  ;;  %v13631_v27 = vsel %vm552_vm0, %v9532_v23, 0.0  ;;  %v17106_v23 = vld [vmem:[#allocation27_spill] sm:$0xff]  ;;  %v4921_v54 = vrot.slane %v13619_v3, 2  ;;  %v4856_v34 = vrot.slane %v13650_v6, 1 }
 0x30c   : > { %4008 = vmatmul.mubr.bf16.gmra.mxu0 %v3355_v42  ;;  %v3292_v42 = vsel %vm1538_vm4, %v13030_v60, %v9478_v48  ;;  %v4924_v60 = vrot.slane %v13607_v7, 2  ;;  %v17101_v48 = vld [vmem:[#allocation92_spill] sm:$0xff]  ;;  %v13644_v49 = vpop.f32.mrf.mxu1  ;;  %v4932_v0 = vrot.slane %v17106_v23, 2  ;;  %v4846_v7 = vrot.slane %v13619_v3, 1 }
 0x30d   : > { %7764 = vmatprep.mubr.msk.bf16.mxu0 %vm7757_vm7, %v17097_v30  ;;  %v17103_v39 = vpack.c.bf16 %v17101_v48, %v17102_v14  ;;  %v3359_v22 = vpack.c.bf16 %v3293_v46, %v3292_v42  ;;  %v13642_v30 = vsel %vm552_vm0, 0.0, %v9528_v45  ;;  %v13653_v48 = vsel %vm552_vm0, %v9527_v13, 0.0  ;;  %9605 = vrot.lane.b32.xlu0 %v9614_v63, %s10627_s15  ;;  %v17108_v46 = vld [vmem:[#allocation76_spill] sm:$0xff]  ;;  %v10089_v13 = vld [vmem:[%s16562_s5 + $0x18] sm:$0xff]  }
 0x30e   : > { %17104 = vst [vmem:[#allocation35_spill] sm:$0xff] %v13642_v30  ;;  %v9619_v38 = vpack.i.bf16 %v17108_v46, %v13543_v44  ;;  %v4929_v45 = vrot.slane %v13622_v47, 2  ;;  %v4926_v42 = vrot.slane %v13625_v56, 2  ;;  %v13661_v14 = vsel %vm552_vm0, 0.0, %v9523_v40  ;;  %8576 = vmatprep.subr.bf16.mxu1 %v10089_v13 }
 0x30f   : > { %9615 = vrot.lane.b32.xlu1 %v9614_v63, %s10626_s14  ;;  %v4934_v63 = vrot.slane %v13639_v51, 2  ;;  %v4976_v50 = vrot.slane %v13642_v30, 2  ;;  %v17110_v44 = vrot.slane %v17094_v58, 2  ;;  %v5023_v19 = vrot.slane %v13653_v48, 2  ;;  %8577 = vmatpush3.bf16.msra.mxu1 %v10089_v13 }
 0x310   : > { %v4851_v13 = vrot.slane %v13625_v56, 1 }
 0x311   : > { %8569 = vmatmul.mubr.msk.bf16.gmra.mxu1 %vm1538_vm4, %v3353_v16  ;;  %v4927_v16 = vrot.slane %v17105_v61, 2  ;;  %v13675_v40 = vsel %vm789_vm1, %v17110_v44, %v4924_v60  ;;  %v13688_v60 = vsel %vm789_vm1, %v4921_v54, %v17110_v44  ;;  %v13710_v54 = vsel %vm789_vm1, %v4932_v0, %v4934_v63 }
 0x312   : > { %8572 = vmatprep.mubr.msk.bf16.mxu1 %vm1538_vm4, %v17103_v39  ;;  %v4979_v39 = vrot.slane %v13631_v27, 2  ;;  %v8105_v33 = vpop.f32.mrf.mxu1  ;;  %17111 = vst [vmem:[#allocation34_spill] sm:$0xff] %v13675_v40  ;;  %17112 = vst [vmem:[#allocation74_spill] sm:$0xff] %v13688_v60  ;;  %v9644_v36 = vpack.i.bf16 %v13675_v40, %v13688_v60  ;;  %v5021_v44 = vrot.slane %v13277_v21, 2 }
 0x313   : > { %9620 = vrot.lane.b32.xlu1 %v9619_v38, %s10625_s30  ;;  %v5020_v38 = vrot.slane %v13661_v14, 2  ;;  %17117 = vst [vmem:[#allocation81_spill] sm:$0xff] %v13710_v54 }
 0x314   : > { %4016 = vmatmul.mubr.bf16.gmra.mxu0 %v3359_v22  ;;  %v17109_v22 = vld [vmem:[#allocation61_spill] sm:$0xff]  ;;  %v8106_v1 = vpop.f32.mrf.mxu1  ;;  %v13703_v9 = vsel %vm789_vm1, %v4977_v59, %v4979_v39  ;;  %v17119_v39 = vrot.slane %v17094_v58, 1 }
 0x315   : > { %v9624_v46 = vpack.i.bf16 %v13619_v3, %v17109_v22  ;;  %v9629_v22 = vpack.i.bf16 %v13479_v12, %v17094_v58  ;;  %v13690_v52 = vadd.f32 %v8106_v1, %v8105_v33  ;;  %17115 = vst [vmem:[#allocation39_spill] sm:$0xff] %v13703_v9  ;;  %v13707_v1 = vsel %vm789_vm1, %v4927_v16, %v4929_v45 }
 0x316   : > { %v13695_v37 = vpop.f32.mrf.mxu1  ;;  %17116 = vst [vmem:[#allocation41_spill] sm:$0xff] %v13707_v1  ;;  %v13713_v33 = vsel %vm789_vm1, %v4976_v50, %v4977_v59  ;;  %v13727_v45 = vsel %vm789_vm1, %v4931_v5, %v4932_v0  ;;  %v13730_v59 = vsel %vm789_vm1, %v5020_v38, %v5021_v44  ;;  %v13733_v50 = vsel %vm789_vm1, %v5021_v44, %v5023_v19 }
 0x317   : > { %9625 = vrot.lane.b32.xlu0 %v9624_v46, %s10625_s30  ;;  %v13700_v46 = vsel %vm789_vm1, %v4926_v42, %v4927_v16  ;;  %9630 = vrot.lane.b32.xlu1 %v9629_v22, %s10625_s30  ;;  %17118 = vst [vmem:[#allocation77_spill] sm:$0xff] %v13713_v33  ;;  %v9634_v42 = vpack.i.bf16 %v17094_v58, %v13619_v3  ;;  %17121 = vst [vmem:[#allocation42_spill] sm:$0xff] %v13727_v45  ;;  %v4854_v38 = vrot.slane %v13622_v47, 1 }
 0x318   : > { %17114 = vst [vmem:[#allocation69_spill] sm:$0xff] %v13700_v46  ;;  %17122 = vst [vmem:[#allocation49_spill] sm:$0xff] %v13730_v59  ;;  %v13742_v22 = vpop.f32.mrf.mxu1  ;;  %v9664_v44 = vpack.i.bf16 %v13536_v10, %v17105_v61  ;;  %v9679_v47 = vpack.i.bf16 %v13707_v1, %v13700_v46  ;;  %v17130_v10 = vld [vmem:[#allocation78_spill] sm:$0xff] }
 0x319   : > { %8573 = vmatmul.mubr.msk.bf16.gmra.mxu1 %vm1538_vm4, %v17113_v4  ;;  %v13721_v4 = vsel %vm711_vm2, %v17119_v39, %v4849_v53  ;;  %17123 = vst [vmem:[#allocation47_spill] sm:$0xff] %v13733_v50  ;;  %v17124_v53 = vmov %v17119_v39  ;;  %v9689_v12 = vpack.i.bf16 %v13650_v6, %v17130_v10  ;;  %v9709_v10 = vpack.i.bf16 %v13710_v54, %v13727_v45 }
 0x31a   : > { %17120 = vst [vmem:[#allocation44_spill] sm:$0xff] %v13721_v4  ;;  %v13740_v63 = vsel %vm711_vm2, %v4846_v7, %v17124_v53  ;;  %v17126_v53 = vld [vmem:[#allocation83_spill] sm:$0xff] }
 0x31b   : > { %9645 = vrot.lane.b32.xlu0 %v9644_v36, %s10626_s14  ;;  %17125 = vst [vmem:[#allocation48_spill] sm:$0xff] %v13740_v63  ;;  %9635 = vrot.lane.b32.xlu1 %v9634_v42, %s10627_s15  ;;  %v9649_v19 = vpack.i.bf16 %v13721_v4, %v13740_v63  ;;  %v9654_v0 = vpack.i.bf16 %v17126_v53, %v13675_v40  ;;  %v17127_v42 = vld [vmem:[#allocation72_spill] sm:$0xff]  ;;  %v4852_v53 = vrot.slane %v17105_v61, 1 }
 0x31c   : > { %v9659_v36 = vpack.i.bf16 %v13625_v56, %v17127_v42 }
 0x31e   : > { %v8111_v7 = vpop.f32.mrf.mxu1 }
 0x31f   : > { %9650 = vrot.lane.b32.xlu0 %v9649_v19, %s10626_s14  ;;  %9640 = vrot.lane.b32.xlu1 %v9649_v19, %s10627_s15 }
 0x320   : > { %v8112_v39 = vpop.f32.mrf.mxu1 }
 0x321   : > { %v13761_v5 = vadd.f32 %v8112_v39, %v8111_v7  ;;  %v13781_v7 = vsel %vm711_vm2, %v4851_v13, %v4852_v53  ;;  %v9669_v39 = vpack.i.bf16 %v17105_v61, %v13625_v56 }
 0x322   : > { %v13771_v19 = vpop.f32.mrf.mxu1  ;;  %17128 = vst [vmem:[#allocation52_spill] sm:$0xff] %v13781_v7 }
 0x323   : > { %9655 = vrot.lane.b32.xlu0 %v9654_v0, %s10625_s30  ;;  %9660 = vrot.lane.b32.xlu1 %v9659_v36, %s10625_s30  ;;  %v10090_v0 = vld [vmem:[%s16562_s5 + $0x10] sm:$0xff]   ;;  %v13784_v36 = vsel %vm711_vm2, %v4852_v53, %v4854_v38  ;;  %v9517_v38 = vunpack.i.l.bf16 %v13545_v57  ;;  %v9513_v53 = vunpack.i.h.bf16 %v13495_v17  ;;  %v4857_v17 = vrot.slane %v17106_v23, 1 }
 0x324   : > { %17129 = vst [vmem:[#allocation56_spill] sm:$0xff] %v13784_v36  ;;  %8578 = vmatprep.subr.bf16.mxu1 %v10090_v0  ;;  %v13789_v42 = vpop.f32.mrf.mxu1 }
 0x325   : > { %8579 = vmatpush3.bf16.msra.mxu1 %v10090_v0  ;;  %v9694_v0 = vpack.i.bf16 %v13688_v60, %v17106_v23  ;;  %v13812_v56 = vsel %vm552_vm0, 0.0, %v9513_v53  ;;  %v13827_v53 = vsel %vm711_vm2, %v4856_v34, %v4857_v17 }
 0x326   : > { %17131 = vst [vmem:[#allocation53_spill] sm:$0xff] %v13812_v56  ;;  %17133 = vst [vmem:[#allocation59_spill] sm:$0xff] %v13827_v53  ;;  %v4936_v34 = vrot.slane %v13812_v56, 2 }
 0x327   : > { %9665 = vrot.lane.b32.xlu0 %v9664_v44, %s10625_s30  ;;  %9680 = vrot.lane.b32.xlu1 %v9679_v47, %s10626_s14  ;;  %v9684_v44 = vpack.i.bf16 %v13784_v36, %v13781_v7 }
 0x32b   : > { %9670 = vrot.lane.b32.xlu0 %v9669_v39, %s10627_s15  ;;  %v8117_v16 = vpop.f32.mrf.mxu1  ;;  %9685 = vrot.lane.b32.xlu1 %v9684_v44, %s10626_s14  ;;  %v4859_v39 = vrot.slane %v13639_v51, 1  ;;  %v9699_v51 = vpack.i.bf16 %v17106_v23, %v13650_v6  ;;  %v17134_v6 = vld [vmem:[#allocation21_spill] sm:$0xff] }
 0x32c   : > { %v4937_v36 = vrot.slane %v17134_v6, 2 }
 0x32d   : > { %v8118_v13 = vpop.f32.mrf.mxu1 }
 0x32e   : > { %v13800_v47 = vadd.f32 %v8118_v13, %v8117_v16  ;;  %v13820_v13 = vsel %vm711_vm2, %v4857_v17, %v4859_v39  ;;  %v4862_v39 = vrot.slane %v17134_v6, 1 }
 0x32f   : > { %9675 = vrot.lane.b32.xlu0 %v9684_v44, %s10627_s15  ;;  %v13803_v40 = vpop.f32.mrf.mxu1  ;;  %9695 = vrot.lane.b32.xlu1 %v9694_v0, %s10625_s30  ;;  %v4791_v44 = vsel %vm552_vm0, %v9517_v38, 0.0  ;;  %17132 = vst [vmem:[#allocation54_spill] sm:$0xff] %v13820_v13  ;;  %v4861_v38 = vrot.slane %v13812_v56, 1  ;;  %v9704_v60 = vpack.i.bf16 %v13820_v13, %v13827_v53  ;;  %v9522_v53 = vunpack.i.l.bf16 %v13538_v18 }
 0x330   : > { %v4864_v0 = vrot.slane %v4791_v44, 1  ;;  %v4939_v7 = vrot.slane %v4791_v44, 2 }
 0x331   : > { %v13817_v16 = vpop.f32.mrf.mxu1  ;;  %v13840_v17 = vsel %vm711_vm2, %v4861_v38, %v4862_v39 }
 0x332   : > { %17135 = vst [vmem:[#allocation65_spill] sm:$0xff] %v13840_v17  ;;  %v13860_v38 = vsel %vm789_vm1, %v4937_v36, %v4939_v7 }
 0x333   : > { %9690 = vrot.lane.b32.xlu0 %v9689_v12, %s10625_s30  ;;  %9700 = vrot.lane.b32.xlu1 %v9699_v51, %s10627_s15  ;;  %v9724_v51 = vpack.i.bf16 %v13700_v46, %v17134_v6  ;;  %17138 = vst [vmem:[#allocation70_spill] sm:$0xff] %v13860_v38 }
 0x336   : > { %v8123_v12 = vpop.f32.mrf.mxu1 }
 0x337   : > { %9710 = vrot.lane.b32.xlu0 %v9709_v10, %s10626_s14  ;;  %9705 = vrot.lane.b32.xlu1 %v9704_v60, %s10627_s15  ;;  %v13843_v10 = vsel %vm711_vm2, %v4862_v39, %v4864_v0  ;;  %v13857_v0 = vsel %vm789_vm1, %v4936_v34, %v4937_v36  ;;  %v17139_v39 = vld [vmem:[#allocation86_spill] sm:$0xff] }
 0x338   : > { %v8124_v23 = vpop.f32.mrf.mxu1  ;;  %17136 = vst [vmem:[#allocation60_spill] sm:$0xff] %v13843_v10  ;;  %v9734_v44 = vpack.i.bf16 %v13843_v10, %v13840_v17  ;;  %17137 = vst [vmem:[#allocation63_spill] sm:$0xff] %v13857_v0  ;;  %v9739_v34 = vpack.i.bf16 %v13860_v38, %v13857_v0 }
 0x339   : > { %v13836_v61 = vadd.f32 %v8124_v23, %v8123_v12  ;;  %v9518_v23 = vunpack.i.h.bf16 %v13545_v57  ;;  %v4792_v12 = vsel %vm552_vm0, %v9522_v53, 0.0  ;;  %v9729_v53 = vpack.i.bf16 %v17134_v6, %v13812_v56 }
 0x33a   : > { %v13845_v13 = vpop.f32.mrf.mxu1  ;;  %v4869_v7 = vrot.slane %v4792_v12, 1 }
 0x33b   : > { %9725 = vrot.lane.b32.xlu0 %v9724_v51, %s10625_s30  ;;  %9715 = vrot.lane.b32.xlu1 %v9704_v60, %s10626_s14  ;;  %v9719_v51 = vpack.i.bf16 %v13812_v56, %v17139_v39  ;;  %v13867_v60 = vsel %vm552_vm0, 0.0, %v9518_v23  ;;  %v17141_v23 = vld [vmem:[#allocation9_spill] sm:$0xff] }
 0x33c   : > { %v13850_v46 = vpop.f32.mrf.mxu1  ;;  %17140 = vst [vmem:[#allocation71_spill] sm:$0xff] %v13867_v60  ;;  %v4866_v39 = vrot.slane %v13867_v60, 1  ;;  %v4867_v3 = vrot.slane %v17141_v23, 1  ;;  %v4941_v56 = vrot.slane %v13867_v60, 2 }
 0x33e   : > { %v8129_v18 = vpop.f32.mrf.mxu1  ;;  %v13889_v58 = vsel %vm711_vm2, %v4867_v3, %v4869_v7  ;;  %v13896_v6 = vsel %vm711_vm2, %v4866_v39, %v4867_v3 }
 0x33f   : > { %9735 = vrot.lane.b32.xlu0 %v9734_v44, %s10627_s15  ;;  %9720 = vrot.lane.b32.xlu1 %v9719_v51, %s10625_s30  ;;  %17142 = vst [vmem:[#allocation75_spill] sm:$0xff] %v13889_v58  ;;  %17143 = vst [vmem:[#allocation46_spill] sm:$0xff] %v13896_v6 }
 0x340   : > { %v8130_v57 = vpop.f32.mrf.mxu1 }
 0x341   : > { %v13872_v17 = vadd.f32 %v8130_v57, %v8129_v18  ;;  %v9754_v18 = vpack.i.bf16 %v13727_v45, %v17141_v23  ;;  %v4944_v57 = vrot.slane %v4792_v12, 2  ;;  %v9764_v12 = vpack.i.bf16 %v13889_v58, %v13896_v6 }
 0x342   : > { %v13874_v36 = vpop.f32.mrf.mxu1  ;;  %v13880_v10 = vpop.f32.mrf.mxu0 }
 0x343   : > { %9740 = vrot.lane.b32.xlu0 %v9739_v34, %s10626_s14  ;;  %9730 = vrot.lane.b32.xlu1 %v9729_v53, %s10627_s15  ;;  %v4942_v53 = vrot.slane %v17141_v23, 2 }
 0x344   : > { %v13886_v51 = vpop.f32.mrf.mxu1  ;;  %v13891_v34 = vpop.f32.mrf.mxu0 }
 0x345   : > { %v13905_v45 = vsel %vm789_vm1, %v4942_v53, %v4944_v57  ;;  %v13911_v39 = vsel %vm789_vm1, %v4941_v56, %v4942_v53  ;;  %v9533_v56 = vunpack.i.h.bf16 %v13574_v31  ;;  %v9779_v53 = vpack.i.bf16 %v13857_v0, %v13139_v35 }
 0x346   : > { %v13898_v63 = vpop.f32.mrf.mxu0  ;;  %17144 = vst [vmem:[#allocation82_spill] sm:$0xff] %v13905_v45  ;;  %17145 = vst [vmem:[#allocation79_spill] sm:$0xff] %v13911_v39 }
 0x347   : > { %9755 = vrot.lane.b32.xlu0 %v9754_v18, %s10625_s30  ;;  %9745 = vrot.lane.b32.xlu1 %v9734_v44, %s10626_s14  ;;  %v9749_v18 = vpack.i.bf16 %v13867_v60, %v13707_v1  ;;  %v9769_v44 = vpack.i.bf16 %v13905_v45, %v13911_v39  ;;  %v9759_v1 = vpack.i.bf16 %v17141_v23, %v13867_v60 }
 0x348   : > { %v8135_v7 = vpop.f32.mrf.mxu1  ;;  %v13913_v4 = vpop.f32.mrf.mxu0 }
 0x34a   : > { %v8136_v3 = vpop.f32.mrf.mxu1 }
 0x34b   : > { %9765 = vrot.lane.b32.xlu0 %v9764_v12, %s10627_s15  ;;  %v13915_v32 = vadd.f32 %v8136_v3, %v8135_v7  ;;  %9750 = vrot.lane.b32.xlu1 %v9749_v18, %s10625_s30  ;;  %v10091_v3 = vld [vmem:[%s16562_s5 + $0x8] sm:$0xff]  }
 0x34c   : > { %v13925_v6 = vpop.f32.mrf.mxu1  ;;  %8580 = vmatprep.subr.bf16.mxu1 %v10091_v3 }
 0x34d   : > { %17146 = vst [vmem:[#allocation50_spill] sm:$0xff] %v13915_v32  ;;  %8581 = vmatpush3.bf16.msra.mxu1 %v10091_v3  ;;  %v4947_v32 = vrot.slane %v13139_v35, 2 }
 0x34e   : > { %v13920_v57 = vpop.f32.mrf.mxu0  ;;  %v13934_v18 = vpop.f32.mrf.mxu1 }
 0x34f   : > { %9770 = vrot.lane.b32.xlu0 %v9769_v44, %s10626_s14  ;;  %9760 = vrot.lane.b32.xlu1 %v9759_v1, %s10627_s15  ;;  %v13940_v44 = vsel %vm552_vm0, 0.0, %v9533_v56 }
 0x350   : > { %v13931_v7 = vpop.f32.mrf.mxu0  ;;  %17148 = vst [vmem:[#allocation87_spill] sm:$0xff] %v13940_v44  ;;  %v9784_v0 = vpack.i.bf16 %v13139_v35, %v13940_v44 }
 0x351   : > { %17147 = vst [vmem:[#allocation84_spill] sm:$0xff] %v13931_v7 }
 0x352   : > { %v13943_v1 = vpop.f32.mrf.mxu0 }
 0x353   : > { %9780 = vrot.lane.b32.xlu0 %v9779_v53, %s10625_s30  ;;  %9775 = vrot.lane.b32.xlu1 %v9764_v12, %s10626_s14  ;;  %17149 = vst [vmem:[#allocation58_spill] sm:$0xff] %v13943_v1  ;;  %v4872_v12 = vrot.slane %v13139_v35, 1  ;;  %v4902_v1 = vrot.slane %v13258_v24, 1 }
 0x354   : > { %v8141_v31 = vpop.f32.mrf.mxu1  ;;  %v13950_v23 = vpop.f32.mrf.mxu0 }
 0x355   : > { %17151 = vst [vmem:[#allocation90_spill] sm:$0xff] %v13950_v23  ;;  %v4904_v23 = vrot.slane %v13631_v27, 1 }
 0x356   : > { %v8142_v53 = vpop.f32.mrf.mxu1 }
 0x357   : > { %v13947_v60 = vadd.f32 %v8142_v53, %v8141_v31  ;;  %9785 = vrot.lane.b32.xlu1 %v9784_v0, %s10627_s15  ;;  %v13967_v53 = vld [vmem:[%s16561_s4] ss:$0 sm:$0xff]  ;;  %v4984_v31 = vrot.slane %v13277_v21, 1 }
 0x358   : > { %v13952_v58 = vpop.f32.mrf.mxu1  ;;  %v13991_v43 = vadd.f32 %v13405_v11, %v13967_v53  ;;  %v4986_v11 = vrot.slane %v13653_v48, 1  ;;  %v14025_v48 = vadd.f32 %v13569_v8, %v13967_v53  ;;  %v9809_v8 = vpack.i.bf16 %v13911_v39, %v13163_v41 }
 0x359   : > { %17150 = vst [vmem:[#allocation88_spill] sm:$0xff] %v13947_v60  ;;  %17152 = vst [vmem:[#allocation25_spill] sm:$0xff] %v13952_v58  ;;  %v8092_v60 = vadd.f32 %v13452_v15, %v13418_v62  ;;  %v4871_v15 = vrot.slane %v13940_v44, 1  ;;  %v4946_v58 = vrot.slane %v13940_v44, 2  ;;  %v8110_v39 = vadd.f32 %v13742_v22, %v13695_v37 }
 0x35a   : > { %v13954_v56 = vpop.f32.mrf.mxu0  ;;  %17158 = vst [vmem:[#allocation68_spill] sm:$0xff] %v13991_v43  ;;  %v4983_v43 = vrot.slane %v13661_v14, 1 }
 0x35b   : > { %17153 = vst [vmem:[#allocation91_spill] sm:$0xff] %v13954_v56  ;;  %v13971_v56 = vpop.f32.mrf.mxu1  ;;  %v13997_v26 = vadd.f32 %v8092_v60, %v13967_v53  ;;  %v14012_v60 = vadd.f32 %v13520_v20, %v13967_v53 }
 0x35c   : > { %v13958_v45 = vpop.f32.mrf.mxu0  ;;  %17155 = vst [vmem:[#allocation51_spill] sm:$0xff] %v13971_v56  ;;  %v8098_v56 = vadd.f32 %v13540_v2, %v13522_v28  ;;  %v4901_v28 = vrot.slane %v13642_v30, 1  ;;  %v8104_v2 = vadd.f32 %v13644_v49, %v13610_v55  ;;  %v14018_v55 = vsel %vm711_vm2, %v4871_v15, %v4872_v12  ;;  %v17187_v30 = vld [vmem:[#allocation50_spill] sm:$0xff] }
 0x35d   : > { %17154 = vst [vmem:[#allocation67_spill] sm:$0xff] %v13958_v45  ;;  %17159 = vst [vmem:[#allocation66_spill] sm:$0xff] %v13997_v26  ;;  %v14081_v22 = vsel %vm711_vm2, %v4983_v43, %v4984_v31 }
 0x35e   : > { %v13973_v35 = vpop.permute.xlu0 %9535  ;;  %v13979_v45 = vpop.f32.mrf.mxu0  ;;  %v14015_v26 = vadd.f32 %v8098_v56, %v13967_v53  ;;  %17160 = vst [vmem:[#allocation92_spill] sm:$0xff] %v14018_v55  ;;  %v14034_v56 = vsel %vm789_vm1, %v4946_v58, %v4947_v32  ;;  %v14047_v15 = vsel %vm711_vm2, %v4901_v28, %v4902_v1  ;;  %17168 = vst [vmem:[#allocation93_spill] sm:$0xff] %v14081_v22 }
 0x35f   : > { %17156 = vst [vmem:[#allocation57_spill] sm:$0xff] %v13973_v35  ;;  %v9537_v0 = vunpack.i.l.bf16 %v13973_v35  ;;  %17157 = vst [vmem:[#allocation55_spill] sm:$0xff] %v13979_v45 }
 0x360   : > { %v14006_v27 = vpop.f32.mrf.mxu0  ;;  %17162 = vst [vmem:[#allocation76_spill] sm:$0xff] %v14034_v56  ;;  %17164 = vst [vmem:[#allocation83_spill] sm:$0xff] %v14047_v15 }
 0x361   : > { %v8147_v3 = vpop.f32.mrf.mxu1  ;;  %v4793_v62 = vsel %vm552_vm0, %v9537_v0, 0.0 }
 0x362   : > { %v4874_v25 = vrot.slane %v4793_v62, 1  ;;  %v14002_v35 = vpop.permute.xlu0 %9545  ;;  %v4949_v7 = vrot.slane %v4793_v62, 2  ;;  %v14027_v62 = vpop.permute.xlu1 %9540 }
 0x363   : > { %v8148_v45 = vpop.f32.mrf.mxu1 }
 0x364   : > { %v14008_v0 = vadd.f32 %v8148_v45, %v8147_v3  ;;  %v14021_v49 = vsel %vm711_vm2, %v4872_v12, %v4874_v25  ;;  %v14037_v3 = vsel %vm711_vm2, %v4902_v1, %v4904_v23  ;;  %v14040_v25 = vadd.f32 %v8104_v2, %v13967_v53 }
 0x365   : > { %17161 = vst [vmem:[#allocation64_spill] sm:$0xff] %v14021_v49  ;;  %v9799_v45 = vpack.i.bf16 %v14021_v49, %v14018_v55  ;;  %17163 = vst [vmem:[#allocation61_spill] sm:$0xff] %v14037_v3  ;;  %v14049_v55 = vpop.f32.mrf.mxu1  ;;  %v14054_v58 = vsel %vm789_vm1, %v4947_v32, %v4949_v7  ;;  %v8116_v1 = vadd.f32 %v13789_v42, %v13771_v19 }
 0x366   : > { %v14031_v20 = vpop.f32.mrf.mxu0  ;;  %v14042_v12 = vpop.permute.xlu0 %9560  ;;  %17165 = vst [vmem:[#allocation72_spill] sm:$0xff] %v14054_v58  ;;  %v14069_v32 = vpack.i.bf16 %v14037_v3, %v14047_v15  ;;  %v8122_v2 = vadd.f32 %v13817_v16, %v13803_v40  ;;  %v14084_v19 = vsel %vm711_vm2, %v4984_v31, %v4986_v11  ;;  %v14088_v42 = vadd.f32 %v13690_v52, %v13967_v53  ;;  %v10092_v31 = vld [vmem:[%s16562_s5] sm:$0xff]  }
 0x367   : > { %v9563_v49 = vunpack.i.h.bf16 %v14042_v12  ;;  %9800 = vrot.lane.b32.xlu1 %v9799_v45, %s10626_s14  ;;  %9790 = vrot.lane.b32.xlu0 %v9799_v45, %s10627_s15  ;;  %17169 = vst [vmem:[#allocation94_spill] sm:$0xff] %v14084_v19  ;;  %v8128_v45 = vadd.f32 %v13850_v46, %v13845_v13  ;;  %v9794_v40 = vpack.i.bf16 %v14054_v58, %v14034_v56  ;;  %v17175_v15 = vld [vmem:[#allocation90_spill] sm:$0xff] }
 0x368   : > { %v14065_v28 = vpop.f32.mrf.mxu0  ;;  %17166 = vst [vmem:[#allocation78_spill] sm:$0xff] %v14069_v32  ;;  %v14105_v11 = vadd.f32 %v8110_v39, %v13967_v53  ;;  %v14109_v46 = vadd.f32 %v13761_v5, %v13967_v53  ;;  %v14112_v13 = vadd.f32 %v8116_v1, %v13967_v53  ;;  %v14124_v39 = vadd.f32 %v13800_v47, %v13967_v53 }
 0x369   : > { %v14075_v23 = vpop.permute.xlu1 %9550  ;;  %v14078_v37 = vsel %vm552_vm0, 0.0, %v9563_v49  ;;  %v14096_v49 = vpop.f32.mrf.mxu1  ;;  %v14127_v5 = vadd.f32 %v8122_v2, %v13967_v53  ;;  %v8134_v1 = vadd.f32 %v13886_v51, %v13874_v36  ;;  %v14138_v52 = vadd.f32 %v13836_v61, %v13967_v53  ;;  %8582 = vmatprep.subr.bf16.mxu1 %v10092_v31 }
 0x36a   : > { %17167 = vst [vmem:[#allocation86_spill] sm:$0xff] %v14078_v37  ;;  %v9804_v43 = vpack.i.bf16 %v14078_v37, %v13860_v38  ;;  %v14115_v16 = vpop.f32.mrf.mxu0  ;;  %v14141_v47 = vadd.f32 %v8128_v45, %v13967_v53  ;;  %v8204_v2 = vadd.f32 %v13913_v4, %v13898_v63  ;;  %v8140_v51 = vadd.f32 %v13934_v18, %v13925_v6  ;;  %v10546_v6 = vld [vmem:[%s16564_s7 + $0x78] sm:$0xff]  }
 0x36b   : > { %9795 = vrot.lane.b32.xlu0 %v9794_v40, %s10626_s14  ;;  %v8201_v40 = vadd.f32 %v13891_v34, %v13880_v10  ;;  %17170 = vst [vmem:[#allocation95_spill] sm:$0xff] %v14138_v52  ;;  %v14148_v10 = vadd.f32 %v13872_v17, %v13967_v53  ;;  %v17173_v34 = vld [vmem:[#allocation84_spill] sm:$0xff]  ;;  %8583 = vmatpush3.bf16.msra.mxu1 %v10092_v31  ;;  %v9548_v4 = vunpack.i.h.bf16 %v14002_v35  ;;  %v9547_v63 = vunpack.i.l.bf16 %v14002_v35  ;;  %v14161_v17 = vpop.permute.xlu0 %9575  ;;  %v17178_v18 = vld [vmem:[#allocation25_spill] sm:$0xff]  ;;  %v17179_v35 = vld [vmem:[#allocation51_spill] sm:$0xff] }
 0x36c   : > { %9805 = vrot.lane.b32.xlu1 %v9804_v43, %s10625_s30  ;;  %17171 = vst [vmem:[#allocation96_spill] sm:$0xff] %v14141_v47  ;;  %v8207_v61 = vadd.f32 %v17173_v34, %v13920_v57  ;;  %v17174_v43 = vld [vmem:[#allocation58_spill] sm:$0xff]  ;;  %v8221_v19 = vpop.f32.mrf.mxu0  ;;  %8722 = vmatprep.subr.bf16.mxu1 %v10546_v6  ;;  %v14170_v57 = vadd.f32 %v8134_v1, %v13967_v53  ;;  %v9542_v31 = vunpack.i.l.bf16 %v14027_v62  ;;  %v17180_v34 = vld [vmem:[#allocation68_spill] sm:$0xff]  ;;  %v17183_v47 = vld [vmem:[#allocation55_spill] sm:$0xff] }
 0x36d   : > { %v14133_v7 = vpop.permute.xlu1 %9555  ;;  %v8153_v3 = vpop.f32.mrf.mxu1  ;;  %17172 = vst [vmem:[#allocation97_spill] sm:$0xff] %v14148_v10  ;;  %v8210_v45 = vadd.f32 %v17175_v15, %v17174_v43  ;;  %v8146_v15 = vadd.f32 %v17179_v35, %v17178_v18  ;;  %v8216_v24 = vadd.f32 %v14006_v27, %v17183_v47  ;;  %v17184_v1 = vld [vmem:[#allocation82_spill] sm:$0xff]  ;;  %v17190_v47 = vld [vmem:[#allocation37_spill] sm:$0xff] }
 0x36e   : > { %v9558_v36 = vunpack.i.h.bf16 %v14133_v7  ;;  %17177 = vst [vmem:[#allocation58_spill] sm:$0xff] %v14170_v57  ;;  %v17185_v18 = vld [vmem:[#allocation66_spill] sm:$0xff]  ;;  %v14202_v27 = vadd.f32 %v8207_v61, %v14012_v60  ;;  %v17191_v60 = vld [vmem:[#allocation88_spill] sm:$0xff] }
 0x36f   : > { %v8154_v38 = vpop.f32.mrf.mxu1  ;;  %9810 = vrot.lane.b32.xlu0 %v9809_v8, %s10625_s30  ;;  %v17182_v8 = vld [vmem:[#allocation67_spill] sm:$0xff]  ;;  %v14191_v35 = vadd.f32 %v8204_v2, %v17185_v18  ;;  %v9562_v2 = vunpack.i.l.bf16 %v14042_v12  ;;  %v14209_v18 = vpop.permute.xlu0 %9580  ;;  %v14222_v61 = vadd.f32 %v8146_v15, %v13967_v53  ;;  %v14239_v15 = vadd.f32 %v8216_v24, %v14040_v25 }
 0x370   : > { %v14159_v22 = vsel %vm552_vm0, 0.0, %v9558_v36  ;;  %v14163_v10 = vadd.f32 %v8154_v38, %v8153_v3  ;;  %v14178_v38 = vadd.f32 %v8201_v40, %v17180_v34  ;;  %v17181_v3 = vld [vmem:[#allocation91_spill] sm:$0xff]  ;;  %v14195_v40 = vadd.f32 %v17187_v30, %v13967_v53 }
 0x371   : > { %17176 = vst [vmem:[#allocation84_spill] sm:$0xff] %v14159_v22  ;;  %v14175_v36 = vpop.f32.mrf.mxu1  ;;  %v8213_v43 = vadd.f32 %v17182_v8, %v17181_v3  ;;  %v14184_v6 = vpop.permute.xlu1 %9565  ;;  %v9824_v57 = vpack.i.bf16 %v14159_v22, %v17184_v1  ;;  %17186 = vst [vmem:[#allocation90_spill] sm:$0xff] %v14191_v35  ;;  %v14198_v34 = vadd.f32 %v8140_v51, %v13967_v53  ;;  %v9543_v3 = vunpack.i.h.bf16 %v14027_v62 }
 0x372   : > { %17188 = vst [vmem:[#allocation25_spill] sm:$0xff] %v14195_v40  ;;  %v5668_v8 = vsel %vm1570_vm5, %v17190_v47, %v9548_v4  ;;  %v5667_v1 = vsel %vm1570_vm5, %v17190_v47, %v9547_v63  ;;  %v14215_v51 = vadd.f32 %v8210_v45, %v14015_v26  ;;  %v14219_v62 = vadd.f32 %v17191_v60, %v13967_v53  ;;  %v17194_v4 = vld [vmem:[#allocation57_spill] sm:$0xff]  ;;  %v17195_v47 = vld [vmem:[#allocation40_spill] sm:$0xff] }
 0x373   : > { %v14188_v52 = vpop.f32.mrf.mxu0  ;;  %17189 = vst [vmem:[#allocation51_spill] sm:$0xff] %v14198_v34  ;;  %9825 = vrot.lane.b32.xlu1 %v9824_v57, %s10625_s30  ;;  %17193 = vst [vmem:[#allocation91_spill] sm:$0xff] %v14222_v61  ;;  %v9538_v63 = vunpack.i.h.bf16 %v17194_v4  ;;  %v5699_v12 = vsel %vm1506_vm3, %v17195_v47, %v9542_v31  ;;  %v14229_v57 = vadd.f32 %v14008_v0, %v13967_v53  ;;  %v14233_v34 = vpop.f32.mrf.mxu1  ;;  %v17199_v4 = vld [vmem:[#allocation33_spill] sm:$0xff] }
 0x374   : > { %17192 = vst [vmem:[#allocation68_spill] sm:$0xff] %v14219_v62  ;;  %v8152_v26 = vadd.f32 %v14096_v49, %v14049_v55  ;;  %v14236_v60 = vadd.f32 %v8213_v43, %v14025_v48  ;;  %17198 = vst [vmem:[#allocation66_spill] sm:$0xff] %v14239_v15  ;;  %v5700_v61 = vsel %vm1506_vm3, %v17199_v4, %v9543_v3  ;;  %v14248_v49 = vpop.permute.xlu0 %9585  ;;  %v9553_v43 = vunpack.i.h.bf16 %v14075_v23 }
 0x375   : > { %v14212_v30 = vpop.f32.mrf.mxu0  ;;  %17196 = vst [vmem:[#allocation67_spill] sm:$0xff] %v14229_v57  ;;  %v9571_v45 = vpop.permute.xlu1 %9570  ;;  %v5795_v31 = vpack.c.bf16 %v5668_v8, %v5667_v1  ;;  %v4951_v57 = vrot.slane %v14078_v37, 2  ;;  %v8219_v55 = vadd.f32 %v14065_v28, %v14031_v20  ;;  %v5731_v48 = vsel %vm1538_vm4, %v5699_v12, %v9538_v63 }
 0x376   : > { %17197 = vst [vmem:[#allocation55_spill] sm:$0xff] %v14236_v60  ;;  %v9573_v47 = vunpack.i.h.bf16 %v9571_v45  ;;  %v9572_v40 = vunpack.i.l.bf16 %v9571_v45  ;;  %v5732_v24 = vsel %vm1538_vm4, %v5700_v61, %v9562_v2  ;;  %v9588_v1 = vunpack.i.h.bf16 %v14248_v49 }
 0x377   : > { %v14243_v0 = vpop.f32.mrf.mxu0  ;;  %v9552_v45 = vunpack.i.l.bf16 %v14075_v23  ;;  %v14258_v4 = vadd.f32 %v8152_v26, %v13967_v53  ;;  %v4876_v20 = vrot.slane %v14078_v37, 1  ;;  %v8222_v61 = vadd.f32 %v8221_v19, %v14115_v16 }
 0x378   : > { %v8159_v25 = vpop.f32.mrf.mxu1  ;;  %v5763_v3 = vsel %vm1570_vm5, %v5731_v48, %v9572_v40  ;;  %v5764_v8 = vsel %vm1570_vm5, %v5732_v24, %v9573_v47  ;;  %v14265_v12 = vsel %vm552_vm0, 0.0, %v9588_v1  ;;  %v9596_v26 = vpop.permute.xlu0 %9595  ;;  %v14282_v16 = vadd.f32 %v8219_v55, %v14088_v42  ;;  %v17205_v1 = vld [vmem:[#allocation62_spill] sm:$0xff] }
 0x379   : > { %17200 = vst [vmem:[#allocation50_spill] sm:$0xff] %v14258_v4  ;;  %v14261_v28 = vpop.permute.xlu1 %9590  ;;  %v5796_v63 = vpack.c.bf16 %v5764_v8, %v5763_v3  ;;  %17201 = vst [vmem:[#allocation37_spill] sm:$0xff] %v14265_v12  ;;  %v14268_v48 = vpop.f32.mrf.mxu0  ;;  %v9834_v47 = vpack.i.bf16 %v14265_v12, %v14054_v58  ;;  %v17202_v3 = vrot.slane %v13163_v41, 2  ;;  %v5608_v8 = vsel %vm1506_vm3, %v17205_v1, %v9553_v43  ;;  %v17209_v1 = vld [vmem:[#allocation13_spill] sm:$0xff] }
 0x37a   : > { %v8160_v2 = vpop.f32.mrf.mxu1  ;;  %v9592_v40 = vunpack.i.l.bf16 %v14261_v28  ;;  %17204 = vst [vmem:[#allocation57_spill] sm:$0xff] %v14282_v16  ;;  %v9557_v23 = vunpack.i.l.bf16 %v14133_v7  ;;  %v17207_v7 = vrot.slane %v13163_v41, 1  ;;  %v17215_v16 = vld [vmem:[#allocation11_spill] sm:$0xff] }
 0x37b   : > { %6070 = vmatprep.mubr.bf16.mxu0 %v5796_v63  ;;  %v14274_v24 = vadd.f32 %v8160_v2, %v8159_v25  ;;  %v14279_v19 = vsel %vm789_vm1, %v4951_v57, %v17202_v3  ;;  %v9578_v63 = vunpack.i.h.bf16 %v14161_v17  ;;  %v17206_v2 = vld [vmem:[#allocation17_spill] sm:$0xff]  ;;  %v9577_v57 = vunpack.i.l.bf16 %v14161_v17  ;;  %9835 = vrot.lane.b32.xlu1 %v9834_v47, %s10625_s30 }
 0x37c   : > { %17203 = vst [vmem:[#allocation88_spill] sm:$0xff] %v14279_v19  ;;  %v4794_v4 = vsel %vm552_vm0, %v9592_v40, 0.0  ;;  %6071 = vmatmul.mubr.bf16.vlgmr.msra.gmra.mxu0 %v5795_v31  ;;  %v5607_v58 = vsel %vm1506_vm3, %v17206_v2, %v9552_v45  ;;  %v14297_v55 = vpop.f32.mrf.mxu1  ;;  %v14302_v43 = vsel %vm711_vm2, %v4876_v20, %v17207_v7  ;;  %v9598_v40 = vunpack.i.h.bf16 %v9596_v26  ;;  %v14312_v15 = vpop.permute.xlu0 %9600 }
 0x37d   : > { %v4879_v3 = vrot.slane %v4794_v4, 1  ;;  %v14295_v42 = vpop.permute.xlu1 %9610  ;;  %17208 = vst [vmem:[#allocation40_spill] sm:$0xff] %v14302_v43  ;;  %v4954_v31 = vrot.slane %v4794_v4, 2  ;;  %v14307_v45 = vadd.f32 %v8222_v61, %v14105_v11  ;;  %v4881_v17 = vrot.slane %v14159_v22, 1 }
 0x37e   : > { %v4956_v47 = vrot.slane %v14159_v22, 2  ;;  %v9568_v2 = vunpack.i.h.bf16 %v14184_v6  ;;  %v17211_v60 = vmov %v17207_v7  ;;  %v5638_v4 = vsel %vm1538_vm4, %v5608_v8, %v9557_v23  ;;  %v17213_v7 = vld [vmem:[#allocation20_spill] sm:$0xff] }
 0x37f   : > { %v14289_v25 = vpop.f32.mrf.mxu0  ;;  %17210 = vst [vmem:[#allocation33_spill] sm:$0xff] %v14307_v45  ;;  %v14317_v20 = vsel %vm711_vm2, %v17211_v60, %v4879_v3  ;;  %v5702_v62 = vsel %vm1506_vm3, %v17213_v7, %v9578_v63  ;;  %v14324_v11 = vadd.f32 %v14163_v10, %v13967_v53  ;;  %v5701_v35 = vsel %vm1506_vm3, %v17215_v16, %v9577_v57  ;;  %v8163_v10 = vpop.f32.mrf.mxu1 }
 0x380   : > { %17212 = vst [vmem:[#allocation62_spill] sm:$0xff] %v14317_v20  ;;  %v9593_v60 = vunpack.i.h.bf16 %v14261_v28  ;;  %v9597_v3 = vunpack.i.l.bf16 %v9596_v26  ;;  %v17216_v23 = vpack.i.bf16 %v13713_v33, %v13710_v54  ;;  %v14341_v63 = vpack.i.bf16 %v14317_v20, %v14302_v43  ;;  %v9606_v54 = vpop.permute.xlu0 %9605 }
 0x381   : > { %17214 = vst [vmem:[#allocation17_spill] sm:$0xff] %v14324_v11  ;;  %v14326_v61 = vpop.f32.mrf.mxu0  ;;  %v14337_v8 = vpop.permute.xlu1 %9615  ;;  %v9567_v7 = vunpack.i.l.bf16 %v14184_v6  ;;  %v8158_v16 = vadd.f32 %v14233_v34, %v14175_v36  ;;  %v5637_v28 = vsel %vm1538_vm4, %v5607_v58, %v9598_v40  ;;  %v17217_v26 = vrot.slane %v13163_v41, 2 }
 0x382   : > { %9840 = vrot.lane.b32.xlu1 %v17216_v23, %s10625_s30  ;;  %v5670_v23 = vsel %vm1570_vm5, %v5638_v4, %v9568_v2  ;;  %v9583_v45 = vunpack.i.h.bf16 %v14209_v18  ;;  %9815 = vrot.lane.b32.xlu0 %v14341_v63, %s10627_s15  ;;  %v17219_v6 = vrot.slane %v13182_v29, 1  ;;  %v17221_v58 = vrot.slane %v13182_v29, 2 }
 0x383   : > { %v14350_v57 = vsel %vm789_vm1, %v17217_v26, %v4954_v31  ;;  %v9582_v31 = vunpack.i.l.bf16 %v14209_v18  ;;  %v8225_v40 = vadd.f32 %v14212_v30, %v14188_v52  ;;  %v9608_v2 = vunpack.i.h.bf16 %v9606_v54  ;;  %v14369_v26 = vpop.f32.mrf.mxu0 }
 0x384   : > { %17218 = vst [vmem:[#allocation20_spill] sm:$0xff] %v14350_v57  ;;  %v14359_v36 = vsel %vm711_vm2, %v4881_v17, %v17219_v6  ;;  %v14364_v34 = vsel %vm789_vm1, %v4956_v47, %v17221_v58  ;;  %v9607_v4 = vunpack.i.l.bf16 %v9606_v54  ;;  %v9819_v17 = vpack.i.bf16 %v14350_v57, %v14279_v19 }
 0x385   : > { %17220 = vst [vmem:[#allocation11_spill] sm:$0xff] %v14359_v36  ;;  %17222 = vst [vmem:[#allocation98_spill] sm:$0xff] %v14364_v34  ;;  %v14373_v43 = vpop.permute.xlu1 %9620  ;;  %v5733_v47 = vsel %vm1538_vm4, %v5701_v35, %v9593_v60  ;;  %v5734_v6 = vsel %vm1538_vm4, %v5702_v62, %v9597_v3  ;;  %v5669_v18 = vsel %vm1570_vm5, %v5637_v28, %v9567_v7  ;;  %v9587_v54 = vunpack.i.l.bf16 %v14248_v49  ;;  %v8233_v7 = vpop.f32.mrf.mxu0  ;;  %v17233_v60 = vld [vmem:[#allocation18_spill] sm:$0xff] }
 0x386   : > { %v8165_v20 = vpop.f32.mrf.mxu1  ;;  %9845 = vrot.lane.b32.xlu1 %v14069_v32, %s10626_s14  ;;  %v14381_v52 = vadd.f32 %v8158_v16, %v13967_v53  ;;  %v5765_v30 = vsel %vm1570_vm5, %v5733_v47, %v9607_v4  ;;  %v5766_v11 = vsel %vm1570_vm5, %v5734_v6, %v9608_v2  ;;  %v4886_v33 = vrot.slane %v14265_v12, 1  ;;  %9820 = vrot.lane.b32.xlu0 %v9819_v17, %s10626_s14  ;;  %v17224_v2 = vld [vmem:[#allocation19_spill] sm:$0xff]  ;;  %v17225_v47 = vld [vmem:[#allocation73_spill] sm:$0xff] }
 0x387   : > { %v5799_v35 = vpack.c.bf16 %v5766_v11, %v5765_v30  ;;  %v9613_v3 = vunpack.i.h.bf16 %v14295_v42  ;;  %v5798_v16 = vpack.c.bf16 %v5670_v23, %v5669_v18  ;;  %v5610_v17 = vsel %vm1506_vm3, %v17225_v47, %v9583_v45  ;;  %v17226_v11 = vld [vmem:[#allocation22_spill] sm:$0xff] }
 0x388   : > { %v8166_v58 = vpop.f32.mrf.mxu1  ;;  %17223 = vst [vmem:[#allocation99_spill] sm:$0xff] %v14381_v52  ;;  %v9612_v6 = vunpack.i.l.bf16 %v14295_v42  ;;  %v14410_v18 = vadd.f32 %v8225_v40, %v14109_v46  ;;  %v5640_v30 = vsel %vm1538_vm4, %v5610_v17, %v9587_v54  ;;  %v14415_v45 = vadd.f32 %v14268_v48, %v14243_v0 }
 0x389   : > { %v14387_v32 = vpop.permute.xlu0 %9625  ;;  %v14390_v62 = vadd.f32 %v8166_v58, %v8165_v20  ;;  %v5609_v20 = vsel %vm1506_vm3, %v17226_v11, %v9582_v31  ;;  %v17227_v58 = vpack.i.bf16 %v13277_v21, %v13661_v14  ;;  %6078 = vmatprep.mubr.bf16.mxu0 %v5799_v35  ;;  %v9631_v23 = vpop.permute.xlu1 %9630  ;;  %v9603_v31 = vunpack.i.h.bf16 %v14312_v15 }
 0x38a   : > { %v9627_v49 = vunpack.i.l.bf16 %v14387_v32  ;;  %v14396_v28 = vpop.f32.mrf.mxu1  ;;  %v8164_v42 = vadd.f32 %v8163_v10, %v14297_v55  ;;  %6079 = vmatmul.mubr.bf16.gmra.mxu0 %v5798_v16  ;;  %v4961_v11 = vrot.slane %v14265_v12, 2  ;;  %v14424_v35 = vadd.f32 %v14274_v24, %v13967_v53  ;;  %v17232_v10 = vld [vmem:[#allocation28_spill] sm:$0xff] }
 0x38b   : > { %9855 = vrot.lane.b32.xlu1 %v17227_v58, %s10627_s15  ;;  %v14419_v47 = vpop.f32.mrf.mxu0  ;;  %v17229_v0 = vpack.i.bf16 %v14034_v56, %v13182_v29  ;;  %v17230_v48 = vrot.slane %v17209_v1, 1  ;;  %v5704_v54 = vsel %vm1506_vm3, %v17232_v10, %v9613_v3  ;;  %v9623_v24 = vunpack.i.h.bf16 %v14373_v43 }
 0x38c   : > { %17228 = vst [vmem:[#allocation73_spill] sm:$0xff] %v14424_v35  ;;  %v4795_v46 = vsel %vm552_vm0, %v9627_v49, 0.0  ;;  %v8231_v49 = vadd.f32 %v14326_v61, %v14289_v25  ;;  %v9633_v16 = vunpack.i.h.bf16 %v9631_v23  ;;  %v14443_v17 = vpop.f32.mrf.mxu1  ;;  %v9602_v4 = vunpack.i.l.bf16 %v14312_v15 }
 0x38d   : > { %v14427_v40 = vpop.permute.xlu0 %9645  ;;  %9830 = vrot.lane.b32.xlu0 %v17229_v0, %s10625_s30  ;;  %v14436_v55 = vsel %vm711_vm2, %v4886_v33, %v17230_v48  ;;  %v14445_v58 = vpop.f32.mrf.mxu0  ;;  %v5703_v0 = vsel %vm1506_vm3, %v17233_v60, %v9612_v6  ;;  %v9618_v33 = vunpack.i.h.bf16 %v14337_v8  ;;  %v9617_v48 = vunpack.i.l.bf16 %v14337_v8 }
 0x38e   : > { %17231 = vst [vmem:[#allocation22_spill] sm:$0xff] %v14436_v55  ;;  %v17234_v3 = vpack.i.bf16 %v13163_v41, %v14078_v37  ;;  %v14456_v25 = vpop.permute.xlu1 %9635  ;;  %v14459_v61 = vsel %vm1570_vm5, %v5640_v30, %v9603_v31  ;;  %v14462_v10 = vadd.f32 %v8164_v42, %v13967_v53  ;;  %v4884_v60 = vrot.slane %v4795_v46, 1 }
 0x38f   : > { %v4959_v6 = vrot.slane %v4795_v46, 2  ;;  %v14464_v15 = vpop.f32.mrf.mxu0  ;;  %v9628_v8 = vunpack.i.h.bf16 %v14387_v32  ;;  %v9632_v35 = vunpack.i.l.bf16 %v9631_v23  ;;  %v8234_v52 = vadd.f32 %v8233_v7, %v14369_v26  ;;  %v17240_v23 = vld [vmem:[#allocation80_spill] sm:$0xff] }
 0x390   : > { %9870 = vrot.lane.b32.xlu1 %v17234_v3, %s10627_s15  ;;  %17235 = vst [vmem:[#allocation28_spill] sm:$0xff] %v14462_v10  ;;  %v17236_v30 = vpack.i.bf16 %v13940_v44, %v13703_v9  ;;  %v14475_v31 = vsel %vm552_vm0, 0.0, %v9623_v24  ;;  %v5639_v42 = vsel %vm1538_vm4, %v5609_v20, %v9633_v16  ;;  %v17238_v26 = vrot.slane %v17209_v1, 2 }
 0x391   : > { %v8171_v56 = vpop.f32.mrf.mxu1  ;;  %v14468_v41 = vpop.permute.xlu0 %9650  ;;  %17237 = vst [vmem:[#allocation18_spill] sm:$0xff] %v14475_v31  ;;  %v5612_v37 = vsel %vm1506_vm3, %v17240_v23, %v9618_v33  ;;  %v9622_v20 = vunpack.i.l.bf16 %v14373_v43 }
 0x392   : > { %9850 = vrot.lane.b32.xlu0 %v17236_v30, %s10625_s30  ;;  %v14478_v46 = vpop.f32.mrf.mxu0  ;;  %v14485_v7 = vsel %vm789_vm1, %v4961_v11, %v17238_v26  ;;  %v17241_v30 = vld [vmem:[#allocation30_spill] sm:$0xff]  ;;  %v9641_v16 = vpop.permute.xlu1 %9640  ;;  %v17243_v11 = vrot.slane %v13182_v29, 1 }
 0x393   : > { %v8172_v3 = vpop.f32.mrf.mxu1  ;;  %17239 = vst [vmem:[#allocation100_spill] sm:$0xff] %v14485_v7  ;;  %v14491_v24 = vsel %vm1506_vm3, %v17241_v30, %v9617_v48  ;;  %v9643_v32 = vunpack.i.h.bf16 %v9641_v16  ;;  %v9642_v10 = vunpack.i.l.bf16 %v9641_v16  ;;  %v17246_v48 = vrot.slane %v13182_v29, 2 }
 0x394   : > { %9880 = vrot.lane.b32.xlu1 %v14341_v63, %s10626_s14  ;;  %v14496_v44 = vadd.f32 %v8172_v3, %v8171_v56  ;;  %v14501_v26 = vsel %vm711_vm2, %v17243_v11, %v4884_v60  ;;  %v14505_v23 = vpop.f32.mrf.mxu0  ;;  %v17248_v56 = vpack.i.bf16 %v13733_v50, %v13730_v59  ;;  %v9889_v60 = vpack.i.bf16 %v14475_v31, %v14350_v57 }
 0x395   : > { %17244 = vst [vmem:[#allocation30_spill] sm:$0xff] %v14501_v26  ;;  %v14503_v33 = vpop.f32.mrf.mxu1  ;;  %v14510_v43 = vsel %vm789_vm1, %v17246_v48, %v4959_v6  ;;  %v14512_v63 = vpop.permute.xlu0 %9655  ;;  %v5735_v3 = vsel %vm1538_vm4, %v5703_v0, %v9628_v8  ;;  %v5736_v30 = vsel %vm1538_vm4, %v5704_v54, %v9632_v35  ;;  %v5671_v16 = vsel %vm1570_vm5, %v5639_v42, %v9602_v4 }
 0x396   : > { %17242 = vst [vmem:[#allocation80_spill] sm:$0xff] %v14496_v44  ;;  %17245 = vst [vmem:[#allocation101_spill] sm:$0xff] %v14503_v33  ;;  %9860 = vrot.lane.b32.xlu0 %v17248_v56, %s10626_s14  ;;  %v5767_v11 = vsel %vm1570_vm5, %v5735_v3, %v9642_v10  ;;  %v5768_v6 = vsel %vm1570_vm5, %v5736_v30, %v9643_v32  ;;  %v14527_v33 = vpop.f32.mrf.mxu0  ;;  %v14530_v59 = vadd.f32 %v8231_v49, %v14124_v39  ;;  %v17250_v56 = vld [vmem:[#allocation12_spill] sm:$0xff]  ;;  %v14535_v0 = vpop.permute.xlu1 %9660 }
 0x397   : > { %17247 = vst [vmem:[#allocation102_spill] sm:$0xff] %v14510_v43  ;;  %v14525_v48 = vpop.f32.mrf.mxu1  ;;  %v9864_v4 = vpack.i.bf16 %v14501_v26, %v14359_v36  ;;  %v5802_v35 = vpack.c.bf16 %v5768_v6, %v5767_v11  ;;  %v14540_v54 = vadd.f32 %v8234_v52, %v14127_v5  ;;  %v4891_v39 = vrot.slane %v14475_v31, 1  ;;  %v17256_v36 = vld [vmem:[#allocation48_spill] sm:$0xff] }
 0x398   : > { %17249 = vst [vmem:[#allocation103_spill] sm:$0xff] %v14525_v48  ;;  %9890 = vrot.lane.b32.xlu1 %v9889_v60, %s10625_s30  ;;  %v9662_v49 = vunpack.i.l.bf16 %v14535_v0  ;;  %v5801_v8 = vpack.c.bf16 %v14459_v61, %v5671_v16  ;;  %v14547_v42 = vpop.f32.mrf.mxu0  ;;  %v14551_v60 = vadd.f32 %v14415_v45, %v14112_v13  ;;  %v5642_v5 = vsel %vm1538_vm4, %v5612_v37, %v9622_v20 }
 0x399   : > { %v8177_v32 = vpop.f32.mrf.mxu1  ;;  %v14557_v52 = vadd.f32 %v14390_v62, %v13967_v53  ;;  %v14561_v30 = vadd.f32 %v14443_v17, %v14396_v28  ;;  %v9666_v61 = vpop.permute.xlu0 %9665  ;;  %6086 = vmatprep.mubr.bf16.mxu0 %v5802_v35  ;;  %v9648_v16 = vunpack.i.h.bf16 %v14427_v40  ;;  %v9647_v13 = vunpack.i.l.bf16 %v14427_v40 }
 0x39a   : > { %9865 = vrot.lane.b32.xlu0 %v9864_v4, %s10627_s15  ;;  %v9658_v45 = vunpack.i.h.bf16 %v14512_v63  ;;  %v4796_v37 = vsel %vm552_vm0, %v9662_v49, 0.0  ;;  %6087 = vmatmul.mubr.bf16.gmra.mxu0 %v5801_v8  ;;  %v14568_v20 = vpop.f32.mrf.mxu0  ;;  %v9638_v11 = vunpack.i.h.bf16 %v14456_v25  ;;  %v9668_v28 = vunpack.i.h.bf16 %v9666_v61  ;;  %v14575_v6 = vpop.permute.xlu1 %9680 }
 0x39b   : > { %17251 = vst [vmem:[#allocation104_spill] sm:$0xff] %v14557_v52  ;;  %v8178_v62 = vpop.f32.mrf.mxu1  ;;  %v17252_v17 = vpack.i.bf16 %v13182_v29, %v14159_v22  ;;  %v9874_v40 = vpack.i.bf16 %v14510_v43, %v14364_v34  ;;  %v9653_v49 = vunpack.i.h.bf16 %v14468_v41  ;;  %v9652_v8 = vunpack.i.l.bf16 %v14468_v41  ;;  %v17255_v41 = vld [vmem:[#allocation44_spill] sm:$0xff]  ;;  %v17272_v52 = vld [vmem:[#allocation55_spill] sm:$0xff] }
 0x39c   : > { %v14579_v35 = vadd.f32 %v8178_v62, %v8177_v32  ;;  %v4889_v10 = vrot.slane %v4796_v37, 1  ;;  %v14583_v50 = vpop.f32.mrf.mxu0  ;;  %v17253_v57 = vrot.slane %v17224_v2, 1  ;;  %v14594_v29 = vadd.f32 %v14445_v58, %v14419_v47 }
 0x39d   : > { %9900 = vrot.lane.b32.xlu1 %v17252_v17, %s10627_s15  ;;  %v14585_v3 = vpop.f32.mrf.mxu1  ;;  %v9657_v32 = vunpack.i.l.bf16 %v14512_v63  ;;  %v9663_v62 = vunpack.i.h.bf16 %v14535_v0  ;;  %v14598_v22 = vpop.permute.xlu0 %9670  ;;  %v5706_v26 = vsel %vm1506_vm3, %v17255_v41, %v9648_v16  ;;  %v5705_v48 = vsel %vm1506_vm3, %v17256_v36, %v9647_v13  ;;  %v17258_v36 = vld [vmem:[#allocation85_spill] sm:$0xff] }
 0x39e   : > { %v14590_v17 = vsel %vm711_vm2, %v4891_v39, %v17253_v57  ;;  %9875 = vrot.lane.b32.xlu0 %v9874_v40, %s10626_s14  ;;  %v14606_v57 = vsel %vm552_vm0, 0.0, %v9658_v45  ;;  %v9667_v39 = vunpack.i.l.bf16 %v9666_v61  ;;  %v14608_v47 = vpop.f32.mrf.mxu0  ;;  %v9637_v63 = vunpack.i.l.bf16 %v14456_v25  ;;  %v14617_v16 = vpop.permute.xlu1 %9685  ;;  %v17259_v61 = vld [vmem:[#allocation31_spill] sm:$0xff] }
 0x39f   : > { %17254 = vst [vmem:[#allocation105_spill] sm:$0xff] %v14590_v17  ;;  %17257 = vst [vmem:[#allocation44_spill] sm:$0xff] %v14606_v57  ;;  %v14610_v58 = vpop.f32.mrf.mxu1  ;;  %v5674_v0 = vsel %vm1570_vm5, %v5642_v5, %v9638_v11  ;;  %v4964_v44 = vrot.slane %v4796_v37, 2  ;;  %v5641_v40 = vsel %vm1538_vm4, %v14491_v24, %v9668_v28  ;;  %v5614_v13 = vsel %vm1506_vm3, %v17258_v36, %v9653_v49 }
 0x3a0   : > { %v14623_v45 = vsel %vm1506_vm3, %v17259_v61, %v9652_v8  ;;  %v14627_v25 = vadd.f32 %v14478_v46, %v14464_v15  ;;  %v17260_v5 = vrot.slane %v17209_v1, 1  ;;  %v14634_v24 = vpop.f32.mrf.mxu0  ;;  %v14637_v11 = vsel %vm1538_vm4, %v5614_v13, %v9657_v32 }
 0x3a1   : > { %9910 = vrot.lane.b32.xlu1 %v9864_v4, %s10626_s14  ;;  %v8546_v4 = vpop.f32.mrf.mxu1  ;;  %v9676_v28 = vpop.permute.xlu0 %9675  ;;  %v17262_v49 = vpack.i.bf16 %v14279_v19, %v17209_v1  ;;  %v9919_v15 = vpack.i.bf16 %v14606_v57, %v14510_v43  ;;  %v5737_v46 = vsel %vm1538_vm4, %v5705_v48, %v9663_v62  ;;  %v5738_v36 = vsel %vm1538_vm4, %v5706_v26, %v9667_v39 }
 0x3a2   : > { %v14632_v37 = vsel %vm711_vm2, %v17260_v5, %v4889_v10  ;;  %v14647_v10 = vadd.f32 %v8546_v4, %v14202_v27  ;;  %v9678_v8 = vunpack.i.h.bf16 %v9676_v28  ;;  %v9677_v41 = vunpack.i.l.bf16 %v9676_v28  ;;  %v14651_v13 = vpop.f32.mrf.mxu0  ;;  %v9696_v5 = vpop.permute.xlu1 %9695 }
 0x3a3   : > { %17261 = vst [vmem:[#allocation48_spill] sm:$0xff] %v14632_v37  ;;  %9885 = vrot.lane.b32.xlu0 %v17262_v49, %s10625_s30  ;;  %v5673_v32 = vsel %vm1570_vm5, %v5641_v40, %v9637_v63  ;;  %v4058_v61 = vpop.f32.mrf.mxu1  ;;  %v9894_v49 = vpack.i.bf16 %v14632_v37, %v14436_v55  ;;  %v17263_v27 = vrot.slane %v17209_v1, 2  ;;  %v9683_v39 = vunpack.i.h.bf16 %v14575_v6  ;;  %v17269_v37 = vld [vmem:[#allocation52_spill] sm:$0xff] }
 0x3a4   : > { %v7783_v48 = vmul.f32 -1.442695, %v14647_v10  ;;  %v14663_v26 = vadd.f32 %v4058_v61, %v14178_v38  ;;  %v9682_v63 = vunpack.i.l.bf16 %v14575_v6  ;;  %v5769_v40 = vsel %vm1570_vm5, %v5737_v46, %v9677_v41  ;;  %v14669_v28 = vpop.f32.mrf.mxu0 }
 0x3a5   : > { %9920 = vrot.lane.b32.xlu1 %v9919_v15, %s10625_s30  ;;  %v14660_v62 = vsel %vm789_vm1, %v17263_v27, %v4964_v44  ;;  %v5770_v4 = vsel %vm1570_vm5, %v5738_v36, %v9678_v8  ;;  %v8547_v15 = vpop.f32.mrf.mxu1  ;;  %v9691_v43 = vpop.permute.xlu0 %9690  ;;  %v9698_v61 = vunpack.i.h.bf16 %v9696_v5  ;;  %v5804_v6 = vpack.c.bf16 %v5674_v0, %v5673_v32  ;;  %v17268_v32 = vld [vmem:[#allocation56_spill] sm:$0xff] }
 0x3a6   : > { %17264 = vst [vmem:[#allocation85_spill] sm:$0xff] %v14660_v62  ;;  %v5805_v19 = vpack.c.bf16 %v5770_v4, %v5769_v40  ;;  %10225 = vpow2.f32 %v7783_v48  ;;  %v7781_v44 = vmul.f32 -1.442695, %v14663_v26  ;;  %v14674_v38 = vadd.f32 %v8547_v15, %v14215_v51  ;;  %v14678_v8 = vpop.f32.mrf.mxu0  ;;  %v14684_v48 = vpop.permute.xlu1 %9700  ;;  %v17266_v4 = vld [vmem:[#allocation90_spill] sm:$0xff] }
 0x3a7   : > { %9895 = vrot.lane.b32.xlu0 %v9894_v49, %s10627_s15  ;;  %v9692_v27 = vunpack.i.l.bf16 %v9691_v43  ;;  %v9904_v46 = vpack.i.bf16 %v14660_v62, %v14485_v7  ;;  %v4061_v41 = vpop.f32.mrf.mxu1  ;;  %v9697_v36 = vunpack.i.l.bf16 %v9696_v5  ;;  %v17265_v40 = vpack.i.bf16 %v17209_v1, %v14265_v12 }
 0x3a8   : > { %6094 = vmatprep.mubr.bf16.mxu0 %v5805_v19  ;;  %10227 = vpow2.f32 %v7781_v44  ;;  %v7784_v51 = vmul.f32 -1.442695, %v14674_v38  ;;  %v14688_v0 = vadd.f32 %v4061_v41, %v17266_v4  ;;  %v5708_v15 = vsel %vm1506_vm3, %v17268_v32, %v9683_v39  ;;  %v14695_v1 = vpop.f32.mrf.mxu0 }
 0x3a9   : > { %9930 = vrot.lane.b32.xlu1 %v17265_v40, %s10627_s15  ;;  %v5707_v5 = vsel %vm1506_vm3, %v17269_v37, %v9682_v63  ;;  %v4797_v55 = vsel %vm552_vm0, %v9692_v27, 0.0  ;;  %6095 = vmatmul.mubr.bf16.gmra.mxu0 %v5804_v6  ;;  %v8550_v19 = vpop.f32.mrf.mxu1  ;;  %v9693_v40 = vunpack.i.h.bf16 %v9691_v43  ;;  %v14697_v44 = vpop.permute.xlu0 %9710  ;;  %v9673_v39 = vunpack.i.h.bf16 %v14598_v22  ;;  %v17270_v63 = vld [vmem:[#allocation57_spill] sm:$0xff] }
 0x3aa   : > { %17267 = vst [vmem:[#allocation31_spill] sm:$0xff] %v14688_v0  ;;  %v4894_v12 = vrot.slane %v4797_v55, 1  ;;  %10229 = vpow2.f32 %v7784_v51  ;;  %v7782_v41 = vmul.f32 -1.442695, %v14688_v0  ;;  %v9672_v4 = vunpack.i.l.bf16 %v14598_v22  ;;  %v14708_v6 = vpop.f32.mrf.mxu0  ;;  %v9706_v32 = vpop.permute.xlu1 %9705 }
 0x3ab   : > { %9905 = vrot.lane.b32.xlu0 %v9904_v46, %s10626_s14  ;;  %v5643_v37 = vsel %vm1538_vm4, %v14623_v45, %v9698_v61  ;;  %v14706_v27 = vadd.f32 %v8550_v19, %v17270_v63  ;;  %v4074_v43 = vpop.f32.mrf.mxu1  ;;  %v17271_v46 = vld [vmem:[#allocation35_spill] sm:$0xff]  ;;  %v5740_v22 = vsel %vm1538_vm4, %v5708_v15, %v9697_v36  ;;  %v4969_v9 = vrot.slane %v4797_v55, 2 }
 0x3ac   : > { %10231 = vpow2.f32 %v7782_v41  ;;  %v9949_v51 = vpack.i.bf16 %v17271_v46, %v14660_v62  ;;  %v14714_v21 = vadd.f32 %v4074_v43, %v17272_v52  ;;  %v9708_v45 = vunpack.i.h.bf16 %v9706_v32  ;;  %v14722_v0 = vpop.f32.mrf.mxu0 }
 0x3ad   : > { %9940 = vrot.lane.b32.xlu1 %v9894_v49, %s10626_s14  ;;  %v9707_v61 = vunpack.i.l.bf16 %v9706_v32  ;;  %v17274_v19 = vrot.slane %v17224_v2, 1  ;;  %v8551_v49 = vpop.f32.mrf.mxu1  ;;  %v17276_v41 = vpack.i.bf16 %v14364_v34, %v17224_v2  ;;  %v7787_v52 = vmul.f32 -1.442695, %v14706_v27 }
 0x3ae   : > { %17273 = vst [vmem:[#allocation90_spill] sm:$0xff] %v14714_v21  ;;  %v7785_v36 = vmul.f32 -1.442695, %v14714_v21  ;;  %v5739_v55 = vsel %vm1538_vm4, %v5707_v5, %v9693_v40  ;;  %v5675_v15 = vsel %vm1570_vm5, %v5643_v37, %v9672_v4  ;;  %v5772_v32 = vsel %vm1570_vm5, %v5740_v22, %v9708_v45  ;;  %v14743_v62 = vpop.f32.mrf.mxu0  ;;  %v14745_v5 = vpop.permute.xlu0 %9725  ;;  %v17280_v4 = vld [vmem:[#allocation33_spill] sm:$0xff] }
 0x3af   : > { %v14720_v63 = vsel %vm711_vm2, %v17274_v19, %v4894_v12  ;;  %9915 = vrot.lane.b32.xlu0 %v17276_v41, %s10625_s30  ;;  %v5676_v12 = vsel %vm1570_vm5, %v14637_v11, %v9673_v39  ;;  %v5771_v43 = vsel %vm1570_vm5, %v5739_v55, %v9707_v61  ;;  %v17277_v19 = vrot.slane %v17224_v2, 2  ;;  %v4077_v21 = vpop.f32.mrf.mxu1  ;;  %v14748_v11 = vpop.permute.xlu1 %9715 }
 0x3b0   : > { %17275 = vst [vmem:[#allocation56_spill] sm:$0xff] %v14720_v63  ;;  %v17278_v34 = vrot.slane %v14475_v31, 2  ;;  %10233 = vpow2.f32 %v7787_v52  ;;  %17279 = vst [vmem:[#allocation52_spill] sm:$0xff] %v14748_v11  ;;  %v9924_v40 = vpack.i.bf16 %v14720_v63, %v14590_v17  ;;  %v5808_v39 = vpack.c.bf16 %v5772_v32, %v5771_v43  ;;  %v14764_v61 = vpop.f32.mrf.mxu0 }
 0x3b1   : > { %9950 = vrot.lane.b32.xlu1 %v9949_v51, %s10625_s30  ;;  %v14753_v37 = vadd.f32 %v8551_v49, %v17280_v4  ;;  %10235 = vpow2.f32 %v7785_v36  ;;  %v5807_v22 = vpack.c.bf16 %v5676_v12, %v5675_v15  ;;  %v17282_v45 = vmov %v17277_v19  ;;  %v8554_v52 = vpop.f32.mrf.mxu1  ;;  %v17286_v36 = vld [vmem:[#allocation95_spill] sm:$0xff] }
 0x3b2   : > { %v14741_v41 = vsel %vm789_vm1, %v17278_v34, %v17277_v19  ;;  %v14757_v34 = vadd.f32 %v14561_v30, %v13967_v53  ;;  %v14762_v51 = vsel %vm789_vm1, %v17282_v45, %v4969_v9  ;;  %6102 = vmatprep.mubr.bf16.mxu0 %v5808_v39  ;;  %v9959_v49 = vpack.i.bf16 %v17224_v2, %v14475_v31  ;;  %v17284_v53 = vld [vmem:[#allocation66_spill] sm:$0xff]  ;;  %v14782_v32 = vpop.f32.mrf.mxu0  ;;  %v17288_v39 = vld [vmem:[#allocation23_spill] sm:$0xff] }
 0x3b3   : > { %17283 = vst [vmem:[#allocation35_spill] sm:$0xff] %v14762_v51  ;;  %9925 = vrot.lane.b32.xlu0 %v9924_v40, %s10627_s15  ;;  %v7788_v55 = vmul.f32 -1.442695, %v14753_v37  ;;  %v14771_v30 = vadd.f32 %v4077_v21, %v17284_v53  ;;  %v14775_v15 = vadd.f32 %v14594_v29, %v17286_v36  ;;  %v10226_v9 = vpop.eup %10225  ;;  %v14779_v12 = vadd.f32 %v14527_v33, %v14505_v23  ;;  %v4090_v19 = vpop.f32.mrf.mxu1  ;;  %v17289_v21 = vld [vmem:[#allocation96_spill] sm:$0xff] }
 0x3b4   : > { %17281 = vst [vmem:[#allocation57_spill] sm:$0xff] %v14757_v34  ;;  %v9712_v43 = vunpack.i.l.bf16 %v14697_v44  ;;  %6103 = vmatmul.mubr.bf16.gmra.mxu0 %v5807_v22  ;;  %17287 = vst [vmem:[#allocation33_spill] sm:$0xff] %v14782_v32  ;;  %v14788_v45 = vadd.f32 %v14627_v25, %v17289_v21  ;;  %v4283_v29 = vadd.f32 1.0, %v10226_v9  ;;  %v9721_v53 = vpop.permute.xlu1 %9720  ;;  %v9934_v33 = vpack.i.bf16 %v14762_v51, %v14741_v41  ;;  %v14799_v25 = vpop.f32.mrf.mxu0  ;;  %v17290_v34 = vld [vmem:[#allocation59_spill] sm:$0xff] }
 0x3b5   : > { %17285 = vst [vmem:[#allocation55_spill] sm:$0xff] %v14771_v30  ;;  %9960 = vrot.lane.b32.xlu1 %v9959_v49, %s10627_s15  ;;  %10237 = vpow2.f32 %v7788_v55  ;;  %v7786_v23 = vmul.f32 -1.442695, %v14771_v30  ;;  %v10228_v22 = vpop.eup %10227  ;;  %v9688_v2 = vunpack.i.h.bf16 %v14617_v16  ;;  %v9722_v4 = vunpack.i.l.bf16 %v9721_v53  ;;  %v8555_v9 = vpop.f32.mrf.mxu1 }
 0x3b6   : > { %v14797_v31 = vadd.f32 %v8554_v52, %v14530_v59  ;;  %10239 = vrcp.f32 %v4283_v29  ;;  %v4281_v49 = vadd.f32 1.0, %v10228_v22  ;;  %v9736_v55 = vpop.permute.xlu0 %9735  ;;  %v14803_v21 = vadd.f32 %v4090_v19, %v14410_v18  ;;  %v14807_v59 = vpop.f32.mrf.mxu0 }
 0x3b7   : > { %9935 = vrot.lane.b32.xlu0 %v9934_v33, %s10626_s14  ;;  %v10230_v63 = vpop.eup %10229  ;;  %v9687_v36 = vunpack.i.l.bf16 %v14617_v16  ;;  %v9713_v17 = vunpack.i.h.bf16 %v14697_v44  ;;  %v9723_v11 = vunpack.i.h.bf16 %v9721_v53  ;;  %10241 = vpow2.f32 %v7786_v23  ;;  %v4093_v52 = vpop.f32.mrf.mxu1 }
 0x3b8   : > { %v5709_v29 = vsel %vm1506_vm3, %v17290_v34, %v9712_v43  ;;  %v4284_v22 = vadd.f32 1.0, %v10230_v63  ;;  %v9727_v30 = vunpack.i.l.bf16 %v14745_v5  ;;  %v14813_v33 = vsel %vm552_vm0, %v9722_v4, 0.0  ;;  %v14816_v18 = vpop.permute.xlu1 %9730  ;;  %v14819_v23 = vpop.f32.mrf.mxu0  ;;  %v17293_v4 = vld [vmem:[#allocation54_spill] sm:$0xff] }
 0x3b9   : > { %9970 = vrot.lane.b32.xlu1 %v9924_v40, %s10626_s14  ;;  %17291 = vst [vmem:[#allocation66_spill] sm:$0xff] %v14816_v18  ;;  %v10232_v16 = vpop.eup %10231  ;;  %10243 = vrcp.f32 %v4281_v49  ;;  %v9738_v44 = vunpack.i.h.bf16 %v9736_v55  ;;  %v9737_v19 = vunpack.i.l.bf16 %v9736_v55  ;;  %v7791_v53 = vmul.f32 -1.442695, %v14797_v31  ;;  %v14821_v32 = vpop.f32.mrf.mxu1 }
 0x3ba   : > { %10245 = vrcp.f32 %v4284_v22  ;;  %v4282_v63 = vadd.f32 1.0, %v10232_v16  ;;  %v17292_v34 = vpack.i.bf16 %v14485_v7, %v17250_v56  ;;  %v7789_v40 = vmul.f32 -1.442695, %v14803_v21  ;;  %v14834_v22 = vpop.f32.mrf.mxu0 }
 0x3bb   : > { %v9979_v43 = vpack.i.bf16 %v13661_v14, %v14762_v51  ;;  %v5710_v49 = vsel %vm1506_vm3, %v17293_v4, %v9713_v17  ;;  %v4899_v55 = vrot.slane %v14813_v33, 1  ;;  %10247 = vpow2.f32 %v7791_v53  ;;  %v14836_v16 = vpop.f32.mrf.mxu1 }
 0x3bc   : > { %9945 = vrot.lane.b32.xlu0 %v17292_v34, %s10625_s30  ;;  %v5741_v18 = vsel %vm1538_vm4, %v5709_v29, %v9723_v11  ;;  %10249 = vrcp.f32 %v4282_v63  ;;  %v5742_v34 = vsel %vm1538_vm4, %v5710_v49, %v9727_v30  ;;  %v14842_v14 = vadd.f32 %v8555_v9, %v14540_v54  ;;  %v14844_v17 = vpop.permute.xlu1 %9745  ;;  %v14852_v63 = vpop.f32.mrf.mxu0  ;;  %v14859_v54 = vld [vmem:[%s16561_s4] ss:$0 sm:$0xff] }
 0x3bd   : > { %9980 = vrot.lane.b32.xlu1 %v9979_v43, %s10625_s30  ;;  %v5773_v7 = vsel %vm1570_vm5, %v5741_v18, %v9737_v19  ;;  %17294 = vst [vmem:[#allocation95_spill] sm:$0xff] %v14844_v17  ;;  %v10234_v4 = vpop.eup %10233  ;;  %v4971_v53 = vrot.slane %v14606_v57, 2  ;;  %v14849_v11 = vadd.f32 %v14568_v20, %v14547_v42  ;;  %10251 = vpow2.f32 %v7789_v40  ;;  %v14854_v30 = vpop.f32.mrf.mxu1  ;;  %17295 = vst [vmem:[#allocation23_spill] sm:$0xff] %v14859_v54  ;;  %v17297_v40 = vld [vmem:[#allocation89_spill] sm:$0xff] }
 0x3be   : > { %v5774_v29 = vsel %vm1570_vm5, %v5742_v34, %v9738_v44  ;;  %v10236_v18 = vpop.eup %10235  ;;  %v14863_v9 = vadd.f32 %v14859_v54, %v14579_v35  ;;  %v4287_v19 = vadd.f32 1.0, %v10234_v4  ;;  %v14865_v42 = vpop.permute.xlu0 %9740  ;;  %v7792_v44 = vmul.f32 -1.442695, %v14842_v14 }
 0x3bf   : > { %v5811_v20 = vpack.c.bf16 %v5774_v29, %v5773_v7  ;;  %v14870_v43 = vsel %vm1506_vm3, %v17297_v40, %v9688_v2  ;;  %v14874_v49 = vadd.f32 %v14608_v47, %v14583_v50  ;;  %v14878_v34 = vadd.f32 %v14610_v58, %v14585_v3  ;;  %v14880_v51 = vpop.f32.mrf.mxu0  ;;  %v14882_v4 = vpop.f32.mrf.mxu1  ;;  %v17299_v7 = vld [vmem:[#allocation26_spill] sm:$0xff] }
 0x3c0   : > { %17296 = vst [vmem:[#allocation96_spill] sm:$0xff] %v14863_v9  ;;  %v4285_v35 = vadd.f32 1.0, %v10236_v18  ;;  %v5615_v29 = vsel %vm1506_vm3, %v17299_v7, %v9687_v36  ;;  %v9728_v17 = vunpack.i.h.bf16 %v14745_v5  ;;  %v17300_v2 = vrot.slane %v17250_v56, 1 }
 0x3c1   : > { %17298 = vst [vmem:[#allocation59_spill] sm:$0xff] %v14878_v34  ;;  %6110 = vmatprep.mubr.bf16.mxu0 %v5811_v20  ;;  %v17301_v50 = vrot.slane %v14606_v57, 1  ;;  %10253 = vrcp.f32 %v4287_v19  ;;  %v14902_v5 = vadd.f32 %v4093_v52, %v14551_v60  ;;  %v9989_v20 = vpack.i.bf16 %v17250_v56, %v14606_v57  ;;  %v14906_v40 = vpop.f32.mrf.mxu0  ;;  %v14908_v7 = vpop.f32.mrf.mxu1 }
 0x3c2   : > { %v17303_v3 = vmov %v17300_v2  ;;  %v10238_v18 = vpop.eup %10237  ;;  %10255 = vpow2.f32 %v7792_v44  ;;  %v14917_v60 = vadd.f32 %v14651_v13, %v14634_v24  ;;  %v14921_v52 = vadd.f32 %v14678_v8, %v14669_v28  ;;  %v14932_v13 = vpop.permute.xlu0 %9755 }
 0x3c3   : > { %v14892_v47 = vsel %vm711_vm2, %v17301_v50, %v17300_v2  ;;  %v14897_v58 = vsel %vm711_vm2, %v17303_v3, %v4899_v55  ;;  %v4288_v2 = vadd.f32 1.0, %v10238_v18  ;;  %v4974_v50 = vrot.slane %v14813_v33, 2  ;;  %v17305_v55 = vld [vmem:[#allocation97_spill] sm:$0xff]  ;;  %v14913_v3 = vpop.permute.xlu1 %9750  ;;  %9990 = vrot.lane.b32.xlu1 %v9989_v20, %s10627_s15  ;;  %v14926_v44 = vpop.f32.mrf.mxu0 }
 0x3c4   : > { %17302 = vst [vmem:[#allocation54_spill] sm:$0xff] %v14892_v47  ;;  %17304 = vst [vmem:[#allocation89_spill] sm:$0xff] %v14897_v58  ;;  %v9954_v36 = vpack.i.bf16 %v14897_v58, %v14892_v47  ;;  %v3954_v19 = vadd.f32 %v14779_v12, %v17305_v55  ;;  %v10240_v58 = vpop.eup %10239  ;;  %10257 = vrcp.f32 %v4285_v35  ;;  %v7790_v33 = vmul.f32 -1.442695, %v14902_v5  ;;  %v14928_v12 = vpop.f32.mrf.mxu1 }
 0x3c5   : > { %v10242_v18 = vpop.eup %10241  ;;  %v9703_v55 = vunpack.i.h.bf16 %v14684_v48  ;;  %v9702_v24 = vunpack.i.l.bf16 %v14684_v48  ;;  %10259 = vrcp.f32 %v4288_v2  ;;  %v14939_v8 = vadd.f32 %v14708_v6, %v14695_v1  ;;  %v14942_v57 = vpop.f32.mrf.mxu0 }
 0x3c6   : > { %9955 = vrot.lane.b32.xlu0 %v9954_v36, %s10627_s15  ;;  %v14935_v28 = vadd.f32 %v14821_v32, %v3954_v19  ;;  %v4286_v35 = vadd.f32 1.0, %v10242_v18  ;;  %10261 = vpow2.f32 %v7790_v33  ;;  %v9752_v20 = vunpack.i.l.bf16 %v14913_v3  ;;  %v14944_v47 = vpop.f32.mrf.mxu1  ;;  %v10244_v34 = vpop.eup %10243 }
 0x3c7   : > { %v5645_v48 = vsel %vm1538_vm4, %v5615_v29, %v9728_v17  ;;  %v17307_v32 = vrot.slane %v17250_v56, 2  ;;  %v10246_v33 = vpop.eup %10245  ;;  %v4379_v18 = vmul.f32 %v10240_v58, %v14647_v10  ;;  %v14963_v17 = vadd.f32 %v14836_v16, %v14775_v15  ;;  %v14965_v29 = vpop.f32.mrf.mxu0  ;;  %10000 = vrot.lane.b32.xlu1 %v9954_v36, %s10626_s14 }
 0x3c8   : > { %17306 = vst [vmem:[#allocation26_spill] sm:$0xff] %v14935_v28  ;;  %v7795_v2 = vmul.f32 -1.442695, %v14935_v28  ;;  %10263 = vrcp.f32 %v4286_v35  ;;  %v4380_v56 = vmul.f32 %v10246_v33, %v14674_v38  ;;  %v14974_v58 = vadd.f32 %v14743_v62, %v14722_v0  ;;  %v9766_v62 = vpop.permute.xlu0 %9765 }
 0x3c9   : > { %v14951_v19 = vsel %vm789_vm1, %v4971_v53, %v17307_v32  ;;  %v17308_v1 = vmov %v17307_v32  ;;  %17309 = vst [vmem:[#allocation97_spill] sm:$0xff] %v14963_v17  ;;  %v14967_v53 = vpop.f32.mrf.mxu1  ;;  %v10248_v32 = vpop.eup %10247  ;;  %v5646_v15 = vsel %vm1538_vm4, %v14870_v43, %v9752_v20  ;;  %v7793_v16 = vmul.f32 -1.442695, %v14963_v17 }
 0x3ca   : > { %v14956_v6 = vsel %vm789_vm1, %v17308_v1, %v4974_v50  ;;  %10265 = vpow2.f32 %v7795_v2  ;;  %v17310_v50 = vld [vmem:[#allocation58_spill] sm:$0xff]  ;;  %v10250_v10 = vpop.eup %10249  ;;  %v4291_v35 = vadd.f32 1.0, %v10248_v32  ;;  %v14980_v28 = vpop.f32.mrf.mxu0  ;;  %v4410_v33 = vpack.c.bf16 %v4380_v56, %v4379_v18 }
 0x3cb   : > { %v9964_v54 = vpack.i.bf16 %v14956_v6, %v14951_v19  ;;  %v3957_v1 = vadd.f32 %v14849_v11, %v17310_v50  ;;  %v14982_v38 = vpop.f32.mrf.mxu1  ;;  %v10252_v2 = vpop.eup %10251  ;;  %v4377_v11 = vmul.f32 %v10244_v34, %v14663_v26  ;;  %v17311_v50 = vld [vmem:[#allocation31_spill] sm:$0xff]  ;;  %v9742_v43 = vunpack.i.l.bf16 %v14865_v42  ;;  %5199 = vrot.lane.b32.xlu1 %v14956_v6, %s10625_s30 }
 0x3cc   : > { %v4378_v9 = vmul.f32 %v10250_v10, %v17311_v50  ;;  %v9757_v20 = vunpack.i.l.bf16 %v14932_v13  ;;  %v9753_v32 = vunpack.i.h.bf16 %v14913_v3  ;;  %v14994_v17 = vpop.f32.mrf.mxu0  ;;  %v4289_v34 = vadd.f32 1.0, %v10252_v2  ;;  %v17313_v2 = vld [vmem:[#allocation68_spill] sm:$0xff] }
 0x3cd   : > { %9965 = vrot.lane.b32.xlu0 %v9964_v54, %s10626_s14  ;;  %v14988_v0 = vadd.f32 %v14854_v30, %v3957_v1  ;;  %v9743_v54 = vunpack.i.h.bf16 %v14865_v42  ;;  %v14996_v26 = vpop.f32.mrf.mxu1  ;;  %10267 = vpow2.f32 %v7793_v16  ;;  %v17312_v30 = vpack.i.bf16 %v14741_v41, %v17288_v39 }
 0x3ce   : > { %v4409_v56 = vpack.c.bf16 %v4378_v9, %v4377_v11  ;;  %10269 = vrcp.f32 %v4291_v35  ;;  %v15005_v42 = vadd.f32 %v14882_v4, %v14788_v45  ;;  %v5677_v3 = vsel %vm1570_vm5, %v5645_v48, %v9702_v24  ;;  %v15009_v1 = vpop.f32.mrf.mxu0  ;;  %v10254_v10 = vpop.eup %10253  ;;  %v17314_v4 = vld [vmem:[#allocation60_spill] sm:$0xff]  ;;  %v17315_v24 = vld [vmem:[#allocation65_spill] sm:$0xff] }
 0x3cf   : > { %v7796_v36 = vmul.f32 -1.442695, %v14988_v0  ;;  %v5678_v18 = vsel %vm1570_vm5, %v5646_v15, %v9703_v55  ;;  %v15011_v9 = vpop.f32.mrf.mxu1  ;;  %v9768_v16 = vunpack.i.h.bf16 %v9766_v62  ;;  %v3970_v11 = vadd.f32 %v14921_v52, %v17313_v2  ;;  %v10256_v45 = vpop.eup %10255  ;;  %v10549_v2 = vld [vmem:[%s16564_s7 + $0x70] sm:$0xff]  }
 0x3d0   : > { %v5810_v35 = vpack.c.bf16 %v5678_v18, %v5677_v3  ;;  %8584 = vmatprep.mubr.msk.bf16.mxu1 %vm1538_vm4, %v4409_v56  ;;  %v5712_v55 = vsel %vm1506_vm3, %v17314_v4, %v9743_v54  ;;  %v5711_v48 = vsel %vm1506_vm3, %v17315_v24, %v9742_v43  ;;  %v9767_v15 = vunpack.i.l.bf16 %v9766_v62  ;;  %v10548_v62 = vld [vmem:[%s16564_s7 + $0x38] sm:$0xff]  }
 0x3d1   : > { %9975 = vrot.lane.b32.xlu0 %v17312_v30, %s10625_s30  ;;  %10271 = vpow2.f32 %v7796_v36  ;;  %v7794_v50 = vmul.f32 -1.442695, %v15005_v42  ;;  %v15023_v36 = vpop.f32.mrf.mxu0  ;;  %v15025_v30 = vpop.f32.mrf.mxu1  ;;  %8585 = vmatmul.mubr.msk.bf16.vlgmr.msra.gmra.mxu1 %vm1538_vm4, %v4410_v33  ;;  %v4292_v52 = vadd.f32 1.0, %v10256_v45  ;;  %v15029_v56 = vadd.f32 %v14908_v7, %v3970_v11 }
 0x3d2   : > { %v10258_v3 = vpop.eup %10257  ;;  %10273 = vrcp.f32 %v4289_v34  ;;  %6111 = vmatmul.mubr.bf16.gmra.mxu0 %v5810_v35  ;;  %v5743_v54 = vsel %vm1538_vm4, %v5711_v48, %v9753_v32  ;;  %8730 = vmatpush3.bf16.msra.mxu1 %v10548_v62  ;;  %v15036_v18 = vmul.f32 %v10254_v10, %v14706_v27  ;;  %v5744_v33 = vsel %vm1538_vm4, %v5712_v55, %v9757_v20  ;;  %v17316_v35 = vld [vmem:[#allocation78_spill] sm:$0xff]  ;;  %v15050_v10 = vpop.permute.xlu1 %9760 }
 0x3d3   : > { %v10260_v43 = vpop.eup %10259  ;;  %10275 = vpow2.f32 %v7794_v50  ;;  %v5775_v34 = vsel %vm1570_vm5, %v5743_v54, %v9767_v15  ;;  %v15042_v7 = vpop.f32.mrf.mxu0  ;;  %8723 = vmatprep.subr.bf16.mxu1 %v10549_v2  ;;  %v7799_v20 = vmul.f32 -1.442695, %v15029_v56  ;;  %v5776_v45 = vsel %vm1570_vm5, %v5744_v33, %v9768_v16  ;;  %v17318_v15 = vld [vmem:[#allocation25_spill] sm:$0xff]  ;;  %v17320_v16 = vld [vmem:[#allocation91_spill] sm:$0xff]  ;;  %v10550_v33 = vld [vmem:[%s16564_s7 + $0x30] sm:$0xff]  }
 0x3d4   : > { %v15044_v32 = vpop.f32.mrf.mxu1  ;;  %v10262_v11 = vpop.eup %10261  ;;  %v4384_v27 = vmul.f32 %v10260_v43, %v14753_v37  ;;  %10277 = vrcp.f32 %v4292_v52  ;;  %v17317_v4 = vpack.i.bf16 %v17288_v39, %v17271_v46  ;;  %v8267_v55 = vadd.f32 %v14807_v59, %v14799_v25  ;;  %v17319_v54 = vld [vmem:[#allocation33_spill] sm:$0xff]  ;;  %v17321_v59 = vld [vmem:[#allocation90_spill] sm:$0xff] }
 0x3d5   : > { %9985 = vrot.lane.b32.xlu0 %v17316_v35, %s10627_s15  ;;  %v4290_v24 = vadd.f32 1.0, %v10262_v11  ;;  %v5814_v48 = vpack.c.bf16 %v5776_v45, %v5775_v34  ;;  %v3962_v37 = vadd.f32 %v14874_v49, %v17318_v15  ;;  %v10264_v50 = vpop.eup %10263  ;;  %v8264_v62 = vadd.f32 %v17319_v54, %v14764_v61  ;;  %v17322_v35 = vld [vmem:[#allocation55_spill] sm:$0xff]  ;;  %v17324_v2 = vld [vmem:[#allocation77_spill] sm:$0xff]  ;;  %v17328_v54 = vld [vmem:[#allocation32_spill] sm:$0xff] }
 0x3d6   : > { %10015 = vrot.lane.b32.xlu1 %v17317_v4, %s10627_s15  ;;  %v4412_v52 = vpack.c.bf16 %v4384_v27, %v15036_v18  ;;  %10279 = vpow2.f32 %v7799_v20  ;;  %v3973_v43 = vadd.f32 %v14939_v8, %v17320_v16  ;;  %8731 = vmatpush3.bf16.msra.mxu1 %v10550_v33  ;;  %v4381_v34 = vmul.f32 %v10258_v3, %v17321_v59  ;;  %v17323_v61 = vld [vmem:[#allocation39_spill] sm:$0xff]  ;;  %v15079_v8 = vpop.f32.mrf.mxu0  ;;  %v15081_v27 = vpop.f32.mrf.mxu1 }
 0x3d7   : > { %v10266_v25 = vpop.eup %10265  ;;  %v4382_v49 = vmul.f32 %v10264_v50, %v17322_v35  ;;  %10281 = vrcp.f32 %v4290_v24  ;;  %6118 = vmatprep.mubr.bf16.mxu0 %v5814_v48  ;;  %v15073_v18 = vadd.f32 %v14928_v12, %v3962_v37  ;;  %v17325_v11 = vpack.i.bf16 %v17323_v61, %v17324_v2  ;;  %v17326_v4 = vld [vmem:[#allocation51_spill] sm:$0xff]  ;;  %v17327_v37 = vld [vmem:[#allocation17_spill] sm:$0xff] }
 0x3d8   : > { %v4295_v20 = vadd.f32 1.0, %v10266_v25  ;;  %v8270_v3 = vadd.f32 %v14834_v22, %v14819_v23  ;;  %v15086_v45 = vadd.f32 %v14944_v47, %v3973_v43  ;;  %v3965_v12 = vadd.f32 %v14917_v60, %v17326_v4  ;;  %v10551_v24 = vld [vmem:[%s16564_s7 + $0x68] sm:$0xff]   ;;  %v15099_v22 = vpop.permute.xlu1 %9775  ;;  %v8571_v25 = vpop.f32.mrf.mxu1 }
 0x3d9   : > { %9995 = vrot.lane.b32.xlu0 %v17325_v11, %s10626_s14  ;;  %8724 = vmatprep.subr.bf16.mxu1 %v10551_v24  ;;  %v4411_v48 = vpack.c.bf16 %v4382_v49, %v4381_v34  ;;  %v7797_v15 = vmul.f32 -1.442695, %v15073_v18  ;;  %v3986_v50 = vadd.f32 %v8267_v55, %v17327_v37  ;;  %v10004_v16 = vpack.i.bf16 %v14951_v19, %v17328_v54  ;;  %v10552_v55 = vld [vmem:[%s16564_s7 + $0x28] sm:$0xff]   ;;  %s7936_s14 = sld [smem:[#allocation5 + $0x1]] }
 0x3da   : > { %v8273_v23 = vadd.f32 %v14880_v51, %v14852_v63  ;;  %v15103_v47 = vadd.f32 %v14926_v44, %v14906_v40  ;;  %v7800_v60 = vmul.f32 -1.442695, %v15086_v45  ;;  %v15107_v43 = vadd.f32 %v14967_v53, %v3965_v12  ;;  %8732 = vmatpush3.bf16.msra.mxu1 %v10552_v55  ;;  %v10268_v33 = vpop.eup %10267  ;;  %v17329_v40 = vld [vmem:[#allocation67_spill] sm:$0xff]  ;;  %v8289_v53 = vpop.f32.mrf.mxu0 }
 0x3db   : > { %10283 = vpow2.f32 %v7797_v15  ;;  %v8279_v51 = vadd.f32 %v14965_v29, %v14942_v57  ;;  %v15115_v63 = vadd.f32 %v14982_v38, %v3986_v50  ;;  %v3978_v44 = vadd.f32 %v14974_v58, %v17329_v40  ;;  %8588 = vmatprep.mubr.msk.bf16.mxu1 %vm1538_vm4, %v4411_v48  ;;  %v10270_v59 = vpop.eup %10269  ;;  %v17330_v49 = vld [vmem:[#allocation99_spill] sm:$0xff]  ;;  %v10553_v57 = vld [vmem:[%s16564_s7 + $0x60] sm:$0xff]   ;;  %v4157_v54 = vpop.f32.mrf.mxu1 }
 0x3dc   : > { %v4293_v34 = vadd.f32 1.0, %v10268_v33  ;;  %10285 = vpow2.f32 %v7800_v60  ;;  %v7798_v35 = vmul.f32 -1.442695, %v15107_v43  ;;  %v3989_v11 = vadd.f32 %v8270_v3, %v17330_v49  ;;  %8589 = vmatmul.mubr.msk.bf16.gmra.mxu1 %vm1538_vm4, %v4412_v52  ;;  %8725 = vmatprep.subr.bf16.mxu1 %v10553_v57  ;;  %v17331_v52 = vld [vmem:[#allocation50_spill] sm:$0xff]  ;;  %v15154_v55 = vpop.permute.xlu1 %9785  ;;  %v17337_v49 = vld [vmem:[#allocation57_spill] sm:$0xff]  ;;  %v17354_v61 = vld [vmem:[#allocation75_spill] sm:$0xff] }
 0x3dd   : > { %10005 = vrot.lane.b32.xlu0 %v10004_v16, %s10625_s30  ;;  %10287 = vrcp.f32 %v4295_v20  ;;  %v7803_v58 = vmul.f32 -1.442695, %v15115_v63  ;;  %v8282_v38 = vadd.f32 %v14994_v17, %v14980_v28  ;;  %v15131_v4 = vadd.f32 %v14996_v26, %v3978_v44  ;;  %v10554_v48 = vld [vmem:[%s16564_s7 + $0x20] sm:$0xff]   ;;  %v17333_v26 = vld [vmem:[#allocation93_spill] sm:$0xff] }
 0x3de   : > { %v10272_v29 = vpop.eup %10271  ;;  %10289 = vrcp.f32 %v4293_v34  ;;  %v15134_v3 = vadd.f32 %v15011_v9, %v3989_v11  ;;  %v3981_v24 = vadd.f32 %v8264_v62, %v17331_v52  ;;  %8733 = vmatpush3.bf16.msra.mxu1 %v10554_v48  ;;  %v15141_v15 = vmul.f32 %v10270_v59, %v14797_v31  ;;  %v17332_v17 = vld [vmem:[#allocation94_spill] sm:$0xff]  ;;  %v17335_v9 = vld [vmem:[#allocation104_spill] sm:$0xff]  ;;  %v8290_v62 = vpop.f32.mrf.mxu0  ;;  %v10555_v16 = vld [vmem:[%s16564_s7 + $0x58] sm:$0xff]  }
 0x3df   : > { %v4296_v12 = vadd.f32 1.0, %v10272_v29  ;;  %v10274_v20 = vpop.eup %10273  ;;  %10291 = vpow2.f32 %v7798_v35  ;;  %v7801_v28 = vmul.f32 -1.442695, %v15131_v4  ;;  %v17334_v37 = vpack.i.bf16 %v17332_v17, %v17333_v26  ;;  %8726 = vmatprep.subr.bf16.mxu1 %v10555_v16  ;;  %v15152_v31 = vpop.permute.xlu0 %9770  ;;  %v17336_v44 = vld [vmem:[#allocation73_spill] sm:$0xff] }
 0x3e0   : > { %v4002_v50 = vadd.f32 %v8279_v51, %v17335_v9  ;;  %v10276_v60 = vpop.eup %10275  ;;  %v7804_v33 = vmul.f32 -1.442695, %v15134_v3  ;;  %v15158_v40 = vadd.f32 %v15025_v30, %v3981_v24  ;;  %v3994_v51 = vadd.f32 %v8273_v23, %v17336_v44  ;;  %v10556_v30 = vld [vmem:[%s16564_s7 + $0x18] sm:$0xff]   ;;  %v8292_v52 = vpop.f32.mrf.mxu0  ;;  %v10557_v24 = vld [vmem:[%s16564_s7 + $0x50] sm:$0xff]  }
 0x3e1   : > { %10010 = vrot.lane.b32.xlu0 %v17334_v37, %s10627_s15  ;;  %10293 = vrcp.f32 %v4296_v12  ;;  %v10278_v59 = vpop.eup %10277  ;;  %v4294_v34 = vadd.f32 1.0, %v10276_v60  ;;  %v4005_v11 = vadd.f32 %v8282_v38, %v17337_v49  ;;  %v8291_v38 = vadd.f32 %v8290_v62, %v8289_v53  ;;  %v15182_v9 = vpop.permute.xlu1 %9800  ;;  %v17339_v44 = vld [vmem:[#allocation96_spill] sm:$0xff] }
 0x3e2   : > { %10295 = vpow2.f32 %v7803_v58  ;;  %v15162_v35 = vadd.f32 %v15044_v32, %v4002_v50  ;;  %v4388_v57 = vmul.f32 %v10278_v59, %v14842_v14  ;;  %v7802_v29 = vmul.f32 -1.442695, %v15158_v40  ;;  %8734 = vmatpush3.bf16.msra.mxu1 %v10556_v30  ;;  %v8574_v14 = vpop.f32.mrf.mxu1  ;;  %v17338_v50 = vld [vmem:[#allocation28_spill] sm:$0xff]  ;;  %v17343_v30 = vld [vmem:[#allocation103_spill] sm:$0xff] }
 0x3e3   : > { %10297 = vpow2.f32 %v7801_v28  ;;  %v15168_v12 = vadd.f32 %v15081_v27, %v3994_v51  ;;  %v10280_v23 = vpop.eup %10279  ;;  %v15174_v58 = vadd.f32 %v8571_v25, %v4005_v11  ;;  %8727 = vmatprep.subr.bf16.mxu1 %v10557_v24  ;;  %v4385_v48 = vmul.f32 %v10274_v20, %v14803_v21  ;;  %v15188_v16 = vpop.permute.xlu0 %9780  ;;  %v10558_v20 = vld [vmem:[%s16564_s7 + $0x10] sm:$0xff]   ;;  %v17341_v11 = vld [vmem:[#allocation23_spill] sm:$0xff] }
 0x3e4   : > { %10299 = vrcp.f32 %v4294_v34  ;;  %v7807_v32 = vmul.f32 -1.442695, %v15162_v35  ;;  %v10282_v27 = vpop.eup %10281  ;;  %v4414_v28 = vpack.c.bf16 %v4388_v57, %v15141_v15  ;;  %v3997_v62 = vadd.f32 %v15103_v47, %v17338_v50  ;;  %v8293_v51 = vpop.f32.mrf.mxu0  ;;  %v10559_v47 = vld [vmem:[%s16564_s7 + $0x48] sm:$0xff]   ;;  %v17340_v49 = vld [vmem:[#allocation80_spill] sm:$0xff] }
 0x3e5   : > { %10301 = vpow2.f32 %v7804_v33  ;;  %v7805_v37 = vmul.f32 -1.442695, %v15168_v12  ;;  %v4386_v25 = vmul.f32 %v10282_v27, %v14902_v5  ;;  %v7808_v53 = vmul.f32 -1.442695, %v15174_v58  ;;  %v4170_v59 = vpop.f32.mrf.mxu1 }
 0x3e6   : > { %10303 = vpow2.f32 %v7802_v29  ;;  %v4299_v60 = vadd.f32 1.0, %v10280_v23  ;;  %v4018_v21 = vadd.f32 %v8291_v38, %v17339_v44  ;;  %8735 = vmatpush3.bf16.msra.mxu1 %v10558_v20  ;;  %v8285_v5 = vadd.f32 %v15023_v36, %v15009_v1  ;;  %v17342_v29 = vld [vmem:[#allocation101_spill] sm:$0xff]  ;;  %v17344_v36 = vld [vmem:[#allocation59_spill] sm:$0xff] }
 0x3e7   : > { %v4413_v15 = vpack.c.bf16 %v4386_v25, %v4385_v48  ;;  %10305 = vpow2.f32 %v7807_v32  ;;  %v15196_v33 = vadd.f32 %v4157_v54, %v3997_v62  ;;  %8728 = vmatprep.subr.bf16.mxu1 %v10559_v47  ;;  %v3849_v57 = vadd.f32 %v17341_v11, %v17340_v49  ;;  %v15212_v50 = vpop.permute.xlu0 %9790 }
 0x3e8   : > { %v10284_v34 = vpop.eup %10283  ;;  %v8176_v23 = vadd.f32 %v17343_v30, %v17342_v29  ;;  %10307 = vpow2.f32 %v7805_v37  ;;  %v15205_v38 = vadd.f32 %v8574_v14, %v4018_v21  ;;  %v3860_v54 = vadd.f32 %v17341_v11, %v17344_v36  ;;  %v15214_v14 = vpop.permute.xlu1 %9805  ;;  %v10560_v21 = vld [vmem:[%s16564_s7 + $0x8] sm:$0xff]  }
 0x3e9   : > { %v10286_v1 = vpop.eup %10285  ;;  %v4297_v32 = vadd.f32 1.0, %v10284_v34  ;;  %10309 = vpow2.f32 %v7808_v53  ;;  %v7806_v24 = vmul.f32 -1.442695, %v15196_v33  ;;  %8592 = vmatprep.mubr.msk.bf16.mxu1 %vm1538_vm4, %v4413_v15  ;;  %v8294_v37 = vadd.f32 %v8293_v51, %v8292_v52  ;;  %v8575_v53 = vpop.f32.mrf.mxu1  ;;  %v10561_v52 = vld [vmem:[%s16564_s7 + $0x40] sm:$0xff]  }
 0x3ea   : > { %v10288_v27 = vpop.eup %10287  ;;  %10311 = vrcp.f32 %v4299_v60  ;;  %v4300_v48 = vadd.f32 1.0, %v10286_v1  ;;  %v7811_v25 = vmul.f32 -1.442695, %v15205_v38  ;;  %8593 = vmatmul.mubr.msk.bf16.gmra.mxu1 %vm1538_vm4, %v4414_v28  ;;  %v4010_v44 = vadd.f32 %v8285_v5, %v3849_v57  ;;  %v15228_v28 = vld [vmem:[%s16564_s7 + $0x88] sm:$0xff]  }
 0x3eb   : > { %v10290_v62 = vpop.eup %10289  ;;  %10313 = vrcp.f32 %v4297_v32  ;;  %8736 = vmatpush3.bf16.msra.mxu1 %v10560_v21  ;;  %v8288_v20 = vadd.f32 %v15079_v8, %v15042_v7  ;;  %v4021_v15 = vadd.f32 %v8294_v37, %v3860_v54  ;;  %v3852_v51 = vadd.f32 %v17341_v11, %v8176_v23  ;;  %v17345_v7 = vld [vmem:[#allocation26_spill] sm:$0xff]  ;;  %v4173_v54 = vpop.f32.mrf.mxu1 }
 0x3ec   : > { %v10292_v60 = vpop.eup %10291  ;;  %10315 = vrcp.f32 %v4300_v48  ;;  %8729 = vmatprep.subr.bf16.mxu1 %v10561_v52  ;;  %v15231_v34 = vadd.f32 %v4170_v59, %v4010_v44  ;;  %v4391_v8 = vmul.f32 %v10288_v27, %v17345_v7  ;;  %v10562_v11 = vld [vmem:[%s16564_s7] sm:$0xff]   ;;  %v15243_v27 = vpop.permute.xlu1 %9825  ;;  %v17347_v44 = vld [vmem:[#allocation97_spill] sm:$0xff]  ;;  %v9758_v7 = vunpack.i.h.bf16 %v14932_v13 }
 0x3ed   : > { %v4298_v47 = vadd.f32 1.0, %v10292_v60  ;;  %10317 = vpow2.f32 %v7806_v24  ;;  %v15235_v29 = vadd.f32 %v8575_v53, %v4021_v15  ;;  %v15241_v24 = vpop.permute.xlu0 %9795  ;;  %v4389_v53 = vmul.f32 %v10290_v62, %v17347_v44 }
 0x3ee   : > { %v10294_v5 = vpop.eup %10293  ;;  %10319 = vpow2.f32 %v7811_v25  ;;  %v7809_v36 = vmul.f32 -1.442695, %v15231_v34  ;;  %v17346_v25 = vld [vmem:[#allocation52_spill] sm:$0xff] }
 0x3ef   : > { %v10296_v49 = vpop.eup %10295  ;;  %v4392_v57 = vmul.f32 %v10294_v5, %v14988_v0  ;;  %10321 = vrcp.f32 %v4298_v47  ;;  %8737 = vmatpush3.bf16.msra.mxu1 %v10562_v11  ;;  %v4013_v0 = vadd.f32 %v8288_v20, %v3852_v51  ;;  %v9718_v37 = vunpack.i.h.bf16 %v17346_v25 }
 0x3f0   : > { %v10298_v30 = vpop.eup %10297  ;;  %v4303_v1 = vadd.f32 1.0, %v10296_v49  ;;  %8616 = vmatprep.subr.bf16.mxu1 %v15228_v28  ;;  %v7812_v52 = vmul.f32 -1.442695, %v15235_v29  ;;  %v9717_v20 = vunpack.i.l.bf16 %v17346_v25  ;;  %v15254_v62 = vpop.permute.xlu1 %9835  ;;  %v17350_v25 = vld [vmem:[#allocation66_spill] sm:$0xff] }
 0x3f1   : > { %v10300_v59 = vpop.eup %10299  ;;  %v4416_v23 = vpack.c.bf16 %v4392_v57, %v4391_v8  ;;  %v4301_v32 = vadd.f32 1.0, %v10298_v30  ;;  %v15250_v5 = vadd.f32 %v4173_v54, %v4013_v0  ;;  %v17348_v30 = vld [vmem:[#allocation27_spill] sm:$0xff]  ;;  %v15260_v11 = vpop.permute.xlu0 %9810  ;;  %v9733_v44 = vunpack.i.h.bf16 %v17350_v25 }
 0x3f2   : > { %v10302_v48 = vpop.eup %10301  ;;  %v4390_v21 = vmul.f32 %v10300_v59, %v15005_v42  ;;  %10323 = vrcp.f32 %v4303_v1  ;;  %v5618_v1 = vsel %vm1506_vm3, %v17348_v30, %v9718_v37  ;;  %v9783_v30 = vunpack.i.h.bf16 %v15188_v16 }
 0x3f3   : > { %v10304_v60 = vpop.eup %10303  ;;  %10325 = vrcp.f32 %v4301_v32  ;;  %v4304_v15 = vadd.f32 1.0, %v10302_v48  ;;  %v7810_v54 = vmul.f32 -1.442695, %v15250_v5 }
 0x3f4   : > { %v4415_v51 = vpack.c.bf16 %v4390_v21, %v4389_v53  ;;  %v4302_v47 = vadd.f32 1.0, %v10304_v60  ;;  %10327 = vpow2.f32 %v7809_v36  ;;  %v10306_v49 = vpop.eup %10305  ;;  %v17349_v36 = vld [vmem:[#allocation29_spill] sm:$0xff]  ;;  %v9732_v53 = vunpack.i.l.bf16 %v17350_v25  ;;  %v17351_v21 = vld [vmem:[#allocation95_spill] sm:$0xff] }
 0x3f5   : > { %10329 = vrcp.f32 %v4304_v15  ;;  %v10308_v42 = vpop.eup %10307  ;;  %v4307_v8 = vadd.f32 1.0, %v10306_v49  ;;  %v5617_v59 = vsel %vm1506_vm3, %v17349_v36, %v9717_v20  ;;  %v9748_v60 = vunpack.i.h.bf16 %v17351_v21  ;;  %v15269_v15 = vpop.permute.xlu1 %9840 }
 0x3f6   : > { %10331 = vrcp.f32 %v4302_v47  ;;  %8596 = vmatprep.mubr.msk.bf16.mxu1 %vm1538_vm4, %v4415_v51  ;;  %v10310_v57 = vpop.eup %10309  ;;  %v4305_v32 = vadd.f32 1.0, %v10308_v42  ;;  %v5647_v37 = vsel %vm1538_vm4, %v5617_v59, %v9758_v7  ;;  %v9773_v51 = vunpack.i.h.bf16 %v15152_v31  ;;  %v15277_v7 = vpop.permute.xlu0 %9815 }
 0x3f7   : > { %10333 = vpow2.f32 %v7812_v52  ;;  %8597 = vmatmul.mubr.msk.bf16.gmra.mxu1 %vm1538_vm4, %v4416_v23  ;;  %v10312_v13 = vpop.eup %10311  ;;  %v4308_v0 = vadd.f32 1.0, %v10310_v57  ;;  %v9747_v23 = vunpack.i.l.bf16 %v17351_v21  ;;  %v9842_v20 = vunpack.i.l.bf16 %v15269_v15 }
 0x3f8   : > { %10335 = vrcp.f32 %v4307_v8  ;;  %v10314_v48 = vpop.eup %10313  ;;  %v9772_v49 = vunpack.i.l.bf16 %v15152_v31  ;;  %v4395_v42 = vmul.f32 %v10312_v13, %v15029_v56  ;;  %v9778_v25 = vunpack.i.h.bf16 %v15099_v22 }
 0x3f9   : > { %v10316_v52 = vpop.eup %10315  ;;  %10337 = vrcp.f32 %v4308_v0  ;;  %v5648_v59 = vsel %vm1538_vm4, %v5618_v1, %v9842_v20  ;;  %v9777_v21 = vunpack.i.l.bf16 %v15099_v22  ;;  %v15283_v2 = vpop.permute.xlu1 %9845  ;;  %v5679_v13 = vsel %vm1570_vm5, %v5647_v37, %v9732_v53 }
 0x3fa   : > { %v10318_v47 = vpop.eup %10317  ;;  %v4396_v8 = vmul.f32 %v10316_v52, %v15086_v45  ;;  %10339 = vpow2.f32 %v7810_v54  ;;  %v5680_v56 = vsel %vm1570_vm5, %v5648_v59, %v9733_v44  ;;  %v4393_v45 = vmul.f32 %v10314_v48, %v15073_v18  ;;  %v17352_v52 = vld [vmem:[#allocation21_spill] sm:$0xff]  ;;  %v15291_v20 = vpop.permute.xlu0 %9820 }
 0x3fb   : > { %v10320_v57 = vpop.eup %10319  ;;  %10341 = vrcp.f32 %v4305_v32  ;;  %v4306_v36 = vadd.f32 1.0, %v10318_v47  ;;  %v5620_v1 = vsel %vm1506_vm3, %v17352_v52, %v9748_v60  ;;  %v5813_v47 = vpack.c.bf16 %v5680_v56, %v5679_v13 }
 0x3fc   : > { %v10322_v0 = vpop.eup %10321  ;;  %v4418_v31 = vpack.c.bf16 %v4396_v8, %v4395_v42  ;;  %v17353_v42 = vld [vmem:[#allocation53_spill] sm:$0xff]  ;;  %v5714_v44 = vsel %vm1506_vm3, %v17354_v61, %v9773_v51  ;;  %v4311_v48 = vadd.f32 1.0, %v10320_v57  ;;  %v9763_v37 = vunpack.i.h.bf16 %v15050_v10  ;;  %v17357_v57 = vld [vmem:[#allocation71_spill] sm:$0xff] }
 0x3fd   : > { %v4394_v54 = vmul.f32 %v10322_v0, %v15107_v43  ;;  %10343 = vrcp.f32 %v4306_v36  ;;  %v5619_v8 = vsel %vm1506_vm3, %v17353_v42, %v9747_v23  ;;  %v17355_v36 = vld [vmem:[#allocation46_spill] sm:$0xff]  ;;  %v9762_v60 = vunpack.i.l.bf16 %v15050_v10  ;;  %6119 = vmatmul.mubr.bf16.gmra.mxu0 %v5813_v47  ;;  %v15302_v0 = vpop.permute.xlu1 %9855  ;;  %v17356_v61 = vld [vmem:[#allocation9_spill] sm:$0xff] }
 0x3fe   : > { %v5713_v53 = vsel %vm1506_vm3, %v17355_v36, %v9772_v49  ;;  %v9782_v59 = vunpack.i.l.bf16 %v15188_v16  ;;  %v15305_v23 = vsel %vm1538_vm4, %v5619_v8, %v9783_v30  ;;  %v15309_v51 = vsel %vm1506_vm3, %v17356_v61, %v9778_v25 }
 0x3ff   : > { %v10324_v32 = vpop.eup %10323  ;;  %v4417_v18 = vpack.c.bf16 %v4394_v54, %v4393_v45  ;;  %v15313_v49 = vsel %vm1506_vm3, %v17357_v57, %v9777_v21  ;;  %v9788_v45 = vunpack.i.h.bf16 %v15154_v55  ;;  %v9798_v30 = vunpack.i.h.bf16 %v15241_v24  ;;  %v15322_v25 = vpop.permute.xlu0 %9830  ;;  %v17359_v57 = vld [vmem:[#allocation92_spill] sm:$0xff] }
 0x400   : > { %v10326_v22 = vpop.eup %10325  ;;  %v4399_v54 = vmul.f32 %v10324_v32, %v15115_v63  ;;  %v9797_v52 = vunpack.i.l.bf16 %v15241_v24  ;;  %10345 = vrcp.f32 %v4311_v48  ;;  %v9807_v8 = vunpack.i.l.bf16 %v15214_v14 }
 0x401   : > { %v10328_v43 = vpop.eup %10327  ;;  %8600 = vmatprep.mubr.msk.bf16.mxu1 %vm1538_vm4, %v4417_v18  ;;  %v4397_v21 = vmul.f32 %v10326_v22, %v15131_v4  ;;  %v9787_v63 = vunpack.i.l.bf16 %v15154_v55  ;;  %v9793_v61 = vunpack.i.h.bf16 %v15212_v50  ;;  %v9792_v4 = vunpack.i.l.bf16 %v15212_v50 }
 0x402   : > { %v10330_v56 = vpop.eup %10329  ;;  %8601 = vmatmul.mubr.msk.bf16.gmra.mxu1 %vm1538_vm4, %v4418_v31  ;;  %v4309_v32 = vadd.f32 1.0, %v10328_v43  ;;  %v9803_v31 = vunpack.i.h.bf16 %v15182_v9  ;;  %v9808_v43 = vunpack.i.h.bf16 %v15214_v14  ;;  %v9817_v14 = vunpack.i.l.bf16 %v15277_v7 }
 0x403   : > { %v10332_v16 = vpop.eup %10331  ;;  %v4400_v13 = vmul.f32 %v10330_v56, %v15134_v3  ;;  %v15328_v56 = vpop.permute.xlu1 %9870 }
 0x404   : > { %v10334_v47 = vpop.eup %10333  ;;  %v4398_v42 = vmul.f32 %v10332_v16, %v15158_v40  ;;  %v17358_v40 = vld [vmem:[#allocation64_spill] sm:$0xff]  ;;  %v5715_v16 = vsel %vm1506_vm3, %v17359_v57, %v9797_v52  ;;  %v9812_v52 = vunpack.i.l.bf16 %v15260_v11 }
 0x405   : > { %v10336_v18 = vpop.eup %10335  ;;  %v4420_v3 = vpack.c.bf16 %v4400_v13, %v4399_v54  ;;  %v4312_v36 = vadd.f32 1.0, %v10334_v47  ;;  %v5716_v48 = vsel %vm1506_vm3, %v17358_v40, %v9798_v30  ;;  %v15338_v54 = vpop.permute.xlu0 %9850 }
 0x406   : > { %v4419_v24 = vpack.c.bf16 %v4398_v42, %v4397_v21  ;;  %v10338_v22 = vpop.eup %10337  ;;  %v4403_v47 = vmul.f32 %v10336_v18, %v15162_v35  ;;  %v5650_v42 = vsel %vm1538_vm4, %v5620_v1, %v9807_v8  ;;  %v9853_v50 = vunpack.i.h.bf16 %v15338_v54 }
 0x407   : > { %10347 = vrcp.f32 %v4312_v36  ;;  %v10340_v13 = vpop.eup %10339  ;;  %v4404_v21 = vmul.f32 %v10338_v22, %v15174_v58  ;;  %v15347_v40 = vpop.permute.xlu1 %9880  ;;  %v9813_v35 = vunpack.i.h.bf16 %v15260_v11  ;;  %v9818_v58 = vunpack.i.h.bf16 %v15277_v7 }
 0x408   : > { %8604 = vmatprep.mubr.msk.bf16.mxu1 %vm1538_vm4, %v4419_v24  ;;  %v10342_v36 = vpop.eup %10341  ;;  %10349 = vrcp.f32 %v4309_v32  ;;  %v4310_v30 = vadd.f32 1.0, %v10340_v13  ;;  %v5746_v1 = vsel %vm1538_vm4, %v5714_v44, %v9782_v59  ;;  %v9827_v18 = vunpack.i.l.bf16 %v15243_v27 }
 0x409   : > { %v4422_v57 = vpack.c.bf16 %v4404_v21, %v4403_v47  ;;  %v9861_v32 = vpop.permute.xlu0 %9860  ;;  %v5745_v24 = vsel %vm1538_vm4, %v5713_v53, %v9853_v50  ;;  %v5778_v22 = vsel %vm1570_vm5, %v5746_v1, %v9793_v61  ;;  %v4401_v13 = vmul.f32 %v10342_v36, %v15168_v12 }
 0x40a   : > { %v10344_v8 = vpop.eup %10343  ;;  %10351 = vrcp.f32 %v4310_v30  ;;  %8605 = vmatmul.mubr.msk.bf16.gmra.mxu1 %vm1538_vm4, %v4420_v3  ;;  %v5682_v11 = vsel %vm1570_vm5, %v5650_v42, %v9763_v37  ;;  %v5747_v7 = vsel %vm1538_vm4, %v5715_v16, %v9808_v43  ;;  %v9822_v44 = vunpack.i.l.bf16 %v15291_v20  ;;  %v17360_v42 = vld [vmem:[#allocation16_spill] sm:$0xff] }
 0x40b   : > { %v4402_v47 = vmul.f32 %v10344_v8, %v15196_v33  ;;  %v15363_v59 = vpop.permute.xlu1 %9890  ;;  %v5777_v3 = vsel %vm1570_vm5, %v5745_v24, %v9792_v4  ;;  %v5748_v53 = vsel %vm1538_vm4, %v5716_v48, %v9812_v52  ;;  %v5779_v61 = vsel %vm1570_vm5, %v5747_v7, %v9817_v14  ;;  %v17362_v8 = vld [vmem:[#allocation87_spill] sm:$0xff]  ;;  %v17363_v24 = vld [vmem:[#allocation62_spill] sm:$0xff] }
 0x40c   : > { %v9863_v12 = vunpack.i.h.bf16 %v9861_v32  ;;  %v9862_v50 = vunpack.i.l.bf16 %v9861_v32  ;;  %v5780_v33 = vsel %vm1570_vm5, %v5748_v53, %v9818_v58  ;;  %v9802_v36 = vunpack.i.l.bf16 %v15182_v9  ;;  %v17361_v58 = vld [vmem:[#allocation40_spill] sm:$0xff] }
 0x40d   : > { %v4421_v21 = vpack.c.bf16 %v4402_v47, %v4401_v13  ;;  %v9823_v37 = vunpack.i.h.bf16 %v15291_v20  ;;  %v5817_v16 = vpack.c.bf16 %v5778_v22, %v5777_v3  ;;  %v9866_v43 = vpop.permute.xlu0 %9865  ;;  %v5681_v4 = vsel %vm1570_vm5, %v15305_v23, %v9762_v60  ;;  %v10346_v14 = vpop.eup %10345 }
 0x40e   : > { %v5624_v48 = vsel %vm1506_vm3, %v17360_v42, %v9803_v31  ;;  %v5651_v30 = vsel %vm1538_vm4, %v15313_v49, %v9813_v35  ;;  %v9828_v52 = vunpack.i.h.bf16 %v15243_v27  ;;  %v5816_v9 = vpack.c.bf16 %v5682_v11, %v5681_v4 }
 0x40f   : > { %8608 = vmatprep.mubr.msk.bf16.mxu1 %vm1538_vm4, %v4421_v21  ;;  %v5652_v20 = vsel %vm1538_vm4, %v15309_v51, %v9827_v18  ;;  %v5717_v10 = vsel %vm1506_vm3, %v17361_v58, %v9822_v44  ;;  %v9832_v60 = vunpack.i.l.bf16 %v15322_v25  ;;  %6126 = vmatprep.mubr.bf16.mxu0 %v5817_v16  ;;  %v5820_v23 = vpack.c.bf16 %v5780_v33, %v5779_v61  ;;  %v15386_v31 = vpop.permute.xlu1 %9900  ;;  %v17364_v44 = vld [vmem:[#allocation8_spill] sm:$0xff] }
 0x410   : > { %v5730_v49 = vsel %vm1506_vm3, %v17332_v17, %v9863_v12  ;;  %v5729_v27 = vsel %vm1506_vm3, %v17333_v26, %v9862_v50  ;;  %v9868_v35 = vunpack.i.h.bf16 %v9866_v43  ;;  %v9867_v1 = vunpack.i.l.bf16 %v9866_v43  ;;  %6127 = vmatmul.mubr.bf16.gmra.mxu0 %v5816_v9  ;;  %v17365_v43 = vld [vmem:[#allocation10_spill] sm:$0xff] }
 0x411   : > { %v5623_v51 = vsel %vm1506_vm3, %v17362_v8, %v9802_v36  ;;  %v9838_v18 = vunpack.i.h.bf16 %v15254_v62  ;;  %v9837_v32 = vunpack.i.l.bf16 %v15254_v62  ;;  %v5718_v22 = vsel %vm1506_vm3, %v17363_v24, %v9823_v37  ;;  %6134 = vmatprep.mubr.bf16.mxu0 %v5820_v23  ;;  %v9876_v17 = vpop.permute.xlu0 %9875 }
 0x412   : > { %8609 = vmatmul.mubr.msk.bf16.gmra.mxu1 %vm1538_vm4, %v4422_v57  ;;  %v4407_v26 = vmul.f32 %v10346_v14, %v15205_v38  ;;  %v5683_v47 = vsel %vm1570_vm5, %v5651_v30, %v9787_v63  ;;  %v5684_v11 = vsel %vm1570_vm5, %v5652_v20, %v9788_v45  ;;  %v5749_v62 = vsel %vm1538_vm4, %v5717_v10, %v9828_v52 }
 0x413   : > { %v5761_v57 = vsel %vm1538_vm4, %v5729_v27, %v17364_v44  ;;  %v5762_v3 = vsel %vm1538_vm4, %v5730_v49, %v17364_v44  ;;  %v15412_v53 = vpop.permute.xlu1 %9910  ;;  %v5750_v38 = vsel %vm1538_vm4, %v5718_v22, %v9832_v60  ;;  %v9833_v63 = vunpack.i.h.bf16 %v15322_v25  ;;  %v17366_v60 = vld [vmem:[#allocation11_spill] sm:$0xff] }
 0x414   : > { %v10348_v13 = vpop.eup %10347  ;;  %v9877_v55 = vunpack.i.l.bf16 %v9876_v17  ;;  %v5781_v45 = vsel %vm1570_vm5, %v5749_v62, %v9867_v1  ;;  %v5782_v21 = vsel %vm1570_vm5, %v5750_v38, %v9868_v35  ;;  %v9873_v50 = vunpack.i.h.bf16 %v15328_v56 }
 0x415   : > { %v4408_v7 = vmul.f32 %v10348_v13, %v15235_v29  ;;  %v10350_v61 = vpop.eup %10349  ;;  %v9848_v29 = vunpack.i.h.bf16 %v15283_v2  ;;  %v9872_v33 = vunpack.i.l.bf16 %v15328_v56  ;;  %v9886_v36 = vpop.permute.xlu0 %9885  ;;  %v9878_v16 = vunpack.i.h.bf16 %v9876_v17 }
 0x416   : > { %v5793_v4 = vsel %vm1570_vm5, %v5761_v57, %v17365_v43  ;;  %v5794_v25 = vsel %vm1570_vm5, %v5762_v3, %v17365_v43  ;;  %v5819_v42 = vpack.c.bf16 %v5684_v11, %v5683_v47  ;;  %v4405_v30 = vmul.f32 %v10350_v61, %v15231_v34 }
 0x417   : > { %v4424_v12 = vpack.c.bf16 %v4408_v7, %v4407_v26  ;;  %v10352_v37 = vpop.eup %10351  ;;  %v9887_v9 = vunpack.i.l.bf16 %v9886_v36  ;;  %v5823_v14 = vpack.c.bf16 %v5782_v21, %v5781_v45  ;;  %v15427_v20 = vpop.permute.xlu1 %9920  ;;  %v5654_v56 = vsel %vm1538_vm4, %v5624_v48, %v9837_v32  ;;  %v17367_v48 = vld [vmem:[#allocation30_spill] sm:$0xff] }
 0x418   : > { %v4406_v52 = vmul.f32 %v10352_v37, %v15250_v5  ;;  %v5653_v58 = vsel %vm1538_vm4, %v5623_v51, %v9833_v63  ;;  %v9852_v10 = vunpack.i.l.bf16 %v15338_v54  ;;  %v5719_v23 = vsel %vm1506_vm3, %v17366_v60, %v9877_v55  ;;  %6135 = vmatmul.mubr.bf16.gmra.mxu0 %v5819_v42  ;;  %v17368_v63 = vld [vmem:[#allocation86_spill] sm:$0xff]  ;;  %v17372_v60 = vld [vmem:[#allocation43_spill] sm:$0xff] }
 0x419   : > { %v5636_v34 = vsel %vm1506_vm3, %v17288_v39, %v9848_v29  ;;  %v9847_v5 = vunpack.i.l.bf16 %v15283_v2  ;;  %v5841_v27 = vpack.c.bf16 %v5794_v25, %v5793_v4  ;;  %6142 = vmatprep.mubr.bf16.mxu0 %v5823_v14  ;;  %v9896_v35 = vpop.permute.xlu0 %9895  ;;  %v5686_v1 = vsel %vm1570_vm5, %v5654_v56, %v9873_v50 }
 0x41a   : > { %v4423_v49 = vpack.c.bf16 %v4406_v52, %v4405_v30  ;;  %v5720_v8 = vsel %vm1506_vm3, %v17367_v48, %v9878_v16  ;;  %v9898_v51 = vunpack.i.h.bf16 %v9896_v35  ;;  %v9897_v54 = vunpack.i.l.bf16 %v9896_v35  ;;  %v17369_v16 = vld [vmem:[#allocation15_spill] sm:$0xff]  ;;  %v17370_v52 = vld [vmem:[#allocation22_spill] sm:$0xff] }
 0x41b   : > { %v5685_v32 = vsel %vm1570_vm5, %v5653_v58, %v9872_v33  ;;  %v9882_v24 = vunpack.i.l.bf16 %v15347_v40  ;;  %v5752_v39 = vsel %vm1538_vm4, %v5720_v8, %v9887_v9  ;;  %v15444_v22 = vpop.permute.xlu1 %9930  ;;  %v5751_v2 = vsel %vm1538_vm4, %v5719_v23, %v9838_v18 }
 0x41c   : > { %8612 = vmatprep.mubr.msk.bf16.mxu1 %vm1538_vm4, %v4423_v49  ;;  %v5666_v17 = vsel %vm1538_vm4, %v5636_v34, %v9852_v10  ;;  %v9888_v13 = vunpack.i.h.bf16 %v9886_v36  ;;  %v5783_v26 = vsel %vm1570_vm5, %v5751_v2, %v9897_v54  ;;  %v5784_v47 = vsel %vm1570_vm5, %v5752_v39, %v9898_v51  ;;  %v10094_v36 = vld [vmem:[%s16564_s7 + $0x80] sm:$0xff]   ;;  %v17371_v10 = vld [vmem:[#allocation36_spill] sm:$0xff] }
 0x41d   : > { %8613 = vmatmul.mubr.msk.bf16.gmra.mxu1 %vm1538_vm4, %v4424_v12  ;;  %v5635_v11 = vsel %vm1506_vm3, %v17271_v46, %v9847_v5  ;;  %v9858_v62 = vunpack.i.h.bf16 %v15302_v0  ;;  %v9857_v7 = vunpack.i.l.bf16 %v15302_v0  ;;  %v9906_v44 = vpop.permute.xlu0 %9905  ;;  %v5826_v57 = vpack.c.bf16 %v5784_v47, %v5783_v26  ;;  %v17374_v34 = vld [vmem:[#allocation48_spill] sm:$0xff] }
 0x41e   : > { %6190 = vmatprep.mubr.bf16.mxu1 %v5841_v27  ;;  %v9843_v18 = vunpack.i.h.bf16 %v15269_v15  ;;  %v5822_v3 = vpack.c.bf16 %v5686_v1, %v5685_v32  ;;  %v9883_v61 = vunpack.i.h.bf16 %v15347_v40  ;;  %v5625_v55 = vsel %vm1506_vm3, %v17368_v63, %v9882_v24  ;;  %v17376_v47 = vld [vmem:[#allocation24_spill] sm:$0xff] }
 0x41f   : > { %v5698_v38 = vsel %vm1570_vm5, %v5666_v17, %v9858_v62  ;;  %v15460_v45 = vpop.permute.xlu1 %9940  ;;  %v9892_v21 = vunpack.i.l.bf16 %v15363_v59  ;;  %v5655_v0 = vsel %vm1538_vm4, %v5625_v55, %v9888_v13  ;;  %v9907_v12 = vunpack.i.l.bf16 %v9906_v44 }
 0x420   : > { %v5665_v46 = vsel %vm1538_vm4, %v5635_v11, %v9843_v18  ;;  %6143 = vmatmul.mubr.bf16.gmra.mxu0 %v5822_v3  ;;  %v9903_v29 = vunpack.i.h.bf16 %v15386_v31  ;;  %v9902_v50 = vunpack.i.l.bf16 %v15386_v31  ;;  %v9908_v37 = vunpack.i.h.bf16 %v9906_v44  ;;  %v17377_v44 = vld [vmem:[#allocation14_spill] sm:$0xff] }
 0x421   : > { %v5697_v15 = vsel %vm1570_vm5, %v5665_v46, %v9857_v7  ;;  %6150 = vmatprep.mubr.bf16.mxu0 %v5826_v57  ;;  %v9916_v40 = vpop.permute.xlu0 %9915  ;;  %v5626_v43 = vsel %vm1506_vm3, %v17369_v16, %v9883_v61  ;;  %v9912_v4 = vunpack.i.l.bf16 %v15412_v53  ;;  %v5721_v9 = vsel %vm1506_vm3, %v17370_v52, %v9907_v12  ;;  %v17378_v57 = vld [vmem:[#allocation45_spill] sm:$0xff] }
 0x422   : > { %v5840_v33 = vpack.c.bf16 %v5698_v38, %v5697_v15  ;;  %v9917_v25 = vunpack.i.l.bf16 %v9916_v40  ;;  %v5687_v30 = vsel %vm1570_vm5, %v5655_v0, %v9902_v50  ;;  %v5656_v31 = vsel %vm1538_vm4, %v5626_v43, %v9892_v21  ;;  %v17381_v38 = vld [vmem:[#allocation74_spill] sm:$0xff]  ;;  %v17383_v50 = vld [vmem:[#allocation37_spill] sm:$0xff] }
 0x423   : > { %v15474_v42 = vpop.permute.xlu1 %9950  ;;  %v9918_v14 = vunpack.i.h.bf16 %v9916_v40  ;;  %v9893_v56 = vunpack.i.h.bf16 %v15363_v59  ;;  %v5688_v58 = vsel %vm1570_vm5, %v5656_v31, %v9903_v29  ;;  %v17373_v23 = vpack.c.bf16 %v17371_v10, %v17372_v60  ;;  %v17375_v59 = vld [vmem:[#allocation84_spill] sm:$0xff]  ;;  %v17389_v31 = vld [vmem:[#allocation42_spill] sm:$0xff] }
 0x424   : > { %v5722_v5 = vsel %vm1506_vm3, %v17374_v34, %v9908_v37  ;;  %v5825_v1 = vpack.c.bf16 %v5688_v58, %v5687_v30  ;;  %v9913_v48 = vunpack.i.h.bf16 %v15412_v53  ;;  %v5627_v8 = vsel %vm1506_vm3, %v17375_v59, %v9912_v4  ;;  %v17387_v4 = vld [vmem:[#allocation105_spill] sm:$0xff]  ;;  %v17391_v60 = vld [vmem:[#allocation56_spill] sm:$0xff] }
 0x425   : > { %6191 = vmatmul.mubr.bf16.vlgmr.msra.gmra.mxu1 %v5840_v33  ;;  %v9926_v49 = vpop.permute.xlu0 %9925  ;;  %v5753_v51 = vsel %vm1538_vm4, %v5721_v9, %v9893_v56  ;;  %v9922_v54 = vunpack.i.l.bf16 %v15427_v20  ;;  %v5657_v32 = vsel %vm1538_vm4, %v5627_v8, %v9918_v14  ;;  %v9933_v2 = vunpack.i.h.bf16 %v15444_v22  ;;  %v17384_v33 = vld [vmem:[#allocation41_spill] sm:$0xff] }
 0x426   : > { %8617 = vmatpush3.bf16.msra.mxu1 %v15228_v28  ;;  %8620 = vmatprep.mubr.msk.bf16.mxu1 %vm1506_vm3, %v17373_v23  ;;  %v9928_v27 = vunpack.i.h.bf16 %v9926_v49  ;;  %v9927_v35 = vunpack.i.l.bf16 %v9926_v49  ;;  %v5754_v28 = vsel %vm1538_vm4, %v5722_v5, %v9917_v25  ;;  %v9932_v53 = vunpack.i.l.bf16 %v15444_v22  ;;  %v17380_v22 = vld [vmem:[#allocation34_spill] sm:$0xff]  ;;  %v17388_v30 = vld [vmem:[#allocation81_spill] sm:$0xff] }
 0x427   : > { %8618 = vmatprep.subr.bf16.mxu1 %v10094_v36  ;;  %v9961_v17 = vpop.permute.xlu1 %9960  ;;  %v5628_v11 = vsel %vm1506_vm3, %v17376_v47, %v9913_v48  ;;  %v17379_v18 = vpack.c.bf16 %v17377_v44, %v17378_v57  ;;  %v17382_v61 = vpack.c.bf16 %v17380_v22, %v17381_v38  ;;  %v9942_v21 = vunpack.i.l.bf16 %v15460_v45  ;;  %v17392_v5 = vld [vmem:[#allocation13_spill] sm:$0xff]  ;;  %v17398_v38 = vld [vmem:[#allocation76_spill] sm:$0xff] }
 0x428   : > { %6151 = vmatmul.mubr.bf16.gmra.mxu0 %v5825_v1  ;;  %v5785_v24 = vsel %vm1570_vm5, %v5753_v51, %v9927_v35  ;;  %v5786_v39 = vsel %vm1570_vm5, %v5754_v28, %v9928_v27  ;;  %v5689_v62 = vsel %vm1570_vm5, %v5657_v32, %v9932_v53  ;;  %v5658_v7 = vsel %vm1538_vm4, %v5628_v11, %v9922_v54  ;;  %v17393_v51 = vld [vmem:[#allocation63_spill] sm:$0xff]  ;;  %v17394_v54 = vld [vmem:[#allocation70_spill] sm:$0xff] }
 0x429   : > { %v9936_v13 = vpop.permute.xlu0 %9935  ;;  %v5829_v26 = vpack.c.bf16 %v5786_v39, %v5785_v24  ;;  %v5690_v3 = vsel %vm1570_vm5, %v5658_v7, %v9933_v2  ;;  %v9943_v29 = vunpack.i.h.bf16 %v15460_v45  ;;  %v5629_v40 = vsel %vm1506_vm3, %v17383_v50, %v9942_v21  ;;  %v17395_v39 = vld [vmem:[#allocation79_spill] sm:$0xff]  ;;  %v17396_v2 = vld [vmem:[#allocation82_spill] sm:$0xff] }
 0x42a   : > { %8619 = vmatpush3.bf16.msra.mxu1 %v10094_v36  ;;  %v5828_v55 = vpack.c.bf16 %v5690_v3, %v5689_v62  ;;  %v9937_v0 = vunpack.i.l.bf16 %v9936_v13  ;;  %v9938_v15 = vunpack.i.h.bf16 %v9936_v13  ;;  %v17385_v36 = vld [vmem:[#allocation69_spill] sm:$0xff]  ;;  %v9952_v43 = vunpack.i.l.bf16 %v15474_v42  ;;  %v17397_v3 = vld [vmem:[#allocation18_spill] sm:$0xff] }
 0x42b   : > { %6158 = vmatprep.mubr.bf16.mxu0 %v5829_v26  ;;  %v15513_v46 = vpop.permute.xlu1 %9970  ;;  %v17386_v37 = vpack.c.bf16 %v17384_v33, %v17385_v36  ;;  %v17390_v52 = vpack.c.bf16 %v17388_v30, %v17389_v31  ;;  %v9923_v14 = vunpack.i.h.bf16 %v15427_v20  ;;  %v9963_v56 = vunpack.i.h.bf16 %v9961_v17  ;;  %v17401_v33 = vld [vmem:[#allocation89_spill] sm:$0xff]  ;;  %v17405_v30 = vld [vmem:[#allocation19_spill] sm:$0xff] }
 0x42c   : > { %v5723_v25 = vsel %vm1506_vm3, %v17387_v4, %v9937_v0  ;;  %v9962_v58 = vunpack.i.l.bf16 %v9961_v17  ;;  %v5724_v23 = vsel %vm1506_vm3, %v17391_v60, %v9938_v15  ;;  %v5630_v27 = vsel %vm1506_vm3, %v17392_v5, %v9943_v29  ;;  %v17400_v0 = vld [vmem:[#allocation54_spill] sm:$0xff] }
 0x42d   : > { %8621 = vmatmul.mubr.msk.bf16.vlgmr.msra.gmra.mxu1 %vm1506_vm3, %v17379_v18  ;;  %v5755_v1 = vsel %vm1538_vm4, %v5723_v25, %v9923_v14  ;;  %v5660_v59 = vsel %vm1538_vm4, %v5630_v27, %v9952_v43  ;;  %v5812_v32 = vpack.c.bf16 %v17394_v54, %v17393_v51  ;;  %v5815_v53 = vpack.c.bf16 %v17396_v2, %v17395_v39  ;;  %v17411_v39 = vld [vmem:[#allocation44_spill] sm:$0xff] }
 0x42e   : > { %8624 = vmatprep.mubr.msk.bf16.mxu1 %vm1506_vm3, %v17382_v61  ;;  %v9946_v63 = vpop.permute.xlu0 %9945  ;;  %v5692_v28 = vsel %vm1570_vm5, %v5660_v59, %v9963_v56  ;;  %v9972_v47 = vunpack.i.l.bf16 %v15513_v46  ;;  %v9973_v18 = vunpack.i.h.bf16 %v15513_v46  ;;  %v17399_v61 = vld [vmem:[#allocation72_spill] sm:$0xff]  ;;  %v9953_v29 = vunpack.i.h.bf16 %v15474_v42 }
 0x42f   : > { %v9948_v12 = vunpack.i.h.bf16 %v9946_v63  ;;  %v9947_v16 = vunpack.i.l.bf16 %v9946_v63  ;;  %v15531_v9 = vpop.permute.xlu1 %9980  ;;  %v5818_v63 = vpack.c.bf16 %v17399_v61, %v17398_v38 }
 0x430   : > { %6159 = vmatmul.mubr.bf16.gmra.mxu0 %v5828_v55  ;;  %v5631_v22 = vsel %vm1506_vm3, %v17397_v3, %v9972_v47  ;;  %v9982_v21 = vunpack.i.l.bf16 %v15531_v9  ;;  %v5632_v31 = vsel %vm1506_vm3, %v17405_v30, %v9973_v18  ;;  %v9983_v47 = vunpack.i.h.bf16 %v15531_v9  ;;  %v17414_v18 = vld [vmem:[#allocation61_spill] sm:$0xff] }
 0x431   : > { %v5659_v45 = vsel %vm1538_vm4, %v5629_v40, %v9948_v12  ;;  %v5756_v35 = vsel %vm1538_vm4, %v5724_v23, %v9947_v16  ;;  %v17403_v16 = vld [vmem:[#allocation88_spill] sm:$0xff] }
 0x432   : > { %v5691_v48 = vsel %vm1570_vm5, %v5659_v45, %v9962_v58  ;;  %v5662_v14 = vsel %vm1538_vm4, %v5632_v31, %v9982_v21 }
 0x433   : > { %v5831_v13 = vpack.c.bf16 %v5692_v28, %v5691_v48 }
 0x435   : > { %8625 = vmatmul.mubr.msk.bf16.gmra.mxu1 %vm1506_vm3, %v17386_v37  ;;  %v9991_v17 = vpop.permute.xlu1 %9990  ;;  %v17402_v37 = vld [vmem:[#allocation20_spill] sm:$0xff] }
 0x436   : > { %8628 = vmatprep.mubr.msk.bf16.mxu1 %vm1506_vm3, %v17390_v52  ;;  %v9993_v50 = vunpack.i.h.bf16 %v9991_v17  ;;  %v9992_v40 = vunpack.i.l.bf16 %v9991_v17  ;;  %v17404_v43 = vpack.c.bf16 %v17402_v37, %v17403_v16  ;;  %v17412_v17 = vld [vmem:[#allocation83_spill] sm:$0xff]  ;;  %v17420_v37 = vld [vmem:[#allocation49_spill] sm:$0xff] }
 0x438   : > { %v9956_v10 = vpop.permute.xlu0 %9955  ;;  %v5694_v60 = vsel %vm1570_vm5, %v5662_v14, %v9993_v50 }
 0x439   : > { %v9958_v49 = vunpack.i.h.bf16 %v9956_v10  ;;  %v9957_v34 = vunpack.i.l.bf16 %v9956_v10  ;;  %v10001_v44 = vpop.permute.xlu1 %10000 }
 0x43a   : > { %v10002_v5 = vunpack.i.l.bf16 %v10001_v44  ;;  %v10003_v59 = vunpack.i.h.bf16 %v10001_v44 }
 0x43b   : > { %v5787_v20 = vsel %vm1570_vm5, %v5755_v1, %v9957_v34  ;;  %v5788_v8 = vsel %vm1570_vm5, %v5756_v35, %v9958_v49  ;;  %v17406_v35 = vld [vmem:[#allocation100_spill] sm:$0xff]  ;;  %v17407_v1 = vld [vmem:[#allocation85_spill] sm:$0xff] }
 0x43c   : > { %v5832_v24 = vpack.c.bf16 %v5788_v8, %v5787_v20  ;;  %v5827_v48 = vpack.c.bf16 %v17407_v1, %v17406_v35  ;;  %v17408_v20 = vld [vmem:[#allocation102_spill] sm:$0xff]  ;;  %v5633_v2 = vsel %vm1506_vm3, %v17411_v39, %v10002_v5 }
 0x43d   : > { %8629 = vmatmul.mubr.msk.bf16.gmra.mxu1 %vm1506_vm3, %v5812_v32  ;;  %v5200_v56 = vpop.permute.xlu1 %5199  ;;  %v17409_v8 = vld [vmem:[#allocation98_spill] sm:$0xff] }
 0x43e   : > { %6166 = vmatprep.mubr.bf16.mxu0 %v5832_v24  ;;  %8632 = vmatprep.mubr.msk.bf16.mxu1 %vm1506_vm3, %v5815_v53  ;;  %v17410_v28 = vpack.c.bf16 %v17408_v20, %v17409_v8 }
 0x43f   : > { %v9966_v26 = vpop.permute.xlu0 %9965  ;;  %6167 = vmatmul.mubr.bf16.gmra.mxu0 %v5831_v13 }
 0x440   : > { %v9967_v11 = vunpack.i.l.bf16 %v9966_v26  ;;  %v9968_v7 = vunpack.i.h.bf16 %v9966_v26 }
 0x442   : > { %v5725_v12 = vsel %vm1506_vm3, %v17400_v0, %v9967_v11  ;;  %v5726_v36 = vsel %vm1506_vm3, %v17401_v33, %v9968_v7  ;;  %v17413_v11 = vld [vmem:[#allocation12_spill] sm:$0xff] }
 0x443   : > { %v9976_v62 = vpop.permute.xlu0 %9975  ;;  %v5757_v52 = vsel %vm1538_vm4, %v5725_v12, %v9953_v29  ;;  %v5833_v12 = vpack.c.bf16 %v14956_v6, %v14951_v19  ;;  %v17416_v19 = vld [vmem:[#allocation39_spill] sm:$0xff]  ;;  %v17417_v6 = vld [vmem:[#allocation77_spill] sm:$0xff] }
 0x444   : > { %v9978_v57 = vunpack.i.h.bf16 %v9976_v62  ;;  %v9977_v55 = vunpack.i.l.bf16 %v9976_v62  ;;  %v5634_v62 = vsel %vm1506_vm3, %v17413_v11, %v10003_v59  ;;  %v17418_v33 = vpack.c.bf16 %v17416_v19, %v17417_v6  ;;  %v10096_v59 = vld [vmem:[%s16566_s9] sm:$0xff]  }
 0x445   : > { %8633 = vmatmul.mubr.msk.bf16.gmra.mxu1 %vm1506_vm3, %v5818_v63  ;;  %v17415_v63 = vld [vmem:[#allocation35_spill] sm:$0xff]  ;;  %v5664_v0 = vsel %vm1538_vm4, %v5634_v62, %v5200_v56 }
 0x446   : > { %v5661_v15 = vsel %vm1538_vm4, %v5631_v22, %v9978_v57  ;;  %8636 = vmatprep.mubr.msk.bf16.mxu1 %vm1506_vm3, %v17404_v43  ;;  %v5758_v42 = vsel %vm1538_vm4, %v5726_v36, %v9977_v55  ;;  %v5830_v55 = vpack.c.bf16 %v17415_v63, %v14741_v41  ;;  %v17419_v36 = vld [vmem:[#allocation47_spill] sm:$0xff]  ;;  %v17422_v43 = vld [vmem:[#allocation38_spill] sm:$0xff] }
 0x447   : > { %v9986_v46 = vpop.permute.xlu0 %9985  ;;  %v5693_v45 = vsel %vm1570_vm5, %v5661_v15, %v9992_v40  ;;  %v17421_v16 = vpack.c.bf16 %v17419_v36, %v17420_v37 }
 0x448   : > { %v9988_v4 = vunpack.i.h.bf16 %v9986_v46  ;;  %v9987_v25 = vunpack.i.l.bf16 %v9986_v46  ;;  %v5834_v34 = vpack.c.bf16 %v5694_v60, %v5693_v45  ;;  %v10016_v54 = vpop.permute.xlu1 %10015  ;;  %v10095_v46 = vld [vmem:[%s16566_s9 + $0x8] sm:$0xff]  }
 0x449   : > { %v10018_v7 = vunpack.i.h.bf16 %v10016_v54  ;;  %v10017_v44 = vunpack.i.l.bf16 %v10016_v54  ;;  %8652 = vmatprep.subr.bf16.mxu1 %v10095_v46 }
 0x44a   : > { %v5789_v58 = vsel %vm1570_vm5, %v5757_v52, %v9987_v25  ;;  %v5790_v10 = vsel %vm1570_vm5, %v5758_v42, %v9988_v4  ;;  %8653 = vmatpush3.bf16.msra.mxu1 %v10095_v46  ;;  %v15621_v4 = vpop.f32.mrf.mxu0 }
 0x44b   : > { %v9996_v23 = vpop.permute.xlu0 %9995  ;;  %v5835_v49 = vpack.c.bf16 %v5790_v10, %v5789_v58  ;;  %v5696_v50 = vsel %vm1570_vm5, %v5664_v0, %v10018_v7  ;;  %8654 = vmatprep.subr.bf16.mxu1 %v10096_v59 }
 0x44c   : > { %v9997_v27 = vunpack.i.l.bf16 %v9996_v23  ;;  %v9998_v32 = vunpack.i.h.bf16 %v9996_v23  ;;  %v15623_v25 = vpop.f32.mrf.mxu0 }
 0x44d   : > { %6174 = vmatprep.mubr.bf16.mxu0 %v5835_v49  ;;  %8637 = vmatmul.mubr.msk.bf16.gmra.mxu1 %vm1506_vm3, %v17410_v28 }
 0x44e   : > { %6175 = vmatmul.mubr.bf16.gmra.mxu0 %v5834_v34  ;;  %8640 = vmatprep.mubr.msk.bf16.mxu1 %vm1506_vm3, %v5827_v48  ;;  %v5727_v13 = vsel %vm1506_vm3, %v17412_v17, %v9997_v27  ;;  %v5728_v3 = vsel %vm1506_vm3, %v17414_v18, %v9998_v32  ;;  %v15625_v30 = vpop.f32.mrf.mxu0 }
 0x44f   : > { %v10006_v51 = vpop.permute.xlu0 %10005  ;;  %v5759_v21 = vsel %vm1538_vm4, %v5727_v13, %v9983_v47  ;;  %8655 = vmatpush3.bf16.msra.mxu1 %v10096_v59 }
 0x450   : > { %v10008_v24 = vunpack.i.h.bf16 %v10006_v51  ;;  %v10007_v53 = vunpack.i.l.bf16 %v10006_v51  ;;  %v15627_v31 = vpop.f32.mrf.mxu0 }
 0x452   : > { %v5663_v26 = vsel %vm1538_vm4, %v5633_v2, %v10008_v24  ;;  %v5760_v61 = vsel %vm1538_vm4, %v5728_v3, %v10007_v53  ;;  %v15629_v42 = vpop.f32.mrf.mxu0 }
 0x453   : > { %v10011_v57 = vpop.permute.xlu0 %10010  ;;  %v5695_v9 = vsel %vm1570_vm5, %v5663_v26, %v10017_v44 }
 0x454   : > { %v10013_v22 = vunpack.i.h.bf16 %v10011_v57  ;;  %v10012_v38 = vunpack.i.l.bf16 %v10011_v57  ;;  %v5837_v41 = vpack.c.bf16 %v5696_v50, %v5695_v9  ;;  %v15631_v52 = vpop.f32.mrf.mxu0 }
 0x455   : > { %8641 = vmatmul.mubr.msk.bf16.gmra.mxu1 %vm1506_vm3, %v5830_v55 }
 0x456   : > { %v5791_v15 = vsel %vm1570_vm5, %v5759_v21, %v10012_v38  ;;  %v5792_v29 = vsel %vm1570_vm5, %v5760_v61, %v10013_v22  ;;  %8644 = vmatprep.mubr.msk.bf16.mxu1 %vm1506_vm3, %v5833_v12  ;;  %v15633_v45 = vpop.f32.mrf.mxu0 }
 0x457   : > { %v5838_v40 = vpack.c.bf16 %v5792_v29, %v5791_v15 }
 0x458   : > { %v15635_v14 = vpop.f32.mrf.mxu0 }
 0x459   : > { %6182 = vmatprep.mubr.bf16.mxu0 %v5838_v40 }
 0x45a   : > { %6183 = vmatmul.mubr.bf16.gmra.mxu0 %v5837_v41  ;;  %v15637_v56 = vpop.f32.mrf.mxu0 }
 0x45c   : > { %v15639_v58 = vpop.f32.mrf.mxu0 }
 0x45d   : > { %8645 = vmatmul.mubr.msk.bf16.gmra.mxu1 %vm1506_vm3, %v17418_v33 }
 0x45e   : > { %8648 = vmatprep.mubr.msk.bf16.mxu1 %vm1506_vm3, %v17421_v16  ;;  %v15643_v60 = vpop.f32.mrf.mxu0 }
 0x460   : > { %v15649_v34 = vpop.f32.mrf.mxu0 }
 0x465   : > { %8649 = vmatmul.mubr.msk.bf16.gmra.mxu1 %vm1506_vm3, %v17422_v43 }
 0x469   : > { %v15653_v27 = vpop.f32.mrf.mxu0 }
 0x46b   : > { %v15657_v1 = vpop.f32.mrf.mxu0 }
 0x46d   : > { %v15664_v20 = vpop.f32.mrf.mxu0 }
 0x46f   : > { %v15668_v28 = vpop.f32.mrf.mxu0 }
 0x474   : > { %v15672_v54 = vpop.f32.mrf.mxu0 }
 0x476   : > { %v15676_v24 = vpop.f32.mrf.mxu0 }
 0x478   : > { %v15682_v53 = vpop.f32.mrf.mxu0 }
 0x47a   : > { %v15686_v13 = vpop.f32.mrf.mxu0 }
 0x491   : > { %v15641_v10 = vpop.f32.mrf.mxu1 }
 0x492   : > { %v15688_v26 = vpop.f32.mrf.mxu0 }
 0x493   : > { %v15645_v23 = vpop.f32.mrf.mxu1 }
 0x494   : > { %v15694_v62 = vpop.f32.mrf.mxu0 }
 0x495   : > { %v15647_v49 = vpop.f32.mrf.mxu1 }
 0x496   : > { %v15698_v44 = vpop.f32.mrf.mxu0 }
 0x497   : > { %v15651_v5 = vpop.f32.mrf.mxu1 }
 0x498   : > { %v15702_v18 = vpop.f32.mrf.mxu0 }
 0x49c   : > { %v15655_v35 = vpop.f32.mrf.mxu1 }
 0x49e   : > { %v15659_v48 = vpop.f32.mrf.mxu1 }
 0x4a0   : > { %v15666_v8 = vpop.f32.mrf.mxu1 }
 0x4a2   : > { %v15670_v51 = vpop.f32.mrf.mxu1 }
 0x4aa   : > { %v15674_v32 = vpop.f32.mrf.mxu1 }
 0x4ac   : > { %v15678_v39 = vpop.f32.mrf.mxu1 }
 0x4ad   : > { %17423 = vst [vmem:[#allocation58_spill] sm:$0xff] %v15678_v39 }
 0x4ae   : > { %v15680_v2 = vpop.f32.mrf.mxu1 }
 0x4b0   : > { %v15684_v17 = vpop.f32.mrf.mxu1 }
 0x4b1   : > { %17424 = vst [vmem:[#allocation31_spill] sm:$0xff] %v15684_v17 }
 0x4b7   : > { %v15690_v47 = vpop.f32.mrf.mxu1 }
 0x4b8   : > { %17425 = vst [vmem:[#allocation68_spill] sm:$0xff] %v15690_v47 }
 0x4b9   : > { %v15692_v11 = vpop.f32.mrf.mxu1 }
 0x4ba   : > { %17426 = vst [vmem:[#allocation60_spill] sm:$0xff] %v15692_v11 }
 0x4bb   : > { %v15696_v7 = vpop.f32.mrf.mxu1 }
 0x4bc   : > { %17427 = vst [vmem:[#allocation65_spill] sm:$0xff] %v15696_v7  ;;  %v8362_v7 = vadd.f32 %v15635_v14, %v15633_v45  ;;  %v8371_v45 = vadd.f32 %v15657_v1, %v15653_v27  ;;  %v8374_v27 = vadd.f32 %v15668_v28, %v15664_v20 }
 0x4bd   : > { %v15700_v57 = vpop.f32.mrf.mxu1  ;;  %v15706_v22 = vpop.f32.mrf.mxu0 }
 0x4be   : > { %17428 = vst [vmem:[#allocation78_spill] sm:$0xff] %v15700_v57  ;;  %v15779_v57 = vld [vmem:[%s16565_s8] ss:$0 sm:$0xff] }
 0x4bf   : > { %v15712_v63 = vpop.f32.mrf.mxu0 }
 0x4c1   : > { %v15718_v9 = vpop.f32.mrf.mxu0 }
 0x4c2   : > { %v15704_v3 = vpop.f32.mrf.mxu1 }
 0x4c3   : > { %17429 = vst [vmem:[#allocation25_spill] sm:$0xff] %v15704_v3  ;;  %v15724_v15 = vpop.f32.mrf.mxu0 }
 0x4c4   : > { %v15708_v38 = vpop.f32.mrf.mxu1 }
 0x4c5   : > { %17430 = vst [vmem:[#allocation33_spill] sm:$0xff] %v15708_v38 }
 0x4c6   : > { %v15710_v61 = vpop.f32.mrf.mxu1 }
 0x4c7   : > { %17431 = vst [vmem:[#allocation91_spill] sm:$0xff] %v15710_v61 }
 0x4c8   : > { %v15714_v55 = vpop.f32.mrf.mxu1 }
 0x4c9   : > { %17432 = vst [vmem:[#allocation90_spill] sm:$0xff] %v15714_v55 }
 0x4ca   : > { %v15716_v21 = vpop.f32.mrf.mxu1 }
 0x4cb   : > { %17433 = vst [vmem:[#allocation55_spill] sm:$0xff] %v15716_v21 }
 0x4cc   : > { %v15720_v0 = vpop.f32.mrf.mxu1 }
 0x4cd   : > { %17434 = vst [vmem:[#allocation51_spill] sm:$0xff] %v15720_v0 }
 0x4ce   : > { %v15722_v12 = vpop.f32.mrf.mxu1 }
 0x4cf   : > { %17435 = vst [vmem:[#allocation17_spill] sm:$0xff] %v15722_v12 }
 0x4d0   : > { %v15726_v29 = vpop.f32.mrf.mxu1  ;;  %v15728_v50 = vpop.f32.mrf.mxu0 }
 0x4d1   : > { %17436 = vst [vmem:[#allocation32_spill] sm:$0xff] %v15726_v29 }
 0x4d2   : > { %v15730_v40 = vpop.f32.mrf.mxu1  ;;  %v15732_v41 = vpop.f32.mrf.mxu0 }
 0x4d3   : > { %17437 = vst [vmem:[#allocation67_spill] sm:$0xff] %v15730_v40 }
 0x4d4   : > { %v15734_v46 = vpop.f32.mrf.mxu1  ;;  %v15736_v19 = vpop.f32.mrf.mxu0 }
 0x4d5   : > { %17438 = vst [vmem:[#allocation99_spill] sm:$0xff] %v15734_v46 }
 0x4d6   : > { %v15738_v6 = vpop.f32.mrf.mxu1  ;;  %v15740_v33 = vpop.f32.mrf.mxu0 }
 0x4d7   : > { %17439 = vst [vmem:[#allocation50_spill] sm:$0xff] %v15738_v6 }
 0x4d8   : > { %v15742_v36 = vpop.f32.mrf.mxu1  ;;  %v15744_v37 = vpop.f32.mrf.mxu0 }
 0x4d9   : > { %17440 = vst [vmem:[#allocation94_spill] sm:$0xff] %v15742_v36 }
 0x4da   : > { %v15746_v16 = vpop.f32.mrf.mxu0 }
 0x4dc   : > { %v15750_v59 = vpop.f32.mrf.mxu0 }
 0x4dd   : > { %v15748_v43 = vpop.f32.mrf.mxu1 }
 0x4de   : > { %17441 = vst [vmem:[#allocation93_spill] sm:$0xff] %v15748_v43  ;;  %v15754_v29 = vpop.f32.mrf.mxu0  ;;  %v8359_v43 = vadd.f32 %v15631_v52, %v15629_v42 }
 0x4df   : > { %v15752_v40 = vpop.f32.mrf.mxu1 }
 0x4e0   : > { %17442 = vst [vmem:[#allocation104_spill] sm:$0xff] %v15752_v40  ;;  %v15758_v12 = vpop.f32.mrf.mxu0  ;;  %v6081_v52 = vadd.f32 %v8359_v43, %v15779_v57 }
 0x4e1   : > { %v15756_v46 = vpop.f32.mrf.mxu1 }
 0x4e2   : > { %17443 = vst [vmem:[#allocation73_spill] sm:$0xff] %v15756_v46  ;;  %v15762_v0 = vpop.f32.mrf.mxu0  ;;  %v8353_v46 = vadd.f32 %v15623_v25, %v15621_v4 }
 0x4e3   : > { %v15760_v6 = vpop.f32.mrf.mxu1 }
 0x4e4   : > { %17444 = vst [vmem:[#allocation57_spill] sm:$0xff] %v15760_v6  ;;  %v15764_v21 = vpop.f32.mrf.mxu0  ;;  %v6073_v47 = vadd.f32 %v8353_v46, %v15779_v57  ;;  %v8365_v46 = vadd.f32 %v15639_v58, %v15637_v56  ;;  %v8368_v56 = vadd.f32 %v15649_v34, %v15643_v60 }
 0x4e5   : > { %v8441_v36 = vpop.f32.mrf.mxu1 }
 0x4e6   : > { %v15766_v38 = vpop.f32.mrf.mxu0  ;;  %v6089_v20 = vadd.f32 %v8365_v46, %v15779_v57 }
 0x4e7   : > { %v8442_v55 = vpop.f32.mrf.mxu1 }
 0x4e8   : > { %v15770_v40 = vadd.f32 %v8442_v55, %v8441_v36  ;;  %v15772_v3 = vpop.f32.mrf.mxu0  ;;  %v8356_v55 = vadd.f32 %v15627_v31, %v15625_v30 }
 0x4e9   : > { %v8444_v61 = vpop.f32.mrf.mxu1 }
 0x4ea   : > { %v15781_v11 = vpop.f32.mrf.mxu0  ;;  %v6076_v31 = vadd.f32 %v8356_v55, %v15779_v57 }
 0x4eb   : > { %v8445_v6 = vpop.f32.mrf.mxu1 }
 0x4ec   : > { %v15785_v42 = vadd.f32 %v8445_v6, %v8444_v61  ;;  %v15790_v4 = vpop.f32.mrf.mxu0  ;;  %v6084_v6 = vadd.f32 %v8362_v7, %v15779_v57  ;;  %v6097_v7 = vadd.f32 %v8371_v45, %v15779_v57 }
 0x4ed   : > { %v8622_v36 = vpop.f32.mrf.mxu1 }
 0x4ee   : > { %v15792_v25 = vadd.f32 %v8622_v36, %v6081_v52  ;;  %v15795_v39 = vpop.f32.mrf.mxu0 }
 0x4ef   : > { %v6233_v17 = vpop.f32.mrf.mxu1 }
 0x4f0   : > { %v7871_v14 = vmul.f32 -1.442695, %v15792_v25  ;;  %v15800_v61 = vadd.f32 %v6233_v17, %v6073_v47  ;;  %v15804_v43 = vpop.f32.mrf.mxu0 }
 0x4f1   : > { %v8623_v30 = vpop.f32.mrf.mxu1 }
 0x4f2   : > { %10353 = vpow2.f32 %v7871_v14  ;;  %v7869_v52 = vmul.f32 -1.442695, %v15800_v61  ;;  %v15809_v36 = vadd.f32 %v8623_v30, %v6084_v6  ;;  %v15817_v55 = vpop.f32.mrf.mxu0  ;;  %v6100_v30 = vadd.f32 %v8374_v27, %v15779_v57 }
 0x4f3   : > { %v6236_v1 = vpop.f32.mrf.mxu1 }
 0x4f4   : > { %10355 = vpow2.f32 %v7869_v52  ;;  %v7872_v17 = vmul.f32 -1.442695, %v15809_v36  ;;  %v15814_v47 = vadd.f32 %v6236_v1, %v6076_v31  ;;  %v8383_v31 = vadd.f32 %v15694_v62, %v15688_v26  ;;  %v15831_v60 = vpop.f32.mrf.mxu0 }
 0x4f5   : > { %v8626_v58 = vpop.f32.mrf.mxu1  ;;  %v6092_v1 = vadd.f32 %v8368_v56, %v15779_v57  ;;  %v8386_v26 = vadd.f32 %v15702_v18, %v15698_v44 }
 0x4f6   : > { %10357 = vpow2.f32 %v7872_v17  ;;  %v7870_v14 = vmul.f32 -1.442695, %v15814_v47  ;;  %v15822_v6 = vadd.f32 %v8626_v58, %v6097_v7  ;;  %v8377_v17 = vadd.f32 %v15676_v24, %v15672_v54  ;;  %v15845_v56 = vpop.f32.mrf.mxu0 }
 0x4f7   : > { %v6249_v28 = vpop.f32.mrf.mxu1  ;;  %v8380_v54 = vadd.f32 %v15686_v13, %v15682_v53 }
 0x4f8   : > { %10359 = vpow2.f32 %v7870_v14  ;;  %v7875_v45 = vmul.f32 -1.442695, %v15822_v6  ;;  %v15829_v52 = vadd.f32 %v6249_v28, %v6089_v20  ;;  %v6113_v14 = vadd.f32 %v8383_v31, %v15779_v57 }
 0x4f9   : > { %v8627_v34 = vpop.f32.mrf.mxu1  ;;  %v6105_v44 = vadd.f32 %v8377_v17, %v15779_v57 }
 0x4fa   : > { %10361 = vpow2.f32 %v7875_v45  ;;  %v7873_v46 = vmul.f32 -1.442695, %v15829_v52  ;;  %v15837_v27 = vadd.f32 %v8627_v34, %v6100_v30  ;;  %v8395_v45 = vadd.f32 %v15732_v41, %v15728_v50 }
 0x4fb   : > { %v6252_v62 = vpop.f32.mrf.mxu1  ;;  %v6116_v34 = vadd.f32 %v8386_v26, %v15779_v57 }
 0x4fc   : > { %10363 = vpow2.f32 %v7873_v46  ;;  %v7876_v7 = vmul.f32 -1.442695, %v15837_v27  ;;  %v15842_v58 = vadd.f32 %v6252_v62, %v6092_v1  ;;  %v8389_v62 = vadd.f32 %v15712_v63, %v15706_v22 }
 0x4fd   : > { %v8630_v24 = vpop.f32.mrf.mxu1 }
 0x4fe   : > { %10365 = vpow2.f32 %v7876_v7  ;;  %v7874_v20 = vmul.f32 -1.442695, %v15842_v58  ;;  %v15850_v28 = vadd.f32 %v8630_v24, %v6113_v14  ;;  %v6108_v7 = vadd.f32 %v8380_v54, %v15779_v57 }
 0x4ff   : > { %v15853_v18 = vpop.f32.mrf.mxu0  ;;  %v10354_v30 = vpop.eup %10353 }
 0x500   : > { %v6265_v31 = vpop.f32.mrf.mxu1  ;;  %v6458_v1 = vadd.f32 1.0, %v10354_v30  ;;  %10367 = vpow2.f32 %v7874_v20  ;;  %v7879_v53 = vmul.f32 -1.442695, %v15850_v28  ;;  %v8398_v20 = vadd.f32 %v15740_v33, %v15736_v19 }
 0x501   : > { %v15859_v13 = vadd.f32 %v6265_v31, %v6105_v44  ;;  %v10356_v46 = vpop.eup %10355  ;;  %v15867_v26 = vpop.f32.mrf.mxu0  ;;  %v6129_v30 = vadd.f32 %v8395_v45, %v15779_v57 }
 0x502   : > { %v8631_v17 = vpop.f32.mrf.mxu1  ;;  %10369 = vrcp.f32 %v6458_v1  ;;  %v6456_v14 = vadd.f32 1.0, %v10356_v46  ;;  %v6121_v46 = vadd.f32 %v8389_v62, %v15779_v57 }
 0x503   : > { %v7877_v50 = vmul.f32 -1.442695, %v15859_v13  ;;  %v15865_v41 = vadd.f32 %v8631_v17, %v6116_v34  ;;  %v10358_v24 = vpop.eup %10357  ;;  %10371 = vpow2.f32 %v7879_v53  ;;  %v8392_v34 = vadd.f32 %v15724_v15, %v15718_v9  ;;  %v15881_v45 = vpop.f32.mrf.mxu0 }
 0x504   : > { %v6268_v44 = vpop.f32.mrf.mxu1  ;;  %10373 = vrcp.f32 %v6456_v14  ;;  %v6459_v22 = vadd.f32 1.0, %v10358_v24  ;;  %v6132_v9 = vadd.f32 %v8398_v20, %v15779_v57 }
 0x505   : > { %v7880_v63 = vmul.f32 -1.442695, %v15865_v41  ;;  %v15873_v54 = vadd.f32 %v6268_v44, %v6108_v7  ;;  %v10360_v31 = vpop.eup %10359  ;;  %10375 = vpow2.f32 %v7877_v50  ;;  %v8407_v7 = vadd.f32 %v15762_v0, %v15758_v12  ;;  %v15895_v20 = vpop.f32.mrf.mxu0 }
 0x506   : > { %v8634_v1 = vpop.f32.mrf.mxu1  ;;  %10377 = vrcp.f32 %v6459_v22  ;;  %v6457_v19 = vadd.f32 1.0, %v10360_v31  ;;  %v8401_v44 = vadd.f32 %v15746_v16, %v15744_v37  ;;  %v6124_v22 = vadd.f32 %v8392_v34, %v15779_v57 }
 0x507   : > { %v7878_v33 = vmul.f32 -1.442695, %v15873_v54  ;;  %v15879_v53 = vadd.f32 %v8634_v1, %v6129_v30  ;;  %v10362_v17 = vpop.eup %10361  ;;  %10379 = vpow2.f32 %v7880_v63  ;;  %v8410_v1 = vadd.f32 %v15766_v38, %v15764_v21 }
 0x508   : > { %v6281_v14 = vpop.f32.mrf.mxu1  ;;  %10381 = vrcp.f32 %v6457_v19  ;;  %v6462_v15 = vadd.f32 1.0, %v10362_v17  ;;  %v6145_v37 = vadd.f32 %v8407_v7, %v15779_v57  ;;  %v6137_v21 = vadd.f32 %v8401_v44, %v15779_v57 }
 0x509   : > { %v7883_v62 = vmul.f32 -1.442695, %v15879_v53  ;;  %v15887_v50 = vadd.f32 %v6281_v14, %v6121_v46  ;;  %v10364_v24 = vpop.eup %10363  ;;  %10383 = vpow2.f32 %v7878_v33  ;;  %v8404_v14 = vadd.f32 %v15754_v29, %v15750_v59 }
 0x50a   : > { %v8635_v30 = vpop.f32.mrf.mxu1  ;;  %10385 = vrcp.f32 %v6462_v15  ;;  %v6460_v0 = vadd.f32 1.0, %v10364_v24  ;;  %v8422_v29 = vadd.f32 %v15845_v56, %v15831_v60  ;;  %v8416_v56 = vadd.f32 %v15795_v39, %v15790_v4 }
 0x50b   : > { %v7881_v12 = vmul.f32 -1.442695, %v15887_v50  ;;  %v15893_v63 = vadd.f32 %v8635_v30, %v6132_v9  ;;  %v10366_v31 = vpop.eup %10365  ;;  %10387 = vpow2.f32 %v7883_v62  ;;  %v8413_v9 = vadd.f32 %v15781_v11, %v15772_v3 }
 0x50c   : > { %v6284_v46 = vpop.f32.mrf.mxu1  ;;  %10389 = vrcp.f32 %v6460_v0  ;;  %v6463_v16 = vadd.f32 1.0, %v10366_v31  ;;  %v6148_v0 = vadd.f32 %v8410_v1, %v15779_v57 }
 0x50d   : > { %v7884_v34 = vmul.f32 -1.442695, %v15893_v63  ;;  %v15901_v19 = vadd.f32 %v6284_v46, %v6124_v22  ;;  %v10368_v17 = vpop.eup %10367  ;;  %10391 = vpow2.f32 %v7881_v12  ;;  %v8419_v22 = vadd.f32 %v15817_v55, %v15804_v43 }
 0x50e   : > { %v8429_v33 = vpop.f32.mrf.mxu0  ;;  %v8638_v38 = vpop.f32.mrf.mxu1  ;;  %10393 = vrcp.f32 %v6463_v16  ;;  %v6461_v7 = vadd.f32 1.0, %v10368_v17  ;;  %v6153_v55 = vadd.f32 %v8413_v9, %v15779_v57  ;;  %v8425_v9 = vadd.f32 %v15867_v26, %v15853_v18 }
 0x50f   : > { %v7882_v15 = vmul.f32 -1.442695, %v15901_v19  ;;  %v15909_v62 = vadd.f32 %v8638_v38, %v6145_v37  ;;  %v10370_v30 = vpop.eup %10369  ;;  %10395 = vpow2.f32 %v7884_v34  ;;  %v6140_v37 = vadd.f32 %v8404_v14, %v15779_v57 }
 0x510   : > { %v8430_v24 = vpop.f32.mrf.mxu0  ;;  %v6297_v11 = vpop.f32.mrf.mxu1  ;;  %10397 = vrcp.f32 %v6461_v7  ;;  %v6164_v14 = vadd.f32 %v8422_v29, %v15779_v57 }
 0x511   : > { %v10372_v3 = vpop.eup %10371  ;;  %v7887_v59 = vmul.f32 -1.442695, %v15909_v62  ;;  %v15916_v44 = vadd.f32 %v6297_v11, %v6137_v21  ;;  %10399 = vpow2.f32 %v7882_v15  ;;  %v6161_v21 = vadd.f32 %v8419_v22, %v15779_v57 }
 0x512   : > { %v10374_v12 = vpop.eup %10373  ;;  %v6466_v31 = vadd.f32 1.0, %v10372_v3  ;;  %v8639_v46 = vpop.f32.mrf.mxu1 }
 0x513   : > { %v8432_v43 = vpop.f32.mrf.mxu0  ;;  %v10376_v60 = vpop.eup %10375  ;;  %10401 = vpow2.f32 %v7887_v59  ;;  %v7885_v16 = vmul.f32 -1.442695, %v15916_v44  ;;  %v15924_v34 = vadd.f32 %v8639_v46, %v6148_v0  ;;  %v8431_v59 = vadd.f32 %v8430_v24, %v8429_v33 }
 0x514   : > { %v10378_v17 = vpop.eup %10377  ;;  %10403 = vrcp.f32 %v6466_v31  ;;  %v6464_v1 = vadd.f32 1.0, %v10376_v60  ;;  %v6300_v38 = vpop.f32.mrf.mxu1  ;;  %v6552_v29 = vmul.f32 %v10374_v12, %v15800_v61 }
 0x515   : > { %v10380_v7 = vpop.eup %10379  ;;  %10405 = vpow2.f32 %v7885_v16  ;;  %v7888_v39 = vmul.f32 -1.442695, %v15924_v34  ;;  %v15931_v4 = vadd.f32 %v6300_v38, %v6140_v37  ;;  %v6555_v11 = vmul.f32 %v10378_v17, %v15809_v36  ;;  %v8433_v31 = vpop.f32.mrf.mxu0 }
 0x516   : > { %v10382_v15 = vpop.eup %10381  ;;  %10407 = vrcp.f32 %v6464_v1  ;;  %v6467_v3 = vadd.f32 1.0, %v10380_v7  ;;  %v8642_v0 = vpop.f32.mrf.mxu1  ;;  %v6554_v37 = vmul.f32 %v10370_v30, %v15792_v25  ;;  %v8434_v24 = vadd.f32 %v8433_v31, %v8432_v43 }
 0x517   : > { %v10384_v22 = vpop.eup %10383  ;;  %v6553_v46 = vmul.f32 %v10382_v15, %v15814_v47  ;;  %10409 = vpow2.f32 %v7888_v39  ;;  %v7886_v18 = vmul.f32 -1.442695, %v15931_v4  ;;  %v15938_v16 = vadd.f32 %v8642_v0, %v6161_v21 }
 0x518   : > { %v10386_v26 = vpop.eup %10385  ;;  %10411 = vrcp.f32 %v6467_v3  ;;  %v6465_v60 = vadd.f32 1.0, %v10384_v22  ;;  %v6313_v36 = vpop.f32.mrf.mxu1  ;;  %v6585_v47 = vpack.c.bf16 %v6555_v11, %v6554_v37  ;;  %v6156_v15 = vadd.f32 %v8416_v56, %v15779_v57 }
 0x519   : > { %v10388_v17 = vpop.eup %10387  ;;  %v6584_v33 = vpack.c.bf16 %v6553_v46, %v6552_v29  ;;  %10413 = vpow2.f32 %v7886_v18  ;;  %v15940_v1 = vadd.f32 %v6313_v36, %v6153_v55  ;;  %v7891_v7 = vmul.f32 -1.442695, %v15938_v16 }
 0x51a   : > { %v8435_v61 = vpop.f32.mrf.mxu0  ;;  %v10390_v12 = vpop.eup %10389  ;;  %10415 = vrcp.f32 %v6465_v60  ;;  %v6470_v38 = vadd.f32 1.0, %v10388_v17  ;;  %v6169_v55 = vadd.f32 %v8425_v9, %v15779_v57  ;;  %v8428_v0 = vadd.f32 %v15895_v20, %v15881_v45 }
 0x51b   : > { %v8643_v39 = vpop.f32.mrf.mxu1  ;;  %v10392_v25 = vpop.eup %10391  ;;  %v7889_v30 = vmul.f32 -1.442695, %v15940_v1  ;;  %8656 = vmatprep.mubr.msk.bf16.mxu1 %vm1506_vm3, %v6584_v33  ;;  %v6177_v22 = vadd.f32 %v8431_v59, %v15779_v57  ;;  %v6180_v56 = vadd.f32 %v8434_v24, %v15779_v57  ;;  %v6558_v18 = vmul.f32 %v10386_v26, %v15822_v6 }
 0x51c   : > { %v15944_v21 = vadd.f32 %v8643_v39, %v6164_v14  ;;  %v8436_v43 = vpop.f32.mrf.mxu0  ;;  %v10394_v3 = vpop.eup %10393  ;;  %10417 = vrcp.f32 %v6470_v38  ;;  %v6468_v11 = vadd.f32 1.0, %v10392_v25  ;;  %8657 = vmatmul.mubr.msk.bf16.vlgmr.msra.gmra.mxu1 %vm1506_vm3, %v6585_v47  ;;  %v6556_v36 = vmul.f32 %v10390_v12, %v15829_v52 }
 0x51d   : > { %v6316_v31 = vpop.f32.mrf.mxu1  ;;  %v10396_v14 = vpop.eup %10395  ;;  %10419 = vpow2.f32 %v7891_v7  ;;  %v6559_v37 = vmul.f32 %v10394_v3, %v15837_v27  ;;  %v8437_v17 = vadd.f32 %v8436_v43, %v8435_v61 }
 0x51e   : > { %v7892_v29 = vmul.f32 -1.442695, %v15944_v21  ;;  %v15954_v46 = vadd.f32 %v6316_v31, %v6156_v15  ;;  %v10398_v9 = vpop.eup %10397  ;;  %10421 = vrcp.f32 %v6468_v11  ;;  %v6471_v45 = vadd.f32 1.0, %v10396_v14  ;;  %v8438_v33 = vpop.f32.mrf.mxu0 }
 0x51f   : > { %v8646_v20 = vpop.f32.mrf.mxu1  ;;  %v10400_v60 = vpop.eup %10399  ;;  %v6557_v59 = vmul.f32 %v10398_v9, %v15842_v58  ;;  %10423 = vpow2.f32 %v7889_v30  ;;  %v6587_v12 = vpack.c.bf16 %v6559_v37, %v6558_v18  ;;  %v6172_v11 = vadd.f32 %v8428_v0, %v15779_v57 }
 0x520   : > { %v10402_v47 = vpop.eup %10401  ;;  %10425 = vrcp.f32 %v6471_v45  ;;  %v6469_v38 = vadd.f32 1.0, %v10400_v60  ;;  %v7890_v24 = vmul.f32 -1.442695, %v15954_v46  ;;  %v15962_v7 = vadd.f32 %v8646_v20, %v6177_v22  ;;  %v8439_v3 = vpop.f32.mrf.mxu0 }
 0x521   : > { %v6329_v6 = vpop.f32.mrf.mxu1  ;;  %v10404_v27 = vpop.eup %10403  ;;  %v6586_v26 = vpack.c.bf16 %v6557_v59, %v6556_v36  ;;  %v6474_v39 = vadd.f32 1.0, %v10402_v47  ;;  %10427 = vpow2.f32 %v7892_v29  ;;  %v6193_v14 = vadd.f32 %v15770_v40, %v15779_v57 }
 0x522   : > { %v15964_v25 = vadd.f32 %v6329_v6, %v6169_v55  ;;  %v10406_v52 = vpop.eup %10405  ;;  %10429 = vrcp.f32 %v6469_v38  ;;  %v7895_v58 = vmul.f32 -1.442695, %v15962_v7  ;;  %v6185_v18 = vadd.f32 %v8437_v17, %v15779_v57 }
 0x523   : > { %v8647_v61 = vpop.f32.mrf.mxu1  ;;  %v10408_v30 = vpop.eup %10407  ;;  %10431 = vrcp.f32 %v6474_v39  ;;  %v6472_v15 = vadd.f32 1.0, %v10406_v52  ;;  %8660 = vmatprep.mubr.msk.bf16.mxu1 %vm1506_vm3, %v6586_v26  ;;  %v8440_v20 = vadd.f32 %v8439_v3, %v8438_v33  ;;  %v6562_v33 = vmul.f32 %v10404_v27, %v15850_v28 }
 0x524   : > { %v15967_v43 = vadd.f32 %v8647_v61, %v6180_v56  ;;  %v10410_v31 = vpop.eup %10409  ;;  %10433 = vpow2.f32 %v7890_v24  ;;  %v7893_v55 = vmul.f32 -1.442695, %v15964_v25  ;;  %8661 = vmatmul.mubr.msk.bf16.gmra.mxu1 %vm1506_vm3, %v6587_v12  ;;  %v6560_v38 = vmul.f32 %v10408_v30, %v15859_v13 }
 0x525   : > { %v6332_v22 = vpop.f32.mrf.mxu1  ;;  %v10412_v29 = vpop.eup %10411  ;;  %10435 = vrcp.f32 %v6472_v15  ;;  %v6475_v9 = vadd.f32 1.0, %v10410_v31  ;;  %v6188_v13 = vadd.f32 %v8440_v20, %v15779_v57 }
 0x526   : > { %v15975_v56 = vadd.f32 %v6332_v22, %v6172_v11  ;;  %v10414_v37 = vpop.eup %10413  ;;  %v6563_v0 = vmul.f32 %v10412_v29, %v15865_v41  ;;  %10437 = vpow2.f32 %v7895_v58  ;;  %v7896_v45 = vmul.f32 -1.442695, %v15967_v43 }
 0x527   : > { %v8650_v60 = vpop.f32.mrf.mxu1  ;;  %v10416_v36 = vpop.eup %10415  ;;  %10439 = vrcp.f32 %v6475_v9  ;;  %v6473_v59 = vadd.f32 1.0, %v10414_v37  ;;  %v6196_v41 = vadd.f32 %v15785_v42, %v15779_v57 }
 0x528   : > { %v7894_v40 = vmul.f32 -1.442695, %v15975_v56  ;;  %v15981_v47 = vadd.f32 %v8650_v60, %v6193_v14  ;;  %v6561_v24 = vmul.f32 %v10416_v36, %v15873_v54  ;;  %10441 = vpow2.f32 %v7893_v55 }
 0x529   : > { %v6345_v17 = vpop.f32.mrf.mxu1  ;;  %v10418_v6 = vpop.eup %10417  ;;  %10443 = vrcp.f32 %v6473_v59  ;;  %v6589_v61 = vpack.c.bf16 %v6563_v0, %v6562_v33 }
 0x52a   : > { %v7899_v26 = vmul.f32 -1.442695, %v15981_v47  ;;  %v15989_v39 = vadd.f32 %v6345_v17, %v6185_v18  ;;  %v10420_v52 = vpop.eup %10419  ;;  %v6588_v12 = vpack.c.bf16 %v6561_v24, %v6560_v38  ;;  %10445 = vpow2.f32 %v7896_v45 }
 0x52b   : > { %v8651_v58 = vpop.f32.mrf.mxu1  ;;  %v10422_v54 = vpop.eup %10421  ;;  %10447 = vpow2.f32 %v7894_v40  ;;  %v6478_v55 = vadd.f32 1.0, %v10420_v52  ;;  %v6566_v20 = vmul.f32 %v10418_v6, %v15879_v53 }
 0x52c   : > { %v7897_v30 = vmul.f32 -1.442695, %v15989_v39  ;;  %v15993_v42 = vadd.f32 %v8651_v58, %v6196_v41  ;;  %v10424_v15 = vpop.eup %10423  ;;  %10449 = vpow2.f32 %v7899_v26  ;;  %8664 = vmatprep.mubr.msk.bf16.mxu1 %vm1506_vm3, %v6588_v12  ;;  %v6564_v37 = vmul.f32 %v10422_v54, %v15887_v50 }
 0x52d   : > { %v6348_v28 = vpop.f32.mrf.mxu1  ;;  %v10426_v27 = vpop.eup %10425  ;;  %v6476_v3 = vadd.f32 1.0, %v10424_v15  ;;  %8665 = vmatmul.mubr.msk.bf16.gmra.mxu1 %vm1506_vm3, %v6589_v61 }
 0x52e   : > { %v7900_v11 = vmul.f32 -1.442695, %v15993_v42  ;;  %v15997_v31 = vadd.f32 %v6348_v28, %v6188_v13  ;;  %v10428_v57 = vpop.eup %10427  ;;  %10451 = vpow2.f32 %v7897_v30  ;;  %v6567_v14 = vmul.f32 %v10426_v27, %v15893_v63 }
 0x52f   : > { %v10430_v22 = vpop.eup %10429  ;;  %10453 = vrcp.f32 %v6476_v3  ;;  %v6479_v29 = vadd.f32 1.0, %v10428_v57 }
 0x530   : > { %v7898_v9 = vmul.f32 -1.442695, %v15997_v31  ;;  %v10432_v18 = vpop.eup %10431  ;;  %v6565_v0 = vmul.f32 %v10430_v22, %v15901_v19  ;;  %10455 = vpow2.f32 %v7900_v11  ;;  %v6591_v63 = vpack.c.bf16 %v6567_v14, %v6566_v20 }
 0x531   : > { %v10434_v45 = vpop.eup %10433  ;;  %10457 = vrcp.f32 %v6479_v29  ;;  %v6570_v58 = vmul.f32 %v10432_v18, %v15909_v62 }
 0x532   : > { %v10436_v60 = vpop.eup %10435  ;;  %v6590_v36 = vpack.c.bf16 %v6565_v0, %v6564_v37  ;;  %v6477_v59 = vadd.f32 1.0, %v10434_v45  ;;  %10459 = vpow2.f32 %v7898_v9 }
 0x533   : > { %v10438_v40 = vpop.eup %10437  ;;  %10461 = vrcp.f32 %v6478_v55  ;;  %v6568_v53 = vmul.f32 %v10436_v60, %v15916_v44 }
 0x534   : > { %v10440_v38 = vpop.eup %10439  ;;  %10463 = vrcp.f32 %v6477_v59  ;;  %v6482_v24 = vadd.f32 1.0, %v10438_v40  ;;  %8668 = vmatprep.mubr.msk.bf16.mxu1 %vm1506_vm3, %v6590_v36 }
 0x535   : > { %v10442_v50 = vpop.eup %10441  ;;  %8669 = vmatmul.mubr.msk.bf16.gmra.mxu1 %vm1506_vm3, %v6591_v63  ;;  %v6571_v6 = vmul.f32 %v10440_v38, %v15924_v34 }
 0x536   : > { %v10444_v19 = vpop.eup %10443  ;;  %v6480_v17 = vadd.f32 1.0, %v10442_v50  ;;  %10465 = vrcp.f32 %v6482_v24 }
 0x537   : > { %v10446_v41 = vpop.eup %10445  ;;  %v6569_v33 = vmul.f32 %v10444_v19, %v15931_v4  ;;  %v6593_v15 = vpack.c.bf16 %v6571_v6, %v6570_v58 }
 0x538   : > { %v10448_v26 = vpop.eup %10447  ;;  %v6483_v52 = vadd.f32 1.0, %v10446_v41  ;;  %10467 = vrcp.f32 %v6480_v17 }
 0x539   : > { %v10450_v12 = vpop.eup %10449  ;;  %v6592_v13 = vpack.c.bf16 %v6569_v33, %v6568_v53  ;;  %v6481_v54 = vadd.f32 1.0, %v10448_v26 }
 0x53a   : > { %10469 = vrcp.f32 %v6483_v52  ;;  %v6486_v61 = vadd.f32 1.0, %v10450_v12 }
 0x53b   : > { %v10452_v30 = vpop.eup %10451  ;;  %10471 = vrcp.f32 %v6481_v54  ;;  %8672 = vmatprep.mubr.msk.bf16.mxu1 %vm1506_vm3, %v6592_v13 }
 0x53c   : > { %v10454_v44 = vpop.eup %10453  ;;  %v6484_v34 = vadd.f32 1.0, %v10452_v30  ;;  %10473 = vrcp.f32 %v6486_v61 }
 0x53d   : > { %v10456_v28 = vpop.eup %10455  ;;  %8673 = vmatmul.mubr.msk.bf16.gmra.mxu1 %vm1506_vm3, %v6593_v15  ;;  %v6572_v22 = vmul.f32 %v10454_v44, %v15940_v1 }
 0x53e   : > { %v10458_v4 = vpop.eup %10457  ;;  %v6487_v27 = vadd.f32 1.0, %v10456_v28  ;;  %10475 = vrcp.f32 %v6484_v34 }
 0x53f   : > { %v10460_v3 = vpop.eup %10459  ;;  %v6575_v55 = vmul.f32 %v10458_v4, %v15944_v21 }
 0x540   : > { %v10462_v62 = vpop.eup %10461  ;;  %10477 = vrcp.f32 %v6487_v27  ;;  %v6485_v11 = vadd.f32 1.0, %v10460_v3 }
 0x541   : > { %v10464_v57 = vpop.eup %10463  ;;  %v6574_v29 = vmul.f32 %v10462_v62, %v15938_v16 }
 0x542   : > { %v6573_v14 = vmul.f32 %v10464_v57, %v15954_v46  ;;  %10479 = vrcp.f32 %v6485_v11 }
 0x543   : > { %v10466_v18 = vpop.eup %10465  ;;  %v6595_v37 = vpack.c.bf16 %v6575_v55, %v6574_v29 }
 0x544   : > { %v6594_v9 = vpack.c.bf16 %v6573_v14, %v6572_v22  ;;  %v6578_v36 = vmul.f32 %v10466_v18, %v15962_v7 }
 0x545   : > { %v10468_v0 = vpop.eup %10467 }
 0x546   : > { %8676 = vmatprep.mubr.msk.bf16.mxu1 %vm1506_vm3, %v6594_v9  ;;  %v6576_v60 = vmul.f32 %v10468_v0, %v15964_v25 }
 0x547   : > { %v10470_v45 = vpop.eup %10469  ;;  %8677 = vmatmul.mubr.msk.bf16.gmra.mxu1 %vm1506_vm3, %v6595_v37 }
 0x548   : > { %v10472_v20 = vpop.eup %10471  ;;  %v6579_v21 = vmul.f32 %v10470_v45, %v15967_v43 }
 0x549   : > { %v6577_v1 = vmul.f32 %v10472_v20, %v15975_v56  ;;  %v10474_v46 = vpop.eup %10473 }
 0x54a   : > { %v6597_v63 = vpack.c.bf16 %v6579_v21, %v6578_v36  ;;  %v6582_v38 = vmul.f32 %v10474_v46, %v15981_v47  ;;  %v7072_v47 = vld [vmem:[%s481_s21] sm:$0xf] }
 0x54b   : > { %v6596_v16 = vpack.c.bf16 %v6577_v1, %v6576_v60  ;;  %v10476_v59 = vpop.eup %10475  ;;  %8738 = vmatprep.subr.msk.bf16.mxu0 %vm1506_vm3, %v7072_v47 }
 0x54c   : > { %v6580_v25 = vmul.f32 %v10476_v59, %v15989_v39 }
 0x54d   : > { %v10478_v40 = vpop.eup %10477  ;;  %8680 = vmatprep.mubr.msk.bf16.mxu1 %vm1506_vm3, %v6596_v16 }
 0x54e   : > { %v6583_v24 = vmul.f32 %v10478_v40, %v15993_v42  ;;  %v7122_v42 = vsel %vm1506_vm3, %v7072_v47, 0 }
 0x54f   : > { %v10480_v50 = vpop.eup %10479  ;;  %8681 = vmatmul.mubr.msk.bf16.gmra.mxu1 %vm1506_vm3, %v6597_v63  ;;  %8689 = vmatpush3.bf16.xpose.msra.mxu0 %v7122_v42 }
 0x550   : > { %v6599_v43 = vpack.c.bf16 %v6583_v24, %v6582_v38  ;;  %v6581_v56 = vmul.f32 %v10480_v50, %v15997_v31  ;;  %v16040_v31 = vld [vmem:[%s16567_s10] ss:$0 sm:$0xff] }
 0x552   : > { %v6598_v7 = vpack.c.bf16 %v6581_v56, %v6580_v25 }
 0x554   : > { %8684 = vmatprep.mubr.msk.bf16.mxu1 %vm1506_vm3, %v6598_v7 }
 0x557   : > { %8685 = vmatmul.mubr.msk.bf16.gmra.mxu1 %vm1506_vm3, %v6599_v43 }
 0x5dc   : > { %v8658_v39 = vpop.f32.mrf.mxu1 }
 0x5dd   : > { %v16043_v17 = vadd.f32 %v8658_v39, %v16040_v31 }
 0x5de   : > { %v6705_v19 = vpop.f32.mrf.mxu1 }
 0x5df   : > { %v16046_v41 = vadd.f32 %v16040_v31, %v6705_v19  ;;  %v6834_v52 = vmul.f32 %v16043_v17, %v16043_v17 }
 0x5e0   : > { %v8659_v53 = vpop.f32.mrf.mxu1 }
 0x5e1   : > { %v6832_v6 = vmul.f32 %v16046_v41, %v16046_v41  ;;  %v16051_v33 = vadd.f32 %v8659_v53, %v16040_v31  ;;  %v6870_v28 = vsel %vm1506_vm3, %v6834_v52, 0.0 }
 0x5e2   : > { %v6708_v26 = vpop.f32.mrf.mxu1 }
 0x5e3   : > { %v16056_v12 = vadd.f32 %v16040_v31, %v6708_v26  ;;  %v6864_v58 = vsel %vm1506_vm3, %v6832_v6, 0.0  ;;  %v6835_v61 = vmul.f32 %v16051_v33, %v16051_v33 }
 0x5e4   : > { %v8662_v13 = vpop.f32.mrf.mxu1  ;;  %6865 = vadd.xlane.f32.xlu0 %v6864_v58 }
 0x5e5   : > { %v6833_v54 = vmul.f32 %v16056_v12, %v16056_v12  ;;  %v16064_v15 = vadd.f32 %v8662_v13, %v16040_v31  ;;  %v6873_v62 = vsel %vm1506_vm3, %v6835_v61, 0.0 }
 0x5e6   : > { %v6721_v30 = vpop.f32.mrf.mxu1 }
 0x5e7   : > { %v16067_v44 = vadd.f32 %v16040_v31, %v6721_v30  ;;  %v6867_v34 = vsel %vm1506_vm3, %v6833_v54, 0.0  ;;  %v6838_v11 = vmul.f32 %v16064_v15, %v16064_v15 }
 0x5e8   : > { %v8663_v4 = vpop.f32.mrf.mxu1  ;;  %6868 = vadd.xlane.f32.xlu1 %v6867_v34  ;;  %6871 = vadd.xlane.f32.xlu0 %v6870_v28 }
 0x5e9   : > { %v6836_v27 = vmul.f32 %v16067_v44, %v16067_v44  ;;  %v16077_v57 = vadd.f32 %v8663_v4, %v16040_v31  ;;  %v6882_v0 = vsel %vm1506_vm3, %v6838_v11, 0.0 }
 0x5ea   : > { %v6724_v3 = vpop.f32.mrf.mxu1 }
 0x5eb   : > { %v16080_v55 = vadd.f32 %v16040_v31, %v6724_v3  ;;  %v6876_v22 = vsel %vm1506_vm3, %v6836_v27, 0.0  ;;  %v6839_v9 = vmul.f32 %v16077_v57, %v16077_v57 }
 0x5ec   : > { %6877 = vadd.xlane.f32.xlu1 %v6876_v22  ;;  %6874 = vadd.xlane.f32.xlu0 %v6873_v62 }
 0x5ed   : > { %v6837_v14 = vmul.f32 %v16080_v55, %v16080_v55  ;;  %v8666_v29 = vpop.f32.mrf.mxu1  ;;  %v6885_v36 = vsel %vm1506_vm3, %v6839_v9, 0.0 }
 0x5ee   : > { %v16088_v18 = vadd.f32 %v8666_v29, %v16040_v31 }
 0x5ef   : > { %v6737_v37 = vpop.f32.mrf.mxu1  ;;  %v6879_v45 = vsel %vm1506_vm3, %v6837_v14, 0.0 }
 0x5f0   : > { %v16093_v20 = vadd.f32 %v16040_v31, %v6737_v37  ;;  %6883 = vadd.xlane.f32.xlu1 %v6882_v0  ;;  %6880 = vadd.xlane.f32.xlu0 %v6879_v45  ;;  %v6842_v1 = vmul.f32 %v16088_v18, %v16088_v18 }
 0x5f1   : > { %v8667_v60 = vpop.f32.mrf.mxu1 }
 0x5f2   : > { %v6840_v21 = vmul.f32 %v16093_v20, %v16093_v20  ;;  %v16101_v16 = vadd.f32 %v8667_v60, %v16040_v31  ;;  %v6894_v50 = vsel %vm1506_vm3, %v6842_v1, 0.0 }
 0x5f3   : > { %v6740_v46 = vpop.f32.mrf.mxu1 }
 0x5f4   : > { %v16104_v59 = vadd.f32 %v16040_v31, %v6740_v46  ;;  %v6888_v40 = vsel %vm1506_vm3, %v6840_v21, 0.0  ;;  %6886 = vadd.xlane.f32.xlu0 %v6885_v36  ;;  %v6843_v25 = vmul.f32 %v16101_v16, %v16101_v16 }
 0x5f5   : > { %v8670_v63 = vpop.f32.mrf.mxu1  ;;  %6889 = vadd.xlane.f32.xlu1 %v6888_v40 }
 0x5f6   : > { %v6841_v38 = vmul.f32 %v16104_v59, %v16104_v59  ;;  %v16113_v43 = vadd.f32 %v8670_v63, %v16040_v31  ;;  %v6897_v52 = vsel %vm1506_vm3, %v6843_v25, 0.0 }
 0x5f7   : > { %v6753_v24 = vpop.f32.mrf.mxu1 }
 0x5f8   : > { %v16116_v56 = vadd.f32 %v16040_v31, %v6753_v24  ;;  %v6891_v7 = vsel %vm1506_vm3, %v6841_v38, 0.0  ;;  %v6846_v53 = vmul.f32 %v16113_v43, %v16113_v43 }
 0x5f9   : > { %v8671_v47 = vpop.f32.mrf.mxu1  ;;  %6895 = vadd.xlane.f32.xlu1 %v6894_v50  ;;  %6892 = vadd.xlane.f32.xlu0 %v6891_v7 }
 0x5fa   : > { %v6844_v42 = vmul.f32 %v16116_v56, %v16116_v56  ;;  %v16122_v39 = vadd.f32 %v8671_v47, %v16040_v31  ;;  %v6906_v28 = vsel %vm1506_vm3, %v6846_v53, 0.0 }
 0x5fb   : > { %v6756_v19 = vpop.f32.mrf.mxu1 }
 0x5fc   : > { %v16127_v6 = vadd.f32 %v16040_v31, %v6756_v19  ;;  %v6900_v26 = vsel %vm1506_vm3, %v6844_v42, 0.0  ;;  %v6847_v54 = vmul.f32 %v16122_v39, %v16122_v39 }
 0x5fd   : > { %v8674_v58 = vpop.f32.mrf.mxu1  ;;  %6901 = vadd.xlane.f32.xlu1 %v6900_v26  ;;  %6898 = vadd.xlane.f32.xlu0 %v6897_v52 }
 0x5fe   : > { %v6845_v13 = vmul.f32 %v16127_v6, %v16127_v6  ;;  %v16136_v30 = vadd.f32 %v8674_v58, %v16040_v31  ;;  %v6909_v11 = vsel %vm1506_vm3, %v6847_v54, 0.0 }
 0x5ff   : > { %v6769_v61 = vpop.f32.mrf.mxu1 }
 0x600   : > { %v16139_v34 = vadd.f32 %v16040_v31, %v6769_v61  ;;  %v6903_v4 = vsel %vm1506_vm3, %v6845_v13, 0.0  ;;  %v6850_v22 = vmul.f32 %v16136_v30, %v16136_v30 }
 0x601   : > { %v8675_v27 = vpop.f32.mrf.mxu1  ;;  %6907 = vadd.xlane.f32.xlu1 %v6906_v28  ;;  %6904 = vadd.xlane.f32.xlu0 %v6903_v4 }
 0x602   : > { %v6848_v3 = vmul.f32 %v16139_v34, %v16139_v34  ;;  %v16149_v14 = vadd.f32 %v8675_v27, %v16040_v31  ;;  %v6918_v60 = vsel %vm1506_vm3, %v6850_v22, 0.0 }
 0x603   : > { %v6772_v62 = vpop.f32.mrf.mxu1 }
 0x604   : > { %v16152_v29 = vadd.f32 %v16040_v31, %v6772_v62  ;;  %v6912_v9 = vsel %vm1506_vm3, %v6848_v3, 0.0  ;;  %v6851_v45 = vmul.f32 %v16149_v14, %v16149_v14 }
 0x605   : > { %6913 = vadd.xlane.f32.xlu1 %v6912_v9  ;;  %6910 = vadd.xlane.f32.xlu0 %v6909_v11 }
 0x606   : > { %v6849_v37 = vmul.f32 %v16152_v29, %v16152_v29  ;;  %v6921_v38 = vsel %vm1506_vm3, %v6851_v45, 0.0 }
 0x607   : > { %v8678_v0 = vpop.f32.mrf.mxu1 }
 0x608   : > { %v6915_v21 = vsel %vm1506_vm3, %v6849_v37, 0.0  ;;  %v16162_v1 = vadd.f32 %v8678_v0, %v16040_v31 }
 0x609   : > { %v6785_v46 = vpop.f32.mrf.mxu1  ;;  %6919 = vadd.xlane.f32.xlu1 %v6918_v60  ;;  %6916 = vadd.xlane.f32.xlu0 %v6915_v21 }
 0x60a   : > { %v16165_v36 = vadd.f32 %v16040_v31, %v6785_v46  ;;  %v6854_v24 = vmul.f32 %v16162_v1, %v16162_v1 }
 0x60b   : > { %v8679_v40 = vpop.f32.mrf.mxu1 }
 0x60c   : > { %v6852_v63 = vmul.f32 %v16165_v36, %v16165_v36  ;;  %v16173_v25 = vadd.f32 %v8679_v40, %v16040_v31  ;;  %v6930_v26 = vsel %vm1506_vm3, %v6854_v24, 0.0 }
 0x60d   : > { %v6788_v50 = vpop.f32.mrf.mxu1  ;;  %6922 = vadd.xlane.f32.xlu0 %v6921_v38 }
 0x60e   : > { %v16176_v7 = vadd.f32 %v16040_v31, %v6788_v50  ;;  %v6924_v47 = vsel %vm1506_vm3, %v6852_v63, 0.0  ;;  %v6855_v52 = vmul.f32 %v16173_v25, %v16173_v25 }
 0x60f   : > { %v8682_v42 = vpop.f32.mrf.mxu1  ;;  %6925 = vadd.xlane.f32.xlu1 %v6924_v47 }
 0x610   : > { %v6853_v19 = vmul.f32 %v16176_v7, %v16176_v7  ;;  %v16185_v58 = vadd.f32 %v8682_v42, %v16040_v31  ;;  %v6933_v22 = vsel %vm1506_vm3, %v6855_v52, 0.0 }
 0x611   : > { %v6801_v53 = vpop.f32.mrf.mxu1 }
 0x612   : > { %v16188_v13 = vadd.f32 %v16040_v31, %v6801_v53  ;;  %v6927_v54 = vsel %vm1506_vm3, %v6853_v19, 0.0  ;;  %v6858_v3 = vmul.f32 %v16185_v58, %v16185_v58 }
 0x613   : > { %v8683_v61 = vpop.f32.mrf.mxu1  ;;  %6931 = vadd.xlane.f32.xlu1 %v6930_v26  ;;  %6928 = vadd.xlane.f32.xlu0 %v6927_v54 }
 0x614   : > { %v6856_v28 = vmul.f32 %v16188_v13, %v16188_v13  ;;  %v16194_v4 = vadd.f32 %v8683_v61, %v16040_v31  ;;  %v6942_v46 = vsel %vm1506_vm3, %v6858_v3, 0.0 }
 0x615   : > { %v6804_v27 = vpop.f32.mrf.mxu1 }
 0x616   : > { %v16199_v62 = vadd.f32 %v16040_v31, %v6804_v27  ;;  %v6936_v11 = vsel %vm1506_vm3, %v6856_v28, 0.0  ;;  %v6859_v0 = vmul.f32 %v16194_v4, %v16194_v4 }
 0x617   : > { %6937 = vadd.xlane.f32.xlu1 %v6936_v11  ;;  %6934 = vadd.xlane.f32.xlu0 %v6933_v22  ;;  %v8686_v9 = vpop.f32.mrf.mxu1 }
 0x618   : > { %v6857_v37 = vmul.f32 %v16199_v62, %v16199_v62  ;;  %v16208_v60 = vadd.f32 %v8686_v9, %v16040_v31  ;;  %v6945_v50 = vsel %vm1506_vm3, %v6859_v0, 0.0 }
 0x619   : > { %v6817_v45 = vpop.f32.mrf.mxu1 }
 0x61a   : > { %v16211_v21 = vadd.f32 %v16040_v31, %v6817_v45  ;;  %v6939_v40 = vsel %vm1506_vm3, %v6857_v37, 0.0  ;;  %v6862_v47 = vmul.f32 %v16208_v60, %v16208_v60 }
 0x61b   : > { %6943 = vadd.xlane.f32.xlu1 %v6942_v46  ;;  %6940 = vadd.xlane.f32.xlu0 %v6939_v40  ;;  %v8687_v63 = vpop.f32.mrf.mxu1 }
 0x61c   : > { %v6860_v38 = vmul.f32 %v16211_v21, %v16211_v21  ;;  %v16221_v42 = vadd.f32 %v8687_v63, %v16040_v31  ;;  %v6954_v61 = vsel %vm1506_vm3, %v6862_v47, 0.0 }
 0x61d   : > { %v6820_v24 = vpop.f32.mrf.mxu1 }
 0x61e   : > { %v16224_v19 = vadd.f32 %v16040_v31, %v6820_v24  ;;  %v6948_v53 = vsel %vm1506_vm3, %v6860_v38, 0.0  ;;  %v6863_v52 = vmul.f32 %v16221_v42, %v16221_v42 }
 0x61f   : > { %6946 = vadd.xlane.f32.xlu0 %v6945_v50  ;;  %6949 = vadd.xlane.f32.xlu1 %v6948_v53 }
 0x620   : > { %v6861_v26 = vmul.f32 %v16224_v19, %v16224_v19  ;;  %v6957_v28 = vsel %vm1506_vm3, %v6863_v52, 0.0 }
 0x622   : > { %v6951_v54 = vsel %vm1506_vm3, %v6861_v26, 0.0 }
 0x623   : > { %6952 = vadd.xlane.f32.xlu0 %v6951_v54  ;;  %6955 = vadd.xlane.f32.xlu1 %v6954_v61 }
 0x627   : > { %6958 = vadd.xlane.f32.xlu0 %v6957_v28 }
 0x66d   : > { %v6866_v31 = vpop.xlane.xlu0 %6865 }
 0x66e   : > { %v6960_v27 = vmax.f32 %v6866_v31, 1e-24 }
 0x670   : > { %10481 = vrsqrt.f32 %v6960_v27 }
 0x671   : > { %v6869_v3 = vpop.xlane.xlu1 %6868  ;;  %v6872_v11 = vpop.xlane.xlu0 %6871 }
 0x672   : > { %v6961_v22 = vmax.f32 %v6869_v3, 1e-24  ;;  %v6962_v9 = vmax.f32 %v6872_v11, 1e-24 }
 0x674   : > { %10483 = vrsqrt.f32 %v6961_v22 }
 0x675   : > { %v6878_v37 = vpop.xlane.xlu1 %6877  ;;  %v6875_v0 = vpop.xlane.xlu0 %6874  ;;  %10485 = vrsqrt.f32 %v6962_v9 }
 0x676   : > { %v6963_v45 = vmax.f32 %v6875_v0, 1e-24  ;;  %v6964_v46 = vmax.f32 %v6878_v37, 1e-24 }
 0x678   : > { %10487 = vrsqrt.f32 %v6963_v45 }
 0x679   : > { %v6884_v40 = vpop.xlane.xlu1 %6883  ;;  %v6881_v63 = vpop.xlane.xlu0 %6880  ;;  %10489 = vrsqrt.f32 %v6964_v46 }
 0x67a   : > { %v6966_v38 = vmax.f32 %v6884_v40, 1e-24  ;;  %v6965_v24 = vmax.f32 %v6881_v63, 1e-24 }
 0x67c   : > { %10491 = vrsqrt.f32 %v6965_v24 }
 0x67d   : > { %v6887_v50 = vpop.xlane.xlu0 %6886  ;;  %10493 = vrsqrt.f32 %v6966_v38  ;;  %v10482_v26 = vpop.eup %10481 }
 0x67e   : > { %v6890_v47 = vpop.xlane.xlu1 %6889  ;;  %v6967_v53 = vmax.f32 %v6887_v50, 1e-24  ;;  %v7024_v31 = vmul.f32 %v10482_v26, %v16046_v41 }
 0x67f   : > { %v6968_v52 = vmax.f32 %v6890_v47, 1e-24 }
 0x680   : > { %10495 = vrsqrt.f32 %v6967_v53 }
 0x681   : > { %v10484_v54 = vpop.eup %10483  ;;  %10497 = vrsqrt.f32 %v6968_v52 }
 0x682   : > { %v6896_v61 = vpop.xlane.xlu1 %6895  ;;  %v6893_v28 = vpop.xlane.xlu0 %6892  ;;  %v7025_v27 = vmul.f32 %v10484_v54, %v16056_v12 }
 0x683   : > { %v6969_v3 = vmax.f32 %v6893_v28, 1e-24  ;;  %v10486_v11 = vpop.eup %10485  ;;  %v6970_v22 = vmax.f32 %v6896_v61, 1e-24 }
 0x684   : > { %v7056_v9 = vpack.c.bf16 %v7025_v27, %v7024_v31  ;;  %v7026_v46 = vmul.f32 %v10486_v11, %v16043_v17 }
 0x685   : > { %v10488_v37 = vpop.eup %10487  ;;  %10499 = vrsqrt.f32 %v6969_v3 }
 0x686   : > { %v6902_v0 = vpop.xlane.xlu1 %6901  ;;  %v6899_v45 = vpop.xlane.xlu0 %6898  ;;  %8690 = vmatprep.mubr.msk.bf16.mxu0 %vm1506_vm3, %v7056_v9  ;;  %v7027_v40 = vmul.f32 %v10488_v37, %v16051_v33  ;;  %10501 = vrsqrt.f32 %v6970_v22 }
 0x687   : > { %v6971_v63 = vmax.f32 %v6899_v45, 1e-24  ;;  %v10490_v38 = vpop.eup %10489  ;;  %v6972_v41 = vmax.f32 %v6902_v0, 1e-24 }
 0x688   : > { %v7057_v12 = vpack.c.bf16 %v7027_v40, %v7026_v46  ;;  %v7028_v52 = vmul.f32 %v10490_v38, %v16067_v44 }
 0x689   : > { %v10492_v24 = vpop.eup %10491  ;;  %10503 = vrsqrt.f32 %v6971_v63 }
 0x68a   : > { %v6908_v50 = vpop.xlane.xlu1 %6907  ;;  %v6905_v47 = vpop.xlane.xlu0 %6904  ;;  %8691 = vmatmul.mubr.msk.bf16.vlgmr.msra.gmra.mxu0 %vm1506_vm3, %v7057_v12  ;;  %v7029_v54 = vmul.f32 %v10492_v24, %v16080_v55  ;;  %10505 = vrsqrt.f32 %v6972_v41 }
 0x68b   : > { %v10494_v53 = vpop.eup %10493  ;;  %v6973_v26 = vmax.f32 %v6905_v47, 1e-24  ;;  %v6974_v17 = vmax.f32 %v6908_v50, 1e-24 }
 0x68c   : > { %v7058_v61 = vpack.c.bf16 %v7029_v54, %v7028_v52  ;;  %v7030_v27 = vmul.f32 %v10494_v53, %v16064_v15 }
 0x68d   : > { %v10496_v33 = vpop.eup %10495  ;;  %10507 = vrsqrt.f32 %v6973_v26 }
 0x68e   : > { %v6914_v28 = vpop.xlane.xlu1 %6913  ;;  %v6911_v31 = vpop.xlane.xlu0 %6910  ;;  %v7031_v3 = vmul.f32 %v10496_v33, %v16077_v57  ;;  %8694 = vmatprep.mubr.msk.bf16.mxu0 %vm1506_vm3, %v7058_v61  ;;  %10509 = vrsqrt.f32 %v6974_v17 }
 0x68f   : > { %v6975_v11 = vmax.f32 %v6911_v31, 1e-24  ;;  %v6976_v22 = vmax.f32 %v6914_v28, 1e-24  ;;  %v10498_v44 = vpop.eup %10497 }
 0x690   : > { %v7059_v9 = vpack.c.bf16 %v7031_v3, %v7030_v27  ;;  %v7032_v15 = vmul.f32 %v10498_v44, %v16093_v20 }
 0x691   : > { %10511 = vrsqrt.f32 %v6975_v11 }
 0x692   : > { %v6920_v55 = vpop.xlane.xlu1 %6919  ;;  %v6917_v37 = vpop.xlane.xlu0 %6916  ;;  %8695 = vmatmul.mubr.msk.bf16.gmra.mxu0 %vm1506_vm3, %v7059_v9  ;;  %10513 = vrsqrt.f32 %v6976_v22 }
 0x693   : > { %v10500_v0 = vpop.eup %10499  ;;  %v6978_v45 = vmax.f32 %v6920_v55, 1e-24  ;;  %v6977_v46 = vmax.f32 %v6917_v37, 1e-24 }
 0x694   : > { %v7033_v57 = vmul.f32 %v10500_v0, %v16104_v59  ;;  %v10502_v40 = vpop.eup %10501 }
 0x695   : > { %10515 = vrsqrt.f32 %v6977_v46  ;;  %v7034_v50 = vmul.f32 %v10502_v40, %v16088_v18 }
 0x696   : > { %v6923_v63 = vpop.xlane.xlu0 %6922  ;;  %v7060_v38 = vpack.c.bf16 %v7033_v57, %v7032_v15  ;;  %v10504_v41 = vpop.eup %10503  ;;  %10517 = vrsqrt.f32 %v6978_v45 }
 0x697   : > { %v6979_v12 = vmax.f32 %v6923_v63, 1e-24  ;;  %v7035_v47 = vmul.f32 %v10504_v41, %v16101_v16  ;;  %v10506_v53 = vpop.eup %10505 }
 0x698   : > { %v6926_v24 = vpop.xlane.xlu1 %6925  ;;  %8698 = vmatprep.mubr.msk.bf16.mxu0 %vm1506_vm3, %v7060_v38  ;;  %v7036_v17 = vmul.f32 %v10506_v53, %v16116_v56 }
 0x699   : > { %10519 = vrsqrt.f32 %v6979_v12  ;;  %v6980_v26 = vmax.f32 %v6926_v24, 1e-24  ;;  %v7061_v20 = vpack.c.bf16 %v7035_v47, %v7034_v50 }
 0x69a   : > { %v10508_v52 = vpop.eup %10507 }
 0x69b   : > { %8699 = vmatmul.mubr.msk.bf16.gmra.mxu0 %vm1506_vm3, %v7061_v20  ;;  %v7037_v33 = vmul.f32 %v10508_v52, %v16127_v6  ;;  %v10510_v61 = vpop.eup %10509  ;;  %10521 = vrsqrt.f32 %v6980_v26 }
 0x69c   : > { %v6932_v59 = vpop.xlane.xlu1 %6931  ;;  %v6929_v54 = vpop.xlane.xlu0 %6928  ;;  %v7038_v11 = vmul.f32 %v10510_v61, %v16113_v43 }
 0x69d   : > { %v6981_v28 = vmax.f32 %v6929_v54, 1e-24  ;;  %v6982_v31 = vmax.f32 %v6932_v59, 1e-24  ;;  %v7062_v18 = vpack.c.bf16 %v7037_v33, %v7036_v17 }
 0x69e   : > { %v10512_v27 = vpop.eup %10511 }
 0x69f   : > { %10523 = vrsqrt.f32 %v6981_v28  ;;  %8702 = vmatprep.mubr.msk.bf16.mxu0 %vm1506_vm3, %v7062_v18  ;;  %v7039_v22 = vmul.f32 %v10512_v27, %v16122_v39  ;;  %v10514_v9 = vpop.eup %10513 }
 0x6a0   : > { %v6938_v16 = vpop.xlane.xlu1 %6937  ;;  %v6935_v3 = vpop.xlane.xlu0 %6934  ;;  %10525 = vrsqrt.f32 %v6982_v31  ;;  %v7040_v46 = vmul.f32 %v10514_v9, %v16139_v34 }
 0x6a1   : > { %v6983_v44 = vmax.f32 %v6935_v3, 1e-24  ;;  %v6984_v56 = vmax.f32 %v6938_v16, 1e-24  ;;  %v7063_v6 = vpack.c.bf16 %v7039_v22, %v7038_v11 }
 0x6a2   : > { %v10516_v55 = vpop.eup %10515 }
 0x6a3   : > { %v10518_v37 = vpop.eup %10517  ;;  %10527 = vrsqrt.f32 %v6983_v44  ;;  %8703 = vmatmul.mubr.msk.bf16.gmra.mxu0 %vm1506_vm3, %v7063_v6  ;;  %v7041_v15 = vmul.f32 %v10516_v55, %v16152_v29 }
 0x6a4   : > { %v6944_v0 = vpop.xlane.xlu1 %6943  ;;  %v6941_v45 = vpop.xlane.xlu0 %6940  ;;  %10529 = vrsqrt.f32 %v6984_v56  ;;  %v7042_v63 = vmul.f32 %v10518_v37, %v16136_v30 }
 0x6a5   : > { %v6986_v57 = vmax.f32 %v6944_v0, 1e-24  ;;  %v6985_v43 = vmax.f32 %v6941_v45, 1e-24  ;;  %v7064_v39 = vpack.c.bf16 %v7041_v15, %v7040_v46  ;;  %v16282_v45 = vstv %s7285_s27 }
 0x6a6   : > { %v10520_v40 = vpop.eup %10519 }
 0x6a7   : > { %v7043_v38 = vmul.f32 %v10520_v40, %v16149_v14  ;;  %10531 = vrsqrt.f32 %v6985_v43  ;;  %8706 = vmatprep.mubr.msk.bf16.mxu0 %vm1506_vm3, %v7064_v39 }
 0x6a8   : > { %v6947_v41 = vpop.xlane.xlu0 %6946  ;;  %v6950_v12 = vpop.xlane.xlu1 %6949  ;;  %10533 = vrsqrt.f32 %v6986_v57 }
 0x6a9   : > { %v6987_v24 = vmax.f32 %v6947_v41, 1e-24  ;;  %v6988_v50 = vmax.f32 %v6950_v12, 1e-24  ;;  %v7065_v34 = vpack.c.bf16 %v7043_v38, %v7042_v63  ;;  %v10522_v47 = vpop.eup %10521 }
 0x6aa   : > { %v7044_v14 = vmul.f32 %v10522_v47, %v16165_v36 }
 0x6ab   : > { %10535 = vrsqrt.f32 %v6987_v24  ;;  %8707 = vmatmul.mubr.msk.bf16.gmra.mxu0 %vm1506_vm3, %v7065_v34 }
 0x6ac   : > { %v6953_v29 = vpop.xlane.xlu0 %6952  ;;  %v6956_v53 = vpop.xlane.xlu1 %6955  ;;  %10537 = vrsqrt.f32 %v6988_v50 }
 0x6ad   : > { %v10524_v26 = vpop.eup %10523  ;;  %v6989_v30 = vmax.f32 %v6953_v29, 1e-24  ;;  %v6990_v20 = vmax.f32 %v6956_v53, 1e-24 }
 0x6ae   : > { %v7045_v52 = vmul.f32 %v10524_v26, %v16176_v7  ;;  %v10526_v59 = vpop.eup %10525 }
 0x6af   : > { %10539 = vrsqrt.f32 %v6989_v30  ;;  %v7046_v28 = vmul.f32 %v10526_v59, %v16162_v1 }
 0x6b0   : > { %v6959_v54 = vpop.xlane.xlu0 %6958  ;;  %v7066_v17 = vpack.c.bf16 %v7045_v52, %v7044_v14  ;;  %v10528_v33 = vpop.eup %10527  ;;  %10541 = vrsqrt.f32 %v6990_v20 }
 0x6b1   : > { %v6991_v61 = vmax.f32 %v6959_v54, 1e-24  ;;  %v7047_v31 = vmul.f32 %v10528_v33, %v16173_v25  ;;  %v10530_v18 = vpop.eup %10529 }
 0x6b2   : > { %8710 = vmatprep.mubr.msk.bf16.mxu0 %vm1506_vm3, %v7066_v17  ;;  %v7048_v7 = vmul.f32 %v10530_v18, %v16188_v13 }
 0x6b3   : > { %10543 = vrsqrt.f32 %v6991_v61  ;;  %v7067_v27 = vpack.c.bf16 %v7047_v31, %v7046_v28 }
 0x6b4   : > { %v10532_v16 = vpop.eup %10531 }
 0x6b5   : > { %v10534_v36 = vpop.eup %10533  ;;  %8711 = vmatmul.mubr.msk.bf16.gmra.mxu0 %vm1506_vm3, %v7067_v27  ;;  %v7049_v3 = vmul.f32 %v10532_v16, %v16199_v62 }
 0x6b6   : > { %v7050_v9 = vmul.f32 %v10534_v36, %v16185_v58 }
 0x6b7   : > { %v7068_v22 = vpack.c.bf16 %v7049_v3, %v7048_v7 }
 0x6b8   : > { %v10536_v11 = vpop.eup %10535 }
 0x6b9   : > { %v7051_v44 = vmul.f32 %v10536_v11, %v16194_v4  ;;  %v10538_v1 = vpop.eup %10537  ;;  %8714 = vmatprep.mubr.msk.bf16.mxu0 %vm1506_vm3, %v7068_v22 }
 0x6ba   : > { %v7052_v6 = vmul.f32 %v10538_v1, %v16211_v21 }
 0x6bb   : > { %v7069_v25 = vpack.c.bf16 %v7051_v44, %v7050_v9 }
 0x6bc   : > { %v10540_v56 = vpop.eup %10539 }
 0x6bd   : > { %v7053_v55 = vmul.f32 %v10540_v56, %v16224_v19  ;;  %v10542_v37 = vpop.eup %10541  ;;  %8715 = vmatmul.mubr.msk.bf16.gmra.mxu0 %vm1506_vm3, %v7069_v25  ;;  %v16284_v19 = vstv %s7936_s14 }
 0x6be   : > { %v7054_v58 = vmul.f32 %v10542_v37, %v16208_v60 }
 0x6bf   : > { %v7070_v13 = vpack.c.bf16 %v7053_v55, %v7052_v6 }
 0x6c0   : > { %v10544_v62 = vpop.eup %10543 }
 0x6c1   : > { %8718 = vmatprep.mubr.msk.bf16.mxu0 %vm1506_vm3, %v7070_v13  ;;  %v7055_v4 = vmul.f32 %v10544_v62, %v16221_v42 }
 0x6c3   : > { %v7071_v0 = vpack.c.bf16 %v7055_v4, %v7054_v58 }
 0x6c5   : > { %8719 = vmatmul.mubr.msk.bf16.gmra.mxu0 %vm1506_vm3, %v7071_v0 }
 0x74a   : > { %v8692_v21 = vpop.f32.mrf.mxu0 }
 0x74b   : > { %v7289_v46 = vmul.f32 %v8692_v21, %v16282_v45 }
 0x74c   : > { %v7158_v15 = vpop.f32.mrf.mxu0 }
 0x74d   : > { %v7323_v57 = vadd.f32 %v16284_v19, %v7289_v46  ;;  %v7287_v43 = vmul.f32 %v16282_v45, %v7158_v15 }
 0x74e   : > { %v8693_v60 = vpop.f32.mrf.mxu0 }
 0x74f   : > { %7389 = vrot.lane.b32.xlu1 %v7323_v57, %s10625_s30  ;;  %v7321_v40 = vadd.f32 %v16284_v19, %v7287_v43  ;;  %v7290_v39 = vmul.f32 %v8693_v60, %v16282_v45 }
 0x750   : > { %v7161_v42 = vpop.f32.mrf.mxu0 }
 0x751   : > { %v7288_v63 = vmul.f32 %v16282_v45, %v7161_v42  ;;  %v7324_v50 = vadd.f32 %v16284_v19, %v7290_v39 }
 0x752   : > { %v8696_v38 = vpop.f32.mrf.mxu0 }
 0x753   : > { %v7322_v41 = vadd.f32 %v16284_v19, %v7288_v63  ;;  %v7293_v12 = vmul.f32 %v8696_v38, %v16282_v45  ;;  %7385 = vrot.lane.b32.xlu1 %v7321_v40, %s10625_s30 }
 0x754   : > { %v7174_v24 = vpop.f32.mrf.mxu0 }
 0x755   : > { %7387 = vrot.lane.b32.xlu0 %v7322_v41, %s10625_s30  ;;  %v7327_v47 = vadd.f32 %v16284_v19, %v7293_v12  ;;  %v7291_v29 = vmul.f32 %v16282_v45, %v7174_v24 }
 0x756   : > { %v8697_v34 = vpop.f32.mrf.mxu0 }
 0x757   : > { %v7294_v53 = vmul.f32 %v8697_v34, %v16282_v45  ;;  %7391 = vrot.lane.b32.xlu1 %v7324_v50, %s10625_s30  ;;  %v7325_v14 = vadd.f32 %v16284_v19, %v7291_v29 }
 0x758   : > { %v7177_v26 = vpop.f32.mrf.mxu0 }
 0x759   : > { %v7328_v30 = vadd.f32 %v16284_v19, %v7294_v53  ;;  %v7292_v20 = vmul.f32 %v16282_v45, %v7177_v26  ;;  %7397 = vrot.lane.b32.xlu0 %v7327_v47, %s10625_s30 }
 0x75b   : > { %v8700_v52 = vpop.f32.mrf.mxu0  ;;  %7399 = vrot.lane.b32.xlu1 %v7328_v30, %s10625_s30  ;;  %v7326_v54 = vadd.f32 %v16284_v19, %v7292_v20 }
 0x75c   : > { %v7297_v59 = vmul.f32 %v8700_v52, %v16282_v45 }
 0x75d   : > { %v7190_v17 = vpop.f32.mrf.mxu0  ;;  %7393 = vrot.lane.b32.xlu0 %v7325_v14, %s10625_s30 }
 0x75e   : > { %v7331_v33 = vadd.f32 %v16284_v19, %v7297_v59  ;;  %v7295_v61 = vmul.f32 %v16282_v45, %v7190_v17 }
 0x75f   : > { %v8701_v28 = vpop.f32.mrf.mxu0  ;;  %7395 = vrot.lane.b32.xlu1 %v7326_v54, %s10625_s30 }
 0x760   : > { %v7298_v31 = vmul.f32 %v8701_v28, %v16282_v45  ;;  %v7329_v36 = vadd.f32 %v16284_v19, %v7295_v61 }
 0x761   : > { %v7193_v18 = vpop.f32.mrf.mxu0  ;;  %7405 = vrot.lane.b32.xlu0 %v7331_v33, %s10625_s30 }
 0x762   : > { %v7332_v27 = vadd.f32 %v16284_v19, %v7298_v31  ;;  %v7296_v16 = vmul.f32 %v16282_v45, %v7193_v18 }
 0x763   : > { %v8704_v7 = vpop.f32.mrf.mxu0 }
 0x764   : > { %v7301_v3 = vmul.f32 %v8704_v7, %v16282_v45  ;;  %7407 = vrot.lane.b32.xlu1 %v7332_v27, %s10625_s30  ;;  %v7330_v22 = vadd.f32 %v16284_v19, %v7296_v16 }
 0x765   : > { %v7206_v11 = vpop.f32.mrf.mxu0  ;;  %7401 = vrot.lane.b32.xlu0 %v7329_v36, %s10625_s30 }
 0x766   : > { %v7335_v9 = vadd.f32 %v16284_v19, %v7301_v3  ;;  %v7299_v44 = vmul.f32 %v16282_v45, %v7206_v11 }
 0x767   : > { %v8705_v1 = vpop.f32.mrf.mxu0 }
 0x768   : > { %v7302_v25 = vmul.f32 %v8705_v1, %v16282_v45  ;;  %7403 = vrot.lane.b32.xlu1 %v7330_v22, %s10625_s30  ;;  %v7333_v37 = vadd.f32 %v16284_v19, %v7299_v44 }
 0x769   : > { %v7209_v56 = vpop.f32.mrf.mxu0  ;;  %7413 = vrot.lane.b32.xlu0 %v7335_v9, %s10625_s30 }
 0x76a   : > { %v7336_v6 = vadd.f32 %v16284_v19, %v7302_v25  ;;  %v7300_v55 = vmul.f32 %v16282_v45, %v7209_v56 }
 0x76b   : > { %v8708_v13 = vpop.f32.mrf.mxu0 }
 0x76c   : > { %v7305_v62 = vmul.f32 %v8708_v13, %v16282_v45  ;;  %7415 = vrot.lane.b32.xlu1 %v7336_v6, %s10625_s30  ;;  %v7334_v4 = vadd.f32 %v16284_v19, %v7300_v55  ;;  %v16385_v6 = vld [vmem:[%s16563_s6] ss:$0 sm:$0xff] }
 0x76d   : > { %v7222_v58 = vpop.f32.mrf.mxu0  ;;  %7409 = vrot.lane.b32.xlu0 %v7333_v37, %s10625_s30  ;;  %v4555_v55 = vadd.f32 %v15641_v10, %v16385_v6  ;;  %v4547_v37 = vadd.f32 %v16385_v6, %v15645_v23  ;;  %v4550_v13 = vadd.f32 %v16385_v6, %v15651_v5 }
 0x76e   : > { %v7339_v0 = vadd.f32 %v16284_v19, %v7305_v62  ;;  %v7303_v21 = vmul.f32 %v16282_v45, %v7222_v58 }
 0x76f   : > { %v8709_v46 = vpop.f32.mrf.mxu0 }
 0x770   : > { %v7306_v15 = vmul.f32 %v8709_v46, %v16282_v45  ;;  %7411 = vrot.lane.b32.xlu1 %v7334_v4, %s10625_s30  ;;  %v7337_v42 = vadd.f32 %v16284_v19, %v7303_v21  ;;  %v4558_v4 = vadd.f32 %v15647_v49, %v16385_v6  ;;  %v4571_v21 = vadd.f32 %v15655_v35, %v16385_v6 }
 0x771   : > { %v7225_v57 = vpop.f32.mrf.mxu0  ;;  %7421 = vrot.lane.b32.xlu0 %v7339_v0, %s10625_s30 }
 0x772   : > { %v7340_v43 = vadd.f32 %v16284_v19, %v7306_v15  ;;  %v7304_v60 = vmul.f32 %v16282_v45, %v7225_v57  ;;  %v4574_v15 = vadd.f32 %v15666_v8, %v16385_v6 }
 0x774   : > { %7423 = vrot.lane.b32.xlu1 %v7340_v43, %s10625_s30  ;;  %v7338_v39 = vadd.f32 %v16284_v19, %v7304_v60  ;;  %v4563_v43 = vadd.f32 %v16385_v6, %v15659_v48 }
 0x775   : > { %v8712_v40 = vpop.f32.mrf.mxu0  ;;  %7417 = vrot.lane.b32.xlu0 %v7337_v42, %s10625_s30  ;;  %v4566_v42 = vadd.f32 %v16385_v6, %v15670_v51  ;;  %v4590_v51 = vadd.f32 %v15680_v2, %v16385_v6  ;;  %v17447_v2 = vld [vmem:[#allocation68_spill] sm:$0xff] }
 0x776   : > { %v7309_v63 = vmul.f32 %v8712_v40, %v16282_v45 }
 0x777   : > { %v7238_v38 = vpop.f32.mrf.mxu0 }
 0x778   : > { %v7343_v41 = vadd.f32 %v16284_v19, %v7309_v63  ;;  %v7307_v12 = vmul.f32 %v16282_v45, %v7238_v38  ;;  %7419 = vrot.lane.b32.xlu1 %v7338_v39, %s10625_s30  ;;  %v4587_v39 = vadd.f32 %v15674_v32, %v16385_v6 }
 0x779   : > { %v8713_v24 = vpop.f32.mrf.mxu0 }
 0x77a   : > { %v7310_v50 = vmul.f32 %v8713_v24, %v16282_v45  ;;  %7429 = vrot.lane.b32.xlu0 %v7343_v41, %s10625_s30  ;;  %v7341_v47 = vadd.f32 %v16284_v19, %v7307_v12  ;;  %v17445_v41 = vld [vmem:[#allocation58_spill] sm:$0xff] }
 0x77b   : > { %v7241_v34 = vpop.f32.mrf.mxu0  ;;  %v4579_v12 = vadd.f32 %v16385_v6, %v17445_v41 }
 0x77c   : > { %v7344_v29 = vadd.f32 %v16284_v19, %v7310_v50  ;;  %v7308_v53 = vmul.f32 %v16282_v45, %v7241_v34 }
 0x77d   : > { %v8716_v26 = vpop.f32.mrf.mxu0 }
 0x77e   : > { %v7313_v30 = vmul.f32 %v8716_v26, %v16282_v45  ;;  %7431 = vrot.lane.b32.xlu1 %v7344_v29, %s10625_s30  ;;  %7425 = vrot.lane.b32.xlu0 %v7341_v47, %s10625_s30  ;;  %v7342_v14 = vadd.f32 %v16284_v19, %v7308_v53  ;;  %v17446_v47 = vld [vmem:[#allocation31_spill] sm:$0xff]  ;;  %v4603_v53 = vadd.f32 %v17447_v2, %v16385_v6 }
 0x77f   : > { %v7254_v20 = vpop.f32.mrf.mxu0  ;;  %v4582_v29 = vadd.f32 %v16385_v6, %v17446_v47 }
 0x780   : > { %v7347_v52 = vadd.f32 %v16284_v19, %v7313_v30  ;;  %v7311_v59 = vmul.f32 %v16282_v45, %v7254_v20 }
 0x781   : > { %v8717_v54 = vpop.f32.mrf.mxu0 }
 0x782   : > { %v7314_v17 = vmul.f32 %v8717_v54, %v16282_v45  ;;  %7427 = vrot.lane.b32.xlu1 %v7342_v14, %s10625_s30  ;;  %7437 = vrot.lane.b32.xlu0 %v7347_v52, %s10625_s30  ;;  %v7345_v61 = vadd.f32 %v16284_v19, %v7311_v59  ;;  %v17448_v52 = vld [vmem:[#allocation65_spill] sm:$0xff]  ;;  %v17449_v54 = vld [vmem:[#allocation60_spill] sm:$0xff] }
 0x783   : > { %v7257_v33 = vpop.f32.mrf.mxu0  ;;  %v4606_v59 = vadd.f32 %v17448_v52, %v16385_v6 }
 0x784   : > { %v7348_v28 = vadd.f32 %v16284_v19, %v7314_v17  ;;  %v7312_v31 = vmul.f32 %v16282_v45, %v7257_v33  ;;  %v4595_v17 = vadd.f32 %v16385_v6, %v17449_v54 }
 0x785   : > { %v8720_v18 = vpop.f32.mrf.mxu0 }
 0x786   : > { %7439 = vrot.lane.b32.xlu1 %v7348_v28, %s10625_s30  ;;  %7433 = vrot.lane.b32.xlu0 %v7345_v61, %s10625_s30  ;;  %v7346_v16 = vadd.f32 %v16284_v19, %v7312_v31  ;;  %v7317_v3 = vmul.f32 %v8720_v18, %v16282_v45  ;;  %v17450_v18 = vld [vmem:[#allocation78_spill] sm:$0xff] }
 0x787   : > { %v7270_v27 = vpop.f32.mrf.mxu0 }
 0x788   : > { %v7315_v36 = vmul.f32 %v16282_v45, %v7270_v27  ;;  %v7351_v44 = vadd.f32 %v16284_v19, %v7317_v3  ;;  %v4598_v27 = vadd.f32 %v16385_v6, %v17450_v18 }
 0x789   : > { %v8721_v7 = vpop.f32.mrf.mxu0 }
 0x78a   : > { %v7349_v11 = vadd.f32 %v16284_v19, %v7315_v36  ;;  %7435 = vrot.lane.b32.xlu1 %v7346_v16, %s10625_s30  ;;  %v7318_v1 = vmul.f32 %v8721_v7, %v16282_v45  ;;  %v17451_v16 = vld [vmem:[#allocation25_spill] sm:$0xff] }
 0x78b   : > { %v7273_v22 = vpop.f32.mrf.mxu0  ;;  %v4619_v36 = vadd.f32 %v17451_v16, %v16385_v6 }
 0x78c   : > { %v7316_v9 = vmul.f32 %v16282_v45, %v7273_v22  ;;  %7441 = vrot.lane.b32.xlu0 %v7349_v11, %s10625_s30  ;;  %v7352_v56 = vadd.f32 %v16284_v19, %v7318_v1  ;;  %v17453_v1 = vld [vmem:[#allocation33_spill] sm:$0xff] }
 0x78e   : > { %v7350_v25 = vadd.f32 %v16284_v19, %v7316_v9  ;;  %v17452_v9 = vld [vmem:[#allocation91_spill] sm:$0xff] }
 0x790   : > { %7445 = vrot.lane.b32.xlu0 %v7351_v44, %s10625_s30  ;;  %7443 = vrot.lane.b32.xlu1 %v7350_v25, %s10625_s30  ;;  %v4622_v44 = vadd.f32 %v17452_v9, %v16385_v6  ;;  %v4611_v25 = vadd.f32 %v16385_v6, %v17453_v1 }
 0x794   : > { %7447 = vrot.lane.b32.xlu1 %v7352_v56, %s10625_s30 }
 0x7c1   : > { %v7390_v45 = vpop.permute.xlu1 %7389 }
 0x7c2   : > { %v7483_v19 = vsel %vm1538_vm4, %v4555_v55, %v7390_v45 }
 0x7c3   : > { %7516 = vst.msk [vmem:[%s16394_s18 + $0x10] sm:$0xff] %vm7513_vm8, %v7483_v19 }
 0x7c5   : > { %v7386_v10 = vpop.permute.xlu1 %7385 }
 0x7c6   : > { %v7481_v62 = vsel %vm1538_vm4, %v4547_v37, %v7386_v10  ;;  %v17454_v37 = vld [vmem:[#allocation90_spill] sm:$0xff] }
 0x7c7   : > { %7514 = vst.msk [vmem:[%s16394_s18] sm:$0xff] %vm7513_vm8, %v7481_v62  ;;  %v7388_v58 = vpop.permute.xlu0 %7387  ;;  %v4614_v10 = vadd.f32 %v16385_v6, %v17454_v37  ;;  %v17455_v62 = vld [vmem:[#allocation55_spill] sm:$0xff] }
 0x7c8   : > { %v7482_v0 = vsel %vm1538_vm4, %v4550_v13, %v7388_v58  ;;  %v4635_v58 = vadd.f32 %v17455_v62, %v16385_v6 }
 0x7c9   : > { %7515 = vst.msk [vmem:[%s16394_s18 + $0x8] sm:$0xff] %vm7513_vm8, %v7482_v0  ;;  %v7392_v23 = vpop.permute.xlu1 %7391 }
 0x7ca   : > { %v7484_v5 = vsel %vm1538_vm4, %v4558_v4, %v7392_v23 }
 0x7cb   : > { %7517 = vst.msk [vmem:[%s16394_s18 + $0x18] sm:$0xff] %vm7513_vm8, %v7484_v5  ;;  %v7398_v46 = vpop.permute.xlu0 %7397 }
 0x7cc   : > { %v7487_v49 = vsel %vm1538_vm4, %v4571_v21, %v7398_v46  ;;  %v17456_v21 = vld [vmem:[#allocation51_spill] sm:$0xff]  ;;  %v17457_v46 = vld [vmem:[#allocation17_spill] sm:$0xff] }
 0x7cd   : > { %7520 = vst.msk [vmem:[%s16394_s18 + $0x30] sm:$0xff] %vm7513_vm8, %v7487_v49  ;;  %v7400_v57 = vpop.permute.xlu1 %7399  ;;  %v4627_v5 = vadd.f32 %v16385_v6, %v17456_v21 }
 0x7ce   : > { %v7488_v35 = vsel %vm1538_vm4, %v4574_v15, %v7400_v57  ;;  %v4638_v15 = vadd.f32 %v17457_v46, %v16385_v6 }
 0x7cf   : > { %7521 = vst.msk [vmem:[%s16394_s18 + $0x38] sm:$0xff] %vm7513_vm8, %v7488_v35  ;;  %v7394_v60 = vpop.permute.xlu0 %7393 }
 0x7d0   : > { %v7485_v8 = vsel %vm1538_vm4, %v4563_v43, %v7394_v60  ;;  %v17458_v60 = vld [vmem:[#allocation32_spill] sm:$0xff] }
 0x7d1   : > { %7518 = vst.msk [vmem:[%s16394_s18 + $0x20] sm:$0xff] %vm7513_vm8, %v7485_v8  ;;  %v7396_v40 = vpop.permute.xlu1 %7395  ;;  %v17459_v8 = vld [vmem:[#allocation67_spill] sm:$0xff] }
 0x7d2   : > { %v7486_v48 = vsel %vm1538_vm4, %v4566_v42, %v7396_v40  ;;  %v4630_v42 = vadd.f32 %v16385_v6, %v17458_v60  ;;  %v4651_v40 = vadd.f32 %v17459_v8, %v16385_v6 }
 0x7d3   : > { %7519 = vst.msk [vmem:[%s16394_s18 + $0x28] sm:$0xff] %vm7513_vm8, %v7486_v48  ;;  %v7406_v63 = vpop.permute.xlu0 %7405 }
 0x7d4   : > { %v7491_v38 = vsel %vm1538_vm4, %v4587_v39, %v7406_v63 }
 0x7d5   : > { %7524 = vst.msk [vmem:[%s16394_s18 + $0x50] sm:$0xff] %vm7513_vm8, %v7491_v38 }
 0x7d6   : > { %v7408_v24 = vpop.permute.xlu1 %7407 }
 0x7d7   : > { %v7492_v32 = vsel %vm1538_vm4, %v4590_v51, %v7408_v24  ;;  %v7402_v50 = vpop.permute.xlu0 %7401  ;;  %v17460_v51 = vld [vmem:[#allocation99_spill] sm:$0xff] }
 0x7d8   : > { %7525 = vst.msk [vmem:[%s16394_s18 + $0x58] sm:$0xff] %vm7513_vm8, %v7492_v32  ;;  %v7489_v34 = vsel %vm1538_vm4, %v4579_v12, %v7402_v50  ;;  %v4643_v41 = vadd.f32 %v16385_v6, %v17460_v51  ;;  %v17461_v12 = vld [vmem:[#allocation50_spill] sm:$0xff] }
 0x7d9   : > { %7522 = vst.msk [vmem:[%s16394_s18 + $0x40] sm:$0xff] %vm7513_vm8, %v7489_v34  ;;  %v4654_v24 = vadd.f32 %v17461_v12, %v16385_v6 }
 0x7da   : > { %v7404_v26 = vpop.permute.xlu1 %7403 }
 0x7db   : > { %v7490_v30 = vsel %vm1538_vm4, %v4582_v29, %v7404_v26  ;;  %v7414_v20 = vpop.permute.xlu0 %7413  ;;  %v17462_v29 = vld [vmem:[#allocation94_spill] sm:$0xff]  ;;  %v17463_v26 = vld [vmem:[#allocation104_spill] sm:$0xff] }
 0x7dc   : > { %7523 = vst.msk [vmem:[%s16394_s18 + $0x48] sm:$0xff] %vm7513_vm8, %v7490_v30  ;;  %v7495_v14 = vsel %vm1538_vm4, %v4603_v53, %v7414_v20  ;;  %v4646_v2 = vadd.f32 %v16385_v6, %v17462_v29  ;;  %v4659_v30 = vadd.f32 %v16385_v6, %v17463_v26 }
 0x7dd   : > { %7528 = vst.msk [vmem:[%s16394_s18 + $0x70] sm:$0xff] %vm7513_vm8, %v7495_v14 }
 0x7de   : > { %v7416_v33 = vpop.permute.xlu1 %7415 }
 0x7df   : > { %v7496_v61 = vsel %vm1538_vm4, %v4606_v59, %v7416_v33  ;;  %v7410_v28 = vpop.permute.xlu0 %7409  ;;  %v17464_v59 = vld [vmem:[#allocation93_spill] sm:$0xff] }
 0x7e0   : > { %7529 = vst.msk [vmem:[%s16394_s18 + $0x78] sm:$0xff] %vm7513_vm8, %v7496_v61  ;;  %v7493_v31 = vsel %vm1538_vm4, %v4595_v17, %v7410_v28  ;;  %v4667_v54 = vadd.f32 %v17464_v59, %v16385_v6  ;;  %v17465_v17 = vld [vmem:[#allocation57_spill] sm:$0xff] }
 0x7e1   : > { %7526 = vst.msk [vmem:[%s16394_s18 + $0x60] sm:$0xff] %vm7513_vm8, %v7493_v31  ;;  %v4662_v33 = vadd.f32 %v16385_v6, %v17465_v17 }
 0x7e2   : > { %v7412_v7 = vpop.permute.xlu1 %7411 }
 0x7e3   : > { %v7494_v3 = vsel %vm1538_vm4, %v4598_v27, %v7412_v7  ;;  %v7422_v11 = vpop.permute.xlu0 %7421  ;;  %v17466_v27 = vld [vmem:[#allocation73_spill] sm:$0xff] }
 0x7e4   : > { %7527 = vst.msk [vmem:[%s16394_s18 + $0x68] sm:$0xff] %vm7513_vm8, %v7494_v3  ;;  %v7499_v22 = vsel %vm1538_vm4, %v4619_v36, %v7422_v11  ;;  %v4670_v16 = vadd.f32 %v17466_v27, %v16385_v6 }
 0x7e5   : > { %7532 = vst.msk [vmem:[%s16394_s18 + $0x90] sm:$0xff] %vm7513_vm8, %v7499_v22 }
 0x7e6   : > { %v7424_v56 = vpop.permute.xlu1 %7423 }
 0x7e7   : > { %v7500_v55 = vsel %vm1538_vm4, %v4622_v44, %v7424_v56  ;;  %v7418_v45 = vpop.permute.xlu0 %7417 }
 0x7e8   : > { %7533 = vst.msk [vmem:[%s16394_s18 + $0x98] sm:$0xff] %vm7513_vm8, %v7500_v55  ;;  %v7497_v19 = vsel %vm1538_vm4, %v4611_v25, %v7418_v45 }
 0x7e9   : > { %7530 = vst.msk [vmem:[%s16394_s18 + $0x80] sm:$0xff] %vm7513_vm8, %v7497_v19 }
 0x7ea   : > { %v7420_v13 = vpop.permute.xlu1 %7419 }
 0x7eb   : > { %v7498_v4 = vsel %vm1538_vm4, %v4614_v10, %v7420_v13 }
 0x7ec   : > { %7531 = vst.msk [vmem:[%s16394_s18 + $0x88] sm:$0xff] %vm7513_vm8, %v7498_v4  ;;  %v7430_v0 = vpop.permute.xlu0 %7429 }
 0x7ed   : > { %v7503_v23 = vsel %vm1538_vm4, %v4635_v58, %v7430_v0 }
 0x7ee   : > { %7536 = vst.msk [vmem:[%s16394_s18 + $0xb0] sm:$0xff] %vm7513_vm8, %v7503_v23 }
 0x7f0   : > { %v7432_v49 = vpop.permute.xlu1 %7431  ;;  %v7426_v57 = vpop.permute.xlu0 %7425 }
 0x7f1   : > { %v7504_v43 = vsel %vm1538_vm4, %v4638_v15, %v7432_v49  ;;  %v7501_v35 = vsel %vm1538_vm4, %v4627_v5, %v7426_v57 }
 0x7f2   : > { %7537 = vst.msk [vmem:[%s16394_s18 + $0xb8] sm:$0xff] %vm7513_vm8, %v7504_v43  ;;  %7534 = vst.msk [vmem:[%s16394_s18 + $0xa0] sm:$0xff] %vm7513_vm8, %v7501_v35 }
 0x7f4   : > { %v7428_v39 = vpop.permute.xlu1 %7427  ;;  %v7438_v48 = vpop.permute.xlu0 %7437 }
 0x7f5   : > { %v7502_v63 = vsel %vm1538_vm4, %v4630_v42, %v7428_v39  ;;  %v7507_v38 = vsel %vm1538_vm4, %v4651_v40, %v7438_v48 }
 0x7f6   : > { %7535 = vst.msk [vmem:[%s16394_s18 + $0xa8] sm:$0xff] %vm7513_vm8, %v7502_v63  ;;  %7540 = vst.msk [vmem:[%s16394_s18 + $0xd0] sm:$0xff] %vm7513_vm8, %v7507_v38 }
 0x7f8   : > { %v7440_v32 = vpop.permute.xlu1 %7439  ;;  %v7434_v50 = vpop.permute.xlu0 %7433 }
 0x7f9   : > { %v7508_v34 = vsel %vm1538_vm4, %v4654_v24, %v7440_v32  ;;  %v7505_v47 = vsel %vm1538_vm4, %v4643_v41, %v7434_v50 }
 0x7fa   : > { %7541 = vst.msk [vmem:[%s16394_s18 + $0xd8] sm:$0xff] %vm7513_vm8, %v7508_v34  ;;  %7538 = vst.msk [vmem:[%s16394_s18 + $0xc0] sm:$0xff] %vm7513_vm8, %v7505_v47 }
 0x7fc   : > { %v7436_v53 = vpop.permute.xlu1 %7435 }
 0x7fd   : > { %v7506_v20 = vsel %vm1538_vm4, %v4646_v2, %v7436_v53 }
 0x7fe   : > { %7539 = vst.msk [vmem:[%s16394_s18 + $0xc8] sm:$0xff] %vm7513_vm8, %v7506_v20  ;;  %v7442_v14 = vpop.permute.xlu0 %7441 }
 0x7ff   : > { %v7509_v52 = vsel %vm1538_vm4, %v4659_v30, %v7442_v14 }
 0x800   : > { %7542 = vst.msk [vmem:[%s16394_s18 + $0xe0] sm:$0xff] %vm7513_vm8, %v7509_v52 }
 0x802   : > { %v7446_v61 = vpop.permute.xlu0 %7445  ;;  %v7444_v28 = vpop.permute.xlu1 %7443 }
 0x803   : > { %v7511_v31 = vsel %vm1538_vm4, %v4667_v54, %v7446_v61  ;;  %v7510_v18 = vsel %vm1538_vm4, %v4662_v33, %v7444_v28 }
 0x804   : > { %7544 = vst.msk [vmem:[%s16394_s18 + $0xf0] sm:$0xff] %vm7513_vm8, %v7511_v31  ;;  %7543 = vst.msk [vmem:[%s16394_s18 + $0xe8] sm:$0xff] %vm7513_vm8, %v7510_v18 }
 0x806   : > { %v7448_v36 = vpop.permute.xlu1 %7447 }
 0x807   : > { %v7512_v7 = vsel %vm1538_vm4, %v4670_v16, %v7448_v36 }
 0x808   : > { %7545 = vst.msk [vmem:[%s16394_s18 + $0xf8] sm:$0xff] %vm7513_vm8, %v7512_v7 }
 0x809 PF: > { %s25_s25 = sadd.s32 1, %s10618_s25  }
 0x80a   : > { %p22_p2 = scmp.ge.s32.totalorder %s25_s25, 4  }
 0x80c   :  { %24 = sbr.rel (!%p22_p2) target bundleno = 2 (0x2), region = 115 }
 0x811   :  { %7567 = vsyncpa [#allocation3], 1 }
 0x812   :  { %7569 = vsyncpa [#allocation3 + $0x1], 1 }
 0x813   :  { %7570 = vsyncpa [#allocation4], 1 }
 0x814   :  { %7572 = vsyncpa [#allocation4 + $0x1], 1 }

</bundles_post_ra>
